<compile_context>
chip_gen: v5e
topology: v5e:2x2
jax: 0.10.0
libtpu: 0.0.40
codegen_flags: <defaults>
</compile_context>

<pallas_src>
import functools

import jax
import jax.numpy as jnp
from jax import lax
from jax.experimental import pallas as pl
from jax.experimental.pallas import tpu as pltpu


def _cdiv(a, b):
    return (a + b - 1) // b


def _spec(block_shape, index_map, *, buffers=None):
    """BlockSpec helper; buffers=1 single-buffers constant operands."""
    if buffers is None:
        return pl.BlockSpec(block_shape, index_map)
    try:
        return pl.BlockSpec(block_shape, index_map, pipeline_mode=pl.Buffered(buffers))
    except TypeError:  # older jax without pipeline_mode kwarg
        return pl.BlockSpec(block_shape, index_map)


def _vmem_cap_bytes():
    try:
        return int(pltpu.get_tpu_info().vmem_capacity_bytes * 3 // 4)
    except Exception:
        return 48 * 1024 * 1024


# ----------------------------------------------------------------------------
# GroupNorm statistics kernel: banded accumulation of per-(n, group) sum/sumsq
# ----------------------------------------------------------------------------
def _group_stats_kernel(x_ref, c2g_ref, o_ref):
    # x_ref: (1, th, W+2, C) bf16 (zero outside the real HxW window)
    # c2g_ref: (C, G) one-hot channel->group map, o_ref: (1, 2, G) f32 accumulator
    @pl.when(pl.program_id(1) == 0)
    def _init():
        o_ref[...] = jnp.zeros_like(o_ref)

    x = x_ref[0].astype(jnp.float32)                               # (th, Wp2, C)
    s_c = jnp.sum(jnp.sum(x, axis=0), axis=0, keepdims=True)       # (1, C)
    ss_c = jnp.sum(jnp.sum(x * x, axis=0), axis=0, keepdims=True)  # (1, C)
    s_g = jnp.dot(s_c, c2g_ref[...], preferred_element_type=jnp.float32)    # (1, G)
    ss_g = jnp.dot(ss_c, c2g_ref[...], preferred_element_type=jnp.float32)  # (1, G)
    o_ref[...] += jnp.concatenate([s_g, ss_g], axis=0)[None]


def group_stats_pallas(x_full, num_groups, th):
    """x_full: (N, HB, W+2, C) bf16 band layout -> (N, 2, G) [sum, sumsq]."""
    N, HB, Wp2, C = x_full.shape
    nb = HB // th
    G = num_groups
    cg = C // G
    c2g = (jnp.arange(C)[:, None] // cg == jnp.arange(G)[None, :]).astype(jnp.float32)
    return pl.pallas_call(
        _group_stats_kernel,
        out_shape=jax.ShapeDtypeStruct((N, 2, G), jnp.float32),
        grid=(N, nb),
        in_specs=[
            pl.BlockSpec((1, th, Wp2, C), lambda n, b: (n, b, 0, 0)),
            _spec((C, G), lambda n, b: (0, 0), buffers=1),
        ],
        out_specs=pl.BlockSpec((1, 2, G), lambda n, b: (n, 0, 0)),
        compiler_params=pltpu.CompilerParams(
            dimension_semantics=("parallel", "arbitrary")),
    )(x_full, c2g)


def _gn_affine(stats, gamma, beta, H, W, cg, eps):
    """Fold GroupNorm stats + affine into per-(n, channel) scale/shift: x*a + b."""
    cnt = float(H * W * cg)
    mean = stats[:, 0, :] / cnt
    var = stats[:, 1, :] / cnt - mean * mean
    rstd = lax.rsqrt(jnp.maximum(var, 0.0) + eps)
    mean_c = jnp.repeat(mean, cg, axis=1)                          # (N, C)
    rstd_c = jnp.repeat(rstd, cg, axis=1)
    a = rstd_c * gamma[None, :]
    b = beta[None, :] - mean_c * a
    N, C = a.shape
    return (a.reshape(N, 1, C).astype(jnp.float32),
            b.reshape(N, 1, C).astype(jnp.float32))


# ----------------------------------------------------------------------------
# Fused GroupNorm(affine) + SiLU + Conv3x3 (+ fused identity / 1x1-conv skip)
# ----------------------------------------------------------------------------
def _fused_gn_silu_conv_kernel(xt_ref, xm_ref, xb_ref, a_ref, b_ref, w_ref,
                               bias_ref, *rest, th, H, W, skip_mode):
    if skip_mode == "conv":
        xs_ref, ws_ref, o_ref = rest
    elif skip_mode == "identity":
        xs_ref, o_ref = rest
    else:
        (o_ref,) = rest

    b_idx = pl.program_id(1)
    Wp2 = W + 2
    Cin = xm_ref.shape[-1]
    Cout = o_ref.shape[-1]

    # ---- build the (th+2)-row halo slab and apply GN affine + SiLU ---------
    slab = jnp.concatenate([xt_ref[0], xm_ref[0], xb_ref[0]],
                           axis=0).astype(jnp.float32)             # (th+2, Wp2, Cin)
    y = slab * a_ref[...] + b_ref[...]
    y = y * jax.nn.sigmoid(y)                                      # SiLU
    # zero out conv "same" padding *after* normalization (intended-index mask)
    row = lax.broadcasted_iota(jnp.int32, (th + 2, Wp2), 0) + (b_idx * th - 1)
    col = lax.broadcasted_iota(jnp.int32, (th + 2, Wp2), 1) - 1
    valid = ((row >= 0) & (row < H) & (col >= 0) & (col < W)).astype(jnp.float32)
    y = (y * valid[:, :, None]).astype(jnp.bfloat16)

    # ---- 9 shifted matmuls, f32 accumulation on the MXU --------------------
    acc = jnp.zeros((th * W, Cout), jnp.float32)
    for ki in range(3):
        for kj in range(3):
            patch = y[ki:ki + th, kj:kj + W, :].reshape(th * W, Cin)
            acc = acc + jnp.dot(patch, w_ref[ki * 3 + kj],
                                preferred_element_type=jnp.float32)
    acc = acc + bias_ref[...]

    # ---- fused skip connection on the *raw* (un-normalized) input ----------
    if skip_mode == "conv":
        xs3 = xs_ref[0][:, 1:1 + W, :]
        acc = acc + jnp.dot(xs3.reshape(th * W, xs3.shape[-1]), ws_ref[...],
                            preferred_element_type=jnp.float32)
    elif skip_mode == "identity":
        xs3 = xs_ref[0][:, 1:1 + W, :].astype(jnp.float32)
        acc = acc + xs3.reshape(th * W, Cout)

    # ---- write the full (th, W+2, Cout) band: zero pad cols, mask pad rows --
    rr = lax.broadcasted_iota(jnp.int32, (th, W), 0) + b_idx * th
    rmask = (rr < H).astype(jnp.float32)[:, :, None]               # (th, W, 1)
    out3 = acc.reshape(th, W, Cout) * rmask
    zcol = jnp.zeros((th, 1, Cout), jnp.float32)
    out3 = jnp.concatenate([zcol, out3, zcol], axis=1)             # (th, Wp2, Cout)
    o_ref[...] = out3[None].astype(o_ref.dtype)


def fused_gn_silu_conv(x_full, a_aff, b_aff, w_oihw, bias_total, *,
                       H, W, th, out_dtype, skip_full=None, skip_w=None):
    """GN(affine)+SiLU+Conv3x3(+skip) over the band layout (N, HB, W+2, C)."""
    N, HB, Wp2, Cin = x_full.shape
    assert Wp2 == W + 2
    nb = HB // th
    Cout = w_oihw.shape[0]
    w9 = jnp.transpose(w_oihw, (2, 3, 1, 0)).reshape(9, Cin, Cout).astype(jnp.bfloat16)
    bias2 = bias_total.astype(jnp.float32).reshape(1, Cout)

    if skip_full is None:
        skip_mode = "none"
    elif skip_w is None:
        skip_mode = "identity"
    else:
        skip_mode = "conv"

    in_specs = [
        # 1-row top halo, main band, 1-row bottom halo (clamped; masked in-kernel)
        pl.BlockSpec((1, 1, Wp2, Cin),
                     lambda n, b: (n, jnp.maximum(b * th - 1, 0), 0, 0)),
        pl.BlockSpec((1, th, Wp2, Cin), lambda n, b: (n, b, 0, 0)),
        pl.BlockSpec((1, 1, Wp2, Cin),
                     lambda n, b: (n, jnp.minimum((b + 1) * th, HB - 1), 0, 0)),
        pl.BlockSpec((1, 1, Cin), lambda n, b: (n, 0, 0)),          # GN scale
        pl.BlockSpec((1, 1, Cin), lambda n, b: (n, 0, 0)),          # GN shift
        _spec((9, Cin, Cout), lambda n, b: (0, 0, 0), buffers=1),   # conv weights
        _spec((1, Cout), lambda n, b: (0, 0), buffers=1),           # bias
    ]
    args = [x_full, x_full, x_full, a_aff, b_aff, w9, bias2]
    if skip_mode != "none":
        Cx = skip_full.shape[-1]
        in_specs.append(pl.BlockSpec((1, th, Wp2, Cx), lambda n, b: (n, b, 0, 0)))
        args.append(skip_full)
        if skip_mode == "conv":
            in_specs.append(_spec((Cx, Cout), lambda n, b: (0, 0), buffers=1))
            args.append(skip_w.astype(jnp.bfloat16))

    kernel = functools.partial(_fused_gn_silu_conv_kernel,
                               th=th, H=H, W=W, skip_mode=skip_mode)

    # Gen-aware VMEM budget: double-buffered bands + resident weights + f32 temps.
    out_isz = jnp.dtype(out_dtype).itemsize
    cx = skip_full.shape[-1] if skip_mode != "none" else 0
    bytes_band = th * Wp2 * Cin * 2
    bytes_out = th * Wp2 * Cout * out_isz
    bytes_skip = th * Wp2 * cx * 2
    bytes_w = 9 * Cin * Cout * 2 + (cx * Cout * 2 if skip_mode == "conv" else 0)
    bytes_tmp = (th + 2) * Wp2 * Cin * 6 + th * W * Cout * 8 + 2 * th * W * Cin * 2
    est = 2 * bytes_band + 2 * bytes_out + 2 * bytes_skip + bytes_w + bytes_tmp + (1 << 20)
    vmem_limit = int(min(max(2 * est, 32 * 1024 * 1024), _vmem_cap_bytes()))

    flops = 2 * N * nb * th * W * Cin * Cout * 9
    if skip_mode == "conv":
        flops += 2 * N * nb * th * W * cx * Cout
    bytes_accessed = (x_full.size * 2 + w9.size * 2
                      + (skip_full.size * 2 if skip_mode != "none" else 0)
                      + N * HB * Wp2 * Cout * out_isz)
    cost = pl.CostEstimate(flops=int(flops),
                           transcendentals=int(N * nb * (th + 2) * Wp2 * Cin),
                           bytes_accessed=int(bytes_accessed))

    return pl.pallas_call(
        kernel,
        out_shape=jax.ShapeDtypeStruct((N, HB, Wp2, Cout), out_dtype),
        grid=(N, nb),
        in_specs=in_specs,
        out_specs=pl.BlockSpec((1, th, Wp2, Cout), lambda n, b: (n, b, 0, 0)),
        compiler_params=pltpu.CompilerParams(
            dimension_semantics=("parallel", "parallel"),
            vmem_limit_bytes=vmem_limit,
        ),
        cost_estimate=cost,
    )(*args)


# ----------------------------------------------------------------------------
# ResBlock forward
# ----------------------------------------------------------------------------
def resblock_pallas(x_nchw, params, *, num_groups=32, eps=1e-5, th=8):
    N, Cin, H, W = x_nchw.shape
    Cout = params["conv1_w"].shape[0]
    assert W % 8 == 0, "W must be a multiple of 8 (sublane-friendly reshape)"
    nb = _cdiv(H, th)
    HB = nb * th

    # NCHW -> NHWC bf16, zero-padded into the shared band layout
    # (row i == activation row i, col j+1 == activation col j).
    x_nhwc = jnp.transpose(x_nchw, (0, 2, 3, 1)).astype(jnp.bfloat16)
    x_full = jnp.pad(x_nhwc, ((0, 0), (0, HB - H), (1, 1), (0, 0)))

    cg1 = Cin // num_groups
    cg2 = Cout // num_groups

    # GN1 stats + folded affine, then fused GN1+SiLU+Conv1 (bf16 intermediate).
    stats1 = group_stats_pallas(x_full, num_groups, th)
    a1, b1 = _gn_affine(stats1, params["gn1_g"], params["gn1_b"], H, W, cg1, eps)
    h1_full = fused_gn_silu_conv(x_full, a1, b1, params["conv1_w"], params["conv1_b"],
                                 H=H, W=W, th=th, out_dtype=jnp.bfloat16)

    # GN2 stats + folded affine, then fused GN2+SiLU+Conv2 with fused skip.
    stats2 = group_stats_pallas(h1_full, num_groups, th)
    a2, b2 = _gn_affine(stats2, params["gn2_g"], params["gn2_b"], H, W, cg2, eps)

    if "skip_w" in params:                                         # 1x1 skip conv fused into conv2
        skip_w = jnp.transpose(params["skip_w"][:, :, 0, 0])       # (Cin, Cout)
        bias_total = params["conv2_b"] + params["skip_b"]
        out_full = fused_gn_silu_conv(h1_full, a2, b2, params["conv2_w"], bias_total,
                                      H=H, W=W, th=th, out_dtype=jnp.float32,
                                      skip_full=x_full, skip_w=skip_w)
    else:                                                          # identity skip fused into conv2
        out_full = fused_gn_silu_conv(h1_full, a2, b2, params["conv2_w"],
                                      params["conv2_b"],
                                      H=H, W=W, th=th, out_dtype=jnp.float32,
                                      skip_full=x_full, skip_w=None)

    out = out_full[:, :H, 1:1 + W, :]
    return jnp.transpose(out, (0, 3, 1, 2))                        # NCHW


# ----------------------------------------------------------------------------
# Pure-JAX reference with matching numerics (bf16 storage, f32 accumulation)
# ----------------------------------------------------------------------------
def _resblock_ref(x_nchw, params, groups, eps):
    x = jnp.transpose(x_nchw, (0, 2, 3, 1)).astype(jnp.bfloat16)

    def gn_silu(v, gamma, beta):
        n, h, w, c = v.shape
        cg = c // groups
        vf = v.astype(jnp.float32).reshape(n, h * w, groups, cg)
        mean = jnp.mean(vf, axis=(1, 3), keepdims=True)
        var = jnp.mean(vf * vf, axis=(1, 3), keepdims=True) - mean * mean
        y = (vf - mean) * lax.rsqrt(var + eps)
        y = y.reshape(n, h, w, c) * gamma.reshape(1, 1, 1, c) + beta.reshape(1, 1, 1, c)
        return y * jax.nn.sigmoid(y)

    def conv(v, w, b):
        k = w.shape[2]
        pad = (k - 1) // 2
        y = lax.conv_general_dilated(
            v.astype(jnp.bfloat16), w.astype(jnp.bfloat16),
            window_strides=(1, 1), padding=((pad, pad), (pad, pad)),
            dimension_numbers=("NHWC", "OIHW", "NHWC"),
            preferred_element_type=jnp.float32)
        return y + b.reshape(1, 1, 1, -1).astype(jnp.float32)

    h = conv(gn_silu(x, params["gn1_g"], params["gn1_b"]),
             params["conv1_w"], params["conv1_b"])
    h = h.astype(jnp.bfloat16)                                     # bf16 intermediate
    h = conv(gn_silu(h, params["gn2_g"], params["gn2_b"]),
             params["conv2_w"], params["conv2_b"])
    if "skip_w" in params:
        skip = conv(x, params["skip_w"], params["skip_b"])
    else:
        skip = x.astype(jnp.float32)
    return jnp.transpose(skip + h, (0, 3, 1, 2))


if __name__ == "__main__":
    key = jax.random.PRNGKey(0)
    ks = jax.random.split(key, 8)
    G, EPS = 32, 1e-5

    def conv_init(kw_, kb_, cout, cin, k):
        fan_in = cin * k * k
        bound = 1.0 / (fan_in ** 0.5)
        w = jax.random.uniform(kw_, (cout, cin, k, k), jnp.float32, -bound, bound)
        b = jax.random.uniform(kb_, (cout,), jnp.float32, -bound, bound)
        return w, b

    def make_params(keys, cin, cout, with_skip):
        conv1_w, conv1_b = conv_init(keys[0], keys[1], cout, cin, 3)
        conv2_w, conv2_b = conv_init(keys[2], keys[3], cout, cout, 3)
        p = {
            "gn1_g": 1.0 + 0.1 * jax.random.normal(keys[4], (cin,), jnp.float32),
            "gn1_b": 0.1 * jax.random.normal(keys[5], (cin,), jnp.float32),
            "conv1_w": conv1_w, "conv1_b": conv1_b,
            "gn2_g": 1.0 + 0.1 * jax.random.normal(keys[6], (cout,), jnp.float32),
            "gn2_b": 0.1 * jax.random.normal(keys[7], (cout,), jnp.float32),
            "conv2_w": conv2_w, "conv2_b": conv2_b,
        }
        if with_skip:
            p["skip_w"], p["skip_b"] = conv_init(keys[8], keys[9], cout, cin, 1)
        return p

    # Case 1: in_ch != out_ch -> 1x1 skip conv fused into conv2 (multi-band grid).
    N, Cin, Cout, H, W = 2, 32, 64, 16, 16          # GroupNorm(32, C) needs C % 32 == 0
    x1 = jax.random.normal(ks[0], (N, Cin, H, W), dtype=jnp.float32)
    p1 = make_params(jax.random.split(ks[1], 10), Cin, Cout, with_skip=True)
    fn = jax.jit(functools.partial(resblock_pallas, num_groups=G, eps=EPS, th=8))
    out1 = jax.block_until_ready(fn(x1, p1))
    ref1 = jax.block_until_ready(_resblock_ref(x1, p1, G, EPS))
    assert out1.shape == (N, Cout, H, W), out1.shape
    err1 = float(jnp.max(jnp.abs(out1 - ref1)))
    assert jnp.allclose(out1, ref1, atol=2e-2, rtol=2e-2), err1

    # Case 2: in_ch == out_ch -> identity skip; ragged H (not a multiple of th).
    N2, C2, H2, W2 = 1, 32, 12, 16
    x2 = jax.random.normal(ks[2], (N2, C2, H2, W2), dtype=jnp.float32)
    p2 = make_params(jax.random.split(ks[3], 10), C2, C2, with_skip=False)
    out2 = jax.block_until_ready(fn(x2, p2))
    ref2 = jax.block_until_ready(_resblock_ref(x2, p2, G, EPS))
    assert out2.shape == (N2, C2, H2, W2), out2.shape
    err2 = float(jnp.max(jnp.abs(out2 - ref2)))
    assert jnp.allclose(out2, ref2, atol=2e-2, rtol=2e-2), err2

    print("KERNEL_OK")
</pallas_src>

<mosaic_0001>
module attributes {stable_mosaic.version = 11 : i64} {
  func.func @_fused_gn_silu_conv_kernel(%arg0: i32, %arg1: i32, %arg2: memref<1x1x18x32xbf16, #tpu.memory_space<vmem>>, %arg3: memref<1x8x18x32xbf16, #tpu.memory_space<vmem>>, %arg4: memref<1x1x18x32xbf16, #tpu.memory_space<vmem>>, %arg5: memref<1x1x32xf32, #tpu.memory_space<vmem>>, %arg6: memref<1x1x32xf32, #tpu.memory_space<vmem>>, %arg7: memref<9x32x64xbf16, #tpu.memory_space<vmem>>, %arg8: memref<1x64xf32, #tpu.memory_space<vmem>>, %arg9: memref<1x8x18x64xbf16, #tpu.memory_space<vmem>>) attributes {dimension_semantics = [#tpu.dimension_semantics<parallel>, #tpu.dimension_semantics<parallel>], iteration_bounds = array<i64: 2, 2>, scalar_prefetch = 0 : i64, scratch_operands = 0 : i64, tpu.core_type = #tpu.core_type<tc>, window_params = [{transform_indices = @transform_0, window_bounds = array<i64: 1, 1, 18, 32>}, {transform_indices = @transform_1, window_bounds = array<i64: 1, 8, 18, 32>}, {transform_indices = @transform_2, window_bounds = array<i64: 1, 1, 18, 32>}, {transform_indices = @transform_3, window_bounds = array<i64: 1, 1, 32>}, {transform_indices = @transform_4, window_bounds = array<i64: 1, 1, 32>}, {pipeline_mode = #tpu.pipeline_mode<synchronous>, transform_indices = @transform_5, window_bounds = array<i64: 9, 32, 64>}, {pipeline_mode = #tpu.pipeline_mode<synchronous>, transform_indices = @transform_6, window_bounds = array<i64: 1, 64>}, {transform_indices = @transform_7, window_bounds = array<i64: 1, 8, 18, 64>}]} {
    %c0 = arith.constant 0 : index
    %c0_0 = arith.constant 0 : index
    %c0_1 = arith.constant 0 : index
    %c0_2 = arith.constant 0 : index
    %0 = vector.load %arg2[%c0, %c0_0, %c0_1, %c0_2] : memref<1x1x18x32xbf16, #tpu.memory_space<vmem>>, vector<1x1x18x32xbf16>
    %1 = vector.shape_cast %0 : vector<1x1x18x32xbf16> to vector<1x18x32xbf16>
    %c0_3 = arith.constant 0 : index
    %c0_4 = arith.constant 0 : index
    %c0_5 = arith.constant 0 : index
    %c0_6 = arith.constant 0 : index
    %2 = vector.load %arg3[%c0_3, %c0_4, %c0_5, %c0_6] : memref<1x8x18x32xbf16, #tpu.memory_space<vmem>>, vector<1x8x18x32xbf16>
    %3 = vector.shape_cast %2 : vector<1x8x18x32xbf16> to vector<8x18x32xbf16>
    %c0_7 = arith.constant 0 : index
    %c0_8 = arith.constant 0 : index
    %c0_9 = arith.constant 0 : index
    %c0_10 = arith.constant 0 : index
    %4 = vector.load %arg4[%c0_7, %c0_8, %c0_9, %c0_10] : memref<1x1x18x32xbf16, #tpu.memory_space<vmem>>, vector<1x1x18x32xbf16>
    %5 = vector.shape_cast %4 : vector<1x1x18x32xbf16> to vector<1x18x32xbf16>
    %6 = tpu.concatenate %1, %3, %5 in 0 : vector<1x18x32xbf16>, vector<8x18x32xbf16>, vector<1x18x32xbf16> -> vector<10x18x32xbf16>
    %7 = arith.extf %6 : vector<10x18x32xbf16> to vector<10x18x32xf32>
    %c0_11 = arith.constant 0 : index
    %c0_12 = arith.constant 0 : index
    %c0_13 = arith.constant 0 : index
    %8 = vector.load %arg5[%c0_11, %c0_12, %c0_13] : memref<1x1x32xf32, #tpu.memory_space<vmem>>, vector<1x1x32xf32>
    %9 = vector.broadcast %8 : vector<1x1x32xf32> to vector<10x18x32xf32>
    %10 = arith.mulf %7, %9 : vector<10x18x32xf32>
    %c0_14 = arith.constant 0 : index
    %c0_15 = arith.constant 0 : index
    %c0_16 = arith.constant 0 : index
    %11 = vector.load %arg6[%c0_14, %c0_15, %c0_16] : memref<1x1x32xf32, #tpu.memory_space<vmem>>, vector<1x1x32xf32>
    %12 = vector.broadcast %11 : vector<1x1x32xf32> to vector<10x18x32xf32>
    %13 = arith.addf %10, %12 : vector<10x18x32xf32>
    %14 = arith.negf %13 : vector<10x18x32xf32>
    %15 = math.exp %14 : vector<10x18x32xf32>
    %cst = arith.constant 1.000000e+00 : f32
    %16 = vector.broadcast %cst : f32 to vector<10x18x32xf32>
    %17 = arith.addf %16, %15 : vector<10x18x32xf32>
    %18 = arith.divf %16, %17 : vector<10x18x32xf32>
    %19 = arith.mulf %13, %18 : vector<10x18x32xf32>
    %20 = tpu.iota {dimensions = array<i32: 0>} : vector<10x18xi32>
    %c8_i32 = arith.constant 8 : i32
    %21 = arith.muli %arg1, %c8_i32 : i32
    %c1_i32 = arith.constant 1 : i32
    %22 = arith.subi %21, %c1_i32 : i32
    %23 = vector.broadcast %22 : i32 to vector<10x18xi32>
    %24 = arith.addi %20, %23 : vector<10x18xi32>
    %25 = tpu.iota {dimensions = array<i32: 1>} : vector<10x18xi32>
    %c1_i32_17 = arith.constant 1 : i32
    %26 = vector.broadcast %c1_i32_17 : i32 to vector<10x18xi32>
    %27 = arith.subi %25, %26 : vector<10x18xi32>
    %c0_i32 = arith.constant 0 : i32
    %28 = vector.broadcast %c0_i32 : i32 to vector<10x18xi32>
    %29 = arith.cmpi sge, %24, %28 : vector<10x18xi32>
    %c16_i32 = arith.constant 16 : i32
    %30 = vector.broadcast %c16_i32 : i32 to vector<10x18xi32>
    %31 = arith.cmpi slt, %24, %30 : vector<10x18xi32>
    %32 = arith.andi %29, %31 : vector<10x18xi1>
    %c0_i32_18 = arith.constant 0 : i32
    %33 = vector.broadcast %c0_i32_18 : i32 to vector<10x18xi32>
    %34 = arith.cmpi sge, %27, %33 : vector<10x18xi32>
    %35 = arith.andi %32, %34 : vector<10x18xi1>
    %c16_i32_19 = arith.constant 16 : i32
    %36 = vector.broadcast %c16_i32_19 : i32 to vector<10x18xi32>
    %37 = arith.cmpi slt, %27, %36 : vector<10x18xi32>
    %38 = arith.andi %35, %37 : vector<10x18xi1>
    %39 = arith.extui %38 : vector<10x18xi1> to vector<10x18xi32>
    %40 = arith.sitofp %39 : vector<10x18xi32> to vector<10x18xf32>
    %41 = vector.shape_cast %40 : vector<10x18xf32> to vector<10x18x1xf32>
    %42 = vector.broadcast %41 : vector<10x18x1xf32> to vector<10x18x32xf32>
    %43 = arith.mulf %19, %42 : vector<10x18x32xf32>
    %44 = arith.truncf %43 : vector<10x18x32xf32> to vector<10x18x32xbf16>
    %cst_20 = arith.constant 0.000000e+00 : f32
    %45 = vector.broadcast %cst_20 : f32 to vector<128x64xf32>
    %46 = vector.extract_strided_slice %44 {offsets = [0, 0, 0], sizes = [8, 16, 32], strides = [1, 1, 1]} : vector<10x18x32xbf16> to vector<8x16x32xbf16>
    %47 = vector.shape_cast %46 : vector<8x16x32xbf16> to vector<128x32xbf16>
    %c0_21 = arith.constant 0 : index
    %c0_22 = arith.constant 0 : index
    %c0_23 = arith.constant 0 : index
    %48 = vector.load %arg7[%c0_21, %c0_22, %c0_23] : memref<9x32x64xbf16, #tpu.memory_space<vmem>>, vector<1x32x64xbf16>
    %49 = vector.shape_cast %48 : vector<1x32x64xbf16> to vector<32x64xbf16>
    %cst_24 = arith.constant dense<0.000000e+00> : vector<128x64xf32>
    %50 = tpu.matmul %47, %49, %cst_24 {dimension_numbers = #tpu.dot_dimension_numbers<[1], [0], [0], [1], [0, 0, 1, 1], [], []>} : vector<128x32xbf16>, vector<32x64xbf16>, vector<128x64xf32> -> vector<128x64xf32>
    %51 = arith.addf %45, %50 : vector<128x64xf32>
    %52 = vector.extract_strided_slice %44 {offsets = [0, 1, 0], sizes = [8, 16, 32], strides = [1, 1, 1]} : vector<10x18x32xbf16> to vector<8x16x32xbf16>
    %53 = vector.shape_cast %52 : vector<8x16x32xbf16> to vector<128x32xbf16>
    %c1 = arith.constant 1 : index
    %c0_25 = arith.constant 0 : index
    %c0_26 = arith.constant 0 : index
    %54 = vector.load %arg7[%c1, %c0_25, %c0_26] : memref<9x32x64xbf16, #tpu.memory_space<vmem>>, vector<1x32x64xbf16>
    %55 = vector.shape_cast %54 : vector<1x32x64xbf16> to vector<32x64xbf16>
    %cst_27 = arith.constant dense<0.000000e+00> : vector<128x64xf32>
    %56 = tpu.matmul %53, %55, %cst_27 {dimension_numbers = #tpu.dot_dimension_numbers<[1], [0], [0], [1], [0, 0, 1, 1], [], []>} : vector<128x32xbf16>, vector<32x64xbf16>, vector<128x64xf32> -> vector<128x64xf32>
    %57 = arith.addf %51, %56 : vector<128x64xf32>
    %58 = vector.extract_strided_slice %44 {offsets = [0, 2, 0], sizes = [8, 16, 32], strides = [1, 1, 1]} : vector<10x18x32xbf16> to vector<8x16x32xbf16>
    %59 = vector.shape_cast %58 : vector<8x16x32xbf16> to vector<128x32xbf16>
    %c2 = arith.constant 2 : index
    %c0_28 = arith.constant 0 : index
    %c0_29 = arith.constant 0 : index
    %60 = vector.load %arg7[%c2, %c0_28, %c0_29] : memref<9x32x64xbf16, #tpu.memory_space<vmem>>, vector<1x32x64xbf16>
    %61 = vector.shape_cast %60 : vector<1x32x64xbf16> to vector<32x64xbf16>
    %cst_30 = arith.constant dense<0.000000e+00> : vector<128x64xf32>
    %62 = tpu.matmul %59, %61, %cst_30 {dimension_numbers = #tpu.dot_dimension_numbers<[1], [0], [0], [1], [0, 0, 1, 1], [], []>} : vector<128x32xbf16>, vector<32x64xbf16>, vector<128x64xf32> -> vector<128x64xf32>
    %63 = arith.addf %57, %62 : vector<128x64xf32>
    %64 = vector.extract_strided_slice %44 {offsets = [1, 0, 0], sizes = [8, 16, 32], strides = [1, 1, 1]} : vector<10x18x32xbf16> to vector<8x16x32xbf16>
    %65 = vector.shape_cast %64 : vector<8x16x32xbf16> to vector<128x32xbf16>
    %c3 = arith.constant 3 : index
    %c0_31 = arith.constant 0 : index
    %c0_32 = arith.constant 0 : index
    %66 = vector.load %arg7[%c3, %c0_31, %c0_32] : memref<9x32x64xbf16, #tpu.memory_space<vmem>>, vector<1x32x64xbf16>
    %67 = vector.shape_cast %66 : vector<1x32x64xbf16> to vector<32x64xbf16>
    %cst_33 = arith.constant dense<0.000000e+00> : vector<128x64xf32>
    %68 = tpu.matmul %65, %67, %cst_33 {dimension_numbers = #tpu.dot_dimension_numbers<[1], [0], [0], [1], [0, 0, 1, 1], [], []>} : vector<128x32xbf16>, vector<32x64xbf16>, vector<128x64xf32> -> vector<128x64xf32>
    %69 = arith.addf %63, %68 : vector<128x64xf32>
    %70 = vector.extract_strided_slice %44 {offsets = [1, 1, 0], sizes = [8, 16, 32], strides = [1, 1, 1]} : vector<10x18x32xbf16> to vector<8x16x32xbf16>
    %71 = vector.shape_cast %70 : vector<8x16x32xbf16> to vector<128x32xbf16>
    %c4 = arith.constant 4 : index
    %c0_34 = arith.constant 0 : index
    %c0_35 = arith.constant 0 : index
    %72 = vector.load %arg7[%c4, %c0_34, %c0_35] : memref<9x32x64xbf16, #tpu.memory_space<vmem>>, vector<1x32x64xbf16>
    %73 = vector.shape_cast %72 : vector<1x32x64xbf16> to vector<32x64xbf16>
    %cst_36 = arith.constant dense<0.000000e+00> : vector<128x64xf32>
    %74 = tpu.matmul %71, %73, %cst_36 {dimension_numbers = #tpu.dot_dimension_numbers<[1], [0], [0], [1], [0, 0, 1, 1], [], []>} : vector<128x32xbf16>, vector<32x64xbf16>, vector<128x64xf32> -> vector<128x64xf32>
    %75 = arith.addf %69, %74 : vector<128x64xf32>
    %76 = vector.extract_strided_slice %44 {offsets = [1, 2, 0], sizes = [8, 16, 32], strides = [1, 1, 1]} : vector<10x18x32xbf16> to vector<8x16x32xbf16>
    %77 = vector.shape_cast %76 : vector<8x16x32xbf16> to vector<128x32xbf16>
    %c5 = arith.constant 5 : index
    %c0_37 = arith.constant 0 : index
    %c0_38 = arith.constant 0 : index
    %78 = vector.load %arg7[%c5, %c0_37, %c0_38] : memref<9x32x64xbf16, #tpu.memory_space<vmem>>, vector<1x32x64xbf16>
    %79 = vector.shape_cast %78 : vector<1x32x64xbf16> to vector<32x64xbf16>
    %cst_39 = arith.constant dense<0.000000e+00> : vector<128x64xf32>
    %80 = tpu.matmul %77, %79, %cst_39 {dimension_numbers = #tpu.dot_dimension_numbers<[1], [0], [0], [1], [0, 0, 1, 1], [], []>} : vector<128x32xbf16>, vector<32x64xbf16>, vector<128x64xf32> -> vector<128x64xf32>
    %81 = arith.addf %75, %80 : vector<128x64xf32>
    %82 = vector.extract_strided_slice %44 {offsets = [2, 0, 0], sizes = [8, 16, 32], strides = [1, 1, 1]} : vector<10x18x32xbf16> to vector<8x16x32xbf16>
    %83 = vector.shape_cast %82 : vector<8x16x32xbf16> to vector<128x32xbf16>
    %c6 = arith.constant 6 : index
    %c0_40 = arith.constant 0 : index
    %c0_41 = arith.constant 0 : index
    %84 = vector.load %arg7[%c6, %c0_40, %c0_41] : memref<9x32x64xbf16, #tpu.memory_space<vmem>>, vector<1x32x64xbf16>
    %85 = vector.shape_cast %84 : vector<1x32x64xbf16> to vector<32x64xbf16>
    %cst_42 = arith.constant dense<0.000000e+00> : vector<128x64xf32>
    %86 = tpu.matmul %83, %85, %cst_42 {dimension_numbers = #tpu.dot_dimension_numbers<[1], [0], [0], [1], [0, 0, 1, 1], [], []>} : vector<128x32xbf16>, vector<32x64xbf16>, vector<128x64xf32> -> vector<128x64xf32>
    %87 = arith.addf %81, %86 : vector<128x64xf32>
    %88 = vector.extract_strided_slice %44 {offsets = [2, 1, 0], sizes = [8, 16, 32], strides = [1, 1, 1]} : vector<10x18x32xbf16> to vector<8x16x32xbf16>
    %89 = vector.shape_cast %88 : vector<8x16x32xbf16> to vector<128x32xbf16>
    %c7 = arith.constant 7 : index
    %c0_43 = arith.constant 0 : index
    %c0_44 = arith.constant 0 : index
    %90 = vector.load %arg7[%c7, %c0_43, %c0_44] : memref<9x32x64xbf16, #tpu.memory_space<vmem>>, vector<1x32x64xbf16>
    %91 = vector.shape_cast %90 : vector<1x32x64xbf16> to vector<32x64xbf16>
    %cst_45 = arith.constant dense<0.000000e+00> : vector<128x64xf32>
    %92 = tpu.matmul %89, %91, %cst_45 {dimension_numbers = #tpu.dot_dimension_numbers<[1], [0], [0], [1], [0, 0, 1, 1], [], []>} : vector<128x32xbf16>, vector<32x64xbf16>, vector<128x64xf32> -> vector<128x64xf32>
    %93 = arith.addf %87, %92 : vector<128x64xf32>
    %94 = vector.extract_strided_slice %44 {offsets = [2, 2, 0], sizes = [8, 16, 32], strides = [1, 1, 1]} : vector<10x18x32xbf16> to vector<8x16x32xbf16>
    %95 = vector.shape_cast %94 : vector<8x16x32xbf16> to vector<128x32xbf16>
    %c8 = arith.constant 8 : index
    %c0_46 = arith.constant 0 : index
    %c0_47 = arith.constant 0 : index
    %96 = vector.load %arg7[%c8, %c0_46, %c0_47] : memref<9x32x64xbf16, #tpu.memory_space<vmem>>, vector<1x32x64xbf16>
    %97 = vector.shape_cast %96 : vector<1x32x64xbf16> to vector<32x64xbf16>
    %cst_48 = arith.constant dense<0.000000e+00> : vector<128x64xf32>
    %98 = tpu.matmul %95, %97, %cst_48 {dimension_numbers = #tpu.dot_dimension_numbers<[1], [0], [0], [1], [0, 0, 1, 1], [], []>} : vector<128x32xbf16>, vector<32x64xbf16>, vector<128x64xf32> -> vector<128x64xf32>
    %99 = arith.addf %93, %98 : vector<128x64xf32>
    %c0_49 = arith.constant 0 : index
    %c0_50 = arith.constant 0 : index
    %100 = vector.load %arg8[%c0_49, %c0_50] : memref<1x64xf32, #tpu.memory_space<vmem>>, vector<1x64xf32>
    %101 = vector.broadcast %100 : vector<1x64xf32> to vector<128x64xf32>
    %102 = arith.addf %99, %101 : vector<128x64xf32>
    %103 = tpu.iota {dimensions = array<i32: 0>} : vector<8x16xi32>
    %c8_i32_51 = arith.constant 8 : i32
    %104 = arith.muli %arg1, %c8_i32_51 : i32
    %105 = vector.broadcast %104 : i32 to vector<8x16xi32>
    %106 = arith.addi %103, %105 : vector<8x16xi32>
    %c16_i32_52 = arith.constant 16 : i32
    %107 = vector.broadcast %c16_i32_52 : i32 to vector<8x16xi32>
    %108 = arith.cmpi slt, %106, %107 : vector<8x16xi32>
    %109 = arith.extui %108 : vector<8x16xi1> to vector<8x16xi32>
    %110 = arith.sitofp %109 : vector<8x16xi32> to vector<8x16xf32>
    %111 = vector.shape_cast %110 : vector<8x16xf32> to vector<8x16x1xf32>
    %112 = vector.shape_cast %102 : vector<128x64xf32> to vector<8x16x64xf32>
    %113 = vector.broadcast %111 : vector<8x16x1xf32> to vector<8x16x64xf32>
    %114 = arith.mulf %112, %113 : vector<8x16x64xf32>
    %cst_53 = arith.constant 0.000000e+00 : f32
    %115 = vector.broadcast %cst_53 : f32 to vector<8x1x64xf32>
    %116 = tpu.concatenate %115, %114, %115 in 1 : vector<8x1x64xf32>, vector<8x16x64xf32>, vector<8x1x64xf32> -> vector<8x18x64xf32>
    %117 = vector.shape_cast %116 : vector<8x18x64xf32> to vector<1x8x18x64xf32>
    %118 = arith.truncf %117 : vector<1x8x18x64xf32> to vector<1x8x18x64xbf16>
    %c0_54 = arith.constant 0 : index
    %c0_55 = arith.constant 0 : index
    %c0_56 = arith.constant 0 : index
    %c0_57 = arith.constant 0 : index
    %119 = vector.load %arg9[%c0_54, %c0_55, %c0_56, %c0_57] : memref<1x8x18x64xbf16, #tpu.memory_space<vmem>>, vector<1x8x18x64xbf16>
    tpu.vector_store %arg9[%c0_54, %c0_55, %c0_56, %c0_57], %118 {strides = array<i32>} : memref<1x8x18x64xbf16, #tpu.memory_space<vmem>>, vector<1x8x18x64xbf16>,
    return
  }
  func.func @transform_0(%arg0: i32, %arg1: i32) -> (i32, i32, i32, i32) {
    %c8_i32 = arith.constant 8 : i32
    %0 = arith.muli %arg1, %c8_i32 : i32
    %c1_i32 = arith.constant 1 : i32
    %1 = arith.subi %0, %c1_i32 : i32
    %c0_i32 = arith.constant 0 : i32
    %2 = arith.maxsi %1, %c0_i32 : i32
    %c0_i32_0 = arith.constant 0 : i32
    %c0_i32_1 = arith.constant 0 : i32
    %c0_i32_2 = arith.constant 0 : i32
    return %arg0, %2, %c0_i32_0, %c0_i32_1 : i32, i32, i32, i32
  }
  func.func @transform_1(%arg0: i32, %arg1: i32) -> (i32, i32, i32, i32) {
    %c0_i32 = arith.constant 0 : i32
    %c0_i32_0 = arith.constant 0 : i32
    %c0_i32_1 = arith.constant 0 : i32
    return %arg0, %arg1, %c0_i32, %c0_i32_0 : i32, i32, i32, i32
  }
  func.func @transform_2(%arg0: i32, %arg1: i32) -> (i32, i32, i32, i32) {
    %c1_i32 = arith.constant 1 : i32
    %0 = arith.addi %arg1, %c1_i32 : i32
    %c8_i32 = arith.constant 8 : i32
    %1 = arith.muli %0, %c8_i32 : i32
    %c15_i32 = arith.constant 15 : i32
    %2 = arith.minsi %1, %c15_i32 : i32
    %c0_i32 = arith.constant 0 : i32
    %c0_i32_0 = arith.constant 0 : i32
    %c0_i32_1 = arith.constant 0 : i32
    return %arg0, %2, %c0_i32, %c0_i32_0 : i32, i32, i32, i32
  }
  func.func @transform_3(%arg0: i32, %arg1: i32) -> (i32, i32, i32) {
    %c0_i32 = arith.constant 0 : i32
    %c0_i32_0 = arith.constant 0 : i32
    %c0_i32_1 = arith.constant 0 : i32
    return %arg0, %c0_i32, %c0_i32_0 : i32, i32, i32
  }
  func.func @transform_4(%arg0: i32, %arg1: i32) -> (i32, i32, i32) {
    %c0_i32 = arith.constant 0 : i32
    %c0_i32_0 = arith.constant 0 : i32
    %c0_i32_1 = arith.constant 0 : i32
    return %arg0, %c0_i32, %c0_i32_0 : i32, i32, i32
  }
  func.func @transform_5(%arg0: i32, %arg1: i32) -> (i32, i32, i32) {
    %c0_i32 = arith.constant 0 : i32
    %c0_i32_0 = arith.constant 0 : i32
    %c0_i32_1 = arith.constant 0 : i32
    %c0_i32_2 = arith.constant 0 : i32
    return %c0_i32, %c0_i32_0, %c0_i32_1 : i32, i32, i32
  }
  func.func @transform_6(%arg0: i32, %arg1: i32) -> (i32, i32) {
    %c0_i32 = arith.constant 0 : i32
    %c0_i32_0 = arith.constant 0 : i32
    %c0_i32_1 = arith.constant 0 : i32
    return %c0_i32, %c0_i32_0 : i32, i32
  }
  func.func @transform_7(%arg0: i32, %arg1: i32) -> (i32, i32, i32, i32) {
    %c0_i32 = arith.constant 0 : i32
    %c0_i32_0 = arith.constant 0 : i32
    %c0_i32_1 = arith.constant 0 : i32
    return %arg0, %arg1, %c0_i32, %c0_i32_0 : i32, i32, i32, i32
  }
}

module attributes {stable_mosaic.version = 11 : i64} {
  func.func @_group_stats_kernel(%arg0: i32, %arg1: i32, %arg2: memref<1x8x18x32xbf16, #tpu.memory_space<vmem>>, %arg3: memref<32x32xf32, #tpu.memory_space<vmem>>, %arg4: memref<1x2x32xf32, #tpu.memory_space<vmem>>) attributes {dimension_semantics = [#tpu.dimension_semantics<parallel>, #tpu.dimension_semantics<arbitrary>], iteration_bounds = array<i64: 2, 2>, scalar_prefetch = 0 : i64, scratch_operands = 0 : i64, tpu.core_type = #tpu.core_type<tc>, window_params = [{transform_indices = @transform_0, window_bounds = array<i64: 1, 8, 18, 32>}, {pipeline_mode = #tpu.pipeline_mode<synchronous>, transform_indices = @transform_1, window_bounds = array<i64: 32, 32>}, {transform_indices = @transform_2, window_bounds = array<i64: 1, 2, 32>}]} {
    %c0_i32 = arith.constant 0 : i32
    %0 = arith.cmpi eq, %arg1, %c0_i32 : i32
    %1 = arith.extui %0 : i1 to i32
    %c0_i32_0 = arith.constant 0 : i32
    %2 = arith.cmpi ne, %1, %c0_i32_0 : i32
    scf.if %2 {
      %cst_19 = arith.constant 0.000000e+00 : f32
      %22 = vector.broadcast %cst_19 : f32 to vector<1x2x32xf32>
      %c0_20 = arith.constant 0 : index
      %c0_21 = arith.constant 0 : index
      %c0_22 = arith.constant 0 : index
      %23 = vector.load %arg4[%c0_20, %c0_21, %c0_22] : memref<1x2x32xf32, #tpu.memory_space<vmem>>, vector<1x2x32xf32>
      tpu.vector_store %arg4[%c0_20, %c0_21, %c0_22], %22 {strides = array<i32>} : memref<1x2x32xf32, #tpu.memory_space<vmem>>, vector<1x2x32xf32>,
    } else {
    }
    %c0 = arith.constant 0 : index
    %c0_1 = arith.constant 0 : index
    %c0_2 = arith.constant 0 : index
    %c0_3 = arith.constant 0 : index
    %3 = vector.load %arg2[%c0, %c0_1, %c0_2, %c0_3] : memref<1x8x18x32xbf16, #tpu.memory_space<vmem>>, vector<1x8x18x32xbf16>
    %4 = vector.shape_cast %3 : vector<1x8x18x32xbf16> to vector<8x18x32xbf16>
    %5 = arith.extf %4 : vector<8x18x32xbf16> to vector<8x18x32xf32>
    %cst = arith.constant dense<0.000000e+00> : vector<18x32xf32>
    %6 = vector.multi_reduction <add>, %5, %cst [0] : vector<8x18x32xf32> to vector<18x32xf32>
    %cst_4 = arith.constant dense<0.000000e+00> : vector<32xf32>
    %7 = vector.multi_reduction <add>, %6, %cst_4 [0] : vector<18x32xf32> to vector<32xf32>
    %8 = vector.shape_cast %7 : vector<32xf32> to vector<1x32xf32>
    %9 = arith.mulf %5, %5 : vector<8x18x32xf32>
    %cst_5 = arith.constant dense<0.000000e+00> : vector<18x32xf32>
    %10 = vector.multi_reduction <add>, %9, %cst_5 [0] : vector<8x18x32xf32> to vector<18x32xf32>
    %cst_6 = arith.constant dense<0.000000e+00> : vector<32xf32>
    %11 = vector.multi_reduction <add>, %10, %cst_6 [0] : vector<18x32xf32> to vector<32xf32>
    %12 = vector.shape_cast %11 : vector<32xf32> to vector<1x32xf32>
    %c0_7 = arith.constant 0 : index
    %c0_8 = arith.constant 0 : index
    %13 = vector.load %arg3[%c0_7, %c0_8] : memref<32x32xf32, #tpu.memory_space<vmem>>, vector<32x32xf32>
    %cst_9 = arith.constant dense<0.000000e+00> : vector<1x32xf32>
    %14 = tpu.matmul %8, %13, %cst_9 {dimension_numbers = #tpu.dot_dimension_numbers<[1], [0], [0], [1], [0, 0, 1, 1], [], []>} : vector<1x32xf32>, vector<32x32xf32>, vector<1x32xf32> -> vector<1x32xf32>
    %c0_10 = arith.constant 0 : index
    %c0_11 = arith.constant 0 : index
    %15 = vector.load %arg3[%c0_10, %c0_11] : memref<32x32xf32, #tpu.memory_space<vmem>>, vector<32x32xf32>
    %cst_12 = arith.constant dense<0.000000e+00> : vector<1x32xf32>
    %16 = tpu.matmul %12, %15, %cst_12 {dimension_numbers = #tpu.dot_dimension_numbers<[1], [0], [0], [1], [0, 0, 1, 1], [], []>} : vector<1x32xf32>, vector<32x32xf32>, vector<1x32xf32> -> vector<1x32xf32>
    %c0_13 = arith.constant 0 : index
    %c0_14 = arith.constant 0 : index
    %c0_15 = arith.constant 0 : index
    %17 = vector.load %arg4[%c0_13, %c0_14, %c0_15] : memref<1x2x32xf32, #tpu.memory_space<vmem>>, vector<1x2x32xf32>
    %18 = tpu.concatenate %14, %16 in 0 : vector<1x32xf32>, vector<1x32xf32> -> vector<2x32xf32>
    %19 = vector.shape_cast %18 : vector<2x32xf32> to vector<1x2x32xf32>
    %20 = arith.addf %17, %19 : vector<1x2x32xf32>
    %c0_16 = arith.constant 0 : index
    %c0_17 = arith.constant 0 : index
    %c0_18 = arith.constant 0 : index
    %21 = vector.load %arg4[%c0_16, %c0_17, %c0_18] : memref<1x2x32xf32, #tpu.memory_space<vmem>>, vector<1x2x32xf32>
    tpu.vector_store %arg4[%c0_16, %c0_17, %c0_18], %20 {strides = array<i32>} : memref<1x2x32xf32, #tpu.memory_space<vmem>>, vector<1x2x32xf32>,
    return
  }
  func.func @transform_0(%arg0: i32, %arg1: i32) -> (i32, i32, i32, i32) {
    %c0_i32 = arith.constant 0 : i32
    %c0_i32_0 = arith.constant 0 : i32
    %c0_i32_1 = arith.constant 0 : i32
    return %arg0, %arg1, %c0_i32, %c0_i32_0 : i32, i32, i32, i32
  }
  func.func @transform_1(%arg0: i32, %arg1: i32) -> (i32, i32) {
    %c0_i32 = arith.constant 0 : i32
    %c0_i32_0 = arith.constant 0 : i32
    %c0_i32_1 = arith.constant 0 : i32
    return %c0_i32, %c0_i32_0 : i32, i32
  }
  func.func @transform_2(%arg0: i32, %arg1: i32) -> (i32, i32, i32) {
    %c0_i32 = arith.constant 0 : i32
    %c0_i32_0 = arith.constant 0 : i32
    %c0_i32_1 = arith.constant 0 : i32
    return %arg0, %c0_i32, %c0_i32_0 : i32, i32, i32
  }
}

module attributes {stable_mosaic.version = 11 : i64} {
  func.func @_group_stats_kernel(%arg0: i32, %arg1: i32, %arg2: memref<1x8x18x64xbf16, #tpu.memory_space<vmem>>, %arg3: memref<64x32xf32, #tpu.memory_space<vmem>>, %arg4: memref<1x2x32xf32, #tpu.memory_space<vmem>>) attributes {dimension_semantics = [#tpu.dimension_semantics<parallel>, #tpu.dimension_semantics<arbitrary>], iteration_bounds = array<i64: 2, 2>, scalar_prefetch = 0 : i64, scratch_operands = 0 : i64, tpu.core_type = #tpu.core_type<tc>, window_params = [{transform_indices = @transform_0, window_bounds = array<i64: 1, 8, 18, 64>}, {pipeline_mode = #tpu.pipeline_mode<synchronous>, transform_indices = @transform_1, window_bounds = array<i64: 64, 32>}, {transform_indices = @transform_2, window_bounds = array<i64: 1, 2, 32>}]} {
    %c0_i32 = arith.constant 0 : i32
    %0 = arith.cmpi eq, %arg1, %c0_i32 : i32
    %1 = arith.extui %0 : i1 to i32
    %c0_i32_0 = arith.constant 0 : i32
    %2 = arith.cmpi ne, %1, %c0_i32_0 : i32
    scf.if %2 {
      %cst_19 = arith.constant 0.000000e+00 : f32
      %22 = vector.broadcast %cst_19 : f32 to vector<1x2x32xf32>
      %c0_20 = arith.constant 0 : index
      %c0_21 = arith.constant 0 : index
      %c0_22 = arith.constant 0 : index
      %23 = vector.load %arg4[%c0_20, %c0_21, %c0_22] : memref<1x2x32xf32, #tpu.memory_space<vmem>>, vector<1x2x32xf32>
      tpu.vector_store %arg4[%c0_20, %c0_21, %c0_22], %22 {strides = array<i32>} : memref<1x2x32xf32, #tpu.memory_space<vmem>>, vector<1x2x32xf32>,
    } else {
    }
    %c0 = arith.constant 0 : index
    %c0_1 = arith.constant 0 : index
    %c0_2 = arith.constant 0 : index
    %c0_3 = arith.constant 0 : index
    %3 = vector.load %arg2[%c0, %c0_1, %c0_2, %c0_3] : memref<1x8x18x64xbf16, #tpu.memory_space<vmem>>, vector<1x8x18x64xbf16>
    %4 = vector.shape_cast %3 : vector<1x8x18x64xbf16> to vector<8x18x64xbf16>
    %5 = arith.extf %4 : vector<8x18x64xbf16> to vector<8x18x64xf32>
    %cst = arith.constant dense<0.000000e+00> : vector<18x64xf32>
    %6 = vector.multi_reduction <add>, %5, %cst [0] : vector<8x18x64xf32> to vector<18x64xf32>
    %cst_4 = arith.constant dense<0.000000e+00> : vector<64xf32>
    %7 = vector.multi_reduction <add>, %6, %cst_4 [0] : vector<18x64xf32> to vector<64xf32>
    %8 = vector.shape_cast %7 : vector<64xf32> to vector<1x64xf32>
    %9 = arith.mulf %5, %5 : vector<8x18x64xf32>
    %cst_5 = arith.constant dense<0.000000e+00> : vector<18x64xf32>
    %10 = vector.multi_reduction <add>, %9, %cst_5 [0] : vector<8x18x64xf32> to vector<18x64xf32>
    %cst_6 = arith.constant dense<0.000000e+00> : vector<64xf32>
    %11 = vector.multi_reduction <add>, %10, %cst_6 [0] : vector<18x64xf32> to vector<64xf32>
    %12 = vector.shape_cast %11 : vector<64xf32> to vector<1x64xf32>
    %c0_7 = arith.constant 0 : index
    %c0_8 = arith.constant 0 : index
    %13 = vector.load %arg3[%c0_7, %c0_8] : memref<64x32xf32, #tpu.memory_space<vmem>>, vector<64x32xf32>
    %cst_9 = arith.constant dense<0.000000e+00> : vector<1x32xf32>
    %14 = tpu.matmul %8, %13, %cst_9 {dimension_numbers = #tpu.dot_dimension_numbers<[1], [0], [0], [1], [0, 0, 1, 1], [], []>} : vector<1x64xf32>, vector<64x32xf32>, vector<1x32xf32> -> vector<1x32xf32>
    %c0_10 = arith.constant 0 : index
    %c0_11 = arith.constant 0 : index
    %15 = vector.load %arg3[%c0_10, %c0_11] : memref<64x32xf32, #tpu.memory_space<vmem>>, vector<64x32xf32>
    %cst_12 = arith.constant dense<0.000000e+00> : vector<1x32xf32>
    %16 = tpu.matmul %12, %15, %cst_12 {dimension_numbers = #tpu.dot_dimension_numbers<[1], [0], [0], [1], [0, 0, 1, 1], [], []>} : vector<1x64xf32>, vector<64x32xf32>, vector<1x32xf32> -> vector<1x32xf32>
    %c0_13 = arith.constant 0 : index
    %c0_14 = arith.constant 0 : index
    %c0_15 = arith.constant 0 : index
    %17 = vector.load %arg4[%c0_13, %c0_14, %c0_15] : memref<1x2x32xf32, #tpu.memory_space<vmem>>, vector<1x2x32xf32>
    %18 = tpu.concatenate %14, %16 in 0 : vector<1x32xf32>, vector<1x32xf32> -> vector<2x32xf32>
    %19 = vector.shape_cast %18 : vector<2x32xf32> to vector<1x2x32xf32>
    %20 = arith.addf %17, %19 : vector<1x2x32xf32>
    %c0_16 = arith.constant 0 : index
    %c0_17 = arith.constant 0 : index
    %c0_18 = arith.constant 0 : index
    %21 = vector.load %arg4[%c0_16, %c0_17, %c0_18] : memref<1x2x32xf32, #tpu.memory_space<vmem>>, vector<1x2x32xf32>
    tpu.vector_store %arg4[%c0_16, %c0_17, %c0_18], %20 {strides = array<i32>} : memref<1x2x32xf32, #tpu.memory_space<vmem>>, vector<1x2x32xf32>,
    return
  }
  func.func @transform_0(%arg0: i32, %arg1: i32) -> (i32, i32, i32, i32) {
    %c0_i32 = arith.constant 0 : i32
    %c0_i32_0 = arith.constant 0 : i32
    %c0_i32_1 = arith.constant 0 : i32
    return %arg0, %arg1, %c0_i32, %c0_i32_0 : i32, i32, i32, i32
  }
  func.func @transform_1(%arg0: i32, %arg1: i32) -> (i32, i32) {
    %c0_i32 = arith.constant 0 : i32
    %c0_i32_0 = arith.constant 0 : i32
    %c0_i32_1 = arith.constant 0 : i32
    return %c0_i32, %c0_i32_0 : i32, i32
  }
  func.func @transform_2(%arg0: i32, %arg1: i32) -> (i32, i32, i32) {
    %c0_i32 = arith.constant 0 : i32
    %c0_i32_0 = arith.constant 0 : i32
    %c0_i32_1 = arith.constant 0 : i32
    return %arg0, %c0_i32, %c0_i32_0 : i32, i32, i32
  }
}

module attributes {stable_mosaic.version = 11 : i64} {
  func.func @_fused_gn_silu_conv_kernel(%arg0: i32, %arg1: i32, %arg2: memref<1x1x18x64xbf16, #tpu.memory_space<vmem>>, %arg3: memref<1x8x18x64xbf16, #tpu.memory_space<vmem>>, %arg4: memref<1x1x18x64xbf16, #tpu.memory_space<vmem>>, %arg5: memref<1x1x64xf32, #tpu.memory_space<vmem>>, %arg6: memref<1x1x64xf32, #tpu.memory_space<vmem>>, %arg7: memref<9x64x64xbf16, #tpu.memory_space<vmem>>, %arg8: memref<1x64xf32, #tpu.memory_space<vmem>>, %arg9: memref<1x8x18x32xbf16, #tpu.memory_space<vmem>>, %arg10: memref<32x64xbf16, #tpu.memory_space<vmem>>, %arg11: memref<1x8x18x64xf32, #tpu.memory_space<vmem>>) attributes {dimension_semantics = [#tpu.dimension_semantics<parallel>, #tpu.dimension_semantics<parallel>], iteration_bounds = array<i64: 2, 2>, scalar_prefetch = 0 : i64, scratch_operands = 0 : i64, tpu.core_type = #tpu.core_type<tc>, window_params = [{transform_indices = @transform_0, window_bounds = array<i64: 1, 1, 18, 64>}, {transform_indices = @transform_1, window_bounds = array<i64: 1, 8, 18, 64>}, {transform_indices = @transform_2, window_bounds = array<i64: 1, 1, 18, 64>}, {transform_indices = @transform_3, window_bounds = array<i64: 1, 1, 64>}, {transform_indices = @transform_4, window_bounds = array<i64: 1, 1, 64>}, {pipeline_mode = #tpu.pipeline_mode<synchronous>, transform_indices = @transform_5, window_bounds = array<i64: 9, 64, 64>}, {pipeline_mode = #tpu.pipeline_mode<synchronous>, transform_indices = @transform_6, window_bounds = array<i64: 1, 64>}, {transform_indices = @transform_7, window_bounds = array<i64: 1, 8, 18, 32>}, {pipeline_mode = #tpu.pipeline_mode<synchronous>, transform_indices = @transform_8, window_bounds = array<i64: 32, 64>}, {transform_indices = @transform_9, window_bounds = array<i64: 1, 8, 18, 64>}]} {
    %c0 = arith.constant 0 : index
    %c0_0 = arith.constant 0 : index
    %c0_1 = arith.constant 0 : index
    %c0_2 = arith.constant 0 : index
    %0 = vector.load %arg2[%c0, %c0_0, %c0_1, %c0_2] : memref<1x1x18x64xbf16, #tpu.memory_space<vmem>>, vector<1x1x18x64xbf16>
    %1 = vector.shape_cast %0 : vector<1x1x18x64xbf16> to vector<1x18x64xbf16>
    %c0_3 = arith.constant 0 : index
    %c0_4 = arith.constant 0 : index
    %c0_5 = arith.constant 0 : index
    %c0_6 = arith.constant 0 : index
    %2 = vector.load %arg3[%c0_3, %c0_4, %c0_5, %c0_6] : memref<1x8x18x64xbf16, #tpu.memory_space<vmem>>, vector<1x8x18x64xbf16>
    %3 = vector.shape_cast %2 : vector<1x8x18x64xbf16> to vector<8x18x64xbf16>
    %c0_7 = arith.constant 0 : index
    %c0_8 = arith.constant 0 : index
    %c0_9 = arith.constant 0 : index
    %c0_10 = arith.constant 0 : index
    %4 = vector.load %arg4[%c0_7, %c0_8, %c0_9, %c0_10] : memref<1x1x18x64xbf16, #tpu.memory_space<vmem>>, vector<1x1x18x64xbf16>
    %5 = vector.shape_cast %4 : vector<1x1x18x64xbf16> to vector<1x18x64xbf16>
    %6 = tpu.concatenate %1, %3, %5 in 0 : vector<1x18x64xbf16>, vector<8x18x64xbf16>, vector<1x18x64xbf16> -> vector<10x18x64xbf16>
    %7 = arith.extf %6 : vector<10x18x64xbf16> to vector<10x18x64xf32>
    %c0_11 = arith.constant 0 : index
    %c0_12 = arith.constant 0 : index
    %c0_13 = arith.constant 0 : index
    %8 = vector.load %arg5[%c0_11, %c0_12, %c0_13] : memref<1x1x64xf32, #tpu.memory_space<vmem>>, vector<1x1x64xf32>
    %9 = vector.broadcast %8 : vector<1x1x64xf32> to vector<10x18x64xf32>
    %10 = arith.mulf %7, %9 : vector<10x18x64xf32>
    %c0_14 = arith.constant 0 : index
    %c0_15 = arith.constant 0 : index
    %c0_16 = arith.constant 0 : index
    %11 = vector.load %arg6[%c0_14, %c0_15, %c0_16] : memref<1x1x64xf32, #tpu.memory_space<vmem>>, vector<1x1x64xf32>
    %12 = vector.broadcast %11 : vector<1x1x64xf32> to vector<10x18x64xf32>
    %13 = arith.addf %10, %12 : vector<10x18x64xf32>
    %14 = arith.negf %13 : vector<10x18x64xf32>
    %15 = math.exp %14 : vector<10x18x64xf32>
    %cst = arith.constant 1.000000e+00 : f32
    %16 = vector.broadcast %cst : f32 to vector<10x18x64xf32>
    %17 = arith.addf %16, %15 : vector<10x18x64xf32>
    %18 = arith.divf %16, %17 : vector<10x18x64xf32>
    %19 = arith.mulf %13, %18 : vector<10x18x64xf32>
    %20 = tpu.iota {dimensions = array<i32: 0>} : vector<10x18xi32>
    %c8_i32 = arith.constant 8 : i32
    %21 = arith.muli %arg1, %c8_i32 : i32
    %c1_i32 = arith.constant 1 : i32
    %22 = arith.subi %21, %c1_i32 : i32
    %23 = vector.broadcast %22 : i32 to vector<10x18xi32>
    %24 = arith.addi %20, %23 : vector<10x18xi32>
    %25 = tpu.iota {dimensions = array<i32: 1>} : vector<10x18xi32>
    %c1_i32_17 = arith.constant 1 : i32
    %26 = vector.broadcast %c1_i32_17 : i32 to vector<10x18xi32>
    %27 = arith.subi %25, %26 : vector<10x18xi32>
    %c0_i32 = arith.constant 0 : i32
    %28 = vector.broadcast %c0_i32 : i32 to vector<10x18xi32>
    %29 = arith.cmpi sge, %24, %28 : vector<10x18xi32>
    %c16_i32 = arith.constant 16 : i32
    %30 = vector.broadcast %c16_i32 : i32 to vector<10x18xi32>
    %31 = arith.cmpi slt, %24, %30 : vector<10x18xi32>
    %32 = arith.andi %29, %31 : vector<10x18xi1>
    %c0_i32_18 = arith.constant 0 : i32
    %33 = vector.broadcast %c0_i32_18 : i32 to vector<10x18xi32>
    %34 = arith.cmpi sge, %27, %33 : vector<10x18xi32>
    %35 = arith.andi %32, %34 : vector<10x18xi1>
    %c16_i32_19 = arith.constant 16 : i32
    %36 = vector.broadcast %c16_i32_19 : i32 to vector<10x18xi32>
    %37 = arith.cmpi slt, %27, %36 : vector<10x18xi32>
    %38 = arith.andi %35, %37 : vector<10x18xi1>
    %39 = arith.extui %38 : vector<10x18xi1> to vector<10x18xi32>
    %40 = arith.sitofp %39 : vector<10x18xi32> to vector<10x18xf32>
    %41 = vector.shape_cast %40 : vector<10x18xf32> to vector<10x18x1xf32>
    %42 = vector.broadcast %41 : vector<10x18x1xf32> to vector<10x18x64xf32>
    %43 = arith.mulf %19, %42 : vector<10x18x64xf32>
    %44 = arith.truncf %43 : vector<10x18x64xf32> to vector<10x18x64xbf16>
    %cst_20 = arith.constant 0.000000e+00 : f32
    %45 = vector.broadcast %cst_20 : f32 to vector<128x64xf32>
    %46 = vector.extract_strided_slice %44 {offsets = [0, 0, 0], sizes = [8, 16, 64], strides = [1, 1, 1]} : vector<10x18x64xbf16> to vector<8x16x64xbf16>
    %47 = vector.shape_cast %46 : vector<8x16x64xbf16> to vector<128x64xbf16>
    %c0_21 = arith.constant 0 : index
    %c0_22 = arith.constant 0 : index
    %c0_23 = arith.constant 0 : index
    %48 = vector.load %arg7[%c0_21, %c0_22, %c0_23] : memref<9x64x64xbf16, #tpu.memory_space<vmem>>, vector<1x64x64xbf16>
    %49 = vector.shape_cast %48 : vector<1x64x64xbf16> to vector<64x64xbf16>
    %cst_24 = arith.constant dense<0.000000e+00> : vector<128x64xf32>
    %50 = tpu.matmul %47, %49, %cst_24 {dimension_numbers = #tpu.dot_dimension_numbers<[1], [0], [0], [1], [0, 0, 1, 1], [], []>} : vector<128x64xbf16>, vector<64x64xbf16>, vector<128x64xf32> -> vector<128x64xf32>
    %51 = arith.addf %45, %50 : vector<128x64xf32>
    %52 = vector.extract_strided_slice %44 {offsets = [0, 1, 0], sizes = [8, 16, 64], strides = [1, 1, 1]} : vector<10x18x64xbf16> to vector<8x16x64xbf16>
    %53 = vector.shape_cast %52 : vector<8x16x64xbf16> to vector<128x64xbf16>
    %c1 = arith.constant 1 : index
    %c0_25 = arith.constant 0 : index
    %c0_26 = arith.constant 0 : index
    %54 = vector.load %arg7[%c1, %c0_25, %c0_26] : memref<9x64x64xbf16, #tpu.memory_space<vmem>>, vector<1x64x64xbf16>
    %55 = vector.shape_cast %54 : vector<1x64x64xbf16> to vector<64x64xbf16>
    %cst_27 = arith.constant dense<0.000000e+00> : vector<128x64xf32>
    %56 = tpu.matmul %53, %55, %cst_27 {dimension_numbers = #tpu.dot_dimension_numbers<[1], [0], [0], [1], [0, 0, 1, 1], [], []>} : vector<128x64xbf16>, vector<64x64xbf16>, vector<128x64xf32> -> vector<128x64xf32>
    %57 = arith.addf %51, %56 : vector<128x64xf32>
    %58 = vector.extract_strided_slice %44 {offsets = [0, 2, 0], sizes = [8, 16, 64], strides = [1, 1, 1]} : vector<10x18x64xbf16> to vector<8x16x64xbf16>
    %59 = vector.shape_cast %58 : vector<8x16x64xbf16> to vector<128x64xbf16>
    %c2 = arith.constant 2 : index
    %c0_28 = arith.constant 0 : index
    %c0_29 = arith.constant 0 : index
    %60 = vector.load %arg7[%c2, %c0_28, %c0_29] : memref<9x64x64xbf16, #tpu.memory_space<vmem>>, vector<1x64x64xbf16>
    %61 = vector.shape_cast %60 : vector<1x64x64xbf16> to vector<64x64xbf16>
    %cst_30 = arith.constant dense<0.000000e+00> : vector<128x64xf32>
    %62 = tpu.matmul %59, %61, %cst_30 {dimension_numbers = #tpu.dot_dimension_numbers<[1], [0], [0], [1], [0, 0, 1, 1], [], []>} : vector<128x64xbf16>, vector<64x64xbf16>, vector<128x64xf32> -> vector<128x64xf32>
    %63 = arith.addf %57, %62 : vector<128x64xf32>
    %64 = vector.extract_strided_slice %44 {offsets = [1, 0, 0], sizes = [8, 16, 64], strides = [1, 1, 1]} : vector<10x18x64xbf16> to vector<8x16x64xbf16>
    %65 = vector.shape_cast %64 : vector<8x16x64xbf16> to vector<128x64xbf16>
    %c3 = arith.constant 3 : index
    %c0_31 = arith.constant 0 : index
    %c0_32 = arith.constant 0 : index
    %66 = vector.load %arg7[%c3, %c0_31, %c0_32] : memref<9x64x64xbf16, #tpu.memory_space<vmem>>, vector<1x64x64xbf16>
    %67 = vector.shape_cast %66 : vector<1x64x64xbf16> to vector<64x64xbf16>
    %cst_33 = arith.constant dense<0.000000e+00> : vector<128x64xf32>
    %68 = tpu.matmul %65, %67, %cst_33 {dimension_numbers = #tpu.dot_dimension_numbers<[1], [0], [0], [1], [0, 0, 1, 1], [], []>} : vector<128x64xbf16>, vector<64x64xbf16>, vector<128x64xf32> -> vector<128x64xf32>
    %69 = arith.addf %63, %68 : vector<128x64xf32>
    %70 = vector.extract_strided_slice %44 {offsets = [1, 1, 0], sizes = [8, 16, 64], strides = [1, 1, 1]} : vector<10x18x64xbf16> to vector<8x16x64xbf16>
    %71 = vector.shape_cast %70 : vector<8x16x64xbf16> to vector<128x64xbf16>
    %c4 = arith.constant 4 : index
    %c0_34 = arith.constant 0 : index
    %c0_35 = arith.constant 0 : index
    %72 = vector.load %arg7[%c4, %c0_34, %c0_35] : memref<9x64x64xbf16, #tpu.memory_space<vmem>>, vector<1x64x64xbf16>
    %73 = vector.shape_cast %72 : vector<1x64x64xbf16> to vector<64x64xbf16>
    %cst_36 = arith.constant dense<0.000000e+00> : vector<128x64xf32>
    %74 = tpu.matmul %71, %73, %cst_36 {dimension_numbers = #tpu.dot_dimension_numbers<[1], [0], [0], [1], [0, 0, 1, 1], [], []>} : vector<128x64xbf16>, vector<64x64xbf16>, vector<128x64xf32> -> vector<128x64xf32>
    %75 = arith.addf %69, %74 : vector<128x64xf32>
    %76 = vector.extract_strided_slice %44 {offsets = [1, 2, 0], sizes = [8, 16, 64], strides = [1, 1, 1]} : vector<10x18x64xbf16> to vector<8x16x64xbf16>
    %77 = vector.shape_cast %76 : vector<8x16x64xbf16> to vector<128x64xbf16>
    %c5 = arith.constant 5 : index
    %c0_37 = arith.constant 0 : index
    %c0_38 = arith.constant 0 : index
    %78 = vector.load %arg7[%c5, %c0_37, %c0_38] : memref<9x64x64xbf16, #tpu.memory_space<vmem>>, vector<1x64x64xbf16>
    %79 = vector.shape_cast %78 : vector<1x64x64xbf16> to vector<64x64xbf16>
    %cst_39 = arith.constant dense<0.000000e+00> : vector<128x64xf32>
    %80 = tpu.matmul %77, %79, %cst_39 {dimension_numbers = #tpu.dot_dimension_numbers<[1], [0], [0], [1], [0, 0, 1, 1], [], []>} : vector<128x64xbf16>, vector<64x64xbf16>, vector<128x64xf32> -> vector<128x64xf32>
    %81 = arith.addf %75, %80 : vector<128x64xf32>
    %82 = vector.extract_strided_slice %44 {offsets = [2, 0, 0], sizes = [8, 16, 64], strides = [1, 1, 1]} : vector<10x18x64xbf16> to vector<8x16x64xbf16>
    %83 = vector.shape_cast %82 : vector<8x16x64xbf16> to vector<128x64xbf16>
    %c6 = arith.constant 6 : index
    %c0_40 = arith.constant 0 : index
    %c0_41 = arith.constant 0 : index
    %84 = vector.load %arg7[%c6, %c0_40, %c0_41] : memref<9x64x64xbf16, #tpu.memory_space<vmem>>, vector<1x64x64xbf16>
    %85 = vector.shape_cast %84 : vector<1x64x64xbf16> to vector<64x64xbf16>
    %cst_42 = arith.constant dense<0.000000e+00> : vector<128x64xf32>
    %86 = tpu.matmul %83, %85, %cst_42 {dimension_numbers = #tpu.dot_dimension_numbers<[1], [0], [0], [1], [0, 0, 1, 1], [], []>} : vector<128x64xbf16>, vector<64x64xbf16>, vector<128x64xf32> -> vector<128x64xf32>
    %87 = arith.addf %81, %86 : vector<128x64xf32>
    %88 = vector.extract_strided_slice %44 {offsets = [2, 1, 0], sizes = [8, 16, 64], strides = [1, 1, 1]} : vector<10x18x64xbf16> to vector<8x16x64xbf16>
    %89 = vector.shape_cast %88 : vector<8x16x64xbf16> to vector<128x64xbf16>
    %c7 = arith.constant 7 : index
    %c0_43 = arith.constant 0 : index
    %c0_44 = arith.constant 0 : index
    %90 = vector.load %arg7[%c7, %c0_43, %c0_44] : memref<9x64x64xbf16, #tpu.memory_space<vmem>>, vector<1x64x64xbf16>
    %91 = vector.shape_cast %90 : vector<1x64x64xbf16> to vector<64x64xbf16>
    %cst_45 = arith.constant dense<0.000000e+00> : vector<128x64xf32>
    %92 = tpu.matmul %89, %91, %cst_45 {dimension_numbers = #tpu.dot_dimension_numbers<[1], [0], [0], [1], [0, 0, 1, 1], [], []>} : vector<128x64xbf16>, vector<64x64xbf16>, vector<128x64xf32> -> vector<128x64xf32>
    %93 = arith.addf %87, %92 : vector<128x64xf32>
    %94 = vector.extract_strided_slice %44 {offsets = [2, 2, 0], sizes = [8, 16, 64], strides = [1, 1, 1]} : vector<10x18x64xbf16> to vector<8x16x64xbf16>
    %95 = vector.shape_cast %94 : vector<8x16x64xbf16> to vector<128x64xbf16>
    %c8 = arith.constant 8 : index
    %c0_46 = arith.constant 0 : index
    %c0_47 = arith.constant 0 : index
    %96 = vector.load %arg7[%c8, %c0_46, %c0_47] : memref<9x64x64xbf16, #tpu.memory_space<vmem>>, vector<1x64x64xbf16>
    %97 = vector.shape_cast %96 : vector<1x64x64xbf16> to vector<64x64xbf16>
    %cst_48 = arith.constant dense<0.000000e+00> : vector<128x64xf32>
    %98 = tpu.matmul %95, %97, %cst_48 {dimension_numbers = #tpu.dot_dimension_numbers<[1], [0], [0], [1], [0, 0, 1, 1], [], []>} : vector<128x64xbf16>, vector<64x64xbf16>, vector<128x64xf32> -> vector<128x64xf32>
    %99 = arith.addf %93, %98 : vector<128x64xf32>
    %c0_49 = arith.constant 0 : index
    %c0_50 = arith.constant 0 : index
    %100 = vector.load %arg8[%c0_49, %c0_50] : memref<1x64xf32, #tpu.memory_space<vmem>>, vector<1x64xf32>
    %101 = vector.broadcast %100 : vector<1x64xf32> to vector<128x64xf32>
    %102 = arith.addf %99, %101 : vector<128x64xf32>
    %c0_51 = arith.constant 0 : index
    %c0_52 = arith.constant 0 : index
    %c0_53 = arith.constant 0 : index
    %c0_54 = arith.constant 0 : index
    %103 = vector.load %arg9[%c0_51, %c0_52, %c0_53, %c0_54] : memref<1x8x18x32xbf16, #tpu.memory_space<vmem>>, vector<1x8x18x32xbf16>
    %104 = vector.shape_cast %103 : vector<1x8x18x32xbf16> to vector<8x18x32xbf16>
    %105 = vector.extract_strided_slice %104 {offsets = [0, 1, 0], sizes = [8, 16, 32], strides = [1, 1, 1]} : vector<8x18x32xbf16> to vector<8x16x32xbf16>
    %106 = vector.shape_cast %105 : vector<8x16x32xbf16> to vector<128x32xbf16>
    %c0_55 = arith.constant 0 : index
    %c0_56 = arith.constant 0 : index
    %107 = vector.load %arg10[%c0_55, %c0_56] : memref<32x64xbf16, #tpu.memory_space<vmem>>, vector<32x64xbf16>
    %cst_57 = arith.constant dense<0.000000e+00> : vector<128x64xf32>
    %108 = tpu.matmul %106, %107, %cst_57 {dimension_numbers = #tpu.dot_dimension_numbers<[1], [0], [0], [1], [0, 0, 1, 1], [], []>} : vector<128x32xbf16>, vector<32x64xbf16>, vector<128x64xf32> -> vector<128x64xf32>
    %109 = arith.addf %102, %108 : vector<128x64xf32>
    %110 = tpu.iota {dimensions = array<i32: 0>} : vector<8x16xi32>
    %c8_i32_58 = arith.constant 8 : i32
    %111 = arith.muli %arg1, %c8_i32_58 : i32
    %112 = vector.broadcast %111 : i32 to vector<8x16xi32>
    %113 = arith.addi %110, %112 : vector<8x16xi32>
    %c16_i32_59 = arith.constant 16 : i32
    %114 = vector.broadcast %c16_i32_59 : i32 to vector<8x16xi32>
    %115 = arith.cmpi slt, %113, %114 : vector<8x16xi32>
    %116 = arith.extui %115 : vector<8x16xi1> to vector<8x16xi32>
    %117 = arith.sitofp %116 : vector<8x16xi32> to vector<8x16xf32>
    %118 = vector.shape_cast %117 : vector<8x16xf32> to vector<8x16x1xf32>
    %119 = vector.shape_cast %109 : vector<128x64xf32> to vector<8x16x64xf32>
    %120 = vector.broadcast %118 : vector<8x16x1xf32> to vector<8x16x64xf32>
    %121 = arith.mulf %119, %120 : vector<8x16x64xf32>
    %cst_60 = arith.constant 0.000000e+00 : f32
    %122 = vector.broadcast %cst_60 : f32 to vector<8x1x64xf32>
    %123 = tpu.concatenate %122, %121, %122 in 1 : vector<8x1x64xf32>, vector<8x16x64xf32>, vector<8x1x64xf32> -> vector<8x18x64xf32>
    %124 = vector.shape_cast %123 : vector<8x18x64xf32> to vector<1x8x18x64xf32>
    %c0_61 = arith.constant 0 : index
    %c0_62 = arith.constant 0 : index
    %c0_63 = arith.constant 0 : index
    %c0_64 = arith.constant 0 : index
    %125 = vector.load %arg11[%c0_61, %c0_62, %c0_63, %c0_64] : memref<1x8x18x64xf32, #tpu.memory_space<vmem>>, vector<1x8x18x64xf32>
    tpu.vector_store %arg11[%c0_61, %c0_62, %c0_63, %c0_64], %124 {strides = array<i32>} : memref<1x8x18x64xf32, #tpu.memory_space<vmem>>, vector<1x8x18x64xf32>,
    return
  }
  func.func @transform_0(%arg0: i32, %arg1: i32) -> (i32, i32, i32, i32) {
    %c8_i32 = arith.constant 8 : i32
    %0 = arith.muli %arg1, %c8_i32 : i32
    %c1_i32 = arith.constant 1 : i32
    %1 = arith.subi %0, %c1_i32 : i32
    %c0_i32 = arith.constant 0 : i32
    %2 = arith.maxsi %1, %c0_i32 : i32
    %c0_i32_0 = arith.constant 0 : i32
    %c0_i32_1 = arith.constant 0 : i32
    %c0_i32_2 = arith.constant 0 : i32
    return %arg0, %2, %c0_i32_0, %c0_i32_1 : i32, i32, i32, i32
  }
  func.func @transform_1(%arg0: i32, %arg1: i32) -> (i32, i32, i32, i32) {
    %c0_i32 = arith.constant 0 : i32
    %c0_i32_0 = arith.constant 0 : i32
    %c0_i32_1 = arith.constant 0 : i32
    return %arg0, %arg1, %c0_i32, %c0_i32_0 : i32, i32, i32, i32
  }
  func.func @transform_2(%arg0: i32, %arg1: i32) -> (i32, i32, i32, i32) {
    %c1_i32 = arith.constant 1 : i32
    %0 = arith.addi %arg1, %c1_i32 : i32
    %c8_i32 = arith.constant 8 : i32
    %1 = arith.muli %0, %c8_i32 : i32
    %c15_i32 = arith.constant 15 : i32
    %2 = arith.minsi %1, %c15_i32 : i32
    %c0_i32 = arith.constant 0 : i32
    %c0_i32_0 = arith.constant 0 : i32
    %c0_i32_1 = arith.constant 0 : i32
    return %arg0, %2, %c0_i32, %c0_i32_0 : i32, i32, i32, i32
  }
  func.func @transform_3(%arg0: i32, %arg1: i32) -> (i32, i32, i32) {
    %c0_i32 = arith.constant 0 : i32
    %c0_i32_0 = arith.constant 0 : i32
    %c0_i32_1 = arith.constant 0 : i32
    return %arg0, %c0_i32, %c0_i32_0 : i32, i32, i32
  }
  func.func @transform_4(%arg0: i32, %arg1: i32) -> (i32, i32, i32) {
    %c0_i32 = arith.constant 0 : i32
    %c0_i32_0 = arith.constant 0 : i32
    %c0_i32_1 = arith.constant 0 : i32
    return %arg0, %c0_i32, %c0_i32_0 : i32, i32, i32
  }
  func.func @transform_5(%arg0: i32, %arg1: i32) -> (i32, i32, i32) {
    %c0_i32 = arith.constant 0 : i32
    %c0_i32_0 = arith.constant 0 : i32
    %c0_i32_1 = arith.constant 0 : i32
    %c0_i32_2 = arith.constant 0 : i32
    return %c0_i32, %c0_i32_0, %c0_i32_1 : i32, i32, i32
  }
  func.func @transform_6(%arg0: i32, %arg1: i32) -> (i32, i32) {
    %c0_i32 = arith.constant 0 : i32
    %c0_i32_0 = arith.constant 0 : i32
    %c0_i32_1 = arith.constant 0 : i32
    return %c0_i32, %c0_i32_0 : i32, i32
  }
  func.func @transform_7(%arg0: i32, %arg1: i32) -> (i32, i32, i32, i32) {
    %c0_i32 = arith.constant 0 : i32
    %c0_i32_0 = arith.constant 0 : i32
    %c0_i32_1 = arith.constant 0 : i32
    return %arg0, %arg1, %c0_i32, %c0_i32_0 : i32, i32, i32, i32
  }
  func.func @transform_8(%arg0: i32, %arg1: i32) -> (i32, i32) {
    %c0_i32 = arith.constant 0 : i32
    %c0_i32_0 = arith.constant 0 : i32
    %c0_i32_1 = arith.constant 0 : i32
    return %c0_i32, %c0_i32_0 : i32, i32
  }
  func.func @transform_9(%arg0: i32, %arg1: i32) -> (i32, i32, i32, i32) {
    %c0_i32 = arith.constant 0 : i32
    %c0_i32_0 = arith.constant 0 : i32
    %c0_i32_1 = arith.constant 0 : i32
    return %arg0, %arg1, %c0_i32, %c0_i32_0 : i32, i32, i32, i32
  }
}

</mosaic_0001>

<bundles_post_ra>
// kernel: resblock_pallas.6
= control target key start
LH: loop header
LB: loop body
LE: loop exit
PB: predicated region body
PF: predicated region fallthrough
CT: control target
= control target key end

     0   :  { %s632_s9 = smov 0   ;;  %s634_s10 = smov 0   ;;  %s906_s0 = inlined_call_operand.vmem [shape: bf16[2,16,18,64], index: 0, kind: input, shape index: {}]   ;;  %s907_s1 = inlined_call_operand.vmem [shape: f32[64,32], index: 1, kind: input, shape index: {}]   ;;  %s908_s2 = inlined_call_operand.vmem [shape: f32[2,2,32], index: 2, kind: output, shape index: {}]  }
   0x1   :  { %s636_s11 = smov 0   ;;  %s638_s12 = smov 0  }
   0x2   :  { %s640_s13 = smov 0  }
   0x3 LB: > { %s21_s14 = sadd.s32 1, %s606_s11  ;;  %s24_s15 = sadd.s32 1, %s610_s12  ;;  %s614_s13 = sphi %s640_s13, %s12_s13   ;;  %s610_s12 = sphi %s638_s12, %s912_s12   ;;  %s606_s11 = sphi %s636_s11, %s911_s11   ;;  %s602_s10 = sphi %s634_s10, %s910_s10   ;;  %s598_s9 = sphi %s632_s9, %s909_s9  }
   0x4   : > { %p22_p0 = scmp.ge.s32.totalorder %s21_s14, 2  ;;  %p505_p1 = scmp.ge.s32.totalorder %s614_s13, 1 }
   0x5   : > { %p132_p2 = scmp.lt.s32.totalorder %s614_s13, 5 }
   0x6   : > { %s914_s14 = smov (%p22_p0, %s21_s14), 0  ;;  %s916_s15 = smov (!%p22_p0, %s24_s15), %s610_s12 }
   0x7   : > { %p133_p3 = pnand %p505_p1, %p132_p2  ;;  %p26_p4 = scmp.ge.s32.totalorder %s916_s15, 2 }
   0x8   : > { %s506_s16 = sshll.u32 (!%p133_p3), %s598_s9, 3  ;;  %p159_p5 = scmp.lt.s32.totalorder (!%p133_p3), %s602_s10, 1 }
   0x9   : > { %s918_s15 = smov (%p26_p4, %s916_s15), 0  ;;  %136 = sbr.rel (%p133_p3) target bundleno = 215 (0xd7), region = 28 }
   0xa   : > { %p161_p6 = scmp.lt.s32.totalorder (!%p133_p3), %s506_s16, 15  ;;  %p509_p7 = scmp.ne.s32.totalorder (!%p133_p3), %s598_s9, 0 }
   0xe   : > { %s920_s10 = smov (!%p159_p5, %s602_s10), 1  ;;  %s922_s16 = smov (!%p161_p6, %s506_s16), 15 }
   0xf   : > { %s534_s17 = smul.u32 48, %s920_s10  ;;  %s508_s18 = sshll.u32 %s920_s10, 1 }
  0x10   : > { %s533_s19 = smul.u32 3, %s922_s16  ;;  %s665_s22 = scalar_lea.vmem %s908_s2, %s508_s18 }
  0x11   : > { %176 = sbr.rel (%p509_p7) target bundleno = 24 (0x18), region = 32 }
  0x12   : > { %s165_s23 = sadd.s32 %s534_s17, %s533_s19 }
  0x13   : > { %s507_s24 = sshll.u32 %s165_s23, 2 }
  0x14   : > { %s670_s27 = scalar_lea.vmem %s906_s0, %s507_s24 }
  0x16   : > { %vm177_vm0 = vcmask 254976   ;;  %v616_v0 = vmov 0.0  }
  0x17   : > { %178 = vst.msk [vmem:[%s665_s22] sm:$0x3] %vm177_vm0, %v616_v0 }
  0x18 PF: > { %v372_v1 = vld [vmem:[%s907_s1 + $0x38] sm:$0xff]  ;;  %v371_v2 = vld [vmem:[%s907_s1 + $0x30] sm:$0xff]  ;;  %v370_v3 = vld [vmem:[%s907_s1 + $0x28] sm:$0xff]  ;;  %vm227_vm1 = vcmask 523264   ;;  %vm258_vm2 = vcmask 517120   ;;  %vm423_vm3 = vcmask 1040384  }
  0x19   : > { %407 = vmatpush.msra.mxu1 %v372_v1  ;;  %384 = vmatpush.msra.mxu0 %v372_v1  ;;  %v369_v4 = vld [vmem:[%s907_s1 + $0x20] sm:$0xff]  ;;  %v181_v6 = vld [vmem:[%s670_s27 + $0x8] sm:$0x1]  ;;  %v182_v7 = vld [vmem:[%s670_s27 + $0xc] sm:$0xff]   ;;  %vm426_vm4 = vcmask 254976  }
  0x1a   : > { %v515_v5 = vld [vmem:[%s670_s27] sm:$0xff]   ;;  %v184_v8 = vld [vmem:[%s670_s27 + $0x14] sm:$0x1]  ;;  %v368_v9 = vld [vmem:[%s907_s1 + $0x18] sm:$0xff]  ;;  %v702_v18 = vunpack.c.l.bf16 %v181_v6  ;;  %v704_v19 = vunpack.c.l.bf16 %v182_v7  ;;  %v706_v20 = vunpack.c.h.bf16 %v182_v7 }
  0x1b   : > { %408 = vmatpush.msra.mxu1 %v371_v2  ;;  %385 = vmatpush.msra.mxu0 %v371_v2  ;;  %v692_v10 = vunpack.c.l.bf16 %v515_v5  ;;  %v694_v11 = vunpack.c.h.bf16 %v515_v5  ;;  %v530_v12 = vld [vmem:[%s670_s27 + $0x18] sm:$0xff]   ;;  %v187_v13 = vld [vmem:[%s670_s27 + $0x20] sm:$0x1]  ;;  %v188_v14 = vld [vmem:[%s670_s27 + $0x24] sm:$0xff]   ;;  %v708_v21 = vunpack.c.l.bf16 %v184_v8 }
  0x1c   : > { %v190_v15 = vld [vmem:[%s670_s27 + $0x2c] sm:$0x1]  ;;  %v531_v16 = vld [vmem:[%s670_s27 + $0x30] sm:$0xff]   ;;  %v193_v17 = vld [vmem:[%s670_s27 + $0x38] sm:$0x1]  ;;  %v710_v22 = vunpack.c.l.bf16 %v530_v12  ;;  %v712_v23 = vunpack.c.h.bf16 %v530_v12  ;;  %v717_v27 = vunpack.c.l.bf16 %v187_v13  ;;  %v719_v28 = vunpack.c.l.bf16 %v188_v14 }
  0x1d   : > { %409 = vmatpush.msra.mxu1 %v370_v3  ;;  %386 = vmatpush.msra.mxu0 %v370_v3  ;;  %v194_v24 = vld [vmem:[%s670_s27 + $0x3c] sm:$0xff]   ;;  %v196_v25 = vld [vmem:[%s670_s27 + $0x44] sm:$0x1]  ;;  %v532_v26 = vld [vmem:[%s670_s27 + $0x48] sm:$0xff]   ;;  %v721_v29 = vunpack.c.l.bf16 %v531_v16  ;;  %v723_v30 = vunpack.c.h.bf16 %v531_v16  ;;  %v727_v33 = vunpack.c.h.bf16 %v188_v14  ;;  %v729_v34 = vunpack.c.l.bf16 %v190_v15 }
  0x1e   : > { %v199_v31 = vld [vmem:[%s670_s27 + $0x50] sm:$0x1]  ;;  %v200_v32 = vld [vmem:[%s670_s27 + $0x54] sm:$0xff]   ;;  %v734_v36 = vunpack.c.l.bf16 %v532_v26  ;;  %v736_v37 = vunpack.c.h.bf16 %v532_v26  ;;  %v202_v38 = vld [vmem:[%s670_s27 + $0x5c] sm:$0x1]  ;;  %v739_v39 = vunpack.c.l.bf16 %v193_v17  ;;  %v741_v40 = vunpack.c.l.bf16 %v194_v24 }
  0x1f   : > { %410 = vmatpush.msra.mxu1 %v369_v4  ;;  %387 = vmatpush.msra.mxu0 %v369_v4  ;;  %v367_v35 = vld [vmem:[%s907_s1 + $0x10] sm:$0xff]  ;;  %v743_v41 = vunpack.c.h.bf16 %v194_v24  ;;  %v745_v42 = vunpack.c.l.bf16 %v196_v25  ;;  %v747_v43 = vunpack.c.l.bf16 %v199_v31  ;;  %v285_v44 = vmul.f32 %v692_v10, %v692_v10  ;;  %v366_v45 = vld [vmem:[%s907_s1 + $0x8] sm:$0xff]  ;;  %v365_v54 = vld [vmem:[%s907_s1] sm:$0xff] }
  0x20   : > { %v754_v46 = vunpack.c.l.bf16 %v200_v32  ;;  %v756_v47 = vunpack.c.h.bf16 %v200_v32  ;;  %v286_v48 = vmul.f32 %v694_v11, %v694_v11  ;;  %v288_v49 = vmul.f32 %v704_v19, %v704_v19 }
  0x21   : > { %411 = vmatpush.msra.mxu1 %v368_v9  ;;  %388 = vmatpush.msra.mxu0 %v368_v9  ;;  %v762_v50 = vunpack.c.l.bf16 %v202_v38  ;;  %v287_v51 = vmul.f32 %v702_v18, %v702_v18  ;;  %v289_v52 = vmul.f32 %v706_v20, %v706_v20  ;;  %v290_v53 = vmul.f32 %v708_v21, %v708_v21 }
  0x22   : > { %v291_v55 = vmul.f32 %v710_v22, %v710_v22  ;;  %v292_v56 = vmul.f32 %v712_v23, %v712_v23  ;;  %v293_v57 = vmul.f32 %v717_v27, %v717_v27  ;;  %v309_v58 = vsel %vm227_vm1, %v285_v44, 0.0 }
  0x23   : > { %412 = vmatpush.msra.mxu1 %v367_v35  ;;  %389 = vmatpush.msra.mxu0 %v367_v35  ;;  %v294_v59 = vmul.f32 %v719_v28, %v719_v28  ;;  %v295_v60 = vmul.f32 %v727_v33, %v727_v33  ;;  %v296_v61 = vmul.f32 %v729_v34, %v729_v34  ;;  %v310_v62 = vsel %vm227_vm1, %v288_v49, 0.0 }
  0x24   : > { %v297_v63 = vmul.f32 %v721_v29, %v721_v29  ;;  %v298_v0 = vmul.f32 %v723_v30, %v723_v30  ;;  %v299_v1 = vmul.f32 %v739_v39, %v739_v39  ;;  %v300_v2 = vmul.f32 %v741_v40, %v741_v40 }
  0x25   : > { %413 = vmatpush.msra.mxu1 %v366_v45  ;;  %390 = vmatpush.msra.mxu0 %v366_v45  ;;  %v301_v3 = vmul.f32 %v743_v41, %v743_v41  ;;  %v302_v4 = vmul.f32 %v745_v42, %v745_v42  ;;  %v303_v5 = vmul.f32 %v734_v36, %v734_v36  ;;  %v312_v12 = vsel %vm227_vm1, %v291_v55, 0.0 }
  0x26   : > { %v306_v6 = vmul.f32 %v754_v46, %v754_v46  ;;  %v304_v7 = vmul.f32 %v736_v37, %v736_v37  ;;  %v305_v8 = vmul.f32 %v747_v43, %v747_v43  ;;  %v311_v9 = vadd.f32 %v310_v62, %v309_v58 }
  0x27   : > { %414 = vmatpush.msra.mxu1 %v365_v54  ;;  %391 = vmatpush.msra.mxu0 %v365_v54  ;;  %v307_v13 = vmul.f32 %v756_v47, %v756_v47  ;;  %v308_v14 = vmul.f32 %v762_v50, %v762_v50  ;;  %v314_v15 = vsel %vm227_vm1, %v294_v59, 0.0  ;;  %v324_v16 = vsel %vm227_vm1, %v286_v48, 0.0 }
  0x28   : > { %v313_v17 = vadd.f32 %v312_v12, %v311_v9  ;;  %v316_v24 = vsel %vm227_vm1, %v297_v63, 0.0  ;;  %v325_v25 = vsel %vm227_vm1, %v289_v52, 0.0  ;;  %v327_v26 = vsel %vm227_vm1, %v292_v56, 0.0 }
  0x29   : > { %v318_v31 = vsel %vm227_vm1, %v300_v2, 0.0  ;;  %v320_v32 = vsel %vm227_vm1, %v303_v5, 0.0  ;;  %v322_v35 = vsel %vm227_vm1, %v306_v6, 0.0  ;;  %v326_v38 = vadd.f32 %v325_v25, %v324_v16 }
  0x2a   : > { %v315_v44 = vadd.f32 %v314_v15, %v313_v17  ;;  %v329_v45 = vsel %vm227_vm1, %v295_v60, 0.0  ;;  %v339_v49 = vsel %vm258_vm2, %v287_v51, 0.0  ;;  %v340_v48 = vsel %vm258_vm2, %v290_v53, 0.0 }
  0x2b   : > { %v328_v54 = vadd.f32 %v327_v26, %v326_v38  ;;  %v331_v55 = vsel %vm227_vm1, %v298_v0, 0.0  ;;  %v341_v52 = vadd.f32 %v340_v48, %v339_v49  ;;  %v342_v56 = vsel %vm258_vm2, %v293_v57, 0.0 }
  0x2c   : > { %v317_v58 = vadd.f32 %v316_v24, %v315_v44  ;;  %v333_v59 = vsel %vm227_vm1, %v301_v3, 0.0  ;;  %v335_v62 = vsel %vm227_vm1, %v304_v7, 0.0  ;;  %v344_v63 = vsel %vm258_vm2, %v296_v61, 0.0 }
  0x2d   : > { %v330_v2 = vadd.f32 %v329_v45, %v328_v54  ;;  %v337_v60 = vsel %vm227_vm1, %v307_v13, 0.0  ;;  %v343_v5 = vadd.f32 %v342_v56, %v341_v52  ;;  %v228_v51 = vsel %vm227_vm1, %v692_v10, 0.0 }
  0x2e   : > { %v319_v53 = vadd.f32 %v318_v31, %v317_v58  ;;  %v346_v0 = vsel %vm258_vm2, %v299_v1, 0.0  ;;  %v229_v57 = vsel %vm227_vm1, %v704_v19, 0.0  ;;  %v231_v3 = vsel %vm227_vm1, %v710_v22, 0.0 }
  0x2f   : > { %v332_v6 = vadd.f32 %v331_v55, %v330_v2  ;;  %v345_v7 = vadd.f32 %v344_v63, %v343_v5  ;;  %v348_v61 = vsel %vm258_vm2, %v302_v4, 0.0  ;;  %v230_v9 = vadd.f32 %v229_v57, %v228_v51 }
  0x30   : > { %v321_v12 = vadd.f32 %v320_v32, %v319_v53  ;;  %v350_v13 = vsel %vm258_vm2, %v305_v8, 0.0  ;;  %v352_v15 = vsel %vm258_vm2, %v308_v14, 0.0  ;;  %v233_v10 = vsel %vm227_vm1, %v719_v28, 0.0 }
  0x31   : > { %v334_v1 = vadd.f32 %v333_v59, %v332_v6  ;;  %v347_v16 = vadd.f32 %v346_v0, %v345_v7  ;;  %v232_v17 = vadd.f32 %v231_v3, %v230_v9  ;;  %v243_v19 = vsel %vm227_vm1, %v694_v11, 0.0 }
  0x32   : > { %v323_v22 = vadd.f32 %v322_v35, %v321_v12  ;;  %v235_v24 = vsel %vm227_vm1, %v721_v29, 0.0  ;;  %v244_v4 = vsel %vm227_vm1, %v706_v20, 0.0  ;;  %v246_v8 = vsel %vm227_vm1, %v712_v23, 0.0 }
  0x33   : > { %v336_v14 = vadd.f32 %v335_v62, %v334_v1  ;;  %v349_v25 = vadd.f32 %v348_v61, %v347_v16  ;;  %v234_v26 = vadd.f32 %v233_v10, %v232_v17  ;;  %v245_v28 = vadd.f32 %v244_v4, %v243_v19 }
  0x34   : > { %v354_v31 = vsel %vm227_vm1, %v323_v22, 0.0  ;;  %v237_v32 = vsel %vm227_vm1, %v741_v40, 0.0  ;;  %v239_v11 = vsel %vm227_vm1, %v734_v36, 0.0  ;;  %v248_v29 = vsel %vm227_vm1, %v727_v33, 0.0 }
  0x35   : > { %v338_v35 = vadd.f32 %v337_v60, %v336_v14  ;;  %v351_v20 = vadd.f32 %v350_v13, %v349_v25  ;;  %v236_v38 = vadd.f32 %v235_v24, %v234_v26  ;;  %v247_v44 = vadd.f32 %v246_v8, %v245_v28  ;;  %v419_v14 = vld [vmem:[%s665_s22] sm:$0x3] }
  0x36   : > { %v250_v23 = vsel %vm227_vm1, %v723_v30, 0.0  ;;  %v259_v45 = vsel %vm258_vm2, %v702_v18, 0.0  ;;  %v260_v49 = vsel %vm258_vm2, %v708_v21, 0.0  ;;  %v262_v40 = vsel %vm258_vm2, %v717_v27, 0.0 }
  0x37   : > { %v353_v36 = vadd.f32 %v352_v15, %v351_v20  ;;  %v355_v48 = vsel %vm227_vm1, %v338_v35, 0.0  ;;  %v238_v33 = vadd.f32 %v237_v32, %v236_v38  ;;  %v249_v54 = vadd.f32 %v248_v29, %v247_v44 }
  0x38   : > { %v356_v55 = vadd.f32 %v355_v48, %v354_v31  ;;  %v241_v52 = vsel %vm227_vm1, %v754_v46, 0.0  ;;  %v252_v30 = vsel %vm227_vm1, %v743_v41, 0.0  ;;  %v261_v56 = vadd.f32 %v260_v49, %v259_v45 }
  0x39   : > { %v357_v18 = vsel %vm258_vm2, %v353_v36, 0.0  ;;  %v240_v58 = vadd.f32 %v239_v11, %v238_v33  ;;  %v251_v21 = vadd.f32 %v250_v23, %v249_v54  ;;  %v264_v27 = vsel %vm258_vm2, %v729_v34, 0.0 }
  0x3a   : > { %v358_v59 = vadd.f32 %v357_v18, %v356_v55  ;;  %v254_v62 = vsel %vm227_vm1, %v736_v37, 0.0  ;;  %v263_v63 = vadd.f32 %v262_v40, %v261_v56  ;;  %v266_v46 = vsel %vm258_vm2, %v739_v39, 0.0 }
  0x3b   : > { %v253_v2 = vadd.f32 %v252_v30, %v251_v21  ;;  %v242_v5 = vadd.f32 %v241_v52, %v240_v58  ;;  %v256_v41 = vsel %vm227_vm1, %v756_v47, 0.0  ;;  %v268_v0 = vsel %vm258_vm2, %v745_v42, 0.0 }
  0x3c   : > { %v359_v60 = vrot.slane %v358_v59, 4  ;;  %v265_v51 = vadd.f32 %v264_v27, %v263_v63  ;;  %v270_v37 = vsel %vm258_vm2, %v747_v43, 0.0  ;;  %v272_v61 = vsel %vm258_vm2, %v762_v50, 0.0 }
  0x3d   : > { %v255_v53 = vadd.f32 %v254_v62, %v253_v2  ;;  %v274_v39 = vsel %vm227_vm1, %v242_v5, 0.0 }
  0x3e   : > { %v360_v34 = vadd.f32 %v359_v60, %v358_v59  ;;  %v267_v57 = vadd.f32 %v266_v46, %v265_v51 }
  0x3f   : > { %v257_v3 = vadd.f32 %v256_v41, %v255_v53 }
  0x40   : > { %v361_v6 = vrot.slane %v360_v34, 2  ;;  %v269_v7 = vadd.f32 %v268_v0, %v267_v57 }
  0x41   : > { %v275_v47 = vsel %vm227_vm1, %v257_v3, 0.0 }
  0x42   : > { %v362_v9 = vadd.f32 %v361_v6, %v360_v34  ;;  %v271_v12 = vadd.f32 %v270_v37, %v269_v7  ;;  %v276_v13 = vadd.f32 %v275_v47, %v274_v39 }
  0x44   : > { %v363_v15 = vrot.slane %v362_v9, 1  ;;  %v273_v42 = vadd.f32 %v272_v61, %v271_v12 }
  0x46   : > { %v364_v10 = vadd.f32 %v363_v15, %v362_v9  ;;  %v277_v1 = vsel %vm258_vm2, %v273_v42, 0.0 }
  0x47   : > { %v278_v16 = vadd.f32 %v277_v1, %v276_v13 }
  0x48   : > { %511 = vmatmul.msk.f32.vlgmr.msra.gmra.mxu1 %vm227_vm1, %v364_v10 }
  0x49   : > { %v279_v43 = vrot.slane %v278_v16, 4 }
  0x4b   : > { %v280_v17 = vadd.f32 %v279_v43, %v278_v16 }
  0x4d   : > { %v281_v19 = vrot.slane %v280_v17, 2 }
  0x4f   : > { %v282_v22 = vadd.f32 %v281_v19, %v280_v17 }
  0x51   : > { %v283_v50 = vrot.slane %v282_v22, 1 }
  0x53   : > { %v284_v24 = vadd.f32 %v283_v50, %v282_v22 }
  0x55   : > { %510 = vmatmul.msk.f32.vlgmr.msra.gmra.mxu0 %vm227_vm1, %v284_v24 }
  0xc5   : > { %v416_v4 = vpop.f32.mrf.mxu1 }
  0xc6   : > { %v421_v8 = vrot.slane %v416_v4, 7 }
  0xd2   : > { %v393_v25 = vpop.f32.mrf.mxu0 }
  0xd3   : > { %v424_v26 = vsel %vm423_vm3, %v393_v25, %v421_v8 }
  0xd4   : > { %v425_v28 = vadd.f32 %v424_v26, %v419_v14 }
  0xd6   : > { %427 = vst.msk [vmem:[%s665_s22] sm:$0x3] %vm426_vm4, %v425_v28 }
  0xd7 PF: > { %s12_s13 = sadd.s32 1, %s614_s13   ;;  %s909_s9 = smov %s606_s11 }
  0xd8   : > { %p9_p8 = scmp.ge.s32.totalorder %s12_s13, 6   ;;  %s910_s10 = smov %s610_s12 }
  0xd9   : > { %s911_s11 = smov %s914_s14  ;;  %s912_s12 = smov %s918_s15 }
  0xda   :  { %11 = sbr.rel (!%p9_p8) target bundleno = 3 (0x3), region = 62 }

// kernel: resblock_pallas.4
= control target key start
LH: loop header
LB: loop body
LE: loop exit
PB: predicated region body
PF: predicated region fallthrough
CT: control target
= control target key end

     0   :  { %s627_s9 = smov 0   ;;  %s629_s10 = smov 0   ;;  %s890_s0 = inlined_call_operand.vmem [shape: bf16[2,16,18,32], index: 0, kind: input, shape index: {}]   ;;  %s891_s1 = inlined_call_operand.vmem [shape: f32[32,32], index: 1, kind: input, shape index: {}]   ;;  %s892_s2 = inlined_call_operand.vmem [shape: f32[2,2,32], index: 2, kind: output, shape index: {}]  }
   0x1   :  { %s631_s11 = smov 0   ;;  %s633_s12 = smov 0  }
   0x2   :  { %s635_s13 = smov 0  }
   0x3 LB: > { %s21_s14 = sadd.s32 1, %s601_s11  ;;  %s24_s15 = sadd.s32 1, %s605_s12  ;;  %s609_s13 = sphi %s635_s13, %s12_s13   ;;  %s605_s12 = sphi %s633_s12, %s896_s12   ;;  %s601_s11 = sphi %s631_s11, %s895_s11   ;;  %s597_s10 = sphi %s629_s10, %s894_s10   ;;  %s593_s9 = sphi %s627_s9, %s893_s9  }
   0x4   : > { %p22_p0 = scmp.ge.s32.totalorder %s21_s14, 2  ;;  %p500_p1 = scmp.ge.s32.totalorder %s609_s13, 1 }
   0x5   : > { %p132_p2 = scmp.lt.s32.totalorder %s609_s13, 5 }
   0x6   : > { %s898_s14 = smov (%p22_p0, %s21_s14), 0  ;;  %s900_s15 = smov (!%p22_p0, %s24_s15), %s605_s12 }
   0x7   : > { %p133_p3 = pnand %p500_p1, %p132_p2  ;;  %p26_p4 = scmp.ge.s32.totalorder %s900_s15, 2 }
   0x8   : > { %s501_s16 = sshll.u32 (!%p133_p3), %s593_s9, 3  ;;  %p159_p5 = scmp.lt.s32.totalorder (!%p133_p3), %s597_s10, 1 }
   0x9   : > { %s902_s15 = smov (%p26_p4, %s900_s15), 0  ;;  %136 = sbr.rel (%p133_p3) target bundleno = 215 (0xd7), region = 28 }
   0xa   : > { %p161_p6 = scmp.lt.s32.totalorder (!%p133_p3), %s501_s16, 15  ;;  %p504_p7 = scmp.ne.s32.totalorder (!%p133_p3), %s593_s9, 0 }
   0xe   : > { %s904_s10 = smov (!%p159_p5, %s597_s10), 1  ;;  %s906_s16 = smov (!%p161_p6, %s501_s16), 15 }
   0xf   : > { %s529_s17 = smul.u32 48, %s904_s10  ;;  %s503_s18 = sshll.u32 %s904_s10, 1 }
  0x10   : > { %s528_s19 = smul.u32 3, %s906_s16  ;;  %s660_s22 = scalar_lea.vmem %s892_s2, %s503_s18 }
  0x11   : > { %176 = sbr.rel (%p504_p7) target bundleno = 24 (0x18), region = 32 }
  0x12   : > { %s165_s23 = sadd.s32 %s529_s17, %s528_s19 }
  0x13   : > { %s502_s24 = sshll.u32 %s165_s23, 2 }
  0x14   : > { %s665_s27 = scalar_lea.vmem %s890_s0, %s502_s24 }
  0x16   : > { %vm177_vm0 = vcmask 254976   ;;  %v611_v0 = vmov 0.0  }
  0x17   : > { %178 = vst.msk [vmem:[%s660_s22] sm:$0x3] %vm177_vm0, %v611_v0 }
  0x18 PF: > { %v368_v1 = vld [vmem:[%s891_s1 + $0x18] sm:$0xff]  ;;  %v367_v2 = vld [vmem:[%s891_s1 + $0x10] sm:$0xff]  ;;  %v366_v3 = vld [vmem:[%s891_s1 + $0x8] sm:$0xff]  ;;  %vm227_vm1 = vcmask 261120   ;;  %vm258_vm2 = vcmask 254976   ;;  %vm419_vm3 = vcmask 1040384  }
  0x19   : > { %407 = vmatpush.msra.mxu1 %v368_v1  ;;  %384 = vmatpush.msra.mxu0 %v368_v1  ;;  %v510_v4 = vld [vmem:[%s665_s27] sm:$0xff]   ;;  %v181_v5 = vld [vmem:[%s665_s27 + $0x8] sm:$0x1]  ;;  %v182_v7 = vld [vmem:[%s665_s27 + $0xc] sm:$0xff]  }
  0x1a   : > { %v365_v6 = vld [vmem:[%s891_s1] sm:$0xff]  ;;  %v184_v8 = vld [vmem:[%s665_s27 + $0x14] sm:$0x1]  ;;  %v525_v9 = vld [vmem:[%s665_s27 + $0x18] sm:$0xff]   ;;  %v685_v10 = vunpack.c.l.bf16 %v510_v4  ;;  %v687_v11 = vunpack.c.h.bf16 %v510_v4  ;;  %v694_v16 = vunpack.c.l.bf16 %v181_v5  ;;  %v701_v21 = vunpack.c.l.bf16 %v182_v7 }
  0x1b   : > { %408 = vmatpush.msra.mxu1 %v367_v2  ;;  %385 = vmatpush.msra.mxu0 %v367_v2  ;;  %v689_v12 = vunpack.c.l.bf16 %v525_v9  ;;  %v187_v13 = vld [vmem:[%s665_s27 + $0x20] sm:$0x1]  ;;  %v188_v14 = vld [vmem:[%s665_s27 + $0x24] sm:$0xff]   ;;  %v190_v15 = vld [vmem:[%s665_s27 + $0x2c] sm:$0x1]  ;;  %v696_v17 = vunpack.c.h.bf16 %v525_v9  ;;  %v703_v22 = vunpack.c.h.bf16 %v182_v7  ;;  %v705_v23 = vunpack.c.l.bf16 %v184_v8 }
  0x1c   : > { %v526_v18 = vld [vmem:[%s665_s27 + $0x30] sm:$0xff]   ;;  %v193_v19 = vld [vmem:[%s665_s27 + $0x38] sm:$0x1]  ;;  %v194_v20 = vld [vmem:[%s665_s27 + $0x3c] sm:$0xff]   ;;  %v712_v28 = vunpack.c.l.bf16 %v187_v13  ;;  %v714_v29 = vunpack.c.l.bf16 %v188_v14  ;;  %v716_v30 = vunpack.c.h.bf16 %v188_v14  ;;  %v724_v35 = vunpack.c.l.bf16 %v190_v15 }
  0x1d   : > { %409 = vmatpush.msra.mxu1 %v366_v3  ;;  %386 = vmatpush.msra.mxu0 %v366_v3  ;;  %v707_v24 = vunpack.c.l.bf16 %v526_v18  ;;  %v196_v25 = vld [vmem:[%s665_s27 + $0x44] sm:$0x1]  ;;  %v527_v26 = vld [vmem:[%s665_s27 + $0x48] sm:$0xff]   ;;  %v199_v27 = vld [vmem:[%s665_s27 + $0x50] sm:$0x1]  ;;  %v718_v31 = vunpack.c.h.bf16 %v526_v18  ;;  %v726_v36 = vunpack.c.l.bf16 %v193_v19  ;;  %v730_v38 = vunpack.c.l.bf16 %v194_v20 }
  0x1e   : > { %v720_v32 = vunpack.c.l.bf16 %v527_v26  ;;  %v200_v33 = vld [vmem:[%s665_s27 + $0x54] sm:$0xff]   ;;  %v202_v34 = vld [vmem:[%s665_s27 + $0x5c] sm:$0x1]  ;;  %v728_v37 = vunpack.c.h.bf16 %v527_v26  ;;  %v732_v39 = vunpack.c.h.bf16 %v194_v20  ;;  %v734_v40 = vunpack.c.l.bf16 %v196_v25 }
  0x1f   : > { %410 = vmatpush.msra.mxu1 %v365_v6  ;;  %387 = vmatpush.msra.mxu0 %v365_v6  ;;  %v736_v41 = vunpack.c.l.bf16 %v199_v27  ;;  %v738_v42 = vunpack.c.l.bf16 %v200_v33  ;;  %v740_v43 = vunpack.c.h.bf16 %v200_v33  ;;  %v742_v44 = vunpack.c.l.bf16 %v202_v34 }
  0x20   : > { %v285_v45 = vmul.f32 %v685_v10, %v685_v10  ;;  %v286_v46 = vmul.f32 %v687_v11, %v687_v11  ;;  %v287_v47 = vmul.f32 %v694_v16, %v694_v16  ;;  %v288_v48 = vmul.f32 %v701_v21, %v701_v21 }
  0x21   : > { %v289_v49 = vmul.f32 %v703_v22, %v703_v22  ;;  %v290_v50 = vmul.f32 %v705_v23, %v705_v23  ;;  %v291_v51 = vmul.f32 %v689_v12, %v689_v12  ;;  %v292_v52 = vmul.f32 %v696_v17, %v696_v17 }
  0x22   : > { %v293_v53 = vmul.f32 %v712_v28, %v712_v28  ;;  %v294_v54 = vmul.f32 %v714_v29, %v714_v29  ;;  %v295_v55 = vmul.f32 %v716_v30, %v716_v30  ;;  %v296_v56 = vmul.f32 %v724_v35, %v724_v35 }
  0x23   : > { %v297_v57 = vmul.f32 %v707_v24, %v707_v24  ;;  %v298_v58 = vmul.f32 %v718_v31, %v718_v31  ;;  %v299_v59 = vmul.f32 %v726_v36, %v726_v36  ;;  %v300_v60 = vmul.f32 %v730_v38, %v730_v38 }
  0x24   : > { %v301_v61 = vmul.f32 %v732_v39, %v732_v39  ;;  %v302_v62 = vmul.f32 %v734_v40, %v734_v40  ;;  %v303_v63 = vmul.f32 %v720_v32, %v720_v32  ;;  %v304_v0 = vmul.f32 %v728_v37, %v728_v37 }
  0x25   : > { %v306_v1 = vmul.f32 %v738_v42, %v738_v42  ;;  %v309_v2 = vsel %vm227_vm1, %v285_v45, 0.0  ;;  %v310_v3 = vsel %vm227_vm1, %v288_v48, 0.0  ;;  %v312_v4 = vsel %vm227_vm1, %v291_v51, 0.0 }
  0x26   : > { %v305_v5 = vmul.f32 %v736_v41, %v736_v41  ;;  %v307_v6 = vmul.f32 %v740_v43, %v740_v43  ;;  %v308_v7 = vmul.f32 %v742_v44, %v742_v44  ;;  %v311_v8 = vadd.f32 %v310_v3, %v309_v2 }
  0x27   : > { %v314_v9 = vsel %vm227_vm1, %v294_v54, 0.0  ;;  %v316_v13 = vsel %vm227_vm1, %v297_v57, 0.0  ;;  %v324_v14 = vsel %vm227_vm1, %v286_v46, 0.0  ;;  %v325_v15 = vsel %vm227_vm1, %v289_v49, 0.0 }
  0x28   : > { %v313_v18 = vadd.f32 %v312_v4, %v311_v8  ;;  %v318_v19 = vsel %vm227_vm1, %v300_v60, 0.0  ;;  %v326_v20 = vadd.f32 %v325_v15, %v324_v14  ;;  %v327_v25 = vsel %vm227_vm1, %v292_v52, 0.0 }
  0x29   : > { %v320_v26 = vsel %vm227_vm1, %v303_v63, 0.0  ;;  %v322_v27 = vsel %vm227_vm1, %v306_v1, 0.0  ;;  %v329_v33 = vsel %vm227_vm1, %v295_v55, 0.0  ;;  %v331_v34 = vsel %vm227_vm1, %v298_v58, 0.0 }
  0x2a   : > { %v315_v45 = vadd.f32 %v314_v9, %v313_v18  ;;  %v328_v48 = vadd.f32 %v327_v25, %v326_v20  ;;  %v339_v46 = vsel %vm258_vm2, %v287_v47, 0.0  ;;  %v340_v49 = vsel %vm258_vm2, %v290_v50, 0.0 }
  0x2b   : > { %v333_v51 = vsel %vm227_vm1, %v301_v61, 0.0  ;;  %v335_v54 = vsel %vm227_vm1, %v304_v0, 0.0  ;;  %v341_v57 = vadd.f32 %v340_v49, %v339_v46  ;;  %v342_v52 = vsel %vm258_vm2, %v293_v53, 0.0 }
  0x2c   : > { %v317_v60 = vadd.f32 %v316_v13, %v315_v45  ;;  %v330_v63 = vadd.f32 %v329_v33, %v328_v48  ;;  %v337_v1 = vsel %vm227_vm1, %v307_v6, 0.0  ;;  %v344_v55 = vsel %vm258_vm2, %v296_v56, 0.0 }
  0x2d   : > { %v343_v58 = vadd.f32 %v342_v52, %v341_v57  ;;  %v346_v2 = vsel %vm258_vm2, %v299_v59, 0.0  ;;  %v228_v47 = vsel %vm227_vm1, %v685_v10, 0.0  ;;  %v229_v50 = vsel %vm227_vm1, %v701_v21, 0.0 }
  0x2e   : > { %v319_v61 = vadd.f32 %v318_v19, %v317_v60  ;;  %v332_v0 = vadd.f32 %v331_v34, %v330_v63  ;;  %v230_v3 = vadd.f32 %v229_v50, %v228_v47  ;;  %v231_v53 = vsel %vm227_vm1, %v689_v12, 0.0 }
  0x2f   : > { %v345_v4 = vadd.f32 %v344_v55, %v343_v58  ;;  %v348_v6 = vsel %vm258_vm2, %v302_v62, 0.0  ;;  %v350_v56 = vsel %vm258_vm2, %v305_v5, 0.0  ;;  %v233_v59 = vsel %vm227_vm1, %v714_v29, 0.0 }
  0x30   : > { %v321_v8 = vadd.f32 %v320_v26, %v319_v61  ;;  %v334_v9 = vadd.f32 %v333_v51, %v332_v0  ;;  %v352_v10 = vsel %vm258_vm2, %v308_v7, 0.0  ;;  %v232_v13 = vadd.f32 %v231_v53, %v230_v3 }
  0x31   : > { %v347_v21 = vadd.f32 %v346_v2, %v345_v4  ;;  %v235_v14 = vsel %vm227_vm1, %v707_v24, 0.0  ;;  %v243_v12 = vsel %vm227_vm1, %v687_v11, 0.0  ;;  %v244_v62 = vsel %vm227_vm1, %v703_v22, 0.0 }
  0x32   : > { %v323_v15 = vadd.f32 %v322_v27, %v321_v8  ;;  %v336_v5 = vadd.f32 %v335_v54, %v334_v9  ;;  %v234_v18 = vadd.f32 %v233_v59, %v232_v13  ;;  %v245_v19 = vadd.f32 %v244_v62, %v243_v12 }
  0x33   : > { %v349_v29 = vadd.f32 %v348_v6, %v347_v21  ;;  %v237_v20 = vsel %vm227_vm1, %v730_v38, 0.0  ;;  %v246_v7 = vsel %vm227_vm1, %v696_v17, 0.0  ;;  %v248_v24 = vsel %vm227_vm1, %v716_v30, 0.0 }
  0x34   : > { %v338_v25 = vadd.f32 %v337_v1, %v336_v5  ;;  %v354_v11 = vsel %vm227_vm1, %v323_v15, 0.0  ;;  %v236_v26 = vadd.f32 %v235_v14, %v234_v18  ;;  %v247_v33 = vadd.f32 %v246_v7, %v245_v19  ;;  %v415_v18 = vld [vmem:[%s660_s22] sm:$0x3] }
  0x35   : > { %v351_v22 = vadd.f32 %v350_v56, %v349_v29  ;;  %v239_v27 = vsel %vm227_vm1, %v720_v32, 0.0  ;;  %v250_v34 = vsel %vm227_vm1, %v718_v31, 0.0  ;;  %v252_v38 = vsel %vm227_vm1, %v732_v39, 0.0 }
  0x36   : > { %v355_v17 = vsel %vm227_vm1, %v338_v25, 0.0  ;;  %v238_v45 = vadd.f32 %v237_v20, %v236_v26  ;;  %v249_v48 = vadd.f32 %v248_v24, %v247_v33  ;;  %v259_v30 = vsel %vm258_vm2, %v694_v16, 0.0 }
  0x37   : > { %v353_v46 = vadd.f32 %v352_v10, %v351_v22  ;;  %v356_v49 = vadd.f32 %v355_v17, %v354_v11  ;;  %v260_v51 = vsel %vm258_vm2, %v705_v23, 0.0  ;;  %v262_v32 = vsel %vm258_vm2, %v712_v28, 0.0 }
  0x38   : > { %v240_v54 = vadd.f32 %v239_v27, %v238_v45  ;;  %v251_v31 = vadd.f32 %v250_v34, %v249_v48  ;;  %v261_v57 = vadd.f32 %v260_v51, %v259_v30  ;;  %v241_v52 = vsel %vm227_vm1, %v738_v42, 0.0 }
  0x39   : > { %v357_v39 = vsel %vm258_vm2, %v353_v46, 0.0  ;;  %v254_v60 = vsel %vm227_vm1, %v728_v37, 0.0  ;;  %v264_v16 = vsel %vm258_vm2, %v724_v35, 0.0  ;;  %v256_v28 = vsel %vm227_vm1, %v740_v43, 0.0 }
  0x3a   : > { %v358_v63 = vadd.f32 %v357_v39, %v356_v49  ;;  %v253_v1 = vadd.f32 %v252_v38, %v251_v31  ;;  %v263_v23 = vadd.f32 %v262_v32, %v261_v57  ;;  %v266_v55 = vsel %vm258_vm2, %v726_v36, 0.0 }
  0x3b   : > { %v242_v2 = vadd.f32 %v241_v52, %v240_v54  ;;  %v268_v42 = vsel %vm258_vm2, %v734_v40, 0.0  ;;  %v270_v35 = vsel %vm258_vm2, %v736_v41, 0.0  ;;  %v272_v36 = vsel %vm258_vm2, %v742_v44, 0.0 }
  0x3c   : > { %v359_v58 = vrot.slane %v358_v63, 4  ;;  %v255_v47 = vadd.f32 %v254_v60, %v253_v1  ;;  %v265_v50 = vadd.f32 %v264_v16, %v263_v23 }
  0x3d   : > { %v274_v43 = vsel %vm227_vm1, %v242_v2, 0.0 }
  0x3e   : > { %v360_v37 = vadd.f32 %v359_v58, %v358_v63  ;;  %v257_v61 = vadd.f32 %v256_v28, %v255_v47  ;;  %v267_v0 = vadd.f32 %v266_v55, %v265_v50 }
  0x40   : > { %v361_v3 = vrot.slane %v360_v37, 2  ;;  %v269_v53 = vadd.f32 %v268_v42, %v267_v0  ;;  %v275_v4 = vsel %vm227_vm1, %v257_v61, 0.0 }
  0x41   : > { %v276_v59 = vadd.f32 %v275_v4, %v274_v43 }
  0x42   : > { %v362_v6 = vadd.f32 %v361_v3, %v360_v37  ;;  %v271_v56 = vadd.f32 %v270_v35, %v269_v53 }
  0x44   : > { %v363_v8 = vrot.slane %v362_v6, 1  ;;  %v273_v40 = vadd.f32 %v272_v36, %v271_v56 }
  0x46   : > { %v364_v9 = vadd.f32 %v363_v8, %v362_v6  ;;  %v277_v10 = vsel %vm258_vm2, %v273_v40, 0.0 }
  0x47   : > { %v278_v13 = vadd.f32 %v277_v10, %v276_v59 }
  0x48   : > { %506 = vmatmul.msk.f32.vlgmr.msra.gmra.mxu1 %vm227_vm1, %v364_v9 }
  0x49   : > { %v279_v41 = vrot.slane %v278_v13, 4 }
  0x4b   : > { %v280_v21 = vadd.f32 %v279_v41, %v278_v13 }
  0x4d   : > { %v281_v14 = vrot.slane %v280_v21, 2 }
  0x4f   : > { %v282_v12 = vadd.f32 %v281_v14, %v280_v21 }
  0x51   : > { %v283_v62 = vrot.slane %v282_v12, 1 }
  0x53   : > { %v284_v15 = vadd.f32 %v283_v62, %v282_v12 }
  0x55   : > { %505 = vmatmul.msk.f32.vlgmr.msra.gmra.mxu0 %vm227_vm1, %v284_v15 }
  0xc5   : > { %v412_v44 = vpop.f32.mrf.mxu1 }
  0xc6   : > { %v417_v5 = vrot.slane %v412_v44, 7 }
  0xd2   : > { %v389_v19 = vpop.f32.mrf.mxu0 }
  0xd3   : > { %v420_v29 = vsel %vm419_vm3, %v389_v19, %v417_v5 }
  0xd4   : > { %v421_v20 = vadd.f32 %v420_v29, %v415_v18 }
  0xd6   : > { %422 = vst.msk [vmem:[%s660_s22] sm:$0x3] %vm258_vm2, %v421_v20 }
  0xd7 PF: > { %s12_s13 = sadd.s32 1, %s609_s13   ;;  %s893_s9 = smov %s601_s11 }
  0xd8   : > { %p9_p8 = scmp.ge.s32.totalorder %s12_s13, 6   ;;  %s894_s10 = smov %s605_s12 }
  0xd9   : > { %s895_s11 = smov %s898_s14  ;;  %s896_s12 = smov %s902_s15 }
  0xda   :  { %11 = sbr.rel (!%p9_p8) target bundleno = 3 (0x3), region = 62 }

// kernel: resblock_pallas.5
= control target key start
LH: loop header
LB: loop body
LE: loop exit
PB: predicated region body
PF: predicated region fallthrough
CT: control target
= control target key end

     0   :  { %s3684_s24 = smov 0   ;;  %s3686_s25 = smov 0   ;;  %s5657_s0 = inlined_call_operand.vmem [shape: bf16[2,16,18,32], index: 0, kind: input, shape index: {}, may-alias: {0,1,2}]   ;;  %s5658_s1 = inlined_call_operand.vmem [shape: bf16[2,16,18,32], index: 1, kind: input, shape index: {}, may-alias: {0,1,2}]   ;;  %s5659_s2 = inlined_call_operand.vmem [shape: bf16[2,16,18,32], index: 2, kind: input, shape index: {}, may-alias: {0,1,2}]   ;;  %s5660_s3 = inlined_call_operand.vmem [shape: f32[2,1,32], index: 3, kind: input, shape index: {}]   ;;  %s5661_s4 = inlined_call_operand.vmem [shape: f32[2,1,32], index: 4, kind: input, shape index: {}]   ;;  %s5662_s5 = inlined_call_operand.vmem [shape: bf16[9,32,64], index: 5, kind: input, shape index: {}]   ;;  %s5663_s6 = inlined_call_operand.vmem [shape: f32[1,64], index: 6, kind: input, shape index: {}]   ;;  %s5664_s7 = inlined_call_operand.vmem [shape: bf16[2,16,18,64], index: 7, kind: output, shape index: {}]  }
   0x1   :  { %s3688_s26 = smov 0   ;;  %s3690_s27 = smov 0  }
   0x2   :  { %s3692_s28 = smov 0  }
   0x3 LB: > { %s26_s29 = sadd.s32 1, %s3633_s26  ;;  %s29_s30 = sadd.s32 1, %s3637_s27  ;;  %s3641_s28 = sphi %s3692_s28, %s17_s28   ;;  %s3637_s27 = sphi %s3690_s27, %s5789_s27   ;;  %s3633_s26 = sphi %s3688_s26, %s5788_s26   ;;  %s3629_s25 = sphi %s3686_s25, %s5787_s25   ;;  %s3625_s24 = sphi %s3684_s24, %s5786_s24  }
   0x4   : > { %p27_p0 = scmp.ge.s32.totalorder %s26_s29, 2  ;;  %p3062_p1 = scmp.ge.s32.totalorder %s3641_s28, 1 }
   0x5   : > { %p339_p2 = scmp.lt.s32.totalorder %s3641_s28, 5 }
   0x6   : > { %s5791_s29 = smov (%p27_p0, %s26_s29), 0  ;;  %s5793_s30 = smov (!%p27_p0, %s29_s30), %s3637_s27 }
   0x7   : > { %p340_p3 = pnand %p3062_p1, %p339_p2  ;;  %p31_p4 = scmp.ge.s32.totalorder %s5793_s30, 2 }
   0x9   : > { %s5795_s30 = smov (%p31_p4, %s5793_s30), 0  ;;  %343 = sbr.rel (%p340_p3) target bundleno = 703 (0x2bf), region = 48 }
   0xe   : > { %v1204_v0 = vlaneseq  ;;  %s3714_s8 = sshll.u32 %s3625_s24, 3  ;;  %p417_p5 = scmp.lt.s32.totalorder %s3629_s25, 1  ;;  %v3643_v9 = vmov 0.0  }
   0xf   : > { %s3717_s9 = sadd.s32 4294967295, %s3714_s8  ;;  %v2733_v1 = vstv %s3714_s8  ;;  %p433_p7 = scmp.lt.s32.totalorder %s3714_s8, 15 }
  0x10   : > { %v1205_v2 = vshrl.u32 %v1204_v0, 7  ;;  %v1209_v3 = vstv %s3717_s9  ;;  %v1213_v4 = vand.u32 127, %v1204_v0  ;;  %s5797_s25 = smov (!%p417_p5, %s3629_s25), 1  ;;  %p415_p6 = scmp.gt.s32.totalorder %s3717_s9, 0 }
  0x11   : > { %s3729_s12 = scalar_lea.vmem %s5660_s3, %s5797_s25  ;;  %s3735_s15 = scalar_lea.vmem %s5661_s4, %s5797_s25 }
  0x12   : > { %3420 = vset.pattern.permute.xlu1 %v1205_v2  ;;  %3408 = vset.pattern.permute.xlu0 %v1205_v2  ;;  %v1210_v5 = vadd.s32 %v1209_v3, %v1205_v2  ;;  %v3112_v6 = vadd.s32 4294967295, %v1213_v4  ;;  %v2734_v7 = vadd.s32 %v2733_v1, %v1205_v2  ;;  %v3723_v8 = vadd.s32 16, %v1205_v2  ;;  %p3065_p8 = scmp.lt.s32.totalorder %s3717_s9, 15  ;;  %s5799_s9 = smov (!%p415_p6, %s3717_s9), 0  ;;  %v3795_v32 = vld [vmem:[%s3729_s12] ss:$0 sm:$0xff] }
  0x13   : > { %v3748_v18 = vadd.s32 8, %v1205_v2  ;;  %s434_s16 = scalar_select %p433_p7, %s3714_s8, 15  ;;  %v3802_v35 = vld [vmem:[%s3735_s15] ss:$0 sm:$0xff] }
  0x14   : > { %vm1215_vm0 = vcmp.ge.s32.totalorder %v1210_v5, 0  ;;  %vm1217_vm1 = vcmp.lt.s32.totalorder %v1210_v5, 16  ;;  %vm1221_vm2 = vcmp.ge.s32.totalorder %v3112_v6, 0  ;;  %vm1224_vm3 = vcmp.lt.s32.totalorder %v3112_v6, 16  ;;  %3438 = vset.pattern.permute.xlu2 %v3723_v8  ;;  %s5801_s9 = smov (!%p3065_p8, %s5799_s9), 15  ;;  %s3767_s17 = smul.u32 48, %s5797_s25 }
  0x15   : > { %vm1219_vm4 = vmand %vm1215_vm0, %vm1217_vm1  ;;  %vm2735_vm5 = vcmp.lt.s32.totalorder %v2734_v7, 16  ;;  %v1211_v19 = vadd.s32 %v1209_v3, %v3748_v18  ;;  %s3365_s18 = smul.u32 3, %s434_s16  ;;  %s3311_s14 = sadd.s32 8, %s3714_s8 }
  0x16   : > { %vm1222_vm6 = vmand %vm1219_vm4, %vm1221_vm2  ;;  %v3739_v10 = vsel %vm2735_vm5, 1.0, %v3643_v9  ;;  %s3363_s19 = smul.u32 3, %s5801_s9  ;;  %p443_p9 = scmp.lt.s32.totalorder %s3311_s14, 15 }
  0x17   : > { %5666 = vst [vmem:[#allocation2_spill] sm:$0xff] %v3739_v10  ;;  %vm1225_vm7 = vmand %vm1222_vm6, %vm1224_vm3  ;;  %vm1216_vm8 = vcmp.ge.s32.totalorder %v1211_v19, 0  ;;  %vm1218_vm9 = vcmp.lt.s32.totalorder %v1211_v19, 16  ;;  %s3771_s20 = sadd.s32 %s3365_s18, %s3767_s17 }
  0x18   : > { %v3742_v11 = vsel %vm1225_vm7, 1.0, %v3643_v9  ;;  %vm1220_vm10 = vmand %vm1216_vm8, %vm1218_vm9  ;;  %s423_s21 = sadd.s32 %s3767_s17, %s3363_s19  ;;  %s3072_s22 = sshll.u32 %s3771_s20, 2 }
  0x19   : > { %v1307_v12 = vperm.slane %v3742_v11, 4  ;;  %v1345_v13 = vperm.slane %v3742_v11, 6  ;;  %v1231_v14 = vperm.slane %v3742_v11, 0  ;;  %v1269_v15 = vperm.slane %v3742_v11, 2  ;;  %vm1223_vm11 = vmand %vm1220_vm10, %vm1221_vm2  ;;  %s3070_s23 = sshll.u32 %s423_s21, 2  ;;  %s3783_s9 = scalar_lea.vmem %s5658_s1, %s3072_s22 }
  0x1a   : > { %v1326_v20 = vperm.slane %v3742_v11, 5  ;;  %v1364_v21 = vperm.slane %v3742_v11, 7  ;;  %v1250_v23 = vperm.slane %v3742_v11, 1  ;;  %v1288_v24 = vperm.slane %v3742_v11, 3  ;;  %vm1226_vm12 = vmand %vm1223_vm11, %vm1224_vm3  ;;  %s3788_s13 = scalar_lea.vmem %s5657_s0, %s3070_s23  ;;  %v482_v29 = vld [vmem:[%s3783_s9 + $0xc] sm:$0xf]  ;;  %s5524_s25 = scalar_lea.vmem %s5664_s7, %s3072_s22 }
  0x1b   : > { %v3409_v16 = vpack.i.bf16 %v1345_v13, %v1307_v12  ;;  %v3421_v17 = vpack.i.bf16 %v1231_v14, %v1269_v15  ;;  %v3114_v26 = vsel %vm1226_vm12, 1.0, %v3643_v9  ;;  %v3792_v30 = vld [vmem:[%s3788_s13] sm:$0xff]   ;;  %v512_v31 = vunpack.c.l.bf16 %v482_v29  ;;  %v490_v41 = vld [vmem:[%s3783_s9 + $0x2c] sm:$0x1]  ;;  %v484_v12 = vld [vmem:[%s3783_s9 + $0x14] sm:$0x1] }
  0x1c   : > { %v3450_v22 = vpack.i.bf16 %v1364_v21, %v1326_v20  ;;  %v3456_v25 = vpack.i.bf16 %v1250_v23, %v1288_v24  ;;  %v1383_v27 = vperm.slane %v3114_v26, 0  ;;  %v3774_v28 = vperm.slane %v3114_v26, 1  ;;  %v496_v42 = vld [vmem:[%s3783_s9 + $0x44] sm:$0x1]  ;;  %v494_v46 = vld [vmem:[%s3783_s9 + $0x3c] sm:$0xff]   ;;  %s5803_s14 = smov (!%p443_p9, %s3311_s14), 15 }
  0x1d   : > { %3410 = vperm.xlu0 %3408, %v3409_v16   ;;  %3422 = vperm.xlu1 %3420, %v3421_v17   ;;  %v3332_v33 = vunpack.c.l.bf16 %v3792_v30  ;;  %v546_v34 = vmul.f32 %v3795_v32, %v512_v31  ;;  %v520_v43 = vunpack.c.l.bf16 %v490_v41  ;;  %v526_v44 = vunpack.c.l.bf16 %v496_v42  ;;  %v488_v45 = vld [vmem:[%s3783_s9 + $0x24] sm:$0xff]   ;;  %s5805_s14 = smov (!%p443_p9, %s5803_s14), 15 }
  0x1e   : > { %3440 = vperm.xlu2 %3438, %v3409_v16   ;;  %v518_v49 = vunpack.c.l.bf16 %v488_v45  ;;  %v524_v52 = vunpack.c.l.bf16 %v494_v46  ;;  %v519_v53 = vunpack.c.h.bf16 %v488_v45  ;;  %v525_v6 = vunpack.c.h.bf16 %v494_v46  ;;  %v478_v14 = vld [vmem:[%s3788_s13 + $0x8] sm:$0x1]  ;;  %s3366_s8 = smul.u32 3, %s5805_s14 }
  0x1f   : > { %v540_v36 = vmul.f32 %v3795_v32, %v3332_v33  ;;  %v3806_v37 = vadd.f32 %v3802_v35, %v546_v34  ;;  %v554_v47 = vmul.f32 %v3795_v32, %v520_v43  ;;  %v560_v48 = vmul.f32 %v3795_v32, %v526_v44 }
  0x20   : > { %v552_v56 = vmul.f32 %v3795_v32, %v518_v49  ;;  %v558_v58 = vmul.f32 %v3795_v32, %v524_v52  ;;  %v553_v60 = vmul.f32 %v3795_v32, %v519_v53  ;;  %v559_v11 = vmul.f32 %v3795_v32, %v525_v6  ;;  %s451_s16 = sadd.s32 %s3366_s8, %s3767_s17 }
  0x21   : > { %v3809_v38 = vadd.f32 %v3802_v35, %v540_v36  ;;  %v3086_v39 = vmul.f32 -1.442695, %v3806_v37  ;;  %v3822_v50 = vadd.f32 %v3802_v35, %v554_v47  ;;  %v3825_v51 = vadd.f32 %v3802_v35, %v560_v48  ;;  %s3077_s18 = sshll.u32 %s451_s16, 2 }
  0x22   : > { %v3835_v62 = vadd.f32 %v3802_v35, %v552_v56  ;;  %v3840_v0 = vadd.f32 %v3802_v35, %v558_v58  ;;  %v3843_v1 = vadd.f32 %v3802_v35, %v553_v60  ;;  %v508_v20 = vunpack.c.l.bf16 %v478_v14  ;;  %s453_s23 = scalar_lea.vmem %s5659_s2, %s3077_s18 }
  0x23   : > { %v3080_v40 = vmul.f32 -1.442695, %v3809_v38  ;;  %3479 = vpow2.f32 %v3086_v39  ;;  %v3094_v54 = vmul.f32 -1.442695, %v3822_v50  ;;  %v3100_v55 = vmul.f32 -1.442695, %v3825_v51 }
  0x24   : > { %v3092_v5 = vmul.f32 -1.442695, %v3835_v62  ;;  %v3093_v9 = vmul.f32 -1.442695, %v3843_v1  ;;  %v542_v31 = vmul.f32 %v3795_v32, %v508_v20 }
  0x25   : > { %3414 = vset.pattern.permute.xlu0 %v3748_v18  ;;  %3426 = vset.pattern.permute.xlu1 %v3748_v18  ;;  %3481 = vpow2.f32 %v3080_v40 }
  0x26   : > { %3445 = vperm.xlu2 %3438, %v3421_v17   ;;  %3483 = vpow2.f32 %v3094_v54  ;;  %v3894_v44 = vadd.f32 %v3802_v35, %v542_v31 }
  0x27   : > { %3485 = vpow2.f32 %v3100_v55 }
  0x28   : > { %v3082_v54 = vmul.f32 -1.442695, %v3894_v44 }
  0x29   : > { %v3480_v57 = vpop.eup %3479 }
  0x2a   : > { %v3832_v61 = vadd.f32 1.0, %v3480_v57 }
  0x2b   : > { %v3482_v59 = vpop.eup %3481 }
  0x2c   : > { %v3837_v63 = vadd.f32 1.0, %v3482_v59  ;;  %3487 = vrcp.f32 %v3832_v61  ;;  %vm819_vm13 = vweird.f32 %v3832_v61  ;;  %v825_v47 = vand.u32 2147483648, %v3832_v61 }
  0x2d   : > { %3416 = vperm.xlu0 %3414, %v3409_v16   ;;  %3428 = vperm.xlu1 %3426, %v3421_v17   ;;  %v3867_v17 = vadd.f32 %v3802_v35, %v559_v11 }
  0x2e   : > { %3449 = vset.pattern.permute.xlu2 %v3748_v18  ;;  %3489 = vrcp.f32 %v3837_v63  ;;  %vm729_vm4 = vweird.f32 %v3837_v63  ;;  %v735_v14 = vand.u32 2147483648, %v3837_v63 }
  0x35   : > { %3432 = vset.pattern.permute.xlu1 %v1205_v2  ;;  %3455 = vset.pattern.permute.xlu0 %v1205_v2  ;;  %v3484_v2 = vpop.eup %3483 }
  0x36   : > { %3451 = vperm.xlu2 %3449, %v3450_v22   ;;  %v3486_v3 = vpop.eup %3485  ;;  %v3846_v4 = vadd.f32 1.0, %v3484_v2 }
  0x37   : > { %v3850_v7 = vadd.f32 1.0, %v3486_v3  ;;  %v3859_v13 = vpop.eup %3487 }
  0x38   : > { %3491 = vrcp.f32 %v3846_v4  ;;  %v3862_v15 = vpop.eup %3489  ;;  %v815_v36 = vmul.f32 %v3859_v13, %v3832_v61  ;;  %vm820_vm14 = vweird.f32 %v3859_v13  ;;  %vm939_vm15 = vweird.f32 %v3846_v4 }
  0x39   : > { %3493 = vrcp.f32 %v3850_v7  ;;  %v725_v39 = vmul.f32 %v3862_v15, %v3837_v63  ;;  %v943_v56 = vand.u32 2147483647, %v3846_v4  ;;  %vm1029_vm1 = vweird.f32 %v3850_v7  ;;  %vm3977_vm9 = vmor %vm819_vm13, %vm820_vm14 }
  0x3a   : > { %3495 = vpow2.f32 %v3092_v5  ;;  %v816_v46 = vsub.f32 1.0, %v815_v36  ;;  %v945_v60 = vand.u32 2147483648, %v3846_v4  ;;  %v1033_v2 = vand.u32 2147483647, %v3850_v7 }
  0x3b   : > { %v726_v48 = vsub.f32 1.0, %v725_v39  ;;  %v1035_v3 = vand.u32 2147483648, %v3850_v7  ;;  %vm730_vm5 = vweird.f32 %v3862_v15  ;;  %vm3947_vm7 = vcmp.eq.f32.partialorder %v943_v56, 8.507059e+37 }
  0x3c   : > { %v817_v59 = vmul.f32 %v3859_v13, %v816_v46  ;;  %vm3954_vm8 = vcmp.eq.f32.partialorder %v1033_v2, 8.507059e+37  ;;  %v823_v39 = vand.u32 2147483647, %v3832_v61  ;;  %vm3990_vm10 = vmor %vm729_vm4, %vm730_vm5 }
  0x3d   : > { %3434 = vperm.xlu1 %3432, %v3450_v22   ;;  %3457 = vperm.xlu0 %3455, %v3456_v25   ;;  %v727_v6 = vmul.f32 %v3862_v15, %v726_v48 }
  0x3e   : > { %3467 = vset.pattern.permute.xlu2 %v3723_v8  ;;  %v3864_v16 = vpop.eup %3491  ;;  %v3971_v31 = vadd.f32 %v3859_v13, %v817_v59  ;;  %vm4013_vm11 = vcmp.eq.f32.partialorder %v823_v39, 8.507059e+37 }
  0x3f   : > { %v3869_v19 = vpop.eup %3493  ;;  %vm940_vm0 = vweird.f32 %v3864_v16 }
  0x40   : > { %v3496_v21 = vpop.eup %3495  ;;  %v1025_v26 = vmul.f32 %v3869_v19, %v3850_v7  ;;  %vm1030_vm2 = vweird.f32 %v3869_v19  ;;  %vm3928_vm3 = vmor %vm939_vm15, %vm940_vm0  ;;  %v1036_v7 = vor.u32 1.1754944e-38, %v1035_v3 }
  0x41   : > { %v3878_v29 = vadd.f32 1.0, %v3496_v21  ;;  %vm3942_vm6 = vmor %vm1029_vm1, %vm1030_vm2 }
  0x42   : > { %v1026_v42 = vsub.f32 1.0, %v1025_v26 }
  0x43   : > { %vm909_vm13 = vweird.f32 %v3878_v29 }
  0x44   : > { %v1027_v52 = vmul.f32 %v3869_v19, %v1026_v42  ;;  %v733_v42 = vand.u32 2147483647, %v3837_v63  ;;  %v822_v63 = vsel %vm3977_vm9, %v3859_v13, %v3971_v31 }
  0x45   : > { %3461 = vset.pattern.permute.xlu1 %v3748_v18  ;;  %1388 = vperm.xlu0 %3455, %v1383_v27  }
  0x46   : > { %3469 = vperm.xlu2 %3467, %v3450_v22   ;;  %v1028_v11 = vadd.f32 %v3869_v19, %v1027_v52  ;;  %v736_v52 = vor.u32 1.1754944e-38, %v735_v14  ;;  %vm4017_vm12 = vcmp.eq.f32.partialorder %v733_v42, 8.507059e+37  ;;  %v913_v14 = vand.u32 2147483647, %v3878_v29 }
  0x48   : > { %v1032_v26 = vsel %vm3942_vm6, %v3869_v19, %v1028_v11  ;;  %vm4062_vm5 = vcmp.eq.f32.partialorder %v913_v14, 8.507059e+37 }
  0x49   : > { %v1037_v46 = vsel %vm3954_vm8, %v1036_v7, %v1032_v26 }
  0x4a   : > { %v1194_v3 = vmul.f32 %v1037_v46, %v3825_v51 }
  0x4d   : > { %3463 = vperm.xlu1 %3461, %v3456_v25   ;;  %1407 = vperm.xlu0 %3455, %v3774_v28   ;;  %v935_v25 = vmul.f32 %v3864_v16, %v3846_v4  ;;  %v915_v4 = vand.u32 2147483648, %v3878_v29 }
  0x4e   : > { %1267 = vperm.xlu2 %3467, %v1250_v23   ;;  %v483_v23 = vld [vmem:[%s3783_s9 + $0x10] sm:$0xf] }
  0x4f   : > { %v513_v34 = vunpack.c.l.bf16 %v483_v23  ;;  %v936_v41 = vsub.f32 1.0, %v935_v25  ;;  %v946_v23 = vor.u32 1.1754944e-38, %v945_v60 }
  0x51   : > { %v547_v45 = vmul.f32 %v3795_v32, %v513_v34  ;;  %v937_v49 = vmul.f32 %v3864_v16, %v936_v41 }
  0x53   : > { %v3912_v57 = vadd.f32 %v3802_v35, %v547_v45 }
  0x55   : > { %3473 = vset.pattern.permute.xlu1 %v3723_v8  ;;  %3475 = vset.pattern.permute.xlu0 %v3723_v8  ;;  %v3098_v8 = vmul.f32 -1.442695, %v3840_v0 }
  0x56   : > { %1400 = vperm.xlu2 %3467, %v1383_v27  }
  0x57   : > { %3497 = vpow2.f32 %v3098_v8  ;;  %v938_v8 = vadd.f32 %v3864_v16, %v937_v49  ;;  %v826_v49 = vor.u32 1.1754944e-38, %v825_v47 }
  0x58   : > { %3499 = vpow2.f32 %v3093_v9 }
  0x5d   : > { %1305 = vperm.xlu1 %3473, %v1288_v24   ;;  %v3498_v22 = vpop.eup %3497 }
  0x5e   : > { %1419 = vperm.xlu2 %3467, %v3774_v28   ;;  %v3500_v24 = vpop.eup %3499  ;;  %v3881_v33 = vadd.f32 1.0, %v3498_v22  ;;  %v3087_v22 = vmul.f32 -1.442695, %v3912_v57 }
  0x5f   : > { %v3887_v40 = vadd.f32 1.0, %v3500_v24 }
  0x60   : > { %vm999_vm15 = vweird.f32 %v3881_v33  ;;  %v1003_v20 = vand.u32 2147483647, %v3881_v33 }
  0x61   : > { %vm924_vm1 = vweird.f32 %v3887_v40 }
  0x62   : > { %vm4066_vm6 = vcmp.eq.f32.partialorder %v1003_v20, 8.507059e+37  ;;  %v4129_v20 = vld [vmem:[%s3783_s9 + $0x48] sm:$0xff]  }
  0x65   : > { %3474 = vset.pattern.permute.xlu1 %v3748_v18  ;;  %v514_v18 = vunpack.c.l.bf16 %v484_v12 }
  0x6d   : > { %1394 = vperm.xlu1 %3474, %v1383_v27   ;;  %v3099_v27 = vmul.f32 -1.442695, %v3867_v17 }
  0x6f   : > { %3501 = vpow2.f32 %v3099_v27 }
  0x70   : > { %3503 = vrcp.f32 %v3878_v29 }
  0x71   : > { %3505 = vrcp.f32 %v3881_v33 }
  0x72   : > { %3507 = vrcp.f32 %v3887_v40 }
  0x75   : > { %1413 = vperm.xlu1 %3474, %v3774_v28   ;;  %v548_v28 = vmul.f32 %v3795_v32, %v514_v18  ;;  %v3502_v55 = vpop.eup %3501  ;;  %v3333_v18 = vunpack.c.h.bf16 %v3792_v30  ;;  %v942_v30 = vsel %vm3928_vm3, %v3864_v16, %v938_v8  ;;  %v3982_v16 = vadd.f32 %v3862_v15, %v727_v6 }
  0x76   : > { %v3914_v58 = vpop.eup %3503  ;;  %v3951_v21 = vadd.f32 1.0, %v3502_v55  ;;  %v947_v45 = vsel %vm3947_vm7, %v946_v23, %v942_v30  ;;  %v930_v30 = vand.u32 2147483648, %v3887_v40 }
  0x77   : > { %v3890_v43 = vadd.f32 %v3802_v35, %v548_v28  ;;  %v3920_v5 = vpop.eup %3505  ;;  %v905_v25 = vmul.f32 %v3914_v58, %v3878_v29  ;;  %v541_v19 = vmul.f32 %v3795_v32, %v3333_v18  ;;  %v732_v55 = vsel %vm3990_vm10, %v3862_v15, %v3982_v16 }
  0x78   : > { %v3933_v12 = vpop.eup %3507  ;;  %v995_v27 = vmul.f32 %v3920_v5, %v3881_v33  ;;  %v3441_v56 = vpop.permute.xlu2 %3440  ;;  %v1188_v13 = vmul.f32 %v947_v45, %v3822_v50  ;;  %vm910_vm14 = vweird.f32 %v3914_v58  ;;  %vm1000_vm0 = vweird.f32 %v3920_v5 }
  0x79   : > { %v3088_v53 = vmul.f32 -1.442695, %v3890_v43  ;;  %v920_v28 = vmul.f32 %v3933_v12, %v3887_v40  ;;  %v906_v48 = vsub.f32 1.0, %v905_v25  ;;  %v4011_v60 = vadd.f32 %v3802_v35, %v541_v19  ;;  %vm4045_vm3 = vmor %vm909_vm13, %vm910_vm14 }
  0x7a   : > { %v3443_v6 = vunpack.i.h.bf16 %v3441_v56  ;;  %v3442_v15 = vunpack.i.l.bf16 %v3441_v56  ;;  %vm925_vm2 = vweird.f32 %v3933_v12  ;;  %vm4054_vm4 = vmor %vm999_vm15, %vm1000_vm0  ;;  %v928_v29 = vand.u32 2147483647, %v3887_v40  ;;  %v4097_v56 = vld [vmem:[%s3783_s9 + $0x30] sm:$0xff]  }
  0x7b   : > { %3509 = vpow2.f32 %v3088_v53  ;;  %v996_v53 = vsub.f32 1.0, %v995_v27  ;;  %v907_v8 = vmul.f32 %v3914_v58, %v906_v48  ;;  %v3081_v26 = vmul.f32 -1.442695, %v4011_v60  ;;  %vm4072_vm7 = vmor %vm924_vm1, %vm925_vm2 }
  0x7c   : > { %3511 = vpow2.f32 %v3082_v54  ;;  %v921_v54 = vsub.f32 1.0, %v920_v28  ;;  %v1441_v23 = vmul.f32 %v3443_v6, %v1194_v3  ;;  %v1435_v24 = vmul.f32 %v3442_v15, %v1188_v13 }
  0x7d   : > { %3513 = vrcp.f32 %v3951_v21  ;;  %v997_v50 = vmul.f32 %v3920_v5, %v996_v53  ;;  %v908_v7 = vadd.f32 %v3914_v58, %v907_v8  ;;  %v916_v19 = vor.u32 1.1754944e-38, %v915_v4 }
  0x7e   : > { %3515 = vpow2.f32 %v3087_v22  ;;  %v922_v51 = vmul.f32 %v3933_v12, %v921_v54  ;;  %v1005_v22 = vand.u32 2147483648, %v3881_v33  ;;  %v4077_v41 = vpack.c.bf16 %v1441_v23, %v1441_v23 }
  0x7f   : > { %v998_v27 = vadd.f32 %v3920_v5, %v997_v50  ;;  %v4079_v42 = vpack.c.bf16 %v1435_v24, %v1435_v24  ;;  %v912_v46 = vsel %vm4045_vm3, %v3914_v58, %v908_v7  ;;  %v931_v48 = vor.u32 1.1754944e-38, %v930_v30 }
  0x80   : > { %v923_v31 = vadd.f32 %v3933_v12, %v922_v51  ;;  %v1006_v45 = vor.u32 1.1754944e-38, %v1005_v22  ;;  %vm929_vm8 = vcmp.eq.f32.partialorder %v928_v29, 8.507059e+37  ;;  %v827_v54 = vsel %vm4013_vm11, %v826_v49, %v822_v63 }
  0x81   : > { %v3510_v36 = vpop.eup %3509  ;;  %v737_v58 = vsel %vm4017_vm12, %v736_v52, %v732_v55  ;;  %v1652_v13 = vshll.u32 %v4077_v41, 16  ;;  %v1604_v3 = vshll.u32 %v4079_v42, 16  ;;  %v1018_v52 = vand.u32 2147483647, %v3951_v21 }
  0x82   : > { %v3512_v61 = vpop.eup %3511  ;;  %v4008_v59 = vadd.f32 1.0, %v3510_v36  ;;  %v927_v53 = vsel %vm4072_vm7, %v3933_v12, %v923_v31  ;;  %v1180_v55 = vmul.f32 %v827_v54, %v3806_v37  ;;  %v1174_v47 = vmul.f32 %v737_v58, %v3809_v38 }
  0x83   : > { %v4026_v9 = vadd.f32 1.0, %v3512_v61  ;;  %v4028_v11 = vpop.eup %3513  ;;  %v1002_v61 = vsel %vm4054_vm4, %v3920_v5, %v998_v27  ;;  %v917_v5 = vsel %vm4062_vm5, %v916_v19, %v912_v46  ;;  %v932_v15 = vsel %vm929_vm8, %v931_v48, %v927_v53 }
  0x84   : > { %v3516_v18 = vpop.eup %3515  ;;  %v1010_v33 = vmul.f32 %v4028_v11, %v3951_v21  ;;  %3517 = vrcp.f32 %v4008_v59  ;;  %v1007_v12 = vsel %vm4066_vm6, %v1006_v45, %v1002_v61  ;;  %v3345_v2 = vunpack.c.h.bf16 %v4097_v56 }
  0x85   : > { %v4060_v34 = vadd.f32 1.0, %v3516_v18  ;;  %3519 = vrcp.f32 %v4026_v9  ;;  %v1186_v14 = vmul.f32 %v917_v5, %v3835_v62  ;;  %vm1014_vm9 = vweird.f32 %v3951_v21  ;;  %v3315_v62 = vld [vmem:[%s5662_s5 + $0x18] sm:$0xff] }
  0x86   : > { %v1011_v40 = vsub.f32 1.0, %v1010_v33  ;;  %3521 = vpow2.f32 %v3081_v26  ;;  %vm1015_vm10 = vweird.f32 %v4028_v11  ;;  %v1020_v4 = vand.u32 2147483648, %v3951_v21  ;;  %1752 = vmatpush.bf16.msra.mxu0 %v3315_v62  ;;  %v4155_v21 = vpop.permute.xlu2 %3445  ;;  %3357 = vmatpush.bf16.msra.mxu1 %v3315_v62 }
  0x87   : > { %3523 = vrcp.f32 %v4060_v34  ;;  %v4120_v51 = vrot.slane %v1652_v13, 5  ;;  %v4122_v18 = vrot.slane %v1604_v3, 5  ;;  %v1192_v37 = vmul.f32 %v1007_v12, %v3840_v0  ;;  %vm4144_vm12 = vmor %vm1014_vm9, %vm1015_vm10  ;;  %3358 = vmatpush.bf16.msra.mxu2 %v3315_v62  ;;  %3359 = vmatpush.bf16.msra.mxu3 %v3315_v62  ;;  %v493_v0 = vld [vmem:[%s3783_s9 + $0x38] sm:$0x1] }
  0x88   : > { %v1012_v49 = vmul.f32 %v4028_v11, %v1011_v40  ;;  %v4126_v38 = vmul.f32 %v932_v15, %v3843_v1  ;;  %vm4135_vm11 = vcmp.eq.f32.partialorder %v1018_v52, 8.507059e+37  ;;  %v853_v7 = vand.u32 2147483647, %v4008_v59 }
  0x89   : > { %vm849_vm13 = vweird.f32 %v4008_v59  ;;  %v855_v30 = vand.u32 2147483648, %v4008_v59  ;;  %v556_v26 = vmul.f32 %v3795_v32, %v3345_v2  ;;  %v1021_v28 = vor.u32 1.1754944e-38, %v1020_v4 }
  0x8a   : > { %v4103_v6 = vpop.eup %3517  ;;  %v1013_v23 = vadd.f32 %v4028_v11, %v1012_v49  ;;  %v3349_v29 = vunpack.c.h.bf16 %v4129_v20  ;;  %v3448_v39 = vunpack.i.h.bf16 %v4155_v21  ;;  %v3447_v48 = vunpack.i.l.bf16 %v4155_v21 }
  0x8b   : > { %v4109_v63 = vpop.eup %3519  ;;  %v845_v1 = vmul.f32 %v4103_v6, %v4008_v59  ;;  %vm759_vm14 = vweird.f32 %v4026_v9  ;;  %v4167_v61 = vor.u32 1.1754944e-38, %v855_v30  ;;  %v4170_v54 = vadd.f32 %v3802_v35, %v556_v26 }
  0x8c   : > { %v3522_v8 = vpop.eup %3521  ;;  %v755_v33 = vmul.f32 %v4109_v63, %v4026_v9  ;;  %v1017_v46 = vsel %vm4144_vm12, %v4028_v11, %v1013_v23  ;;  %v763_v58 = vand.u32 2147483647, %v4026_v9  ;;  %v765_v13 = vand.u32 2147483648, %v4026_v9 }
  0x8d   : > { %v4118_v50 = vpop.eup %3523  ;;  %v4140_v25 = vadd.f32 1.0, %v3522_v8  ;;  %v846_v40 = vsub.f32 1.0, %v845_v1  ;;  %v562_v5 = vmul.f32 %v3795_v32, %v3349_v29  ;;  %v3344_v49 = vunpack.c.l.bf16 %v4097_v56 }
  0x8e   : > { %v830_v31 = vmul.f32 %v4118_v50, %v4060_v34  ;;  %v756_v53 = vsub.f32 1.0, %v755_v33  ;;  %v1022_v8 = vsel %vm4135_vm11, %v1021_v28, %v1017_v46  ;;  %vm850_vm15 = vweird.f32 %v4103_v6 }
  0x8f   : > { %v3423_v22 = vpop.permute.xlu1 %3422  ;;  %v3411_v27 = vpop.permute.xlu0 %3410  ;;  %3525 = vrcp.f32 %v4140_v25  ;;  %vm760_vm0 = vweird.f32 %v4109_v63  ;;  %v847_v4 = vmul.f32 %v4103_v6, %v846_v40  ;;  %vm4186_vm1 = vcmp.eq.f32.partialorder %v853_v7, 8.507059e+37  ;;  %vm4203_vm4 = vmor %vm849_vm13, %vm850_vm15 }
  0x90   : > { %v3425_v16 = vunpack.i.h.bf16 %v3423_v22  ;;  %v3424_v19 = vunpack.i.l.bf16 %v3423_v22  ;;  %v3413_v36 = vunpack.i.h.bf16 %v3411_v27  ;;  %v3412_v45 = vunpack.i.l.bf16 %v3411_v27  ;;  %vm4220_vm8 = vmor %vm759_vm14, %vm760_vm0 }
  0x91   : > { %v831_v3 = vsub.f32 1.0, %v830_v31  ;;  %v757_v62 = vmul.f32 %v4109_v63, %v756_v53  ;;  %vm744_vm2 = vweird.f32 %v4140_v25  ;;  %v4194_v22 = vadd.f32 %v3802_v35, %v562_v5 }
  0x92   : > { %v1421_v12 = vmul.f32 %v3425_v16, %v1174_v47  ;;  %v1427_v11 = vmul.f32 %v3424_v19, %v1180_v55  ;;  %v1439_v15 = vmul.f32 %v3413_v36, %v1192_v37  ;;  %v4176_v2 = vmul.f32 %v3412_v45, %v1186_v14 }
  0x93   : > { %v3096_v47 = vmul.f32 -1.442695, %v4170_v54  ;;  %v832_v14 = vmul.f32 %v4118_v50, %v831_v3  ;;  %v750_v37 = vand.u32 2147483648, %v4140_v25  ;;  %v748_v24 = vand.u32 2147483647, %v4140_v25 }
  0x94   : > { %v555_v1 = vmul.f32 %v3795_v32, %v3344_v49  ;;  %vm4207_vm5 = vcmp.eq.f32.partialorder %v763_v58, 8.507059e+37  ;;  %vm834_vm6 = vweird.f32 %v4060_v34  ;;  %vm835_vm7 = vweird.f32 %v4118_v50 }
  0x95   : > { %v3526_v52 = vpop.eup %3525  ;;  %v840_v33 = vand.u32 2147483648, %v4060_v34  ;;  %v848_v26 = vadd.f32 %v4103_v6, %v847_v4  ;;  %v758_v27 = vadd.f32 %v4109_v63, %v757_v62  ;;  %3527 = vpow2.f32 %v3096_v47  ;;  %vm4244_vm11 = vmor %vm834_vm6, %vm835_vm7  ;;  %v499_v4 = vld [vmem:[%s3783_s9 + $0x50] sm:$0x1] }
  0x96   : > { %v740_v55 = vmul.f32 %v3526_v52, %v4140_v25  ;;  %vm745_vm3 = vweird.f32 %v3526_v52  ;;  %v751_v29 = vor.u32 1.1754944e-38, %v750_v37  ;;  %v3102_v16 = vmul.f32 -1.442695, %v4194_v22 }
  0x97   : > { %vm4226_vm9 = vmor %vm744_vm2, %vm745_vm3  ;;  %v523_v19 = vunpack.c.l.bf16 %v493_v0  ;;  %v4232_v36 = vadd.f32 %v3802_v35, %v555_v1  ;;  %v833_v9 = vadd.f32 %v4118_v50, %v832_v14  ;;  %v838_v45 = vand.u32 2147483647, %v4060_v34 }
  0x98   : > { %v741_v23 = vsub.f32 1.0, %v740_v55  ;;  %vm749_vm10 = vcmp.eq.f32.partialorder %v748_v24, 8.507059e+37  ;;  %v4236_v40 = vpack.c.bf16 %v1421_v12, %v1421_v12  ;;  %v4238_v25 = vpack.c.bf16 %v1427_v11, %v1427_v11 }
  0x99   : > { %v766_v58 = vor.u32 1.1754944e-38, %v765_v13  ;;  %v3348_v5 = vunpack.c.l.bf16 %v4129_v20  ;;  %v852_v49 = vsel %vm4203_vm4, %v4103_v6, %v848_v26  ;;  %v762_v12 = vsel %vm4220_vm8, %v4109_v63, %v758_v27 }
  0x9a   : > { %v742_v28 = vmul.f32 %v3526_v52, %v741_v23  ;;  %v841_v11 = vor.u32 1.1754944e-38, %v840_v33  ;;  %3529 = vpow2.f32 %v3102_v16  ;;  %v557_v55 = vmul.f32 %v3795_v32, %v523_v19 }
  0x9b   : > { %v3095_v20 = vmul.f32 -1.442695, %v4232_v36  ;;  %v3528_v47 = vpop.eup %3527  ;;  %v1193_v14 = vmul.f32 %v1022_v8, %v3867_v17  ;;  %v837_v63 = vsel %vm4244_vm11, %v4118_v50, %v833_v9  ;;  %vm839_vm12 = vcmp.eq.f32.partialorder %v838_v45, 8.507059e+37 }
  0x9c   : > { %v743_v46 = vadd.f32 %v3526_v52, %v742_v28  ;;  %v4267_v37 = vpack.c.bf16 %v1439_v15, %v1439_v15  ;;  %v529_v24 = vunpack.c.l.bf16 %v499_v4  ;;  %v561_v0 = vmul.f32 %v3795_v32, %v3348_v5 }
  0x9d   : > { %v857_v17 = vsel %vm4186_vm1, %v4167_v61, %v852_v49  ;;  %v767_v8 = vsel %vm4207_vm5, %v766_v58, %v762_v12  ;;  %v842_v7 = vsel %vm839_vm12, %v841_v11, %v837_v63  ;;  %v4276_v33 = vadd.f32 1.0, %v3528_v47 }
  0x9e   : > { %v747_v13 = vsel %vm4226_vm9, %v3526_v52, %v743_v46  ;;  %v3314_v52 = vld [vmem:[%s5662_s5 + $0x10] sm:$0xff]  ;;  %v4279_v15 = vadd.f32 %v3802_v35, %v557_v55  ;;  %3531 = vpow2.f32 %v3095_v20  ;;  %v1489_v56 = vshrl.u32 %v4236_v40, 16 }
  0x9f   : > { %v3417_v53 = vpop.permute.xlu0 %3416  ;;  %v3429_v34 = vpop.permute.xlu1 %3428  ;;  %v752_v62 = vsel %vm749_vm10, %v751_v29, %v747_v13  ;;  %1753 = vmatpush.bf16.msra.mxu0 %v3314_v52  ;;  %3360 = vmatpush.bf16.msra.mxu1 %v3314_v52  ;;  %v1492_v61 = vshll.u32 %v4236_v40, 16  ;;  %v4285_v30 = vpack.c.bf16 %v4176_v2, %v4176_v2  ;;  %v1182_v59 = vmul.f32 %v857_v17, %v3890_v43 }
  0xa0   : > { %v3419_v6 = vunpack.i.h.bf16 %v3417_v53  ;;  %v3418_v23 = vunpack.i.l.bf16 %v3417_v53  ;;  %v3431_v1 = vunpack.i.h.bf16 %v3429_v34  ;;  %v1175_v50 = vmul.f32 %v752_v62, %v4011_v60  ;;  %3361 = vmatpush.bf16.msra.mxu2 %v3314_v52  ;;  %3362 = vmatpush.bf16.msra.mxu3 %v3314_v52  ;;  %v3530_v26 = vpop.eup %3529 }
  0xa1   : > { %v1176_v28 = vmul.f32 %v767_v8, %v3894_v44  ;;  %v4291_v31 = vadd.f32 %v3802_v35, %v561_v0  ;;  %v1537_v29 = vshrl.u32 %v4238_v25, 16  ;;  %v1181_v16 = vmul.f32 %v842_v7, %v3912_v57 }
  0xa2   : > { %v1440_v60 = vmul.f32 %v3419_v6, %v1193_v14  ;;  %v1434_v27 = vmul.f32 %v3418_v23, %v4126_v38  ;;  %v3430_v19 = vunpack.i.l.bf16 %v3429_v34  ;;  %v1422_v9 = vmul.f32 %v3431_v1, %v1175_v50 }
  0xa3   : > { %v1540_v2 = vshll.u32 %v4238_v25, 16  ;;  %3533 = vrcp.f32 %v4276_v33  ;;  %v563_v45 = vmul.f32 %v3795_v32, %v529_v24  ;;  %v3097_v38 = vmul.f32 -1.442695, %v4279_v15 }
  0xa4   : > { %v1633_v43 = vshrl.u32 %v4267_v37, 16  ;;  %v1636_v44 = vshll.u32 %v4267_v37, 16  ;;  %v4301_v46 = vpack.c.bf16 %v1440_v60, %v1440_v60  ;;  %v4303_v53 = vadd.f32 1.0, %v3530_v26  ;;  %v3532_v58 = vpop.eup %3531 }
  0xa5   : > { %v4305_v57 = vpack.c.bf16 %v1434_v27, %v1434_v27  ;;  %v1423_v3 = vmul.f32 %v3448_v39, %v1176_v28  ;;  %v1429_v5 = vmul.f32 %v3447_v48, %v1182_v59  ;;  %v3101_v32 = vmul.f32 -1.442695, %v4291_v31 }
  0xa6   : > { %v1491_v49 = vrot.slane %v1489_v56, 4  ;;  %v1585_v12 = vshrl.u32 %v4285_v30, 16  ;;  %v1428_v11 = vmul.f32 %v3430_v19, %v1181_v16  ;;  %v4313_v13 = vpack.c.bf16 %v1422_v9, %v1422_v9 }
  0xa7   : > { %v1494_v4 = vrot.slane %v1492_v61, 5  ;;  %v1539_v34 = vrot.slane %v1537_v29, 4  ;;  %v4316_v62 = vadd.f32 %v3802_v35, %v563_v45  ;;  %3535 = vpow2.f32 %v3097_v38 }
  0xa8   : > { %v1588_v55 = vshll.u32 %v4285_v30, 16  ;;  %v1646_v39 = vshrl.u32 %v4301_v46, 16  ;;  %3537 = vrcp.f32 %v4303_v53  ;;  %v4321_v21 = vadd.f32 1.0, %v3532_v58 }
  0xa9   : > { %v4323_v48 = vpop.eup %3533  ;;  %v1598_v20 = vshrl.u32 %v4305_v57, 16  ;;  %v4326_v47 = vpack.c.bf16 %v1423_v3, %v1423_v3  ;;  %v4328_v14 = vpack.c.bf16 %v1429_v5, %v1429_v5  ;;  %3539 = vpow2.f32 %v3101_v32 }
  0xaa   : > { %v1542_v35 = vrot.slane %v1540_v2, 5  ;;  %v4330_v6 = vpack.c.bf16 %v1428_v11, %v1428_v11  ;;  %v1502_v63 = vshrl.u32 %v4313_v13, 16  ;;  %v1498_v52 = vshll.u32 %v4313_v13, 16 }
  0xab   : > { %v4334_v23 = vrot.slane %v1633_v43, 4  ;;  %v4336_v24 = vrot.slane %v1636_v44, 5  ;;  %v4338_v0 = vrot.slane %v1585_v12, 4  ;;  %v3103_v17 = vmul.f32 -1.442695, %v4316_v62  ;;  %v4358_v43 = vpop.permute.xlu2 %3451 }
  0xac   : > { %v4341_v8 = vrot.slane %v1588_v55, 5  ;;  %v4343_v1 = vrot.slane %v1646_v39, 4  ;;  %v965_v50 = vmul.f32 %v4323_v48, %v4276_v33  ;;  %3541 = vrcp.f32 %v4321_v21 }
  0xad   : > { %v3536_v7 = vpop.eup %3535  ;;  %v4348_v56 = vrot.slane %v1598_v20, 4  ;;  %v1508_v61 = vshll.u32 %v4326_v47, 16  ;;  %v1556_v60 = vshll.u32 %v4328_v14, 16  ;;  %v1495_v26 = vor.u32 %v1494_v4, %v1491_v49 }
  0xae   : > { %v4352_v27 = vpop.eup %3537  ;;  %v1504_v59 = vrot.slane %v1502_v63, 4  ;;  %v1550_v28 = vshrl.u32 %v4330_v6, 16  ;;  %v1500_v29 = vrot.slane %v1498_v52, 5  ;;  %v1546_v16 = vshll.u32 %v4330_v6, 16 }
  0xaf   : > { %v3540_v19 = vpop.eup %3539  ;;  %3543 = vpow2.f32 %v3103_v17  ;;  %vm1485_vm13 = vsmask.f32 3328  ;;  %vm1486_vm14 = vsmask.f32 7440  ;;  %v1543_v9 = vor.u32 %v1542_v35, %v1539_v34 }
  0xb0   : > { %v966_v2 = vsub.f32 1.0, %v965_v50  ;;  %v973_v45 = vand.u32 2147483647, %v4276_v33  ;;  %v975_v38 = vand.u32 2147483648, %v4276_v33  ;;  %v4360_v44 = vadd.f32 1.0, %v3536_v7  ;;  %vm4370_vm15 = vmor %vm1485_vm13, %vm1486_vm14 }
  0xb1   : > { %v1510_v58 = vrot.slane %v1508_v61, 5  ;;  %v1558_v3 = vrot.slane %v1556_v60, 5  ;;  %v1055_v5 = vmul.f32 %v4352_v27, %v4303_v53  ;;  %v1552_v12 = vrot.slane %v1550_v28, 4 }
  0xb2   : > { %v4365_v49 = vpop.eup %3541  ;;  %v4367_v11 = vadd.f32 1.0, %v3540_v19  ;;  %v1505_v34 = vor.u32 %v1504_v59, %v1500_v29  ;;  %v1548_v55 = vrot.slane %v1546_v16, 5  ;;  %vm969_vm0 = vweird.f32 %v4276_v33 }
  0xb3   : > { %v1063_v39 = vand.u32 2147483647, %v4303_v53  ;;  %v1065_v20 = vand.u32 2147483648, %v4303_v53  ;;  %v1496_v35 = vrot.slane %v1495_v26, 4  ;;  %v967_v63 = vmul.f32 %v4323_v48, %v966_v2 }
  0xb4   : > { %vm4378_vm1 = vcmp.eq.f32.partialorder %v973_v45, 8.507059e+37  ;;  %v976_v17 = vor.u32 1.1754944e-38, %v975_v38  ;;  %3545 = vrcp.f32 %v4360_v44  ;;  %v1544_v50 = vrot.slane %v1543_v9, 4  ;;  %v4393_v9 = vpop.permute.xlu1 %3434 }
  0xb5   : > { %v3544_v7 = vpop.eup %3543  ;;  %v1056_v61 = vsub.f32 1.0, %v1055_v5  ;;  %v950_v60 = vmul.f32 %v4365_v49, %v4321_v21  ;;  %v1501_v59 = vsel %vm4370_vm15, %v1496_v35, %v1500_v29  ;;  %v1506_v28 = vrot.slane %v1505_v34, 4 }
  0xb6   : > { %vm970_vm2 = vweird.f32 %v4323_v48  ;;  %3547 = vrcp.f32 %v4367_v11  ;;  %v1553_v26 = vor.u32 %v1552_v12, %v1548_v55  ;;  %v1591_v16 = vor.u32 %v4341_v8, %v4338_v0  ;;  %v4443_v0 = vld [vmem:[%s3783_s9 + $0x18] sm:$0xff]  }
  0xb7   : > { %v4391_v19 = vor.u32 1.1754944e-38, %v1065_v20  ;;  %v1511_v2 = vsel %vm4370_vm15, %v1506_v28, %v1510_v58  ;;  %vm1721_vm3 = vcmask 261120   ;;  %v1594_v45 = vshll.u32 %v4305_v57, 16  ;;  %vm4403_vm4 = vmor %vm969_vm0, %vm970_vm2 }
  0xb8   : > { %v968_v29 = vadd.f32 %v4323_v48, %v967_v63  ;;  %v4399_v38 = vadd.f32 1.0, %v3544_v7  ;;  %v1685_v5 = vunpack.c.l.b16 %v1501_v59  ;;  %v1686_v34 = vunpack.c.l.b16 %v1511_v2 }
  0xb9   : > { %v1057_v8 = vmul.f32 %v4352_v27, %v1056_v61  ;;  %v951_v12 = vsub.f32 1.0, %v950_v60  ;;  %v1549_v58 = vsel %vm4370_vm15, %v1544_v50, %v1548_v55  ;;  %v1554_v20 = vrot.slane %v1553_v26, 4 }
  0xba   : > { %v4410_v35 = vpop.eup %3545  ;;  %v1701_v59 = vpack.c.b16 %v1686_v34, %v1685_v5  ;;  %v1592_v28 = vrot.slane %v1591_v16, 4  ;;  %v958_v2 = vand.u32 2147483647, %v4321_v21  ;;  %v1596_v60 = vrot.slane %v1594_v45, 5  ;;  %v3335_v34 = vld [vmem:[%s3783_s9] sm:$0xff]  }
  0xbb   : > { %v1559_v61 = vsel %vm4370_vm15, %v1554_v20, %v1558_v3  ;;  %v972_v55 = vsel %vm4403_vm4, %v4323_v48, %v968_v29  ;;  %v1689_v50 = vunpack.c.l.b16 %v1549_v58  ;;  %v1639_v16 = vor.u32 %v4336_v24, %v4334_v23  ;;  %v481_v20 = vld [vmem:[%s3783_s9 + $0x8] sm:$0x1] }
  0xbc   : > { %v4418_v32 = vpop.eup %3547  ;;  %3127 = vmatmul.msk.bf16.vlgmr.msra.gmra.mxu0 %vm1721_vm3, %v1701_v59  ;;  %v1690_v26 = vunpack.c.l.b16 %v1559_v61  ;;  %v4427_v5 = vadd.f32 %v4352_v27, %v1057_v8  ;;  %3549 = vrcp.f32 %v4399_v38  ;;  %v952_v3 = vmul.f32 %v4365_v49, %v951_v12 }
  0xbd   : > { %v960_v45 = vand.u32 2147483648, %v4321_v21  ;;  %vm1059_vm5 = vweird.f32 %v4303_v53  ;;  %vm1060_vm6 = vweird.f32 %v4352_v27  ;;  %v980_v48 = vmul.f32 %v4410_v35, %v4360_v44 }
  0xbe   : > { %v4436_v29 = vpack.c.b16 %v1690_v26, %v1689_v50  ;;  %v1597_v23 = vsel %vm4370_vm15, %v1592_v28, %v1596_v60  ;;  %v1601_v24 = vor.u32 %v4348_v56, %v1596_v60  ;;  %v4447_v8 = vsel %vm4378_vm1, %v976_v17, %v972_v55  ;;  %vm4530_vm2 = vmor %vm1059_vm5, %vm1060_vm6 }
  0xbf   : > { %vm954_vm7 = vweird.f32 %v4321_v21  ;;  %vm955_vm8 = vweird.f32 %v4365_v49  ;;  %v1040_v12 = vmul.f32 %v4418_v32, %v4367_v11  ;;  %vm984_vm9 = vweird.f32 %v4360_v44 }
  0xc0   : > { %vm985_vm10 = vweird.f32 %v4410_v35  ;;  %vm4455_vm11 = vcmp.eq.f32.partialorder %v958_v2, 8.507059e+37  ;;  %3129 = vmatmul.msk.bf16.vlgmr.msra.gmra.mxu1 %vm1721_vm3, %v4436_v29  ;;  %v1602_v52 = vrot.slane %v1601_v24, 4  ;;  %v1640_v17 = vrot.slane %v1639_v16, 4  ;;  %vm4469_vm12 = vmor %vm954_vm7, %vm955_vm8 }
  0xc1   : > { %v1642_v58 = vshll.u32 %v4301_v46, 16  ;;  %v953_v59 = vadd.f32 %v4365_v49, %v952_v3  ;;  %v1693_v28 = vunpack.c.l.b16 %v1597_v23  ;;  %v3336_v61 = vunpack.c.l.bf16 %v3335_v34  ;;  %vm4549_vm4 = vmor %vm984_vm9, %vm985_vm10 }
  0xc2   : > { %v3340_v60 = vunpack.c.l.bf16 %v4443_v0  ;;  %v981_v55 = vsub.f32 1.0, %v980_v48  ;;  %v961_v50 = vor.u32 1.1754944e-38, %v960_v45  ;;  %v1607_v26 = vsel %vm4370_vm15, %v1602_v52, %v4122_v18  ;;  %v4476_v3 = vpop.eup %3549  ;;  %v4479_v48 = vld [vmem:[%s3729_s12] ss:$0 sm:$0xff] }
  0xc3   : > { %v1644_v16 = vrot.slane %v1642_v58, 5  ;;  %v1041_v23 = vsub.f32 1.0, %v1040_v12  ;;  %v1694_v24 = vunpack.c.l.b16 %v1607_v26  ;;  %v543_v7 = vmul.f32 %v4479_v48, %v3336_v61  ;;  %v4493_v58 = vld [vmem:[%s3735_s15] ss:$0 sm:$0xff] }
  0xc4   : > { %v511_v21 = vunpack.c.l.bf16 %v481_v20  ;;  %vm1044_vm13 = vweird.f32 %v4367_v11  ;;  %v3337_v63 = vunpack.c.h.bf16 %v3335_v34  ;;  %v957_v18 = vsel %vm4469_vm12, %v4365_v49, %v953_v59 }
  0xc5   : > { %v1645_v45 = vsel %vm4370_vm15, %v1640_v17, %v1644_v16  ;;  %v1649_v33 = vor.u32 %v4343_v1, %v1644_v16  ;;  %v4489_v52 = vpack.c.b16 %v1694_v24, %v1693_v28  ;;  %v549_v12 = vmul.f32 %v4479_v48, %v3340_v60 }
  0xc6   : > { %v4496_v20 = vadd.f32 %v4493_v58, %v543_v7  ;;  %vm4500_vm14 = vcmp.eq.f32.partialorder %v1063_v39, 8.507059e+37  ;;  %v982_v1 = vmul.f32 %v4410_v35, %v981_v55  ;;  %v5721_v34 = vand.u32 2147483647, %v4360_v44 }
  0xc7   : > { %v1070_v59 = vmul.f32 %v4476_v3, %v4399_v38  ;;  %v1050_v7 = vand.u32 2147483648, %v4367_v11  ;;  %v1650_v28 = vrot.slane %v1649_v33, 4  ;;  %v1042_v61 = vmul.f32 %v4418_v32, %v1041_v23  ;;  %3131 = vmatmul.msk.bf16.vlgmr.msra.gmra.mxu2 %vm1721_vm3, %v4489_v52 }
  0xc8   : > { %vm4507_vm0 = vcmp.eq.f32.partialorder %v5721_v34, 8.507059e+37  ;;  %v1697_v39 = vunpack.c.l.b16 %v1645_v45  ;;  %v3083_v60 = vmul.f32 -1.442695, %v4496_v20  ;;  %v545_v55 = vmul.f32 %v4479_v48, %v511_v21 }
  0xc9   : > { %v962_v2 = vsel %vm4455_vm11, %v961_v50, %v957_v18  ;;  %vm1045_vm1 = vweird.f32 %v4418_v32  ;;  %v1655_v26 = vsel %vm4370_vm15, %v1650_v28, %v4120_v51  ;;  %v544_v33 = vmul.f32 %v4479_v48, %v3337_v63 }
  0xca   : > { %v1698_v23 = vunpack.c.l.b16 %v1655_v26  ;;  %v4535_v56 = vadd.f32 %v4493_v58, %v549_v12  ;;  %3551 = vpow2.f32 %v3083_v60  ;;  %v4538_v50 = vadd.f32 %v4493_v58, %v545_v55  ;;  %vm4568_vm5 = vmor %vm1044_vm13, %vm1045_vm1 }
  0xcb   : > { %v983_v51 = vadd.f32 %v4410_v35, %v982_v1  ;;  %v1071_v24 = vsub.f32 1.0, %v1070_v59  ;;  %v3341_v63 = vunpack.c.h.bf16 %v4443_v0  ;;  %v4543_v21 = vadd.f32 %v4493_v58, %v544_v33 }
  0xcc   : > { %v1043_v45 = vadd.f32 %v4418_v32, %v1042_v61  ;;  %v1048_v18 = vand.u32 2147483647, %v4367_v11  ;;  %v4555_v12 = vpack.c.b16 %v1698_v23, %v1697_v39  ;;  %v3085_v1 = vmul.f32 -1.442695, %v4538_v50 }
  0xcd   : > { %v1062_v0 = vsel %vm4530_vm2, %v4352_v27, %v4427_v5  ;;  %v5728_v34 = vand.u32 2147483648, %v4360_v44  ;;  %v1189_v61 = vmul.f32 %v962_v2, %v4232_v36  ;;  %v3084_v39 = vmul.f32 -1.442695, %v4543_v21 }
  0xce   : > { %v1190_v60 = vmul.f32 %v4447_v8, %v4170_v54  ;;  %v1051_v55 = vor.u32 1.1754944e-38, %v1050_v7  ;;  %3133 = vmatmul.msk.bf16.vlgmr.msra.gmra.mxu3 %vm1721_vm3, %v4555_v12  ;;  %v3089_v27 = vmul.f32 -1.442695, %v4535_v56  ;;  %3553 = vpow2.f32 %v3085_v1 }
  0xcf   : > { %v991_v59 = vor.u32 1.1754944e-38, %v5728_v34  ;;  %v987_v44 = vsel %vm4549_vm4, %v4410_v35, %v983_v51  ;;  %v1072_v11 = vmul.f32 %v4476_v3, %v1071_v24  ;;  %v550_v36 = vmul.f32 %v4479_v48, %v3341_v63  ;;  %v4591_v35 = vpop.permute.xlu2 %3469 }
  0xd0   : > { %3555 = vpow2.f32 %v3084_v39  ;;  %v3552_v5 = vpop.eup %3551  ;;  %vm1074_vm6 = vweird.f32 %v4399_v38  ;;  %v1078_v54 = vand.u32 2147483647, %v4399_v38  ;;  %v1047_v8 = vsel %vm4568_vm5, %v4418_v32, %v1043_v45 }
  0xd1   : > { %vm1049_vm7 = vcmp.eq.f32.partialorder %v1048_v18, 8.507059e+37  ;;  %vm1075_vm8 = vweird.f32 %v4476_v3  ;;  %v1080_v7 = vand.u32 2147483648, %v4399_v38  ;;  %v5731_v2 = vunpack.i.l.bf16 %v4393_v9 }
  0xd2   : > { %v697_v33 = vadd.f32 1.0, %v3552_v5  ;;  %v1067_v16 = vsel %vm4500_vm14, %v4391_v19, %v1062_v0  ;;  %v5732_v23 = vunpack.i.l.bf16 %v4358_v43  ;;  %v992_v32 = vsel %vm4507_vm0, %v991_v59, %v987_v44  ;;  %vm4611_vm9 = vmor %vm1074_vm6, %vm1075_vm8 }
  0xd3   : > { %v1436_v26 = vmul.f32 %v5731_v2, %v1189_v61  ;;  %3557 = vpow2.f32 %v3089_v27  ;;  %v1073_v24 = vadd.f32 %v4476_v3, %v1072_v11  ;;  %v1052_v63 = vsel %vm1049_vm7, %v1051_v55, %v1047_v8 }
  0xd4   : > { %v1437_v51 = vmul.f32 %v5732_v23, %v1190_v60  ;;  %3559 = vrcp.f32 %v697_v33  ;;  %v4604_v53 = vadd.f32 %v4493_v58, %v550_v36  ;;  %v3554_v45 = vpop.eup %3553  ;;  %v3454_v18 = vunpack.i.h.bf16 %v4358_v43 }
  0xd5   : > { %v3471_v17 = vunpack.i.l.bf16 %v4591_v35  ;;  %v3437_v49 = vunpack.i.h.bf16 %v4393_v9  ;;  %vm4617_vm10 = vcmp.eq.f32.partialorder %v1078_v54, 8.507059e+37  ;;  %v1191_v34 = vmul.f32 %v992_v32, %v4279_v15 }
  0xd6   : > { %v3556_v1 = vpop.eup %3555  ;;  %v4622_v43 = vpack.c.bf16 %v1436_v26, %v1436_v26  ;;  %v4624_v59 = vadd.f32 1.0, %v3554_v45  ;;  %v1196_v38 = vmul.f32 %v1067_v16, %v4194_v22  ;;  %v1081_v28 = vor.u32 1.1754944e-38, %v1080_v7 }
  0xd7   : > { %v1195_v61 = vmul.f32 %v1052_v63, %v4291_v31  ;;  %v4628_v39 = vadd.f32 1.0, %v3556_v1  ;;  %v4630_v60 = vpack.c.bf16 %v1437_v51, %v1437_v51  ;;  %v1077_v9 = vsel %vm4611_vm9, %v4476_v3, %v1073_v24 }
  0xd8   : > { %3561 = vrcp.f32 %v4624_v59  ;;  %v3090_v15 = vmul.f32 -1.442695, %v4604_v53  ;;  %v3472_v31 = vunpack.i.h.bf16 %v4591_v35  ;;  %v1438_v44 = vmul.f32 %v3471_v17, %v1191_v34 }
  0xd9   : > { %v3558_v55 = vpop.eup %3557  ;;  %3563 = vrcp.f32 %v4628_v39  ;;  %v1622_v22 = vshrl.u32 %v4630_v60, 16  ;;  %v1609_v11 = vshrl.u32 %v4622_v43, 16  ;;  %v1082_v36 = vsel %vm4617_vm10, %v1081_v28, %v1077_v9  ;;  %v3317_v28 = vld [vmem:[%s5662_s5 + $0x28] sm:$0xff] }
  0xda   : > { %v3560_v27 = vpop.eup %3559  ;;  %v1442_v5 = vmul.f32 %v3437_v49, %v1195_v61  ;;  %v1612_v3 = vshll.u32 %v4622_v43, 16  ;;  %v1443_v8 = vmul.f32 %v3454_v18, %v1196_v38  ;;  %v4644_v7 = vadd.f32 1.0, %v3558_v55  ;;  %2058 = vmatpush.bf16.msrb.mxu2 %v3317_v28 }
  0xdb   : > { %v770_v54 = vmul.f32 %v3560_v27, %v697_v33  ;;  %v780_v2 = vand.u32 2147483648, %v697_v33  ;;  %3565 = vpow2.f32 %v3090_v15  ;;  %vm774_vm11 = vweird.f32 %v697_v33 }
  0xdc   : > { %vm775_vm12 = vweird.f32 %v3560_v27  ;;  %v778_v16 = vand.u32 2147483647, %v697_v33  ;;  %v4648_v23 = vrot.slane %v1622_v22, 4  ;;  %v1197_v51 = vmul.f32 %v1082_v36, %v4316_v62 }
  0xdd   : > { %v771_v26 = vsub.f32 1.0, %v770_v54  ;;  %v4651_v32 = vpack.c.bf16 %v1438_v44, %v1438_v44  ;;  %v1611_v24 = vrot.slane %v1609_v11, 4  ;;  %v4653_v45 = vpack.c.bf16 %v1442_v5, %v1442_v5  ;;  %vm4657_vm13 = vmor %vm774_vm11, %vm775_vm12  ;;  %v4674_v11 = vpop.permute.xlu0 %3457 }
  0xde   : > { %v4646_v35 = vpop.eup %3561  ;;  %v1614_v18 = vrot.slane %v1612_v3, 5  ;;  %v781_v33 = vor.u32 1.1754944e-38, %v780_v2  ;;  %3567 = vrcp.f32 %v4644_v7  ;;  %v1618_v1 = vshll.u32 %v4630_v60, 16 }
  0xdf   : > { %v3564_v63 = vpop.eup %3563  ;;  %v772_v19 = vmul.f32 %v3560_v27, %v771_v26  ;;  %v800_v17 = vmul.f32 %v4646_v35, %v4624_v59  ;;  %vm779_vm14 = vcmp.eq.f32.partialorder %v778_v16, 8.507059e+37  ;;  %v795_v38 = vand.u32 2147483648, %v4628_v39 }
  0xe0   : > { %v785_v62 = vmul.f32 %v3564_v63, %v4628_v39  ;;  %vm789_vm0 = vweird.f32 %v4628_v39  ;;  %vm790_vm1 = vweird.f32 %v3564_v63  ;;  %v793_v15 = vand.u32 2147483647, %v4628_v39 }
  0xe1   : > { %v773_v0 = vadd.f32 %v3560_v27, %v772_v19  ;;  %v801_v34 = vsub.f32 1.0, %v800_v17  ;;  %v3566_v61 = vpop.eup %3565  ;;  %v1657_v55 = vshrl.u32 %v4653_v45, 16  ;;  %v1660_v22 = vshll.u32 %v4653_v45, 16  ;;  %vm4684_vm5 = vmor %vm789_vm0, %vm790_vm1 }
  0xe2   : > { %v786_v9 = vsub.f32 1.0, %v785_v62  ;;  %v3460_v3 = vunpack.i.h.bf16 %v4674_v11  ;;  %v1620_v2 = vrot.slane %v1618_v1, 5  ;;  %vm804_vm2 = vweird.f32 %v4624_v59 }
  0xe3   : > { %v777_v44 = vsel %vm4657_vm13, %v3560_v27, %v773_v0  ;;  %v802_v36 = vmul.f32 %v4646_v35, %v801_v34  ;;  %vm805_vm4 = vweird.f32 %v4646_v35  ;;  %v796_v16 = vor.u32 1.1754944e-38, %v795_v38 }
  0xe4   : > { %v782_v5 = vsel %vm779_vm14, %v781_v33, %v777_v44  ;;  %v787_v54 = vmul.f32 %v3564_v63, %v786_v9  ;;  %v4688_v19 = vpop.eup %3567  ;;  %v810_v17 = vand.u32 2147483648, %v4624_v59  ;;  %v4691_v49 = vadd.f32 1.0, %v3566_v61  ;;  %vm4696_vm7 = vmor %vm804_vm2, %vm805_vm4 }
  0xe5   : > { %v1177_v26 = vmul.f32 %v782_v5, %v4496_v20  ;;  %vm794_vm6 = vcmp.eq.f32.partialorder %v793_v15, 8.507059e+37  ;;  %v1444_v20 = vmul.f32 %v3472_v31, %v1197_v51  ;;  %v803_v62 = vadd.f32 %v4646_v35, %v802_v36 }
  0xe6   : > { %v788_v33 = vadd.f32 %v3564_v63, %v787_v54  ;;  %v808_v1 = vand.u32 2147483647, %v4624_v59  ;;  %v1615_v0 = vor.u32 %v1614_v18, %v1611_v24  ;;  %v1628_v39 = vshll.u32 %v4651_v32, 16  ;;  %v4707_v59 = vpop.permute.xlu1 %3463 }
  0xe7   : > { %v1625_v28 = vor.u32 %v4648_v23, %v1620_v2  ;;  %v4703_v61 = vpack.c.bf16 %v1443_v8, %v1443_v8  ;;  %v860_v31 = vmul.f32 %v4688_v19, %v4644_v7  ;;  %v1424_v51 = vmul.f32 %v3460_v3, %v1177_v26 }
  0xe8   : > { %v792_v38 = vsel %vm4684_vm5, %v3564_v63, %v788_v33  ;;  %v1659_v24 = vrot.slane %v1657_v55, 4  ;;  %v1662_v18 = vrot.slane %v1660_v22, 5  ;;  %v811_v15 = vor.u32 1.1754944e-38, %v810_v17 }
  0xe9   : > { %v797_v9 = vsel %vm794_vm6, %v796_v16, %v792_v38  ;;  %3569 = vrcp.f32 %v4691_v49  ;;  %v4710_v44 = vpack.c.bf16 %v1444_v20, %v1444_v20  ;;  %v807_v23 = vsel %vm4696_vm7, %v4646_v35, %v803_v62 }
  0xea   : > { %vm809_vm8 = vcmp.eq.f32.partialorder %v808_v1, 8.507059e+37  ;;  %v1616_v8 = vrot.slane %v1615_v0, 4  ;;  %v1630_v63 = vrot.slane %v1628_v39, 5  ;;  %v1178_v36 = vmul.f32 %v797_v9, %v4543_v21 }
  0xeb   : > { %v3466_v5 = vunpack.i.h.bf16 %v4707_v59  ;;  %v1626_v3 = vrot.slane %v1625_v28, 4  ;;  %v1670_v55 = vshrl.u32 %v4703_v61, 16  ;;  %v861_v22 = vsub.f32 1.0, %v860_v31 }
  0xec   : > { %v4718_v54 = vpack.c.bf16 %v1424_v51, %v1424_v51  ;;  %v1676_v26 = vshll.u32 %v4710_v44, 16  ;;  %v812_v27 = vsel %vm809_vm8, %v811_v15, %v807_v23  ;;  %v1663_v16 = vor.u32 %v1662_v18, %v1659_v24  ;;  %v487_v24 = vld [vmem:[%s3783_s9 + $0x20] sm:$0x1] }
  0xed   : > { %v1621_v35 = vsel %vm4370_vm15, %v1616_v8, %v1620_v2  ;;  %v1425_v33 = vmul.f32 %v3466_v5, %v1178_v36  ;;  %v1631_v21 = vsel %vm4370_vm15, %v1626_v3, %v1630_v63  ;;  %v1666_v20 = vshll.u32 %v4703_v61, 16  ;;  %v4743_v5 = vld [vmem:[%s3783_s9 + $0x54] sm:$0xff]  }
  0xee   : > { %v1672_v62 = vrot.slane %v1670_v55, 4  ;;  %v862_v1 = vmul.f32 %v4688_v19, %v861_v22  ;;  %v1513_v0 = vshrl.u32 %v4718_v54, 16  ;;  %v1179_v39 = vmul.f32 %v812_v27, %v4538_v50  ;;  %v1268_v50 = vpop.permute.xlu2 %1267 }
  0xef   : > { %v4723_v17 = vpop.eup %3569  ;;  %v1678_v34 = vrot.slane %v1676_v26, 5  ;;  %v1516_v38 = vshll.u32 %v4718_v54, 16  ;;  %v1695_v2 = vunpack.c.l.b16 %v1621_v35  ;;  %v1664_v28 = vrot.slane %v1663_v16, 4 }
  0xf0   : > { %vm864_vm9 = vweird.f32 %v4644_v7  ;;  %v868_v31 = vand.u32 2147483647, %v4644_v7  ;;  %v875_v51 = vmul.f32 %v4723_v17, %v4691_v49  ;;  %v1696_v9 = vunpack.c.l.b16 %v1631_v21 }
  0xf1   : > { %vm865_vm10 = vweird.f32 %v4688_v19  ;;  %v870_v18 = vand.u32 2147483648, %v4644_v7  ;;  %v4739_v15 = vpack.c.bf16 %v1425_v33, %v1425_v33  ;;  %v1668_v23 = vrot.slane %v1666_v20, 5 }
  0xf2   : > { %v863_v8 = vadd.f32 %v4688_v19, %v862_v1  ;;  %v1515_v63 = vrot.slane %v1513_v0, 4  ;;  %v1426_v36 = vmul.f32 %v1268_v50, %v1179_v39  ;;  %v4745_v3 = vpack.c.b16 %v1696_v9, %v1695_v2  ;;  %vm4755_vm11 = vmor %vm864_vm9, %vm865_vm10 }
  0xf3   : > { %v1518_v55 = vrot.slane %v1516_v38, 5  ;;  %v1669_v22 = vsel %vm4370_vm15, %v1664_v28, %v1668_v23  ;;  %v1673_v26 = vor.u32 %v1672_v62, %v1668_v23  ;;  %v517_v27 = vunpack.c.l.bf16 %v487_v24 }
  0xf4   : > { %v3151_v16 = vrot.slane %v4236_v40, 9  ;;  %v1936_v35 = vrot.slane %v4326_v47, 5  ;;  %v876_v21 = vsub.f32 1.0, %v875_v51  ;;  %3132 = vmatmul.msk.bf16.gmra.mxu2 %vm1721_vm3, %v4745_v3  ;;  %v1933_v20 = vrot.slane %v4313_v13, 5 }
  0xf5   : > { %v1526_v62 = vshrl.u32 %v4739_v15, 16  ;;  %v530_v1 = vunpack.c.l.bf16 %v4743_v5  ;;  %v1674_v0 = vrot.slane %v1673_v26, 4  ;;  %vm4764_vm12 = vcmp.eq.f32.partialorder %v868_v31, 8.507059e+37 }
  0xf6   : > { %v871_v7 = vor.u32 1.1754944e-38, %v870_v18  ;;  %v4768_v39 = vpack.c.bf16 %v1426_v36, %v1426_v36  ;;  %v1699_v38 = vunpack.c.l.b16 %v1669_v22  ;;  %v867_v2 = vsel %vm4755_vm11, %v4688_v19, %v863_v8  ;;  %v3319_v18 = vld [vmem:[%s5662_s5 + $0x38] sm:$0xff] }
  0xf7   : > { %v1679_v28 = vsel %vm4370_vm15, %v1674_v0, %v1678_v34  ;;  %v551_v51 = vmul.f32 %v4479_v48, %v517_v27  ;;  %v1519_v9 = vor.u32 %v1518_v55, %v1515_v63  ;;  %v877_v24 = vmul.f32 %v4723_v17, %v876_v21  ;;  %v502_v34 = vld [vmem:[%s3783_s9 + $0x5c] sm:$0x1]  ;;  %2148 = vmatpush.bf16.msrb.mxu3 %v3319_v18 }
  0xf8   : > { %v1532_v31 = vshll.u32 %v4768_v39, 16  ;;  %v1700_v50 = vunpack.c.l.b16 %v1679_v28  ;;  %v1522_v23 = vshll.u32 %v4739_v15, 16  ;;  %v1528_v36 = vrot.slane %v1526_v62, 4  ;;  %v3316_v28 = vld [vmem:[%s5662_s5 + $0x20] sm:$0xff] }
  0xf9   : > { %v4783_v19 = vadd.f32 %v4493_v58, %v551_v51  ;;  %vm1928_vm13 = vcmask 1042432   ;;  %vm1929_vm14 = vcmask 1046532   ;;  %vm879_vm0 = vweird.f32 %v4691_v49  ;;  %v3318_v51 = vld [vmem:[%s5662_s5 + $0x30] sm:$0xff]  ;;  %2059 = vmatpush.bf16.msrb.mxu2 %v3316_v28 }
  0xfa   : > { %vm880_vm1 = vweird.f32 %v4723_v17  ;;  %v4788_v8 = vpack.c.b16 %v1700_v50, %v1699_v38  ;;  %v1524_v63 = vrot.slane %v1522_v23, 5  ;;  %vm4790_vm2 = vmor %vm1928_vm13, %vm1929_vm14  ;;  %v885_v22 = vand.u32 2147483648, %v4691_v49  ;;  %v3313_v50 = vld [vmem:[%s5662_s5 + $0x8] sm:$0xff] }
  0xfb   : > { %v3091_v26 = vmul.f32 -1.442695, %v4783_v19  ;;  %v1520_v27 = vrot.slane %v1519_v9, 4  ;;  %v1935_v33 = vrot.slane %v1933_v20, 4  ;;  %v872_v21 = vsel %vm4764_vm12, %v871_v7, %v867_v2  ;;  %vm4812_vm4 = vmor %vm879_vm0, %vm880_vm1  ;;  %2149 = vmatpush.bf16.msrb.mxu3 %v3318_v51  ;;  %1877 = vmatpush.bf16.msrb.mxu1 %v3313_v50 }
  0xfc   : > { %v1534_v62 = vrot.slane %v1532_v31, 5  ;;  %v878_v0 = vadd.f32 %v4723_v17, %v877_v24  ;;  %v883_v38 = vand.u32 2147483647, %v4691_v49  ;;  %3134 = vmatmul.msk.bf16.gmra.mxu3 %vm1721_vm3, %v4788_v8  ;;  %v1529_v7 = vor.u32 %v1528_v36, %v1524_v63 }
  0xfd   : > { %3571 = vpow2.f32 %v3091_v26  ;;  %v1934_v2 = vsel %vm4790_vm2, %v3151_v16, %v1933_v20  ;;  %v1937_v9 = vsel %vm4790_vm2, %v1935_v33, %v1936_v35  ;;  %v3459_v31 = vunpack.i.l.bf16 %v4674_v11 }
  0xfe   : > { %v532_v24 = vunpack.c.l.bf16 %v502_v34  ;;  %v1993_v49 = vunpack.c.l.b16 %v1937_v9  ;;  %v886_v18 = vor.u32 1.1754944e-38, %v885_v22  ;;  %v564_v23 = vmul.f32 %v4479_v48, %v530_v1  ;;  %v3321_v34 = vld [vmem:[%s5662_s5 + $0x48] sm:$0xff] }
  0xff   : > { %v1525_v36 = vsel %vm4370_vm15, %v1520_v27, %v1524_v63  ;;  %v1530_v16 = vrot.slane %v1529_v7, 4  ;;  %v1183_v20 = vmul.f32 %v872_v21, %v4535_v56  ;;  %v882_v11 = vsel %vm4812_vm4, %v4723_v17, %v878_v0  ;;  %2260 = vmatpush.bf16.msrb.mxu0 %v3321_v34 }
 0x100   : > { %vm884_vm5 = vcmp.eq.f32.partialorder %v883_v38, 8.507059e+37  ;;  %v1992_v35 = vunpack.c.l.b16 %v1934_v2  ;;  %v1687_v22 = vunpack.c.l.b16 %v1525_v36  ;;  %v566_v33 = vmul.f32 %v4479_v48, %v532_v24 }
 0x101   : > { %v1535_v1 = vsel %vm4370_vm15, %v1530_v16, %v1534_v62  ;;  %v887_v56 = vsel %vm884_vm5, %v886_v18, %v882_v11  ;;  %v1430_v21 = vmul.f32 %v3459_v31, %v1183_v20  ;;  %v4838_v17 = vadd.f32 %v4493_v58, %v564_v23  ;;  %v3312_v31 = vld [vmem:[%s5662_s5] sm:$0xff] }
 0x102   : > { %v1688_v26 = vunpack.c.l.b16 %v1535_v1  ;;  %v2008_v63 = vpack.c.b16 %v1993_v49, %v1992_v35  ;;  %v3465_v28 = vunpack.i.l.bf16 %v4707_v59  ;;  %v531_v62 = vunpack.c.h.bf16 %v4743_v5  ;;  %1878 = vmatpush.bf16.msrb.mxu1 %v3312_v31 }
 0x103   : > { %v3572_v27 = vpop.eup %3571  ;;  %v1940_v51 = vrot.slane %v4739_v15, 5  ;;  %v1184_v47 = vmul.f32 %v887_v56, %v4604_v53  ;;  %v1813_v7 = vunpack.c.l.b16 %v4718_v54  ;;  %v1814_v2 = vunpack.c.l.b16 %v4739_v15  ;;  %v3320_v56 = vld [vmem:[%s5662_s5 + $0x40] sm:$0xff] }
 0x104   : > { %v705_v0 = vadd.f32 1.0, %v3572_v27  ;;  %v1702_v38 = vpack.c.b16 %v1688_v26, %v1687_v22  ;;  %3171 = vmatmul.msk.bf16.vlgmr.msrb.gmra.mxu2 %vm1721_vm3, %v2008_v63  ;;  %v1943_v9 = vrot.slane %v4768_v39, 5  ;;  %v4852_v59 = vpack.c.bf16 %v1430_v21, %v1430_v21  ;;  %2261 = vmatpush.bf16.msrb.mxu0 %v3320_v56 }
 0x105   : > { %v3104_v5 = vmul.f32 -1.442695, %v4838_v17  ;;  %v4856_v24 = vadd.f32 %v4493_v58, %v566_v33  ;;  %v565_v53 = vmul.f32 %v4479_v48, %v531_v62  ;;  %v3152_v50 = vrot.slane %v4718_v54, 9 }
 0x106   : > { %3573 = vrcp.f32 %v705_v0  ;;  %3128 = vmatmul.msk.bf16.gmra.mxu0 %vm1721_vm3, %v1702_v38  ;;  %v1942_v49 = vrot.slane %v1940_v51, 4  ;;  %v1431_v15 = vmul.f32 %v3465_v28, %v1184_v47  ;;  %v4860_v18 = vpack.c.b16 %v1814_v2, %v1813_v7 }
 0x107   : > { %v4863_v39 = vadd.f32 %v4493_v58, %v565_v53  ;;  %v1561_v16 = vshrl.u32 %v4852_v59, 16  ;;  %3575 = vpow2.f32 %v3104_v5  ;;  %v3106_v20 = vmul.f32 -1.442695, %v4856_v24 }
 0x108   : > { %v1944_v23 = vsel %vm4790_vm2, %v1942_v49, %v1943_v9  ;;  %v1564_v48 = vshll.u32 %v4852_v59, 16  ;;  %v1941_v58 = vsel %vm4790_vm2, %v3152_v50, %v1940_v51  ;;  %v4875_v35 = vpack.c.bf16 %v1431_v15, %v1431_v15 }
 0x109   : > { %v3105_v11 = vmul.f32 -1.442695, %v4863_v39  ;;  %vm894_vm6 = vweird.f32 %v705_v0  ;;  %v900_v34 = vand.u32 2147483648, %v705_v0  ;;  %v1995_v1 = vunpack.c.l.b16 %v1944_v23 }
 0x10a   : > { %v898_v26 = vand.u32 2147483647, %v705_v0  ;;  %v1994_v63 = vunpack.c.l.b16 %v1941_v58  ;;  %v1563_v21 = vrot.slane %v1561_v16, 4  ;;  %v1566_v51 = vrot.slane %v1564_v48, 5  ;;  %v1306_v16 = vpop.permute.xlu1 %1305 }
 0x10b   : > { %3577 = vpow2.f32 %v3105_v11  ;;  %v901_v28 = vor.u32 1.1754944e-38, %v900_v34  ;;  %v1574_v47 = vshrl.u32 %v4875_v35, 16  ;;  %v1947_v2 = vrot.slane %v4330_v6, 5 }
 0x10c   : > { %v3574_v36 = vpop.eup %3573  ;;  %3191 = vmatmul.msk.bf16.vlgmr.msrb.gmra.mxu3 %vm1721_vm3, %v4860_v18  ;;  %3579 = vpow2.f32 %v3106_v20  ;;  %v4880_v62 = vpack.c.b16 %v1995_v1, %v1994_v63  ;;  %vm899_vm9 = vcmp.eq.f32.partialorder %v898_v26, 8.507059e+37  ;;  %v1816_v50 = vunpack.c.l.b16 %v4330_v6 }
 0x10d   : > { %v890_v54 = vmul.f32 %v3574_v36, %v705_v0  ;;  %vm895_vm7 = vweird.f32 %v3574_v36  ;;  %v3576_v33 = vpop.eup %3575  ;;  %v1570_v0 = vshll.u32 %v4875_v35, 16  ;;  %v1950_v49 = vrot.slane %v4328_v14, 5 }
 0x10e   : > { %vm896_vm8 = vmor %vm894_vm6, %vm895_vm7  ;;  %v1576_v15 = vrot.slane %v1574_v47, 4  ;;  %v4892_v23 = vadd.f32 1.0, %v3576_v33  ;;  %v1567_v20 = vor.u32 %v1566_v51, %v1563_v21  ;;  %v1949_v58 = vrot.slane %v1947_v2, 4 }
 0x10f   : > { %v891_v22 = vsub.f32 1.0, %v890_v54  ;;  %v1572_v11 = vrot.slane %v1570_v0, 5 }
 0x110   : > { %v1951_v26 = vsel %vm4790_vm2, %v1949_v58, %v1950_v49  ;;  %v1954_v58 = vrot.slane %v4875_v35, 5  ;;  %vm1089_vm12 = vweird.f32 %v4892_v23 }
 0x111   : > { %v892_v27 = vmul.f32 %v3574_v36, %v891_v22  ;;  %v3578_v9 = vpop.eup %3577  ;;  %v1577_v22 = vor.u32 %v1576_v15, %v1572_v11  ;;  %v1997_v33 = vunpack.c.l.b16 %v1951_v26  ;;  %v3329_v15 = vld [vmem:[%s5662_s5 + $0x88] sm:$0xff] }
 0x112   : > { %v4887_v53 = vadd.f32 1.0, %v3578_v9  ;;  %v3580_v48 = vpop.eup %3579  ;;  %v3327_v9 = vld [vmem:[%s5662_s5 + $0x78] sm:$0xff]  ;;  %2654 = vmatpush.bf16.msra.mxu0 %v3329_v15 }
 0x113   : > { %v893_v7 = vadd.f32 %v3574_v36, %v892_v27  ;;  %v4900_v14 = vadd.f32 1.0, %v3580_v48  ;;  %v1578_v51 = vrot.slane %v1577_v22, 4  ;;  %2558 = vmatpush.bf16.msra.mxu3 %v3327_v9 }
 0x114   : > { %3172 = vmatmul.msk.bf16.gmra.mxu2 %vm1721_vm3, %v4880_v62  ;;  %3581 = vrcp.f32 %v4887_v53  ;;  %vm1104_vm10 = vweird.f32 %v4887_v53 }
 0x115   : > { %v897_v31 = vsel %vm896_vm8, %v3574_v36, %v893_v7  ;;  %v1815_v36 = vunpack.c.l.b16 %v4238_v25  ;;  %3583 = vrcp.f32 %v4892_v23  ;;  %vm1119_vm0 = vweird.f32 %v4900_v14 }
 0x116   : > { %v902_v5 = vsel %vm899_vm9, %v901_v28, %v897_v31  ;;  %3211 = vmatmul.msk.bf16.vlgmr.msrb.gmra.mxu0 %vm1721_vm3, %v1702_v38  ;;  %v1568_v38 = vrot.slane %v1567_v20, 4  ;;  %3585 = vrcp.f32 %v4900_v14  ;;  %v3323_v31 = vld [vmem:[%s5662_s5 + $0x58] sm:$0xff] }
 0x117   : > { %v1185_v54 = vmul.f32 %v902_v5, %v4783_v19  ;;  %v4897_v6 = vpack.c.b16 %v1816_v50, %v1815_v36  ;;  %v3153_v19 = vrot.slane %v4238_v25, 9  ;;  %2356 = vmatpush.bf16.msra.mxu1 %v3323_v31  ;;  %v1818_v36 = vunpack.c.l.b16 %v4875_v35 }
 0x118   : > { %v1573_v28 = vsel %vm4370_vm15, %v1568_v38, %v1572_v11  ;;  %v1817_v11 = vunpack.c.l.b16 %v4852_v59  ;;  %v1812_v31 = vunpack.c.l.b16 %v4313_v13  ;;  %v1125_v13 = vand.u32 2147483648, %v4900_v14 }
 0x119   : > { %v1432_v34 = vmul.f32 %v1306_v16, %v1185_v54  ;;  %v1948_v27 = vsel %vm4790_vm2, %v3153_v19, %v1947_v2  ;;  %v3325_v2 = vld [vmem:[%s5662_s5 + $0x68] sm:$0xff]  ;;  %v1691_v5 = vunpack.c.l.b16 %v1573_v28 }
 0x11a   : > { %v4909_v56 = vpop.eup %3581  ;;  %v1996_v25 = vunpack.c.l.b16 %v1948_v27  ;;  %2446 = vmatpush.bf16.msra.mxu2 %v3325_v2  ;;  %v4952_v26 = vpack.c.b16 %v1818_v36, %v1817_v11  ;;  %v1956_v27 = vrot.slane %v1954_v58, 4  ;;  %v1095_v2 = vand.u32 2147483648, %v4892_v23 }
 0x11b   : > { %v1462_v1 = vpack.c.bf16 %v1432_v34, %v1432_v34  ;;  %v4914_v47 = vpop.eup %3583  ;;  %v1100_v0 = vmul.f32 %v4909_v56, %v4887_v53  ;;  %vm1105_vm11 = vweird.f32 %v4909_v56  ;;  %v1811_v11 = vunpack.c.l.b16 %v4236_v40 }
 0x11c   : > { %3192 = vmatmul.msk.bf16.gmra.mxu3 %vm1721_vm3, %v4897_v6  ;;  %v4929_v49 = vpack.c.b16 %v1997_v33, %v1996_v25  ;;  %v4934_v16 = vpop.eup %3585  ;;  %v1085_v20 = vmul.f32 %v4914_v47, %v4892_v23  ;;  %vm4968_vm13 = vmor %vm1104_vm10, %vm1105_vm11  ;;  %vm1090_vm14 = vweird.f32 %v4914_v47 }
 0x11d   : > { %v1580_v63 = vshll.u32 %v1462_v1, 16  ;;  %v1101_v54 = vsub.f32 1.0, %v1100_v0  ;;  %v1115_v34 = vmul.f32 %v4934_v16, %v4900_v14  ;;  %v1957_v38 = vrot.slane %v1462_v1, 5  ;;  %vm4985_vm5 = vmor %vm1089_vm12, %vm1090_vm14 }
 0x11e   : > { %v1086_v22 = vsub.f32 1.0, %v1085_v20  ;;  %v1110_v1 = vand.u32 2147483648, %v4887_v53  ;;  %v1093_v0 = vand.u32 2147483647, %v4892_v23  ;;  %vm1120_vm1 = vweird.f32 %v4934_v16 }
 0x11f   : > { %v1582_v21 = vrot.slane %v1580_v63, 5  ;;  %v1102_v19 = vmul.f32 %v4909_v56, %v1101_v54  ;;  %v3154_v63 = vrot.slane %v4852_v59, 9  ;;  %v1116_v33 = vsub.f32 1.0, %v1115_v34  ;;  %vm4998_vm6 = vmor %vm1119_vm0, %vm1120_vm1 }
 0x120   : > { %v1958_v35 = vsel %vm4790_vm2, %v1956_v27, %v1957_v38  ;;  %v1108_v59 = vand.u32 2147483647, %v4887_v53  ;;  %v1111_v53 = vor.u32 1.1754944e-38, %v1110_v1  ;;  %v1123_v54 = vand.u32 2147483647, %v4900_v14 }
 0x121   : > { %v1583_v7 = vsel %vm4370_vm15, %v1578_v51, %v1582_v21  ;;  %v1087_v21 = vmul.f32 %v4914_v47, %v1086_v22  ;;  %v1103_v28 = vadd.f32 %v4909_v56, %v1102_v19  ;;  %v1955_v51 = vsel %vm4790_vm2, %v3154_v63, %v1954_v58 }
 0x122   : > { %v1692_v50 = vunpack.c.l.b16 %v1583_v7  ;;  %v1999_v7 = vunpack.c.l.b16 %v1958_v35  ;;  %v1117_v9 = vmul.f32 %v4934_v16, %v1116_v33  ;;  %vm1109_vm4 = vcmp.eq.f32.partialorder %v1108_v59, 8.507059e+37 }
 0x123   : > { %v1107_v15 = vsel %vm4968_vm13, %v4909_v56, %v1103_v28  ;;  %v1961_v34 = vrot.slane %v4305_v57, 5  ;;  %v1096_v56 = vor.u32 1.1754944e-38, %v1095_v2  ;;  %v1827_v22 = vpack.c.b16 %v1812_v31, %v1811_v11  ;;  %v3324_v11 = vld [vmem:[%s5662_s5 + $0x60] sm:$0xff] }
 0x124   : > { %v4938_v48 = vpack.c.b16 %v1692_v50, %v1691_v5  ;;  %3173 = vmatmul.msk.bf16.gmra.mxu2 %vm1721_vm3, %v4929_v49  ;;  %v1998_v5 = vunpack.c.l.b16 %v1955_v51  ;;  %v1088_v50 = vadd.f32 %v4914_v47, %v1087_v21  ;;  %v1118_v58 = vadd.f32 %v4934_v16, %v1117_v9 }
 0x125   : > { %v1112_v38 = vsel %vm1109_vm4, %v1111_v53, %v1107_v15  ;;  %vm1094_vm7 = vcmp.eq.f32.partialorder %v1093_v0, 8.507059e+37  ;;  %v1819_v19 = vunpack.c.l.b16 %v4285_v30  ;;  %v1820_v63 = vunpack.c.l.b16 %v4305_v57  ;;  %v1395_v57 = vpop.permute.xlu1 %1394  ;;  %v1401_v53 = vpop.permute.xlu2 %1400  ;;  %2447 = vmatpush.bf16.msra.mxu2 %v3324_v11 }
 0x126   : > { %3212 = vmatmul.msk.bf16.gmra.mxu0 %vm1721_vm3, %v4436_v29  ;;  %3130 = vmatmul.msk.bf16.gmra.mxu1 %vm1721_vm3, %v4938_v48  ;;  %v4992_v36 = vpack.c.b16 %v1999_v7, %v1998_v5  ;;  %v1092_v40 = vsel %vm4985_vm5, %v4914_v47, %v1088_v50  ;;  %v1964_v14 = vrot.slane %v4079_v42, 5  ;;  %vm1124_vm8 = vcmp.eq.f32.partialorder %v1123_v54, 8.507059e+37 }
 0x127   : > { %v1126_v27 = vor.u32 1.1754944e-38, %v1125_v13  ;;  %v1122_v33 = vsel %vm4998_vm6, %v4934_v16, %v1118_v58  ;;  %v1199_v47 = vmul.f32 %v1112_v38, %v4863_v39  ;;  %v3155_v35 = vrot.slane %v4285_v30, 9  ;;  %v1389_v16 = vpop.permute.xlu0 %1388  ;;  %v3326_v58 = vld [vmem:[%s5662_s5 + $0x70] sm:$0xff] }
 0x128   : > { %v1963_v1 = vrot.slane %v1961_v34, 4  ;;  %v1097_v21 = vsel %vm1094_vm7, %v1096_v56, %v1092_v40  ;;  %v5018_v28 = vpack.c.b16 %v1820_v63, %v1819_v19  ;;  %v1968_v15 = vrot.slane %v4630_v60, 5  ;;  %2559 = vmatpush.bf16.msra.mxu3 %v3326_v58 }
 0x129   : > { %v1127_v59 = vsel %vm1124_vm8, %v1126_v27, %v1122_v33  ;;  %v1198_v42 = vmul.f32 %v1097_v21, %v4838_v17  ;;  %v1446_v51 = vmul.f32 %v1395_v57, %v1199_v47  ;;  %v1962_v25 = vsel %vm4790_vm2, %v3155_v35, %v1961_v34  ;;  %v3322_v57 = vld [vmem:[%s5662_s5 + $0x50] sm:$0xff] }
 0x12a   : > { %v1965_v39 = vsel %vm4790_vm2, %v1963_v1, %v1964_v14  ;;  %v1200_v30 = vmul.f32 %v1127_v59, %v4856_v24  ;;  %v2000_v7 = vunpack.c.l.b16 %v1962_v25  ;;  %v1821_v20 = vunpack.c.l.b16 %v4622_v43  ;;  %v3328_v59 = vld [vmem:[%s5662_s5 + $0x80] sm:$0xff]  ;;  %2357 = vmatpush.bf16.msra.mxu1 %v3322_v57 }
 0x12b   : > { %v2001_v0 = vunpack.c.l.b16 %v1965_v39  ;;  %v1445_v2 = vmul.f32 %v1389_v16, %v1198_v42  ;;  %v5028_v9 = vpack.c.bf16 %v1446_v51, %v1446_v51  ;;  %v1822_v54 = vunpack.c.l.b16 %v4630_v60  ;;  %2655 = vmatpush.bf16.msra.mxu0 %v3328_v59 }
 0x12c   : > { %3193 = vmatmul.msk.bf16.gmra.mxu3 %vm1721_vm3, %v4952_v26  ;;  %v1447_v17 = vmul.f32 %v1401_v53, %v1200_v30  ;;  %v1971_v13 = vrot.slane %v4651_v32, 5  ;;  %v3156_v60 = vrot.slane %v4622_v43, 9  ;;  %v1970_v23 = vrot.slane %v1968_v15, 4 }
 0x12d   : > { %v5030_v31 = vpack.c.b16 %v2001_v0, %v2000_v7  ;;  %v5032_v5 = vpack.c.bf16 %v1445_v2, %v1445_v2  ;;  %v2322_v50 = vrot.slane %v5028_v9, 5  ;;  %v5056_v38 = vpack.c.b16 %v1822_v54, %v1821_v20 }
 0x12e   : > { %v5038_v24 = vpack.c.bf16 %v1447_v17, %v1447_v17  ;;  %v1972_v40 = vsel %vm4790_vm2, %v1970_v23, %v1971_v13  ;;  %v1975_v35 = vrot.slane %v4301_v46, 5  ;;  %v1823_v1 = vunpack.c.l.b16 %v4267_v37 }
 0x12f   : > { %v3219_v34 = vrot.slane %v5032_v5, 9  ;;  %v2324_v56 = vrot.slane %v2322_v50, 4  ;;  %v2003_v27 = vunpack.c.l.b16 %v1972_v40  ;;  %v1824_v21 = vunpack.c.l.b16 %v4301_v46 }
 0x130   : > { %v2325_v32 = vrot.slane %v5038_v24, 5  ;;  %v1978_v42 = vrot.slane %v4077_v41, 5  ;;  %v3157_v51 = vrot.slane %v4267_v37, 9  ;;  %v1977_v25 = vrot.slane %v1975_v35, 4 }
 0x131   : > { %v5089_v46 = vpack.c.b16 %v1824_v21, %v1823_v1  ;;  %v1982_v37 = vrot.slane %v4703_v61, 5  ;;  %v1825_v2 = vunpack.c.l.b16 %v4653_v45  ;;  %v1826_v53 = vunpack.c.l.b16 %v4703_v61 }
 0x132   : > { %v2326_v43 = vsel %vm4790_vm2, %v2324_v56, %v2325_v32  ;;  %v1976_v39 = vsel %vm4790_vm2, %v3157_v51, %v1975_v35  ;;  %v1979_v30 = vsel %vm4790_vm2, %v1977_v25, %v1978_v42  ;;  %v1985_v17 = vrot.slane %v4710_v44, 5 }
 0x133   : > { %v2333_v63 = vunpack.c.l.b16 %v2326_v43  ;;  %v2004_v16 = vunpack.c.l.b16 %v1976_v39  ;;  %v2005_v7 = vunpack.c.l.b16 %v1979_v30  ;;  %v5112_v20 = vpack.c.b16 %v1826_v53, %v1825_v2 }
 0x134   : > { %3174 = vmatmul.msk.bf16.gmra.mxu2 %vm1721_vm3, %v4992_v36  ;;  %v2217_v11 = vshll.u32 %v5028_v9, 16  ;;  %v2221_v44 = vshrl.u32 %v5028_v9, 16  ;;  %v2208_v56 = vshrl.u32 %v5032_v5, 16  ;;  %v2124_v1 = vunpack.c.l.b16 %v5032_v5 }
 0x135   : > { %v5097_v0 = vpack.c.b16 %v2005_v7, %v2004_v16 }
 0x136   : > { %3213 = vmatmul.msk.bf16.gmra.mxu0 %vm1721_vm3, %v4938_v48  ;;  %3143 = vmatmul.msk.bf16.vlgmr.msrb.gmra.mxu1 %vm1721_vm3, %v1827_v22  ;;  %v1969_v22 = vsel %vm4790_vm2, %v3156_v60, %v1968_v15  ;;  %v1984_v15 = vrot.slane %v1982_v37, 4  ;;  %v2211_v60 = vshll.u32 %v5032_v5, 16  ;;  %v2219_v23 = vrot.slane %v2217_v11, 5  ;;  %v3351_v11 = vld [vmem:[%s453_s23] sm:$0xff]  }
 0x137   : > { %v2002_v14 = vunpack.c.l.b16 %v1969_v22  ;;  %v2223_v32 = vrot.slane %v2221_v44, 4  ;;  %v2210_v40 = vrot.slane %v2208_v56, 4  ;;  %v3353_v44 = vunpack.c.h.bf16 %v3351_v11  ;;  %v3601_v56 = vld [vmem:[%s3729_s12] ss:$0 sm:$0xff] }
 0x138   : > { %v1986_v13 = vsel %vm4790_vm2, %v1984_v15, %v1985_v17  ;;  %v2213_v43 = vrot.slane %v2211_v60, 5 }
 0x139   : > { %v5070_v47 = vpack.c.b16 %v2003_v27, %v2002_v14  ;;  %v2125_v14 = vunpack.c.l.b16 %v5028_v9  ;;  %v2227_v27 = vshll.u32 %v5038_v24, 16  ;;  %v568_v60 = vmul.f32 %v3601_v56, %v3353_v44 }
 0x13a   : > { %v2214_v21 = vor.u32 %v2213_v43, %v2210_v40  ;;  %v505_v43 = vld [vmem:[%s453_s23 + $0x8] sm:$0x1] }
 0x13b   : > { %v5145_v59 = vpack.c.b16 %v2125_v14, %v2124_v1  ;;  %v2229_v42 = vrot.slane %v2227_v27, 5 }
 0x13c   : > { %3194 = vmatmul.msk.bf16.gmra.mxu3 %vm1721_vm3, %v5018_v28  ;;  %v2215_v9 = vrot.slane %v2214_v21, 4  ;;  %v535_v21 = vunpack.c.l.bf16 %v505_v43 }
 0x13e   : > { %v2220_v5 = vsel %vm4370_vm15, %v2215_v9, %v2219_v23 }
 0x13f   : > { %v2236_v16 = vunpack.c.l.b16 %v2220_v5 }
 0x144   : > { %3175 = vmatmul.msk.bf16.gmra.mxu2 %vm1721_vm3, %v5030_v31 }
 0x146   : > { %3214 = vmatmul.msk.bf16.gmra.mxu0 %vm1721_vm3, %v4489_v52  ;;  %3144 = vmatmul.msk.bf16.gmra.mxu1 %vm1721_vm3, %v4860_v18  ;;  %v2323_v18 = vsel %vm4790_vm2, %v3219_v34, %v2322_v50  ;;  %v3158_v50 = vrot.slane %v4653_v45, 9  ;;  %v2007_v34 = vunpack.c.l.b16 %v1986_v13 }
 0x147   : > { %v2332_v19 = vunpack.c.l.b16 %v2323_v18  ;;  %v5128_v18 = vpop.f32.mrf.mxu0 }
 0x148   : > { %v1983_v61 = vsel %vm4790_vm2, %v3158_v50, %v1982_v37 }
 0x149   : > { %v5068_v33 = vpack.c.b16 %v2333_v63, %v2332_v19  ;;  %v2006_v45 = vunpack.c.l.b16 %v1983_v61  ;;  %v2224_v63 = vor.u32 %v2223_v32, %v2219_v23 }
 0x14a   : > { %v5099_v41 = vpop.f32.mrf.mxu2 }
 0x14b   : > { %v5130_v22 = vpack.c.b16 %v2007_v34, %v2006_v45  ;;  %v2225_v57 = vrot.slane %v2224_v63, 4  ;;  %v3352_v34 = vunpack.c.l.bf16 %v3351_v11  ;;  %v3602_v63 = vld [vmem:[%s3735_s15] ss:$0 sm:$0xff] }
 0x14c   : > { %3195 = vmatmul.msk.bf16.gmra.mxu3 %vm1721_vm3, %v5056_v38  ;;  %v5210_v14 = vadd.f32 %v3602_v63, %v568_v60 }
 0x14d   : > { %v2230_v24 = vsel %vm4370_vm15, %v2225_v57, %v2229_v42  ;;  %v567_v40 = vmul.f32 %v3601_v56, %v3352_v34 }
 0x14e   : > { %v2237_v30 = vunpack.c.l.b16 %v2230_v24  ;;  %v3108_v57 = vmul.f32 -1.442695, %v5210_v14  ;;  %v569_v24 = vmul.f32 %v3601_v56, %v535_v21 }
 0x14f   : > { %v5147_v51 = vpop.f32.mrf.mxu0 }
 0x150   : > { %v5162_v37 = vpack.c.b16 %v2237_v30, %v2236_v16  ;;  %3587 = vpow2.f32 %v3108_v57  ;;  %v5236_v16 = vadd.f32 %v3602_v63, %v569_v24 }
 0x151   : > { %v5114_v54 = vpop.f32.mrf.mxu3 }
 0x152   : > { %5757 = vst [vmem:[#allocation3_spill] sm:$0xff] %v5114_v54  ;;  %v5124_v58 = vpop.f32.mrf.mxu2  ;;  %v3109_v56 = vmul.f32 -1.442695, %v5236_v16 }
 0x154   : > { %3176 = vmatmul.msk.bf16.gmra.mxu2 %vm1721_vm3, %v5070_v47 }
 0x156   : > { %3215 = vmatmul.msk.bf16.gmra.mxu0 %vm1721_vm3, %v4745_v3  ;;  %3145 = vmatmul.msk.bf16.gmra.mxu1 %vm1721_vm3, %v4897_v6  ;;  %v3588_v34 = vpop.eup %3587 }
 0x157   : > { %v5245_v43 = vadd.f32 1.0, %v3588_v34 }
 0x159   : > { %v5132_v19 = vpop.f32.mrf.mxu3  ;;  %vm1149_vm9 = vweird.f32 %v5245_v43 }
 0x15a   : > { %5758 = vst [vmem:[#allocation4_spill] sm:$0xff] %v5132_v19 }
 0x15c   : > { %3196 = vmatmul.msk.bf16.gmra.mxu3 %vm1721_vm3, %v5089_v46 }
 0x164   : > { %3177 = vmatmul.msk.bf16.gmra.mxu2 %vm1721_vm3, %v5097_v0 }
 0x166   : > { %3216 = vmatmul.msk.bf16.gmra.mxu0 %vm1721_vm3, %v4555_v12  ;;  %3146 = vmatmul.msk.bf16.gmra.mxu1 %vm1721_vm3, %v4952_v26 }
 0x16c   : > { %3197 = vmatmul.msk.bf16.gmra.mxu3 %vm1721_vm3, %v5112_v20 }
 0x174   : > { %3178 = vmatmul.msk.bf16.gmra.mxu2 %vm1721_vm3, %v5130_v22 }
 0x176   : > { %3217 = vmatmul.msk.bf16.gmra.mxu0 %vm1721_vm3, %v4788_v8  ;;  %3147 = vmatmul.msk.bf16.gmra.mxu1 %vm1721_vm3, %v5018_v28 }
 0x177   : > { %v5142_v35 = vpop.f32.mrf.mxu2 }
 0x178   : > { %5759 = vst [vmem:[#allocation5_spill] sm:$0xff] %v5142_v35 }
 0x17c   : > { %3198 = vmatmul.msk.bf16.gmra.mxu3 %vm1721_vm3, %v5145_v59 }
 0x17f   : > { %v5154_v25 = vpop.f32.mrf.mxu3  ;;  %v5156_v39 = vpop.f32.mrf.mxu2 }
 0x180   : > { %5760 = vst [vmem:[#allocation6_spill] sm:$0xff] %v5154_v25 }
 0x181   : > { %5761 = vst [vmem:[#allocation7_spill] sm:$0xff] %v5156_v39 }
 0x183   : > { %v5160_v7 = vpop.f32.mrf.mxu0 }
 0x184   : > { %3252 = vmatmul.msk.bf16.vlgmr.msra.gmra.mxu2 %vm1721_vm3, %v4897_v6  ;;  %v5181_v6 = vpop.f32.mrf.mxu1 }
 0x186   : > { %3218 = vmatmul.msk.bf16.gmra.mxu0 %vm1721_vm3, %v5162_v37  ;;  %3148 = vmatmul.msk.bf16.gmra.mxu1 %vm1721_vm3, %v5056_v38 }
 0x187   : > { %v5170_v2 = vpop.f32.mrf.mxu3  ;;  %v2061_v53 = vpop.f32.mrf.mxu2 }
 0x188   : > { %5762 = vst [vmem:[#allocation8_spill] sm:$0xff] %v5170_v2 }
 0x18b   : > { %v5172_v17 = vpop.f32.mrf.mxu0 }
 0x18c   : > { %3272 = vmatmul.msk.bf16.vlgmr.msra.gmra.mxu3 %vm1721_vm3, %v4436_v29 }
 0x18f   : > { %v5176_v50 = vpop.f32.mrf.mxu3  ;;  %v5178_v15 = vpop.f32.mrf.mxu2 }
 0x193   : > { %v5183_v61 = vpop.f32.mrf.mxu0 }
 0x194   : > { %3253 = vmatmul.msk.bf16.gmra.mxu2 %vm1721_vm3, %v4952_v26  ;;  %v5200_v26 = vpop.f32.mrf.mxu1 }
 0x196   : > { %3293 = vmatmul.msk.bf16.vlgmr.msra.gmra.mxu0 %vm1721_vm3, %v4929_v49  ;;  %3149 = vmatmul.msk.bf16.gmra.mxu1 %vm1721_vm3, %v5089_v46 }
 0x197   : > { %v5194_v29 = vpop.f32.mrf.mxu3  ;;  %v5196_v13 = vpop.f32.mrf.mxu2 }
 0x19b   : > { %v5198_v45 = vpop.f32.mrf.mxu0 }
 0x19c   : > { %3273 = vmatmul.msk.bf16.gmra.mxu3 %vm1721_vm3, %v4938_v48  ;;  %v5218_v48 = vadd.f32 %v3602_v63, %v567_v40 }
 0x19e   : > { %v3107_v5 = vmul.f32 -1.442695, %v5218_v48 }
 0x19f   : > { %v5205_v23 = vpop.f32.mrf.mxu3  ;;  %v5207_v32 = vpop.f32.mrf.mxu2 }
 0x1a0   : > { %3589 = vpow2.f32 %v3107_v5 }
 0x1a1   : > { %3591 = vpow2.f32 %v3109_v56 }
 0x1a2   : > { %3593 = vrcp.f32 %v5245_v43 }
 0x1a3   : > { %v5212_v27 = vpop.f32.mrf.mxu0  ;;  %v5214_v1 = vpop.f32.mrf.mxu1 }
 0x1a4   : > { %3254 = vmatmul.msk.bf16.gmra.mxu2 %vm1721_vm3, %v5018_v28 }
 0x1a6   : > { %3294 = vmatmul.msk.bf16.gmra.mxu0 %vm1721_vm3, %v4992_v36  ;;  %3150 = vmatmul.msk.bf16.gmra.mxu1 %vm1721_vm3, %v5112_v20  ;;  %v3590_v40 = vpop.eup %3589 }
 0x1a7   : > { %v5225_v42 = vpop.f32.mrf.mxu3  ;;  %v5227_v9 = vpop.f32.mrf.mxu2 }
 0x1a8   : > { %v3592_v34 = vpop.eup %3591 }
 0x1a9   : > { %v3594_v56 = vpop.eup %3593 }
 0x1aa   : > { %v1145_v2 = vmul.f32 %v3594_v56, %v5245_v43  ;;  %vm1150_vm10 = vweird.f32 %v3594_v56 }
 0x1ab   : > { %v5230_v30 = vpop.f32.mrf.mxu0  ;;  %v5232_v28 = vpop.f32.mrf.mxu1  ;;  %vm5308_vm13 = vmor %vm1149_vm9, %vm1150_vm10 }
 0x1ac   : > { %3274 = vmatmul.msk.bf16.gmra.mxu3 %vm1721_vm3, %v4489_v52  ;;  %v5252_v52 = vadd.f32 1.0, %v3590_v40  ;;  %v5267_v40 = vadd.f32 1.0, %v3592_v34 }
 0x1ae   : > { %3595 = vrcp.f32 %v5252_v52  ;;  %vm1134_vm11 = vweird.f32 %v5252_v52  ;;  %vm1164_vm4 = vweird.f32 %v5267_v40 }
 0x1af   : > { %v5238_v11 = vpop.f32.mrf.mxu3  ;;  %v5240_v44 = vpop.f32.mrf.mxu2  ;;  %3597 = vrcp.f32 %v5267_v40 }
 0x1b3   : > { %v5243_v60 = vpop.f32.mrf.mxu0  ;;  %v1880_v21 = vpop.f32.mrf.mxu1 }
 0x1b4   : > { %v1881_v57 = vadd.f32 %v1880_v21, %v5128_v18  ;;  %3255 = vmatmul.msk.bf16.gmra.mxu2 %vm1721_vm3, %v5056_v38  ;;  %v3596_v10 = vpop.eup %3595 }
 0x1b5   : > { %v5293_v19 = vpop.eup %3597  ;;  %vm1135_vm12 = vweird.f32 %v3596_v10 }
 0x1b6   : > { %3295 = vmatmul.msk.bf16.gmra.mxu0 %vm1721_vm3, %v5030_v31  ;;  %v2101_v63 = vadd.f32 %v2061_v53, %v1881_v57  ;;  %3232 = vmatmul.msk.bf16.vlgmr.msra.gmra.mxu1 %vm1721_vm3, %v4880_v62  ;;  %vm5319_vm14 = vmor %vm1134_vm11, %vm1135_vm12  ;;  %vm1165_vm5 = vweird.f32 %v5293_v19 }
 0x1b7   : > { %v5256_v24 = vpop.f32.mrf.mxu3  ;;  %v5259_v5 = vpop.f32.mrf.mxu2  ;;  %vm5354_vm6 = vmor %vm1164_vm4, %vm1165_vm5 }
 0x1bb   : > { %v5262_v18 = vpop.f32.mrf.mxu0  ;;  %v1882_v38 = vpop.f32.mrf.mxu1 }
 0x1bc   : > { %3275 = vmatmul.msk.bf16.gmra.mxu3 %vm1721_vm3, %v4745_v3  ;;  %v1883_v53 = vadd.f32 %v1882_v38, %v5147_v51  ;;  %v1130_v3 = vmul.f32 %v3596_v10, %v5252_v52  ;;  %v1146_v38 = vsub.f32 1.0, %v1145_v2 }
 0x1be   : > { %v5270_v62 = vadd.f32 %v5178_v15, %v1883_v53  ;;  %v1131_v54 = vsub.f32 1.0, %v1130_v3  ;;  %v1153_v3 = vand.u32 2147483647, %v5245_v43 }
 0x1bf   : > { %v5272_v21 = vpop.f32.mrf.mxu3  ;;  %v5274_v57 = vpop.f32.mrf.mxu2 }
 0x1c0   : > { %5763 = vst [vmem:[#allocation9_spill] sm:$0xff] %v5272_v21  ;;  %vm1154_vm0 = vcmp.eq.f32.partialorder %v1153_v3, 8.507059e+37 }
 0x1c3   : > { %v5278_v25 = vpop.f32.mrf.mxu0  ;;  %v1885_v51 = vpop.f32.mrf.mxu1 }
 0x1c4   : > { %5764 = vst [vmem:[#allocation10_spill] sm:$0xff] %v5278_v25  ;;  %v1886_v34 = vadd.f32 %v1885_v51, %v5160_v7  ;;  %3256 = vmatmul.msk.bf16.gmra.mxu2 %vm1721_vm3, %v5089_v46  ;;  %v1147_v7 = vmul.f32 %v3594_v56, %v1146_v38  ;;  %v1160_v46 = vmul.f32 %v5293_v19, %v5267_v40 }
 0x1c6   : > { %3296 = vmatmul.msk.bf16.gmra.mxu0 %vm1721_vm3, %v5070_v47  ;;  %v5287_v15 = vadd.f32 %v5196_v13, %v1886_v34  ;;  %3233 = vmatmul.msk.bf16.gmra.mxu1 %vm1721_vm3, %v4929_v49  ;;  %v1132_v13 = vmul.f32 %v3596_v10, %v1131_v54  ;;  %v1155_v34 = vand.u32 2147483648, %v5245_v43  ;;  %v1148_v39 = vadd.f32 %v3594_v56, %v1147_v7 }
 0x1c7   : > { %v5291_v53 = vpop.f32.mrf.mxu3  ;;  %v5295_v2 = vpop.f32.mrf.mxu2  ;;  %v1140_v54 = vand.u32 2147483648, %v5252_v52  ;;  %v1138_v43 = vand.u32 2147483647, %v5252_v52 }
 0x1c8   : > { %5765 = vst [vmem:[#allocation11_spill] sm:$0xff] %v5291_v53  ;;  %v1156_v7 = vor.u32 1.1754944e-38, %v1155_v34 }
 0x1c9   : > { %vm1139_vm1 = vcmp.eq.f32.partialorder %v1138_v43, 8.507059e+37 }
 0x1cb   : > { %v5300_v51 = vpop.f32.mrf.mxu0  ;;  %v1887_v49 = vpop.f32.mrf.mxu1 }
 0x1cc   : > { %5766 = vst [vmem:[#allocation12_spill] sm:$0xff] %v5300_v51  ;;  %3276 = vmatmul.msk.bf16.gmra.mxu3 %vm1721_vm3, %v4555_v12  ;;  %v1888_v38 = vadd.f32 %v1887_v49, %v5172_v17  ;;  %v1161_v51 = vsub.f32 1.0, %v1160_v46  ;;  %v1133_v12 = vadd.f32 %v3596_v10, %v1132_v13  ;;  %v1152_v49 = vsel %vm5308_vm13, %v3594_v56, %v1148_v39 }
 0x1cd   : > { %v1141_v46 = vor.u32 1.1754944e-38, %v1140_v54  ;;  %v2191_v13 = vadd.f32 %v5176_v50, %v2101_v63  ;;  %v1157_v34 = vsel %vm1154_vm0, %v1156_v7, %v1152_v49  ;;  %v1168_v50 = vand.u32 2147483647, %v5267_v40  ;;  %v1408_v54 = vpop.permute.xlu0 %1407 }
 0x1ce   : > { %v5314_v25 = vadd.f32 %v5207_v32, %v1888_v38  ;;  %v1162_v32 = vmul.f32 %v5293_v19, %v1161_v51  ;;  %v1137_v52 = vsel %vm5319_vm14, %v3596_v10, %v1133_v12  ;;  %v1170_v63 = vand.u32 2147483648, %v5267_v40 }
 0x1cf   : > { %v5316_v35 = vpop.f32.mrf.mxu3  ;;  %v5325_v21 = vpop.f32.mrf.mxu2  ;;  %v5339_v56 = vadd.f32 %v5183_v61, %v2191_v13  ;;  %v1142_v10 = vsel %vm1139_vm1, %v1141_v46, %v1137_v52  ;;  %v1202_v51 = vmul.f32 %v1157_v34, %v5210_v14  ;;  %vm1169_vm7 = vcmp.eq.f32.partialorder %v1168_v50, 8.507059e+37 }
 0x1d0   : > { %5769 = vst [vmem:[#allocation13_spill] sm:$0xff] %v5316_v35  ;;  %v1163_v53 = vadd.f32 %v5293_v19, %v1162_v32  ;;  %v1414_v61 = vpop.permute.xlu1 %1413  ;;  %v1201_v40 = vmul.f32 %v1142_v10, %v5218_v48  ;;  %v1171_v3 = vor.u32 1.1754944e-38, %v1170_v63 }
 0x1d2   : > { %v1167_v14 = vsel %vm5354_vm6, %v5293_v19, %v1163_v53  ;;  %v1448_v49 = vmul.f32 %v1408_v54, %v1201_v40 }
 0x1d3   : > { %v5328_v38 = vpop.f32.mrf.mxu0  ;;  %v1890_v35 = vpop.f32.mrf.mxu1  ;;  %v1172_v19 = vsel %vm1169_vm7, %v1171_v3, %v1167_v14  ;;  %v2194_v3 = vadd.f32 %v5225_v42, %v5314_v25 }
 0x1d4   : > { %v1891_v39 = vadd.f32 %v1890_v35, %v5181_v6  ;;  %3257 = vmatmul.msk.bf16.gmra.mxu2 %vm1721_vm3, %v5112_v20 }
 0x1d6   : > { %3297 = vmatmul.msk.bf16.gmra.mxu0 %vm1721_vm3, %v5097_v0  ;;  %v5348_v35 = vadd.f32 %v5227_v9, %v1891_v39  ;;  %3234 = vmatmul.msk.bf16.gmra.mxu1 %vm1721_vm3, %v4992_v36  ;;  %v1449_v9 = vmul.f32 %v1414_v61, %v1202_v51  ;;  %v2192_v36 = vadd.f32 %v5194_v29, %v5270_v62 }
 0x1d7   : > { %v5352_v20 = vpop.f32.mrf.mxu3  ;;  %v5368_v7 = vpop.f32.mrf.mxu2  ;;  %v1203_v29 = vmul.f32 %v1172_v19, %v5236_v16  ;;  %v5380_v62 = vpack.c.bf16 %v1448_v49, %v1448_v49 }
 0x1d8   : > { %v5372_v17 = vadd.f32 %v5198_v45, %v2192_v36  ;;  %v5374_v46 = vpack.c.bf16 %v1449_v9, %v1449_v9  ;;  %v2193_v45 = vadd.f32 %v5205_v23, %v5287_v15 }
 0x1d9   : > { %v2506_v63 = vshrl.u32 %v5380_v62, 16  ;;  %v2509_v53 = vshll.u32 %v5380_v62, 16  ;;  %v2422_v19 = vunpack.c.l.b16 %v5380_v62 }
 0x1da   : > { %v2515_v52 = vshll.u32 %v5374_v46, 16  ;;  %v5392_v16 = vadd.f32 %v5212_v27, %v2193_v45  ;;  %v2423_v36 = vunpack.c.l.b16 %v5374_v46 }
 0x1db   : > { %v5362_v12 = vpop.f32.mrf.mxu0  ;;  %v1892_v43 = vpop.f32.mrf.mxu1  ;;  %v2511_v6 = vrot.slane %v2509_v53, 5 }
 0x1dc   : > { %3277 = vmatmul.msk.bf16.gmra.mxu3 %vm1721_vm3, %v4788_v8  ;;  %v1893_v48 = vadd.f32 %v1892_v43, %v5200_v26  ;;  %v1420_v8 = vpop.permute.xlu2 %1419  ;;  %v2519_v26 = vshrl.u32 %v5374_v46, 16  ;;  %v2517_v23 = vrot.slane %v2515_v52, 5 }
 0x1dd   : > { %v1450_v50 = vmul.f32 %v1420_v8, %v1203_v29 }
 0x1de   : > { %v2106_v32 = vadd.f32 %v5240_v44, %v1893_v48  ;;  %v2521_v15 = vrot.slane %v2519_v26, 4  ;;  %v2620_v26 = vrot.slane %v5374_v46, 5 }
 0x1df   : > { %v5377_v13 = vpop.f32.mrf.mxu3  ;;  %v5395_v10 = vpop.f32.mrf.mxu2  ;;  %v1480_v27 = vpack.c.bf16 %v1450_v50, %v1450_v50 }
 0x1e0   : > { %v2522_v61 = vor.u32 %v2521_v15, %v2517_v23  ;;  %v2622_v46 = vrot.slane %v2620_v26, 4  ;;  %v2196_v4 = vadd.f32 %v5256_v24, %v2106_v32 }
 0x1e1   : > { %v2525_v14 = vshll.u32 %v1480_v27, 16 }
 0x1e2   : > { %v2523_v43 = vrot.slane %v2522_v61, 4  ;;  %v5774_v61 = vld [vmem:[#allocation9_spill] sm:$0xff] }
 0x1e3   : > { %v5384_v34 = vpop.f32.mrf.mxu0  ;;  %v1895_v39 = vpop.f32.mrf.mxu1  ;;  %v2527_v25 = vrot.slane %v2525_v14, 5  ;;  %v5775_v14 = vld [vmem:[#allocation5_spill] sm:$0xff] }
 0x1e4   : > { %v1896_v44 = vadd.f32 %v1895_v39, %v5214_v1  ;;  %3258 = vmatmul.msk.bf16.gmra.mxu2 %vm1721_vm3, %v5145_v59  ;;  %v2508_v1 = vrot.slane %v2506_v63, 4  ;;  %v2623_v63 = vrot.slane %v1480_v27, 5 }
 0x1e6   : > { %3298 = vmatmul.msk.bf16.gmra.mxu0 %vm1721_vm3, %v5130_v22  ;;  %v2107_v51 = vadd.f32 %v5259_v5, %v1896_v44  ;;  %3235 = vmatmul.msk.bf16.gmra.mxu1 %vm1721_vm3, %v5030_v31  ;;  %v5413_v31 = vadd.f32 %v5230_v30, %v2194_v3  ;;  %v2512_v9 = vor.u32 %v2511_v6, %v2508_v1 }
 0x1e7   : > { %v5403_v59 = vpop.f32.mrf.mxu3  ;;  %v2091_v49 = vpop.f32.mrf.mxu2  ;;  %v2195_v30 = vadd.f32 %v5238_v11, %v5348_v35 }
 0x1e8   : > { %v2513_v29 = vrot.slane %v2512_v9, 4  ;;  %v2197_v3 = vadd.f32 %v5774_v61, %v2107_v51  ;;  %v5776_v9 = vld [vmem:[#allocation10_spill] sm:$0xff]  ;;  %v5777_v51 = vld [vmem:[#allocation11_spill] sm:$0xff] }
 0x1e9   : > { %v5432_v39 = vadd.f32 %v5243_v60, %v2195_v30  ;;  %v3280_v60 = vrot.slane %v5380_v62, 9 }
 0x1ea   : > { %v2518_v45 = vsel %vm4370_vm15, %v2513_v29, %v2517_v23 }
 0x1eb   : > { %v5405_v40 = vpop.f32.mrf.mxu0  ;;  %v1897_v54 = vpop.f32.mrf.mxu1  ;;  %v2534_v35 = vunpack.c.l.b16 %v2518_v45  ;;  %v2621_v24 = vsel %vm4790_vm2, %v3280_v60, %v2620_v26  ;;  %v5782_v60 = vld [vmem:[#allocation4_spill] sm:$0xff] }
 0x1ec   : > { %3278 = vmatmul.msk.bf16.gmra.mxu3 %vm1721_vm3, %v5162_v37  ;;  %v1898_v5 = vadd.f32 %v1897_v54, %v5232_v28  ;;  %v2424_v37 = vpack.c.b16 %v2423_v36, %v2422_v19  ;;  %v2528_v28 = vsel %vm4370_vm15, %v2523_v43, %v2527_v25  ;;  %v2630_v6 = vunpack.c.l.b16 %v2621_v24  ;;  %v5778_v25 = vld [vmem:[#allocation7_spill] sm:$0xff] }
 0x1ed   : > { %v2535_v50 = vunpack.c.l.b16 %v2528_v28  ;;  %v5458_v36 = vadd.f32 %v5776_v9, %v2197_v3  ;;  %vm2778_vm15 = vcmask 1040384  }
 0x1ee   : > { %v2108_v48 = vadd.f32 %v5274_v57, %v1898_v5 }
 0x1ef   : > { %v5418_v42 = vpop.f32.mrf.mxu3  ;;  %v2536_v44 = vpack.c.b16 %v2535_v50, %v2534_v35  ;;  %v5781_v50 = vld [vmem:[#allocation3_spill] sm:$0xff] }
 0x1f0   : > { %v2198_v43 = vadd.f32 %v5777_v51, %v2108_v48 }
 0x1f3   : > { %v1900_v8 = vpop.f32.mrf.mxu1  ;;  %v5424_v52 = vpop.f32.mrf.mxu0 }
 0x1f4   : > { %v1901_v57 = vadd.f32 %v1900_v8, %v5099_v41  ;;  %3259 = vmatmul.msk.bf16.gmra.mxu2 %vm1721_vm3, %v2424_v37  ;;  %v2093_v41 = vpop.f32.mrf.mxu2  ;;  %v5779_v37 = vld [vmem:[#allocation12_spill] sm:$0xff] }
 0x1f5   : > { %v5471_v28 = vadd.f32 %v5779_v37, %v2198_v43  ;;  %v5785_v37 = vld [vmem:[#allocation2_spill] sm:$0xff] }
 0x1f6   : > { %3299 = vmatmul.msk.bf16.gmra.mxu0 %vm1721_vm3, %v5068_v33  ;;  %v2109_v11 = vadd.f32 %v5295_v2, %v1901_v57  ;;  %3236 = vmatmul.msk.bf16.gmra.mxu1 %vm1721_vm3, %v5070_v47  ;;  %v2624_v2 = vsel %vm4790_vm2, %v2622_v46, %v2623_v63  ;;  %v5448_v47 = vadd.f32 %v5262_v18, %v2196_v4  ;;  %vm2870_vm2 = vcmask 516096  }
 0x1f7   : > { %v5440_v23 = vpop.f32.mrf.mxu3  ;;  %v2631_v32 = vunpack.c.l.b16 %v2624_v2 }
 0x1fb   : > { %v1902_v53 = vpop.f32.mrf.mxu1  ;;  %v5450_v1 = vpop.f32.mrf.mxu0 }
 0x1fc   : > { %3279 = vmatmul.msk.bf16.gmra.mxu3 %vm1721_vm3, %v2536_v44  ;;  %v1903_v15 = vadd.f32 %v1902_v53, %v5124_v58  ;;  %v2096_v54 = vpop.f32.mrf.mxu2  ;;  %v2632_v58 = vpack.c.b16 %v2631_v32, %v2630_v6  ;;  %v5783_v6 = vld [vmem:[#allocation6_spill] sm:$0xff] }
 0x1fe   : > { %v2110_v27 = vadd.f32 %v5325_v21, %v1903_v15 }
 0x1ff   : > { %v5460_v18 = vpop.f32.mrf.mxu3 }
 0x203   : > { %v1905_v62 = vpop.f32.mrf.mxu1  ;;  %v5466_v55 = vpop.f32.mrf.mxu0 }
 0x204   : > { %v1906_v5 = vadd.f32 %v1905_v62, %v5775_v14  ;;  %v2098_v30 = vpop.f32.mrf.mxu2 }
 0x206   : > { %3300 = vmatmul.msk.bf16.gmra.mxu0 %vm1721_vm3, %v2632_v58  ;;  %v2111_v21 = vadd.f32 %v5368_v7, %v1906_v5  ;;  %3237 = vmatmul.msk.bf16.gmra.mxu1 %vm1721_vm3, %v5097_v0  ;;  %v5780_v7 = vld [vmem:[#allocation13_spill] sm:$0xff] }
 0x207   : > { %v5474_v26 = vpop.f32.mrf.mxu3  ;;  %v2199_v45 = vadd.f32 %v5780_v7, %v2109_v11 }
 0x209   : > { %v5481_v48 = vadd.f32 %v5328_v38, %v2199_v45  ;;  %v2201_v38 = vadd.f32 %v5377_v13, %v2111_v21 }
 0x20b   : > { %v1907_v19 = vpop.f32.mrf.mxu1  ;;  %v5476_v57 = vpop.f32.mrf.mxu0 }
 0x20c   : > { %v1908_v29 = vadd.f32 %v1907_v19, %v5778_v25  ;;  %v2449_v44 = vpop.f32.mrf.mxu2 }
 0x20e   : > { %v2112_v8 = vadd.f32 %v5395_v10, %v1908_v29  ;;  %v2200_v10 = vadd.f32 %v5352_v20, %v2110_v27 }
 0x20f   : > { %v2561_v63 = vpop.f32.mrf.mxu3 }
 0x210   : > { %v5488_v11 = vadd.f32 %v5362_v12, %v2200_v10  ;;  %v2202_v27 = vadd.f32 %v5403_v59, %v2112_v8 }
 0x212   : > { %v5500_v13 = vadd.f32 %v5405_v40, %v2202_v27  ;;  %v5510_v40 = vld [vmem:[%s5663_s6] ss:$0 sm:$0xff] }
 0x213   : > { %v1910_v0 = vpop.f32.mrf.mxu1  ;;  %v2657_v53 = vpop.f32.mrf.mxu0 }
 0x214   : > { %v1911_v35 = vadd.f32 %v1910_v0, %v5781_v50  ;;  %v2451_v24 = vpop.f32.mrf.mxu2 }
 0x216   : > { %v2113_v46 = vadd.f32 %v2091_v49, %v1911_v35  ;;  %3238 = vmatmul.msk.bf16.gmra.mxu1 %vm1721_vm3, %v5130_v22  ;;  %v5493_v22 = vadd.f32 %v5384_v34, %v2201_v38 }
 0x217   : > { %v2563_v49 = vpop.f32.mrf.mxu3 }
 0x218   : > { %v2203_v34 = vadd.f32 %v5418_v42, %v2113_v46  ;;  %v2738_v42 = vperm.slane %v5785_v37, 0 }
 0x21a   : > { %v5505_v51 = vadd.f32 %v5424_v52, %v2203_v34 }
 0x21b   : > { %v1912_v4 = vpop.f32.mrf.mxu1  ;;  %v2659_v3 = vpop.f32.mrf.mxu0 }
 0x21c   : > { %v1913_v15 = vadd.f32 %v1912_v4, %v5782_v60  ;;  %v2454_v62 = vpop.f32.mrf.mxu2 }
 0x21e   : > { %v2114_v2 = vadd.f32 %v2093_v41, %v1913_v15  ;;  %v5784_v41 = vld [vmem:[#allocation8_spill] sm:$0xff] }
 0x21f   : > { %v2566_v14 = vpop.f32.mrf.mxu3 }
 0x223   : > { %v1915_v32 = vpop.f32.mrf.mxu1  ;;  %v2662_v9 = vpop.f32.mrf.mxu0 }
 0x224   : > { %v1916_v61 = vadd.f32 %v1915_v32, %v5783_v6 }
 0x226   : > { %v2115_v20 = vadd.f32 %v2096_v54, %v1916_v61  ;;  %3239 = vmatmul.msk.bf16.gmra.mxu1 %vm1721_vm3, %v5068_v33  ;;  %v2456_v33 = vpop.f32.mrf.mxu2  ;;  %vm2867_vm3 = vcmask 519168  }
 0x227   : > { %v2568_v43 = vpop.f32.mrf.mxu3 }
 0x22b   : > { %v1917_v12 = vpop.f32.mrf.mxu1  ;;  %v2664_v25 = vpop.f32.mrf.mxu0 }
 0x22c   : > { %v1918_v58 = vadd.f32 %v1917_v12, %v5784_v41 }
 0x22e   : > { %v2116_v5 = vadd.f32 %v2098_v30, %v1918_v58  ;;  %v2204_v30 = vadd.f32 %v5440_v23, %v2114_v2  ;;  %v2459_v50 = vpop.f32.mrf.mxu2 }
 0x230   : > { %v5517_v7 = vadd.f32 %v5450_v1, %v2204_v30  ;;  %v2205_v1 = vadd.f32 %v5460_v18, %v2115_v20 }
 0x232   : > { %v5531_v15 = vadd.f32 %v5466_v55, %v2205_v1 }
 0x233   : > { %v2359_v21 = vpop.f32.mrf.mxu1  ;;  %v2667_v4 = vpop.f32.mrf.mxu0 }
 0x234   : > { %v2399_v54 = vadd.f32 %v2359_v21, %v5339_v56 }
 0x236   : > { %v2489_v59 = vadd.f32 %v2449_v44, %v2399_v54  ;;  %v2571_v44 = vpop.f32.mrf.mxu3  ;;  %v2461_v18 = vpop.f32.mrf.mxu2 }
 0x238   : > { %v2601_v19 = vadd.f32 %v2561_v63, %v2489_v59 }
 0x23a   : > { %v2697_v29 = vadd.f32 %v2657_v53, %v2601_v19 }
 0x23b   : > { %v2361_v56 = vpop.f32.mrf.mxu1 }
 0x23c   : > { %v2717_v52 = vadd.f32 %v5510_v40, %v2697_v29  ;;  %v2400_v8 = vadd.f32 %v2361_v56, %v5372_v17 }
 0x23e   : > { %v2746_v45 = vmul.f32 %v2738_v42, %v2717_v52  ;;  %v2490_v0 = vadd.f32 %v2451_v24, %v2400_v8  ;;  %v2573_v27 = vpop.f32.mrf.mxu3  ;;  %v2464_v19 = vpop.f32.mrf.mxu2 }
 0x240   : > { %v2779_v35 = vrot.slane %v2746_v45, 7  ;;  %v2602_v46 = vadd.f32 %v2563_v49, %v2490_v0  ;;  %v2739_v49 = vperm.slane %v5785_v37, 1  ;;  %v2740_v0 = vperm.slane %v5785_v37, 2 }
 0x242   : > { %v2827_v23 = vsel %vm2778_vm15, 0.0, %v2779_v35  ;;  %v2698_v17 = vadd.f32 %v2659_v3, %v2602_v46 }
 0x243   : > { %v2843_v63 = vpack.c.bf16 %v2827_v23, %v2827_v23  ;;  %v2364_v10 = vpop.f32.mrf.mxu1 }
 0x244   : > { %v2718_v53 = vadd.f32 %v5510_v40, %v2698_v17  ;;  %v2401_v60 = vadd.f32 %v2364_v10, %v5392_v16  ;;  %v2206_v16 = vadd.f32 %v5474_v26, %v2116_v5 }
 0x245   : > { %2868 = vst.msk [vmem:[%s5524_s25] sm:$0xf] %vm2867_vm3, %v2843_v63 }
 0x246   : > { %v2747_v2 = vmul.f32 %v2738_v42, %v2718_v53  ;;  %v2491_v24 = vadd.f32 %v2454_v62, %v2401_v60  ;;  %v5542_v58 = vadd.f32 %v5476_v57, %v2206_v16  ;;  %v2576_v42 = vpop.f32.mrf.mxu3 }
 0x248   : > { %v2780_v38 = vrot.slane %v2747_v2, 7  ;;  %v2603_v32 = vadd.f32 %v2566_v14, %v2491_v24  ;;  %v2669_v14 = vpop.f32.mrf.mxu0 }
 0x24a   : > { %v2781_v6 = vsel %vm2778_vm15, %v2779_v35, %v2780_v38  ;;  %v2835_v61 = vsel %vm2778_vm15, %v2780_v38, 0.0  ;;  %v2699_v3 = vadd.f32 %v2662_v9, %v2603_v32 }
 0x24b   : > { %v2844_v55 = vpack.c.bf16 %v2781_v6, %v2781_v6  ;;  %v2845_v20 = vpack.c.bf16 %v2835_v61, %v2835_v61  ;;  %v2366_v12 = vpop.f32.mrf.mxu1 }
 0x24c   : > { %v2719_v62 = vadd.f32 %v5510_v40, %v2699_v3  ;;  %v2402_v41 = vadd.f32 %v2366_v12, %v5413_v31  ;;  %v2741_v12 = vperm.slane %v5785_v37, 3 }
 0x24d   : > { %2869 = vst.msk [vmem:[%s5524_s25 + $0x4] sm:$0xf] %vm2867_vm3, %v2844_v55 }
 0x24e   : > { %2871 = vst.msk [vmem:[%s5524_s25 + $0x8] sm:$0x1] %vm2870_vm2, %v2845_v20  ;;  %v2748_v9 = vmul.f32 %v2739_v49, %v2719_v62  ;;  %v2492_v26 = vadd.f32 %v2456_v33, %v2402_v41  ;;  %v2578_v63 = vpop.f32.mrf.mxu3 }
 0x250   : > { %v2782_v5 = vrot.slane %v2748_v9, 7  ;;  %v2604_v34 = vadd.f32 %v2568_v43, %v2492_v26  ;;  %v2672_v33 = vpop.f32.mrf.mxu0 }
 0x252   : > { %v2828_v21 = vsel %vm2778_vm15, 0.0, %v2782_v5  ;;  %v2700_v54 = vadd.f32 %v2664_v25, %v2604_v34 }
 0x253   : > { %v2846_v59 = vpack.c.bf16 %v2828_v21, %v2828_v21  ;;  %v2369_v29 = vpop.f32.mrf.mxu1 }
 0x254   : > { %v2720_v31 = vadd.f32 %v5510_v40, %v2700_v54  ;;  %v2403_v57 = vadd.f32 %v2369_v29, %v5432_v39 }
 0x255   : > { %2872 = vst.msk [vmem:[%s5524_s25 + $0xc] sm:$0xf] %vm2867_vm3, %v2846_v59 }
 0x256   : > { %v2749_v30 = vmul.f32 %v2739_v49, %v2720_v31  ;;  %v2493_v56 = vadd.f32 %v2459_v50, %v2403_v57  ;;  %v2466_v50 = vpop.f32.mrf.mxu2  ;;  %v2581_v16 = vpop.f32.mrf.mxu3 }
 0x258   : > { %v2783_v52 = vrot.slane %v2749_v30, 7  ;;  %v2605_v43 = vadd.f32 %v2571_v44, %v2493_v56  ;;  %v2674_v53 = vpop.f32.mrf.mxu0 }
 0x25a   : > { %v2784_v8 = vsel %vm2778_vm15, %v2782_v5, %v2783_v52  ;;  %v2836_v25 = vsel %vm2778_vm15, %v2783_v52, 0.0  ;;  %v2701_v45 = vadd.f32 %v2667_v4, %v2605_v43 }
 0x25b   : > { %v2847_v35 = vpack.c.bf16 %v2784_v8, %v2784_v8  ;;  %v2848_v46 = vpack.c.bf16 %v2836_v25, %v2836_v25  ;;  %v2371_v39 = vpop.f32.mrf.mxu1 }
 0x25c   : > { %v2721_v23 = vadd.f32 %v5510_v40, %v2701_v45  ;;  %v2404_v17 = vadd.f32 %v2371_v39, %v5448_v47 }
 0x25d   : > { %2873 = vst.msk [vmem:[%s5524_s25 + $0x10] sm:$0xf] %vm2867_vm3, %v2847_v35  ;;  %v2742_v35 = vperm.slane %v5785_v37, 4 }
 0x25e   : > { %2874 = vst.msk [vmem:[%s5524_s25 + $0x14] sm:$0x1] %vm2870_vm2, %v2848_v46  ;;  %v2750_v44 = vmul.f32 %v2740_v0, %v2721_v23  ;;  %v2494_v1 = vadd.f32 %v2461_v18, %v2404_v17  ;;  %v2469_v18 = vpop.f32.mrf.mxu2  ;;  %v2583_v57 = vpop.f32.mrf.mxu3 }
 0x260   : > { %v2785_v10 = vrot.slane %v2750_v44, 7  ;;  %v2606_v4 = vadd.f32 %v2573_v27, %v2494_v1 }
 0x262   : > { %v2829_v60 = vsel %vm2778_vm15, 0.0, %v2785_v10  ;;  %v2702_v2 = vadd.f32 %v2669_v14, %v2606_v4 }
 0x263   : > { %v2849_v24 = vpack.c.bf16 %v2829_v60, %v2829_v60  ;;  %v2374_v38 = vpop.f32.mrf.mxu1 }
 0x264   : > { %v2722_v32 = vadd.f32 %v5510_v40, %v2702_v2  ;;  %v2405_v47 = vadd.f32 %v2374_v38, %v5458_v36  ;;  %v2677_v36 = vpop.f32.mrf.mxu0 }
 0x265   : > { %2875 = vst.msk [vmem:[%s5524_s25 + $0x18] sm:$0xf] %vm2867_vm3, %v2849_v24 }
 0x266   : > { %v2751_v49 = vmul.f32 %v2740_v0, %v2722_v32  ;;  %v2495_v6 = vadd.f32 %v2464_v19, %v2405_v47  ;;  %v2471_v59 = vpop.f32.mrf.mxu2  ;;  %v2586_v44 = vpop.f32.mrf.mxu3 }
 0x268   : > { %v2786_v61 = vrot.slane %v2751_v49, 7  ;;  %v2607_v3 = vadd.f32 %v2576_v42, %v2495_v6 }
 0x26a   : > { %v2787_v55 = vsel %vm2778_vm15, %v2785_v10, %v2786_v61  ;;  %v2837_v20 = vsel %vm2778_vm15, %v2786_v61, 0.0  ;;  %v2703_v27 = vadd.f32 %v2672_v33, %v2607_v3 }
 0x26b   : > { %v2850_v62 = vpack.c.bf16 %v2787_v55, %v2787_v55  ;;  %v2851_v41 = vpack.c.bf16 %v2837_v20, %v2837_v20  ;;  %v2376_v14 = vpop.f32.mrf.mxu1 }
 0x26c   : > { %v2723_v9 = vadd.f32 %v5510_v40, %v2703_v27  ;;  %v2406_v26 = vadd.f32 %v2376_v14, %v5471_v28  ;;  %v2679_v28 = vpop.f32.mrf.mxu0 }
 0x26d   : > { %2876 = vst.msk [vmem:[%s5524_s25 + $0x1c] sm:$0xf] %vm2867_vm3, %v2850_v62 }
 0x26e   : > { %2877 = vst.msk [vmem:[%s5524_s25 + $0x20] sm:$0x1] %vm2870_vm2, %v2851_v41  ;;  %v2752_v5 = vmul.f32 %v2741_v12, %v2723_v9  ;;  %v2496_v34 = vadd.f32 %v2466_v50, %v2406_v26  ;;  %v2474_v23 = vpop.f32.mrf.mxu2 }
 0x270   : > { %v2788_v21 = vrot.slane %v2752_v5, 7  ;;  %v2608_v54 = vadd.f32 %v2578_v63, %v2496_v34 }
 0x272   : > { %v2830_v19 = vsel %vm2778_vm15, 0.0, %v2788_v21  ;;  %v2704_v29 = vadd.f32 %v2674_v53, %v2608_v54 }
 0x273   : > { %v2852_v31 = vpack.c.bf16 %v2830_v19, %v2830_v19  ;;  %v2379_v42 = vpop.f32.mrf.mxu1 }
 0x274   : > { %v2724_v30 = vadd.f32 %v5510_v40, %v2704_v29  ;;  %v2407_v56 = vadd.f32 %v2379_v42, %v5481_v48  ;;  %v2682_v10 = vpop.f32.mrf.mxu0 }
 0x275   : > { %2878 = vst.msk [vmem:[%s5524_s25 + $0x24] sm:$0xf] %vm2867_vm3, %v2852_v31 }
 0x276   : > { %v2753_v33 = vmul.f32 %v2741_v12, %v2724_v30  ;;  %v2497_v52 = vadd.f32 %v2469_v18, %v2407_v56  ;;  %v2588_v18 = vpop.f32.mrf.mxu3  ;;  %v2743_v12 = vperm.slane %v5785_v37, 5 }
 0x278   : > { %v2789_v43 = vrot.slane %v2753_v33, 7  ;;  %v2609_v8 = vadd.f32 %v2581_v16, %v2497_v52 }
 0x27a   : > { %v2790_v25 = vsel %vm2778_vm15, %v2788_v21, %v2789_v43  ;;  %v2838_v45 = vsel %vm2778_vm15, %v2789_v43, 0.0  ;;  %v2705_v0 = vadd.f32 %v2677_v36, %v2609_v8 }
 0x27b   : > { %v2853_v46 = vpack.c.bf16 %v2790_v25, %v2790_v25  ;;  %v2854_v39 = vpack.c.bf16 %v2838_v45, %v2838_v45  ;;  %v2381_v48 = vpop.f32.mrf.mxu1  ;;  %v2744_v45 = vperm.slane %v5785_v37, 6 }
 0x27c   : > { %v2725_v17 = vadd.f32 %v5510_v40, %v2705_v0  ;;  %v2408_v50 = vadd.f32 %v2381_v48, %v5488_v11  ;;  %v2476_v11 = vpop.f32.mrf.mxu2  ;;  %v2684_v16 = vpop.f32.mrf.mxu0 }
 0x27d   : > { %2879 = vst.msk [vmem:[%s5524_s25 + $0x28] sm:$0xf] %vm2867_vm3, %v2853_v46 }
 0x27e   : > { %2880 = vst.msk [vmem:[%s5524_s25 + $0x2c] sm:$0x1] %vm2870_vm2, %v2854_v39  ;;  %v2754_v1 = vmul.f32 %v2742_v35, %v2725_v17  ;;  %v2498_v63 = vadd.f32 %v2471_v59, %v2408_v50  ;;  %v2591_v54 = vpop.f32.mrf.mxu3 }
 0x280   : > { %v2791_v4 = vrot.slane %v2754_v1, 7  ;;  %v2610_v53 = vadd.f32 %v2583_v57, %v2498_v63 }
 0x282   : > { %v2831_v60 = vsel %vm2778_vm15, 0.0, %v2791_v4  ;;  %v2706_v2 = vadd.f32 %v2679_v28, %v2610_v53 }
 0x283   : > { %v2855_v24 = vpack.c.bf16 %v2831_v60, %v2831_v60  ;;  %v2384_v38 = vpop.f32.mrf.mxu1 }
 0x284   : > { %v2726_v32 = vadd.f32 %v5510_v40, %v2706_v2  ;;  %v2409_v47 = vadd.f32 %v2384_v38, %v5493_v22  ;;  %v2479_v5 = vpop.f32.mrf.mxu2  ;;  %v2687_v31 = vpop.f32.mrf.mxu0 }
 0x285   : > { %2881 = vst.msk [vmem:[%s5524_s25 + $0x30] sm:$0xf] %vm2867_vm3, %v2855_v24 }
 0x286   : > { %v2755_v49 = vmul.f32 %v2742_v35, %v2726_v32  ;;  %v2499_v6 = vadd.f32 %v2474_v23, %v2409_v47  ;;  %v2593_v0 = vpop.f32.mrf.mxu3 }
 0x288   : > { %v2792_v61 = vrot.slane %v2755_v49, 7  ;;  %v2611_v3 = vadd.f32 %v2586_v44, %v2499_v6 }
 0x28a   : > { %v2793_v55 = vsel %vm2778_vm15, %v2791_v4, %v2792_v61  ;;  %v2839_v20 = vsel %vm2778_vm15, %v2792_v61, 0.0  ;;  %v2707_v27 = vadd.f32 %v2682_v10, %v2611_v3  ;;  %v2745_v3 = vperm.slane %v5785_v37, 7 }
 0x28b   : > { %v2856_v62 = vpack.c.bf16 %v2793_v55, %v2793_v55  ;;  %v2857_v22 = vpack.c.bf16 %v2839_v20, %v2839_v20  ;;  %v2386_v41 = vpop.f32.mrf.mxu1 }
 0x28c   : > { %v2727_v36 = vadd.f32 %v5510_v40, %v2707_v27  ;;  %v2410_v14 = vadd.f32 %v2386_v41, %v5500_v13  ;;  %v2481_v52 = vpop.f32.mrf.mxu2  ;;  %v2689_v48 = vpop.f32.mrf.mxu0 }
 0x28d   : > { %2882 = vst.msk [vmem:[%s5524_s25 + $0x34] sm:$0xf] %vm2867_vm3, %v2856_v62 }
 0x28e   : > { %2883 = vst.msk [vmem:[%s5524_s25 + $0x38] sm:$0x1] %vm2870_vm2, %v2857_v22  ;;  %v2756_v9 = vmul.f32 %v2743_v12, %v2727_v36  ;;  %v2500_v26 = vadd.f32 %v2476_v11, %v2410_v14  ;;  %v2596_v24 = vpop.f32.mrf.mxu3 }
 0x290   : > { %v2794_v34 = vrot.slane %v2756_v9, 7  ;;  %v2612_v21 = vadd.f32 %v2588_v18, %v2500_v26 }
 0x292   : > { %v2832_v59 = vsel %vm2778_vm15, 0.0, %v2794_v34  ;;  %v2708_v19 = vadd.f32 %v2684_v16, %v2612_v21 }
 0x293   : > { %v2858_v29 = vpack.c.bf16 %v2832_v59, %v2832_v59  ;;  %v2389_v57 = vpop.f32.mrf.mxu1 }
 0x294   : > { %v2728_v42 = vadd.f32 %v5510_v40, %v2708_v19  ;;  %v2411_v13 = vadd.f32 %v2389_v57, %v5505_v51  ;;  %v2484_v4 = vpop.f32.mrf.mxu2  ;;  %v2692_v47 = vpop.f32.mrf.mxu0 }
 0x295   : > { %2884 = vst.msk [vmem:[%s5524_s25 + $0x3c] sm:$0xf] %vm2867_vm3, %v2858_v29 }
 0x296   : > { %v2757_v30 = vmul.f32 %v2743_v12, %v2728_v42  ;;  %v2501_v56 = vadd.f32 %v2479_v5, %v2411_v13  ;;  %v2598_v41 = vpop.f32.mrf.mxu3 }
 0x298   : > { %v2795_v28 = vrot.slane %v2757_v30, 7  ;;  %v2613_v33 = vadd.f32 %v2591_v54, %v2501_v56 }
 0x29a   : > { %v2796_v43 = vsel %vm2778_vm15, %v2794_v34, %v2795_v28  ;;  %v2840_v8 = vsel %vm2778_vm15, %v2795_v28, 0.0  ;;  %v2709_v25 = vadd.f32 %v2687_v31, %v2613_v33 }
 0x29b   : > { %v2859_v35 = vpack.c.bf16 %v2796_v43, %v2796_v43  ;;  %v2860_v46 = vpack.c.bf16 %v2840_v8, %v2840_v8  ;;  %v2391_v51 = vpop.f32.mrf.mxu1 }
 0x29c   : > { %v2729_v39 = vadd.f32 %v5510_v40, %v2709_v25  ;;  %v2412_v23 = vadd.f32 %v2391_v51, %v5517_v7  ;;  %v2486_v12 = vpop.f32.mrf.mxu2  ;;  %v2694_v14 = vpop.f32.mrf.mxu0 }
 0x29d   : > { %2885 = vst.msk [vmem:[%s5524_s25 + $0x40] sm:$0xf] %vm2867_vm3, %v2859_v35 }
 0x29e   : > { %2886 = vst.msk [vmem:[%s5524_s25 + $0x44] sm:$0x1] %vm2870_vm2, %v2860_v46  ;;  %v2758_v17 = vmul.f32 %v2744_v45, %v2729_v39  ;;  %v2502_v50 = vadd.f32 %v2481_v52, %v2412_v23 }
 0x2a0   : > { %v2797_v44 = vrot.slane %v2758_v17, 7  ;;  %v2614_v1 = vadd.f32 %v2593_v0, %v2502_v50 }
 0x2a2   : > { %v2833_v63 = vsel %vm2778_vm15, 0.0, %v2797_v44  ;;  %v2710_v10 = vadd.f32 %v2689_v48, %v2614_v1 }
 0x2a3   : > { %v2861_v53 = vpack.c.bf16 %v2833_v63, %v2833_v63  ;;  %v2394_v60 = vpop.f32.mrf.mxu1 }
 0x2a4   : > { %v2730_v2 = vadd.f32 %v5510_v40, %v2710_v10  ;;  %v2413_v7 = vadd.f32 %v2394_v60, %v5531_v15 }
 0x2a5   : > { %2887 = vst.msk [vmem:[%s5524_s25 + $0x48] sm:$0xf] %vm2867_vm3, %v2861_v53 }
 0x2a6   : > { %v2759_v38 = vmul.f32 %v2744_v45, %v2730_v2  ;;  %v2503_v32 = vadd.f32 %v2484_v4, %v2413_v7 }
 0x2a8   : > { %v2798_v11 = vrot.slane %v2759_v38, 7  ;;  %v2615_v49 = vadd.f32 %v2596_v24, %v2503_v32 }
 0x2aa   : > { %v2799_v6 = vsel %vm2778_vm15, %v2797_v44, %v2798_v11  ;;  %v2841_v18 = vsel %vm2778_vm15, %v2798_v11, 0.0  ;;  %v2711_v61 = vadd.f32 %v2692_v47, %v2615_v49 }
 0x2ab   : > { %v2862_v16 = vpack.c.bf16 %v2799_v6, %v2799_v6  ;;  %v2863_v55 = vpack.c.bf16 %v2841_v18, %v2841_v18  ;;  %v2396_v15 = vpop.f32.mrf.mxu1 }
 0x2ac   : > { %v2731_v20 = vadd.f32 %v5510_v40, %v2711_v61  ;;  %v2414_v27 = vadd.f32 %v2396_v15, %v5542_v58 }
 0x2ad   : > { %2888 = vst.msk [vmem:[%s5524_s25 + $0x4c] sm:$0xf] %vm2867_vm3, %v2862_v16 }
 0x2ae   : > { %2889 = vst.msk [vmem:[%s5524_s25 + $0x50] sm:$0x1] %vm2870_vm2, %v2863_v55  ;;  %v2760_v62 = vmul.f32 %v2745_v3, %v2731_v20  ;;  %v2504_v22 = vadd.f32 %v2486_v12, %v2414_v27 }
 0x2b0   : > { %v2800_v36 = vrot.slane %v2760_v62, 7  ;;  %v2616_v37 = vadd.f32 %v2598_v41, %v2504_v22 }
 0x2b2   : > { %v2834_v9 = vsel %vm2778_vm15, 0.0, %v2800_v36  ;;  %v2712_v26 = vadd.f32 %v2694_v14, %v2616_v37 }
 0x2b3   : > { %v2864_v5 = vpack.c.bf16 %v2834_v9, %v2834_v9 }
 0x2b4   : > { %v2732_v34 = vadd.f32 %v5510_v40, %v2712_v26 }
 0x2b5   : > { %2890 = vst.msk [vmem:[%s5524_s25 + $0x54] sm:$0xf] %vm2867_vm3, %v2864_v5 }
 0x2b6   : > { %v2761_v58 = vmul.f32 %v2745_v3, %v2732_v34 }
 0x2b8   : > { %v2801_v21 = vrot.slane %v2761_v58, 7 }
 0x2ba   : > { %v2802_v54 = vsel %vm2778_vm15, %v2800_v36, %v2801_v21  ;;  %v2842_v59 = vsel %vm2778_vm15, %v2801_v21, 0.0 }
 0x2bb   : > { %v2865_v19 = vpack.c.bf16 %v2802_v54, %v2802_v54  ;;  %v2866_v29 = vpack.c.bf16 %v2842_v59, %v2842_v59 }
 0x2bd   : > { %2891 = vst.msk [vmem:[%s5524_s25 + $0x58] sm:$0xf] %vm2867_vm3, %v2865_v19 }
 0x2be   : > { %2892 = vst.msk [vmem:[%s5524_s25 + $0x5c] sm:$0x1] %vm2870_vm2, %v2866_v29 }
 0x2bf PF: > { %s17_s28 = sadd.s32 1, %s3641_s28   ;;  %s5786_s24 = smov %s3633_s26 }
 0x2c0   : > { %p14_p10 = scmp.ge.s32.totalorder %s17_s28, 6   ;;  %s5787_s25 = smov %s3637_s27 }
 0x2c1   : > { %s5788_s26 = smov %s5791_s29  ;;  %s5789_s27 = smov %s5795_s30 }
 0x2c2   :  { %16 = sbr.rel (!%p14_p10) target bundleno = 3 (0x3), region = 98 }

// kernel: resblock_pallas.7
= control target key start
LH: loop header
LB: loop body
LE: loop exit
PB: predicated region body
PF: predicated region fallthrough
CT: control target
= control target key end

     0   :  { %s4409_s30 = smov 0   ;;  %s4411_s10 = smov 0   ;;  %s6655_s0 = inlined_call_operand.vmem [shape: bf16[2,16,18,64], index: 0, kind: input, shape index: {}, may-alias: {0,1,2}]   ;;  %s6656_s1 = inlined_call_operand.vmem [shape: bf16[2,16,18,64], index: 1, kind: input, shape index: {}, may-alias: {0,1,2}]   ;;  %s6657_s2 = inlined_call_operand.vmem [shape: bf16[2,16,18,64], index: 2, kind: input, shape index: {}, may-alias: {0,1,2}]   ;;  %s6658_s3 = inlined_call_operand.vmem [shape: f32[2,1,64], index: 3, kind: input, shape index: {}]   ;;  %s6659_s4 = inlined_call_operand.vmem [shape: f32[2,1,64], index: 4, kind: input, shape index: {}]   ;;  %s6660_s5 = inlined_call_operand.vmem [shape: bf16[9,64,64], index: 5, kind: input, shape index: {}]   ;;  %s6661_s6 = inlined_call_operand.vmem [shape: f32[1,64], index: 6, kind: input, shape index: {}]   ;;  %s6662_s7 = inlined_call_operand.vmem [shape: bf16[2,16,18,32], index: 7, kind: input, shape index: {}]   ;;  %s6663_s8 = inlined_call_operand.vmem [shape: bf16[32,64], index: 8, kind: input, shape index: {}]   ;;  %s6664_s9 = inlined_call_operand.vmem [shape: f32[2,16,18,64], index: 9, kind: output, shape index: {}]  }
   0x1   :  { %s4413_s11 = smov 0   ;;  %s4415_s12 = smov 0  }
   0x2   :  { %s4417_s13 = smov 0  }
   0x3 LB: > { %s28_s14 = sadd.s32 1, %s4348_s11  ;;  %s31_s15 = sadd.s32 1, %s4352_s12  ;;  %s4356_s13 = sphi %s4417_s13, %s19_s13   ;;  %s4352_s12 = sphi %s4415_s12, %s6864_s12   ;;  %s4348_s11 = sphi %s4413_s11, %s6863_s11   ;;  %s4344_s10 = sphi %s4411_s10, %s6862_s10   ;;  %s4340_s30 = sphi %s4409_s30, %s6861_s30  }
   0x4   : > { %p29_p0 = scmp.ge.s32.totalorder %s28_s14, 2  ;;  %p3641_p1 = scmp.ge.s32.totalorder %s4356_s13, 1 }
   0x5   : > { %p407_p2 = scmp.lt.s32.totalorder %s4356_s13, 5 }
   0x6   : > { %s6866_s14 = smov (%p29_p0, %s28_s14), 0  ;;  %s6868_s15 = smov (!%p29_p0, %s31_s15), %s4352_s12 }
   0x7   : > { %p408_p3 = pnand %p3641_p1, %p407_p2  ;;  %p33_p4 = scmp.ge.s32.totalorder %s6868_s15, 2 }
   0x9   : > { %s6870_s15 = smov (%p33_p4, %s6868_s15), 0  ;;  %411 = sbr.rel (%p408_p3) target bundleno = 689 (0x2b1), region = 56 }
   0xe   : > { %v1297_v0 = vlaneseq  ;;  %s4439_s16 = sshll.u32 %s4340_s30, 3  ;;  %p499_p5 = scmp.lt.s32.totalorder %s4344_s10, 1  ;;  %v6665_v8 = vmov 0.0  }
   0xf   : > { %s4442_s17 = sadd.s32 4294967295, %s4439_s16  ;;  %p515_p6 = scmp.lt.s32.totalorder %s4439_s16, 15 }
  0x10   : > { %v4444_v1 = vshrl.u32 %v1297_v0, 7  ;;  %v1302_v2 = vstv %s4442_s17  ;;  %v1306_v3 = vand.u32 127, %v1297_v0  ;;  %s6872_s10 = smov (!%p499_p5, %s4344_s10), 1  ;;  %p497_p7 = scmp.gt.s32.totalorder %s4442_s17, 0 }
  0x11   : > { %s4457_s20 = scalar_lea.vmem %s6658_s3, %s6872_s10  ;;  %s4463_s23 = scalar_lea.vmem %s6659_s4, %s6872_s10 }
  0x12   : > { %6687 = vst [vmem:[#allocation2_spill] sm:$0xff] %v4444_v1  ;;  %4131 = vset.pattern.permute.xlu0 %v4444_v1  ;;  %v1339_v4 = vadd.s32 16, %v4444_v1  ;;  %v1299_v5 = vadd.s32 8, %v4444_v1  ;;  %v1303_v6 = vadd.s32 %v1302_v2, %v4444_v1  ;;  %v3693_v7 = vadd.s32 4294967295, %v1306_v3  ;;  %s516_s24 = scalar_select %p515_p6, %s4439_s16, 15 }
  0x13   : > { %p3644_p8 = scmp.lt.s32.totalorder %s4442_s17, 15  ;;  %s6874_s17 = smov (!%p497_p7, %s4442_s17), 0  ;;  %v4507_v30 = vld [vmem:[%s4457_s20] ss:$0 sm:$0xff] }
  0x14   : > { %4143 = vset.pattern.permute.xlu1 %v1339_v4  ;;  %4155 = vset.pattern.permute.xlu2 %v1299_v5  ;;  %vm1308_vm0 = vcmp.ge.s32.totalorder %v1303_v6, 0  ;;  %vm1310_vm1 = vcmp.lt.s32.totalorder %v1303_v6, 16  ;;  %vm1314_vm2 = vcmp.ge.s32.totalorder %v3693_v7, 0  ;;  %vm1317_vm3 = vcmp.lt.s32.totalorder %v3693_v7, 16  ;;  %s4478_s25 = smul.u32 48, %s6872_s10 }
  0x15   : > { %vm1312_vm4 = vmand %vm1308_vm0, %vm1310_vm1  ;;  %v1304_v21 = vadd.s32 %v1302_v2, %v1299_v5  ;;  %s4088_s26 = smul.u32 3, %s516_s24  ;;  %s6876_s17 = smov (!%p3644_p8, %s6874_s17), 15  ;;  %v4516_v35 = vld [vmem:[%s4463_s23] ss:$0 sm:$0xff] }
  0x16   : > { %vm1315_vm5 = vmand %vm1312_vm4, %vm1314_vm2  ;;  %s4086_s28 = smul.u32 3, %s6876_s17 }
  0x17   : > { %vm1318_vm6 = vmand %vm1315_vm5, %vm1317_vm3  ;;  %vm1309_vm7 = vcmp.ge.s32.totalorder %v1304_v21, 0  ;;  %vm1311_vm8 = vcmp.lt.s32.totalorder %v1304_v21, 16  ;;  %s4481_s27 = sadd.s32 %s4088_s26, %s4478_s25 }
  0x18   : > { %v3694_v9 = vsel %vm1318_vm6, 1.0, %v6665_v8  ;;  %vm1313_vm9 = vmand %vm1309_vm7, %vm1311_vm8  ;;  %s3651_s29 = sshll.u32 %s4481_s27, 2  ;;  %s505_s30 = sadd.s32 %s4478_s25, %s4086_s28 }
  0x19   : > { %v1324_v10 = vperm.slane %v3694_v9, 0  ;;  %v1400_v11 = vperm.slane %v3694_v9, 4  ;;  %v1343_v12 = vperm.slane %v3694_v9, 1  ;;  %v1419_v13 = vperm.slane %v3694_v9, 5  ;;  %vm1316_vm10 = vmand %vm1313_vm9, %vm1314_vm2  ;;  %s4491_s19 = scalar_lea.vmem %s6656_s1, %s3651_s29  ;;  %s3649_s17 = sshll.u32 %s505_s30, 2 }
  0x1a   : > { %v1362_v16 = vperm.slane %v3694_v9, 2  ;;  %v1438_v17 = vperm.slane %v3694_v9, 6  ;;  %v1381_v19 = vperm.slane %v3694_v9, 3  ;;  %v1457_v20 = vperm.slane %v3694_v9, 7  ;;  %vm1319_vm11 = vmand %vm1316_vm10, %vm1317_vm3  ;;  %v4494_v26 = vld [vmem:[%s4491_s19] sm:$0xff]   ;;  %v4497_v27 = vld [vmem:[%s4491_s19 + $0x30] sm:$0xff]   ;;  %s4504_s24 = scalar_lea.vmem %s6655_s0, %s3649_s17  ;;  %s6033_s21 = scalar_lea.vmem %s6662_s7, %s3651_s29 }
  0x1b   : > { %v4144_v14 = vpack.i.bf16 %v1324_v10, %v1400_v11  ;;  %v4156_v15 = vpack.i.bf16 %v1343_v12, %v1419_v13  ;;  %v3695_v23 = vsel %vm1319_vm11, 1.0, %v6665_v8  ;;  %v4058_v28 = vunpack.c.h.bf16 %v4494_v26  ;;  %v581_v31 = vld [vmem:[%s4491_s19 + $0x24] sm:$0xf]  ;;  %v574_v47 = vld [vmem:[%s4491_s19 + $0x8] sm:$0x1]  ;;  %v4015_v10 = vld [vmem:[%s6660_s5 + $0x10] sm:$0xff] }
  0x1c   : > { %v4167_v18 = vpack.i.bf16 %v1362_v16, %v1438_v17  ;;  %v4184_v22 = vpack.i.bf16 %v1381_v19, %v1457_v20  ;;  %v1476_v24 = vperm.slane %v3695_v23, 0  ;;  %v1495_v25 = vperm.slane %v3695_v23, 1  ;;  %v4512_v33 = vld [vmem:[%s4504_s24] sm:$0xff]   ;;  %v586_v49 = vld [vmem:[%s4491_s19 + $0x38] sm:$0x1]  ;;  %s4012_s30 = sadd.s32 8, %s4439_s16 }
  0x1d   : > { %4145 = vperm.xlu1 %4143, %v4144_v14   ;;  %4133 = vperm.xlu0 %4131, %v4144_v14   ;;  %v4066_v29 = vunpack.c.h.bf16 %v4497_v27  ;;  %v637_v32 = vmul.f32 %v4507_v30, %v4058_v28  ;;  %v611_v36 = vunpack.c.l.bf16 %v581_v31  ;;  %v4053_v37 = vunpack.c.l.bf16 %v4512_v33  ;;  %v583_v51 = vld [vmem:[%s4491_s19 + $0x2c] sm:$0x1]  ;;  %v571_v13 = vld [vmem:[%s4504_s24 + $0x8] sm:$0x1]  ;;  %p6022_p9 = scmp.lt.s32.totalorder %s4012_s30, 15 }
  0x1e   : > { %4157 = vperm.xlu2 %4155, %v4156_v15   ;;  %v604_v50 = vunpack.c.l.bf16 %v574_v47  ;;  %v616_v53 = vunpack.c.l.bf16 %v586_v49  ;;  %v613_v55 = vunpack.c.l.bf16 %v583_v51  ;;  %v601_v17 = vunpack.c.l.bf16 %v571_v13 }
  0x1f   : > { %v649_v34 = vmul.f32 %v4507_v30, %v4066_v29  ;;  %v4520_v38 = vadd.f32 %v4516_v35, %v637_v32  ;;  %v645_v40 = vmul.f32 %v4507_v30, %v611_v36  ;;  %v633_v41 = vmul.f32 %v4507_v30, %v4053_v37  ;;  %s6878_s30 = smov (!%p6022_p9, %s4012_s30), 15 }
  0x20   : > { %v638_v57 = vmul.f32 %v4507_v30, %v604_v50  ;;  %v650_v59 = vmul.f32 %v4507_v30, %v616_v53  ;;  %v647_v61 = vmul.f32 %v4507_v30, %v613_v55  ;;  %s6880_s30 = smov (!%p6022_p9, %s6878_s30), 15 }
  0x21   : > { %v4523_v39 = vadd.f32 %v4516_v35, %v649_v34  ;;  %v3665_v42 = vmul.f32 -1.442695, %v4520_v38  ;;  %v4530_v44 = vadd.f32 %v4516_v35, %v645_v40  ;;  %v4533_v45 = vadd.f32 %v4516_v35, %v633_v41  ;;  %v4605_v41 = vld [vmem:[%s4491_s19 + $0x3c] sm:$0xff]   ;;  %s4089_s29 = smul.u32 3, %s6880_s30 }
  0x22   : > { %v4549_v63 = vadd.f32 %v4516_v35, %v638_v57  ;;  %v4553_v0 = vadd.f32 %v4516_v35, %v650_v59  ;;  %v4057_v57 = vunpack.c.l.bf16 %v4494_v26 }
  0x23   : > { %v3677_v43 = vmul.f32 -1.442695, %v4523_v39  ;;  %4194 = vpow2.f32 %v3665_v42  ;;  %v3673_v46 = vmul.f32 -1.442695, %v4530_v44  ;;  %v3661_v48 = vmul.f32 -1.442695, %v4533_v45  ;;  %s533_s22 = sadd.s32 %s4089_s29, %s4478_s25 }
  0x24   : > { %v3666_v6 = vmul.f32 -1.442695, %v4549_v63  ;;  %v3678_v7 = vmul.f32 -1.442695, %v4553_v0 }
  0x25   : > { %4149 = vset.pattern.permute.xlu1 %v4444_v1  ;;  %4137 = vset.pattern.permute.xlu0 %v1299_v5  ;;  %4196 = vpow2.f32 %v3677_v43 }
  0x26   : > { %4161 = vset.pattern.permute.xlu2 %v1339_v4  ;;  %4198 = vpow2.f32 %v3673_v46 }
  0x27   : > { %4200 = vpow2.f32 %v3661_v48 }
  0x29   : > { %v4195_v52 = vpop.eup %4194 }
  0x2a   : > { %v4540_v56 = vadd.f32 1.0, %v4195_v52  ;;  %v618_v52 = vunpack.c.h.bf16 %v4605_v41 }
  0x2b   : > { %v4197_v54 = vpop.eup %4196 }
  0x2c   : > { %v4543_v58 = vadd.f32 1.0, %v4197_v54  ;;  %v4199_v60 = vpop.eup %4198  ;;  %4202 = vrcp.f32 %v4540_v56  ;;  %vm882_vm12 = vweird.f32 %v4540_v56  ;;  %v886_v29 = vand.u32 2147483647, %v4540_v56 }
  0x2d   : > { %4151 = vperm.xlu1 %4149, %v4156_v15   ;;  %4139 = vperm.xlu0 %4137, %v4144_v14   ;;  %v4201_v62 = vpop.eup %4200  ;;  %v4555_v2 = vadd.f32 1.0, %v4199_v60  ;;  %v888_v31 = vand.u32 2147483648, %v4540_v56 }
  0x2e   : > { %4163 = vperm.xlu2 %4161, %v4156_v15   ;;  %4204 = vrcp.f32 %v4543_v58  ;;  %v4557_v3 = vadd.f32 1.0, %v4201_v62  ;;  %vm1062_vm13 = vweird.f32 %v4543_v58  ;;  %v1066_v42 = vand.u32 2147483647, %v4543_v58 }
  0x2f   : > { %4206 = vrcp.f32 %v4555_v2  ;;  %v1068_v43 = vand.u32 2147483648, %v4543_v58  ;;  %vm4617_vm0 = vcmp.eq.f32.partialorder %v886_v29, 8.507059e+37  ;;  %v889_v59 = vor.u32 1.1754944e-38, %v888_v31 }
  0x30   : > { %4208 = vrcp.f32 %v4557_v3  ;;  %vm4639_vm3 = vcmp.eq.f32.partialorder %v1066_v42, 8.507059e+37  ;;  %vm1002_vm4 = vweird.f32 %v4555_v2  ;;  %vm822_vm6 = vweird.f32 %v4557_v3 }
  0x31   : > { %4210 = vpow2.f32 %v3666_v6  ;;  %v1006_v6 = vand.u32 2147483647, %v4555_v2 }
  0x32   : > { %v4567_v9 = vpop.eup %4202  ;;  %4212 = vpow2.f32 %v3678_v7 }
  0x33   : > { %v878_v14 = vmul.f32 %v4567_v9, %v4540_v56  ;;  %vm883_vm14 = vweird.f32 %v4567_v9  ;;  %v1069_v56 = vor.u32 1.1754944e-38, %v1068_v43  ;;  %vm4711_vm10 = vcmp.eq.f32.partialorder %v1006_v6, 8.507059e+37 }
  0x34   : > { %v4573_v11 = vpop.eup %4204  ;;  %vm4626_vm1 = vmor %vm882_vm12, %vm883_vm14 }
  0x35   : > { %4168 = vperm.xlu1 %4149, %v4167_v18   ;;  %4178 = vset.pattern.permute.xlu0 %v1339_v4  ;;  %v1058_v15 = vmul.f32 %v4573_v11, %v4543_v58  ;;  %v4582_v16 = vpop.eup %4206  ;;  %vm1063_vm15 = vweird.f32 %v4573_v11  ;;  %v582_v58 = vld [vmem:[%s4491_s19 + $0x28] sm:$0xf] }
  0x36   : > { %4172 = vset.pattern.permute.xlu2 %v1299_v5  ;;  %v4016_v5 = vld [vmem:[%s6660_s5 + $0x18] sm:$0xff]  ;;  %v998_v23 = vmul.f32 %v4582_v16, %v4555_v2  ;;  %vm4635_vm2 = vmor %vm1062_vm13, %vm1063_vm15  ;;  %vm1003_vm5 = vweird.f32 %v4582_v16 }
  0x37   : > { %2000 = vmatpush.bf16.msra.mxu1 %v4016_v5  ;;  %4082 = vmatpush.bf16.msra.mxu3 %v4016_v5  ;;  %v1059_v21 = vsub.f32 1.0, %v1058_v15  ;;  %v636_v15 = vmul.f32 %v4507_v30, %v4057_v57  ;;  %vm4675_vm8 = vmor %vm1002_vm4, %vm1003_vm5 }
  0x38   : > { %v999_v47 = vsub.f32 1.0, %v998_v23 }
  0x39   : > { %v1060_v37 = vmul.f32 %v4573_v11, %v1059_v21  ;;  %v828_v21 = vand.u32 2147483648, %v4557_v3 }
  0x3a   : > { %v1000_v5 = vmul.f32 %v4582_v16, %v999_v47 }
  0x3b   : > { %2001 = vmatpush.bf16.msra.mxu1 %v4015_v10  ;;  %4083 = vmatpush.bf16.msra.mxu3 %v4015_v10  ;;  %v1061_v55 = vadd.f32 %v4573_v11, %v1060_v37  ;;  %v652_v10 = vmul.f32 %v4507_v30, %v618_v52  ;;  %v4700_v37 = vadd.f32 %v4516_v35, %v636_v15  ;;  %v829_v52 = vor.u32 1.1754944e-38, %v828_v21 }
  0x3c   : > { %v4054_v21 = vunpack.c.h.bf16 %v4512_v33 }
  0x3d   : > { %4185 = vperm.xlu1 %4149, %v4184_v22   ;;  %4180 = vperm.xlu0 %4178, %v4167_v18  }
  0x3e   : > { %4174 = vperm.xlu2 %4172, %v4167_v18   ;;  %v4584_v18 = vpop.eup %4208 }
  0x3f   : > { %v818_v32 = vmul.f32 %v4584_v18, %v4557_v3  ;;  %vm823_vm7 = vweird.f32 %v4584_v18 }
  0x40   : > { %vm4694_vm9 = vmor %vm822_vm6, %vm823_vm7 }
  0x41   : > { %v819_v51 = vsub.f32 1.0, %v818_v32 }
  0x43   : > { %v820_v7 = vmul.f32 %v4584_v18, %v819_v51 }
  0x45   : > { %4189 = vset.pattern.permute.xlu1 %v1339_v4  ;;  %1398 = vperm.xlu0 %4178, %v1381_v19   ;;  %v4560_v4 = vadd.f32 %v4516_v35, %v647_v61  ;;  %v821_v23 = vadd.f32 %v4584_v18, %v820_v7  ;;  %v3664_v61 = vmul.f32 -1.442695, %v4700_v37 }
  0x46   : > { %1468 = vperm.xlu2 %4172, %v1457_v20  }
  0x47   : > { %v3675_v12 = vmul.f32 -1.442695, %v4560_v4 }
  0x49   : > { %4214 = vpow2.f32 %v3675_v12  ;;  %v4065_v12 = vunpack.c.l.bf16 %v4497_v27 }
  0x4d   : > { %1474 = vperm.xlu1 %4189, %v1457_v20   ;;  %1493 = vperm.xlu0 %4178, %v1476_v24   ;;  %v879_v20 = vsub.f32 1.0, %v878_v14  ;;  %v1065_v14 = vsel %vm4635_vm2, %v4573_v11, %v1061_v55  ;;  %v1008_v11 = vand.u32 2147483648, %v4555_v2 }
  0x4e   : > { %1392 = vperm.xlu2 %4172, %v1381_v19   ;;  %v4211_v19 = vpop.eup %4210  ;;  %v1070_v32 = vsel %vm4639_vm3, %v1069_v56, %v1065_v14 }
  0x4f   : > { %v4213_v22 = vpop.eup %4212  ;;  %v4597_v34 = vadd.f32 1.0, %v4211_v19  ;;  %v880_v36 = vmul.f32 %v4567_v9, %v879_v20  ;;  %v612_v19 = vunpack.c.l.bf16 %v582_v58  ;;  %v1009_v51 = vor.u32 1.1754944e-38, %v1008_v11 }
  0x50   : > { %v4215_v28 = vpop.eup %4214  ;;  %v4602_v40 = vadd.f32 1.0, %v4213_v22 }
  0x51   : > { %v4612_v48 = vadd.f32 1.0, %v4215_v28  ;;  %4216 = vrcp.f32 %v4597_v34  ;;  %v881_v53 = vadd.f32 %v4567_v9, %v880_v36  ;;  %v4682_v28 = vadd.f32 %v4516_v35, %v652_v10 }
  0x52   : > { %4218 = vrcp.f32 %v4602_v40  ;;  %v648_v36 = vmul.f32 %v4507_v30, %v4065_v12  ;;  %v646_v47 = vmul.f32 %v4507_v30, %v612_v19  ;;  %vm897_vm12 = vweird.f32 %v4597_v34 }
  0x53   : > { %4220 = vrcp.f32 %v4612_v48  ;;  %v885_v13 = vsel %vm4626_vm1, %v4567_v9, %v881_v53  ;;  %v1001_v9 = vadd.f32 %v4582_v16, %v1000_v5  ;;  %v825_v53 = vsel %vm4694_vm9, %v4584_v18, %v821_v23 }
  0x54   : > { %v890_v31 = vsel %vm4617_vm0, %v889_v59, %v885_v13  ;;  %v3680_v55 = vmul.f32 -1.442695, %v4682_v28  ;;  %v4724_v60 = vadd.f32 %v4516_v35, %v648_v36  ;;  %v4728_v18 = vadd.f32 %v4516_v35, %v646_v47 }
  0x55   : > { %4190 = vset.pattern.permute.xlu1 %v4444_v1  ;;  %1512 = vperm.xlu0 %4178, %v1495_v25   ;;  %v1271_v59 = vmul.f32 %v890_v31, %v4520_v38  ;;  %v903_v14 = vand.u32 2147483648, %v4597_v34  ;;  %vm1077_vm15 = vweird.f32 %v4602_v40  ;;  %v1081_v31 = vand.u32 2147483647, %v4602_v40 }
  0x56   : > { %1487 = vperm.xlu2 %4172, %v1476_v24   ;;  %v3676_v12 = vmul.f32 -1.442695, %v4724_v60  ;;  %v3674_v19 = vmul.f32 -1.442695, %v4728_v18  ;;  %vm1032_vm1 = vweird.f32 %v4612_v48  ;;  %v1038_v50 = vand.u32 2147483648, %v4612_v48 }
  0x57   : > { %vm4796_vm5 = vcmp.eq.f32.partialorder %v1081_v31, 8.507059e+37 }
  0x5d   : > { %1481 = vperm.xlu1 %4190, %v1476_v24   ;;  %v635_v24 = vmul.f32 %v4507_v30, %v601_v17  ;;  %v4661_v17 = vpop.eup %4216 }
  0x5e   : > { %1506 = vperm.xlu2 %4172, %v1495_v25   ;;  %v4668_v20 = vpop.eup %4218  ;;  %v893_v42 = vmul.f32 %v4661_v17, %v4597_v34  ;;  %vm898_vm13 = vweird.f32 %v4661_v17 }
  0x5f   : > { %v4615_v49 = vadd.f32 %v4516_v35, %v635_v24  ;;  %v826_v24 = vand.u32 2147483647, %v4557_v3  ;;  %v4684_v29 = vpop.eup %4220  ;;  %v1073_v43 = vmul.f32 %v4668_v20, %v4602_v40  ;;  %v1005_v3 = vsel %vm4675_vm8, %v4582_v16, %v1001_v9  ;;  %vm4763_vm2 = vmor %vm897_vm12, %vm898_vm13 }
  0x60   : > { %v1028_v54 = vmul.f32 %v4684_v29, %v4612_v48  ;;  %v1283_v16 = vmul.f32 %v1070_v32, %v4523_v39  ;;  %v4732_v58 = vsel %vm4711_vm10, %v1009_v51, %v1005_v3  ;;  %v901_v39 = vand.u32 2147483647, %v4597_v34 }
  0x61   : > { %v3663_v26 = vmul.f32 -1.442695, %v4615_v49  ;;  %vm827_vm11 = vcmp.eq.f32.partialorder %v826_v24, 8.507059e+37  ;;  %v1074_v5 = vsub.f32 1.0, %v1073_v43  ;;  %vm1078_vm0 = vweird.f32 %v4668_v20 }
  0x62   : > { %v4734_v38 = vsel %vm827_vm11, %v829_v52, %v825_v53  ;;  %v1029_v7 = vsub.f32 1.0, %v1028_v54  ;;  %vm4746_vm14 = vcmp.eq.f32.partialorder %v901_v39, 8.507059e+37  ;;  %v1083_v32 = vand.u32 2147483648, %v4602_v40  ;;  %vm4776_vm4 = vmor %vm1077_vm15, %vm1078_vm0  ;;  %v4014_v52 = vld [vmem:[%s6660_s5 + $0x8] sm:$0xff] }
  0x63   : > { %4222 = vpow2.f32 %v3663_v26  ;;  %v1075_v15 = vmul.f32 %v4668_v20, %v1074_v5  ;;  %vm1033_vm3 = vweird.f32 %v4684_v29  ;;  %v634_v43 = vmul.f32 %v4507_v30, %v4054_v21  ;;  %2002 = vmatpush.bf16.msra.mxu1 %v4014_v52  ;;  %4084 = vmatpush.bf16.msra.mxu3 %v4014_v52 }
  0x64   : > { %v1030_v24 = vmul.f32 %v4684_v29, %v1029_v7  ;;  %v904_v3 = vor.u32 1.1754944e-38, %v903_v14  ;;  %vm4804_vm6 = vmor %vm1032_vm1, %vm1033_vm3 }
  0x65   : > { %1500 = vperm.xlu1 %4190, %v1495_v25   ;;  %v4591_v25 = vld [vmem:[%s4491_s19 + $0xc] sm:$0xff]   ;;  %v4791_v40 = vadd.f32 %v4516_v35, %v634_v43 }
  0x66   : > { %v606_v46 = vunpack.c.h.bf16 %v4591_v25  ;;  %v1031_v54 = vadd.f32 %v4684_v29, %v1030_v24  ;;  %v4854_v24 = vmul.f32 %v4734_v38, %v4533_v45 }
  0x67   : > { %v3662_v39 = vmul.f32 -1.442695, %v4791_v40 }
  0x68   : > { %v640_v62 = vmul.f32 %v4507_v30, %v606_v46 }
  0x69   : > { %v4223_v57 = vpop.eup %4222 }
  0x6a   : > { %v4666_v27 = vadd.f32 %v4516_v35, %v640_v62  ;;  %v894_v62 = vsub.f32 1.0, %v893_v42  ;;  %v4737_v10 = vadd.f32 1.0, %v4223_v57  ;;  %v1076_v42 = vadd.f32 %v4668_v20, %v1075_v15  ;;  %v4020_v57 = vld [vmem:[%s6660_s5 + $0x38] sm:$0xff] }
  0x6b   : > { %1863 = vmatpush.bf16.msra.mxu0 %v4020_v57  ;;  %4078 = vmatpush.bf16.msra.mxu2 %v4020_v57 }
  0x6c   : > { %v3668_v46 = vmul.f32 -1.442695, %v4666_v27  ;;  %v895_v13 = vmul.f32 %v4661_v17, %v894_v62  ;;  %vm852_vm8 = vweird.f32 %v4737_v10 }
  0x6e   : > { %4224 = vpow2.f32 %v3668_v46  ;;  %v896_v36 = vadd.f32 %v4661_v17, %v895_v13 }
  0x6f   : > { %4226 = vpow2.f32 %v3680_v55  ;;  %v1036_v55 = vand.u32 2147483647, %v4612_v48  ;;  %v1080_v48 = vsel %vm4776_vm4, %v4668_v20, %v1076_v42  ;;  %v1035_v20 = vsel %vm4804_vm6, %v4684_v29, %v1031_v54 }
  0x70   : > { %4228 = vpow2.f32 %v3664_v61  ;;  %v4847_v29 = vmul.f32 %v4732_v58, %v4530_v44 }
  0x71   : > { %4230 = vrcp.f32 %v4737_v10  ;;  %vm4830_vm7 = vcmp.eq.f32.partialorder %v1036_v55, 8.507059e+37 }
  0x72   : > { %4232 = vpow2.f32 %v3674_v19  ;;  %v4019_v19 = vld [vmem:[%s6660_s5 + $0x30] sm:$0xff] }
  0x73   : > { %4234 = vpow2.f32 %v3676_v12  ;;  %v1039_v12 = vor.u32 1.1754944e-38, %v1038_v50  ;;  %1864 = vmatpush.bf16.msra.mxu0 %v4019_v19  ;;  %4079 = vmatpush.bf16.msra.mxu2 %v4019_v19 }
  0x74   : > { %v4225_v22 = vpop.eup %4224 }
  0x75   : > { %v4227_v2 = vpop.eup %4226  ;;  %v4781_v51 = vadd.f32 1.0, %v4225_v22  ;;  %v858_v22 = vand.u32 2147483648, %v4737_v10 }
  0x76   : > { %v4229_v46 = vpop.eup %4228 }
  0x77   : > { %v4810_v62 = vpop.eup %4230  ;;  %4236 = vrcp.f32 %v4781_v51  ;;  %v4822_v13 = vadd.f32 1.0, %v4229_v46  ;;  %v856_v46 = vand.u32 2147483647, %v4737_v10  ;;  %v931_v52 = vand.u32 2147483647, %v4781_v51 }
  0x78   : > { %v4158_v56 = vpop.permute.xlu2 %4157  ;;  %4238 = vpow2.f32 %v3662_v39  ;;  %vm853_vm9 = vweird.f32 %v4810_v62  ;;  %vm927_vm1 = vweird.f32 %v4781_v51 }
  0x79   : > { %v4160_v26 = vunpack.i.h.bf16 %v4158_v56  ;;  %v4159_v6 = vunpack.i.l.bf16 %v4158_v56  ;;  %v4808_v56 = vadd.f32 1.0, %v4227_v2  ;;  %v933_v2 = vand.u32 2147483648, %v4781_v51  ;;  %vm4957_vm0 = vmor %vm852_vm8, %vm853_vm9 }
  0x7a   : > { %v871_v39 = vand.u32 2147483647, %v4822_v13  ;;  %vm4937_vm13 = vcmp.eq.f32.partialorder %v856_v46, 8.507059e+37  ;;  %vm867_vm15 = vweird.f32 %v4822_v13 }
  0x7b   : > { %v1518_v9 = vmul.f32 %v4160_v26, %v1271_v59  ;;  %v1530_v23 = vmul.f32 %v4159_v6, %v1283_v16  ;;  %v1084_v16 = vor.u32 1.1754944e-38, %v1083_v32  ;;  %v900_v26 = vsel %vm4763_vm2, %v4661_v17, %v896_v36  ;;  %v4233_v6 = vpop.eup %4232  ;;  %v4013_v17 = vld [vmem:[%s6660_s5] sm:$0xff] }
  0x7c   : > { %v4834_v15 = vadd.f32 1.0, %v4233_v6  ;;  %4240 = vrcp.f32 %v4808_v56  ;;  %2003 = vmatpush.bf16.msra.mxu1 %v4013_v17  ;;  %4085 = vmatpush.bf16.msra.mxu3 %v4013_v17  ;;  %v4235_v11 = vpop.eup %4234  ;;  %v1040_v32 = vsel %vm4830_vm7, %v1039_v12, %v1035_v20  ;;  %v4885_v57 = vor.u32 1.1754944e-38, %v933_v2 }
  0x7d   : > { %v4770_v47 = vpack.c.bf16 %v1518_v9, %v1518_v9  ;;  %v4786_v53 = vpack.c.bf16 %v1530_v23, %v1530_v23  ;;  %v905_v9 = vsel %vm4746_vm14, %v904_v3, %v900_v26  ;;  %v1085_v21 = vsel %vm4796_vm5, %v1084_v16, %v1080_v48  ;;  %v4862_v42 = vpop.eup %4236 }
  0x7e   : > { %v848_v23 = vmul.f32 %v4810_v62, %v4737_v10  ;;  %4242 = vrcp.f32 %v4834_v15  ;;  %v1272_v44 = vmul.f32 %v905_v9, %v4549_v63  ;;  %v1284_v58 = vmul.f32 %v1085_v21, %v4553_v0  ;;  %v4018_v63 = vld [vmem:[%s6660_s5 + $0x28] sm:$0xff]  ;;  %v4239_v0 = vpop.eup %4238 }
  0x7f   : > { %6708 = vst [vmem:[#allocation3_spill] sm:$0xff] %v4786_v53  ;;  %v1623_v5 = vshrl.u32 %v4770_v47, 16  ;;  %v1719_v7 = vshrl.u32 %v4786_v53, 16  ;;  %4244 = vrcp.f32 %v4822_v13  ;;  %v4871_v3 = vor.u32 1.1754944e-38, %v858_v22  ;;  %1865 = vmatpush.bf16.msra.mxu0 %v4018_v63  ;;  %4080 = vmatpush.bf16.msra.mxu2 %v4018_v63 }
  0x80   : > { %v4877_v34 = vmul.f32 %v1040_v32, %v4560_v4  ;;  %v849_v50 = vsub.f32 1.0, %v848_v23  ;;  %v4881_v54 = vadd.f32 1.0, %v4235_v11  ;;  %v4889_v61 = vadd.f32 1.0, %v4239_v0 }
  0x81   : > { %v4864_v43 = vrot.slane %v1623_v5, 4  ;;  %v4866_v45 = vrot.slane %v1719_v7, 4  ;;  %v4892_v5 = vld [vmem:[%s4491_s19 + $0x48] sm:$0xff]   ;;  %v4902_v7 = vmul.f32 %v4862_v42, %v4781_v51  ;;  %v873_v12 = vand.u32 2147483648, %v4822_v13 }
  0x82   : > { %v4883_v55 = vpop.eup %4240  ;;  %4246 = vrcp.f32 %v4889_v61  ;;  %v850_v20 = vmul.f32 %v4810_v62, %v849_v50  ;;  %v1023_v14 = vand.u32 2147483648, %v4834_v15  ;;  %v4070_v19 = vunpack.c.h.bf16 %v4892_v5 }
  0x83   : > { %4248 = vrcp.f32 %v4881_v54  ;;  %vm1017_vm10 = vweird.f32 %v4834_v15  ;;  %v1021_v21 = vand.u32 2147483647, %v4834_v15  ;;  %v924_v50 = vsub.f32 1.0, %v4902_v7 }
  0x84   : > { %v4243_v4 = vpop.eup %4242  ;;  %v851_v0 = vadd.f32 %v4810_v62, %v850_v20  ;;  %v655_v7 = vmul.f32 %v4507_v30, %v4070_v19  ;;  %v617_v20 = vunpack.c.l.bf16 %v4605_v41  ;;  %vm928_vm2 = vweird.f32 %v4862_v42 }
  0x85   : > { %v4898_v6 = vpop.eup %4244  ;;  %v1013_v17 = vmul.f32 %v4243_v4, %v4834_v15  ;;  %vm1018_vm11 = vweird.f32 %v4243_v4  ;;  %vm4941_vm14 = vcmp.eq.f32.partialorder %v1021_v21, 8.507059e+37  ;;  %vm837_vm3 = vweird.f32 %v4889_v61 }
  0x86   : > { %v863_v32 = vmul.f32 %v4898_v6, %v4822_v13  ;;  %vm4933_vm12 = vmor %vm1017_vm10, %vm1018_vm11  ;;  %vm1107_vm5 = vweird.f32 %v4808_v56  ;;  %vm1108_vm6 = vweird.f32 %v4883_v55  ;;  %vm4999_vm8 = vcmp.eq.f32.partialorder %v871_v39, 8.507059e+37 }
  0x87   : > { %v1014_v9 = vsub.f32 1.0, %v1013_v17  ;;  %vm5005_vm10 = vcmp.eq.f32.partialorder %v931_v52, 8.507059e+37  ;;  %vm868_vm11 = vweird.f32 %v4898_v6 }
  0x88   : > { %v4164_v31 = vpop.permute.xlu2 %4163  ;;  %v4247_v17 = vpop.eup %4246  ;;  %v864_v16 = vsub.f32 1.0, %v863_v32  ;;  %v841_v32 = vand.u32 2147483647, %v4889_v61 }
  0x89   : > { %v4166_v36 = vunpack.i.h.bf16 %v4164_v31  ;;  %v4165_v33 = vunpack.i.l.bf16 %v4164_v31  ;;  %v1103_v31 = vmul.f32 %v4883_v55, %v4808_v56  ;;  %v4947_v15 = vpop.eup %4248  ;;  %vm838_vm4 = vweird.f32 %v4247_v17 }
  0x8a   : > { %v1043_v8 = vmul.f32 %v4947_v15, %v4881_v54  ;;  %vm4988_vm7 = vmor %vm837_vm3, %vm838_vm4  ;;  %vm842_vm9 = vcmp.eq.f32.partialorder %v841_v32, 8.507059e+37 }
  0x8b   : > { %v1519_v26 = vmul.f32 %v4166_v36, %v1272_v44  ;;  %v4894_v48 = vmul.f32 %v4165_v33, %v1284_v58  ;;  %v1015_v58 = vmul.f32 %v4243_v4, %v1014_v9  ;;  %v605_v33 = vunpack.c.l.bf16 %v4591_v25 }
  0x8d   : > { %v4914_v23 = vpack.c.bf16 %v1519_v26, %v1519_v26  ;;  %v1016_v25 = vadd.f32 %v4243_v4, %v1015_v58  ;;  %v639_v19 = vmul.f32 %v4507_v30, %v605_v33  ;;  %v4974_v26 = vadd.f32 %v4516_v35, %v655_v7 }
  0x8e   : > { %v855_v33 = vsel %vm4957_vm0, %v4810_v62, %v851_v0  ;;  %v865_v0 = vmul.f32 %v4898_v6, %v864_v16  ;;  %vm1048_vm0 = vweird.f32 %v4947_v15 }
  0x8f   : > { %v4868_v38 = vpop.permute.xlu0 %4133  ;;  %v4916_v11 = vpop.permute.xlu1 %4145  ;;  %v1020_v41 = vsel %vm4933_vm12, %v4243_v4, %v1016_v25  ;;  %v651_v4 = vmul.f32 %v4507_v30, %v617_v20  ;;  %v1104_v25 = vsub.f32 1.0, %v1103_v31  ;;  %v4993_v62 = vadd.f32 %v4516_v35, %v639_v19 }
  0x90   : > { %v4135_v22 = vunpack.i.l.bf16 %v4868_v38  ;;  %v4136_v2 = vunpack.i.h.bf16 %v4868_v38  ;;  %v4147_v63 = vunpack.i.l.bf16 %v4916_v11  ;;  %v1024_v38 = vor.u32 1.1754944e-38, %v1023_v14 }
  0x91   : > { %v833_v14 = vmul.f32 %v4247_v17, %v4889_v61  ;;  %v925_v31 = vmul.f32 %v4862_v42, %v924_v50  ;;  %v3683_v16 = vmul.f32 -1.442695, %v4974_v26  ;;  %v5014_v50 = vadd.f32 %v4516_v35, %v651_v4 }
  0x92   : > { %v1526_v44 = vmul.f32 %v4135_v22, %v4847_v29  ;;  %v843_v29 = vand.u32 2147483648, %v4889_v61  ;;  %v1025_v10 = vsel %vm4941_vm14, %v1024_v38, %v1020_v41  ;;  %v1514_v58 = vmul.f32 %v4136_v2, %v4854_v24  ;;  %vm5033_vm14 = vmor %vm867_vm15, %vm868_vm11 }
  0x93   : > { %v834_v22 = vsub.f32 1.0, %v833_v14  ;;  %v1280_v59 = vmul.f32 %v1025_v10, %v4728_v18  ;;  %v1105_v39 = vmul.f32 %v4883_v55, %v1104_v25  ;;  %v3667_v41 = vmul.f32 -1.442695, %v4993_v62 }
  0x94   : > { %v4984_v2 = vpack.c.bf16 %v1526_v44, %v1526_v44  ;;  %v844_v38 = vor.u32 1.1754944e-38, %v843_v29  ;;  %v860_v10 = vsel %vm4937_vm13, %v4871_v3, %v855_v33  ;;  %vm1834_vm12 = vcmask 523264   ;;  %vm5049_vm13 = vmor %vm927_vm1, %vm928_vm2 }
  0x95   : > { %v835_v24 = vmul.f32 %v4247_v17, %v834_v22  ;;  %v866_v22 = vadd.f32 %v4898_v6, %v865_v0  ;;  %4250 = vpow2.f32 %v3683_v16  ;;  %v3679_v4 = vmul.f32 -1.442695, %v5014_v50  ;;  %vm5074_vm1 = vmor %vm1107_vm5, %vm1108_vm6 }
  0x96   : > { %6723 = vst [vmem:[#allocation4_spill] sm:$0xff] %v4984_v2  ;;  %v1932_v29 = vunpack.c.l.b16 %v4984_v2  ;;  %v5040_v3 = vpack.c.bf16 %v1514_v58, %v1514_v58  ;;  %v1106_v58 = vadd.f32 %v4883_v55, %v1105_v39  ;;  %v874_v18 = vor.u32 1.1754944e-38, %v873_v12 }
  0x97   : > { %v836_v61 = vadd.f32 %v4247_v17, %v835_v24  ;;  %v1269_v24 = vmul.f32 %v860_v10, %v4615_v49  ;;  %4252 = vpow2.f32 %v3667_v41  ;;  %v870_v51 = vsel %vm5033_vm14, %v4898_v6, %v866_v22 }
  0x98   : > { %vm1047_vm15 = vweird.f32 %v4881_v54  ;;  %v1051_v6 = vand.u32 2147483647, %v4881_v54  ;;  %v1053_v12 = vand.u32 2147483648, %v4881_v54  ;;  %4254 = vpow2.f32 %v3679_v4 }
  0x99   : > { %v840_v52 = vsel %vm4988_vm7, %v4247_v17, %v836_v61  ;;  %v875_v39 = vsel %vm4999_vm8, %v874_v18, %v870_v51  ;;  %vm5098_vm3 = vmor %vm1047_vm15, %vm1048_vm0  ;;  %v1110_v54 = vsel %vm5074_vm1, %v4883_v55, %v1106_v58  ;;  %vm1582_vm7 = vsmask.f32 3328 }
  0x9a   : > { %v845_v21 = vsel %vm842_vm9, %v844_v38, %v840_v52  ;;  %v6738_v38 = vand.u32 2147483647, %v4808_v56  ;;  %vm5117_vm4 = vcmp.eq.f32.partialorder %v1051_v6, 8.507059e+37  ;;  %v1054_v22 = vor.u32 1.1754944e-38, %v1053_v12 }
  0x9b   : > { %v1268_v32 = vmul.f32 %v845_v21, %v4791_v40  ;;  %v1528_v40 = vmul.f32 %v4147_v63, %v4877_v34  ;;  %v5082_v63 = vpack.c.bf16 %v4894_v48, %v4894_v48  ;;  %v4251_v61 = vpop.eup %4250  ;;  %vm1583_vm8 = vsmask.f32 7440 }
  0x9c   : > { %vm5086_vm2 = vcmp.eq.f32.partialorder %v6738_v38, 8.507059e+37  ;;  %v5126_v55 = vadd.f32 1.0, %v4251_v61  ;;  %v589_v61 = vld [vmem:[%s4491_s19 + $0x44] sm:$0x1]  ;;  %vm5244_vm9 = vmor %vm1582_vm7, %vm1583_vm8 }
  0x9d   : > { %v5107_v21 = vpack.c.bf16 %v1528_v40, %v1528_v40  ;;  %v4253_v41 = vpop.eup %4252  ;;  %v1586_v40 = vshrl.u32 %v5040_v3, 16 }
  0x9e   : > { %v4255_v4 = vpop.eup %4254  ;;  %v5137_v58 = vadd.f32 1.0, %v4253_v41  ;;  %4256 = vrcp.f32 %v5126_v55  ;;  %vm1152_vm5 = vweird.f32 %v5126_v55 }
  0x9f   : > { %v4924_v36 = vpop.permute.xlu0 %4139  ;;  %6744 = vst [vmem:[#allocation7_spill] sm:$0xff] %v5107_v21  ;;  %v5146_v38 = vadd.f32 1.0, %v4255_v4 }
  0xa0   : > { %v4141_v46 = vunpack.i.l.bf16 %v4924_v36  ;;  %v4142_v14 = vunpack.i.h.bf16 %v4924_v36  ;;  %v926_v36 = vadd.f32 %v4862_v42, %v925_v31  ;;  %4258 = vrcp.f32 %v5137_v58 }
  0xa1   : > { %4260 = vrcp.f32 %v5146_v38  ;;  %vm912_vm6 = vweird.f32 %v5137_v58 }
  0xa2   : > { %v1527_v7 = vmul.f32 %v4141_v46, %v1280_v59  ;;  %v1044_v46 = vsub.f32 1.0, %v1043_v8  ;;  %v1515_v8 = vmul.f32 %v4142_v14, %v1268_v32  ;;  %v930_v49 = vsel %vm5049_vm13, %v4862_v42, %v926_v36  ;;  %v4175_v36 = vpop.permute.xlu2 %4174 }
  0xa3   : > { %v1924_v14 = vunpack.c.l.b16 %v5040_v3  ;;  %v935_v44 = vsel %vm5005_vm10, %v4885_v57, %v930_v49  ;;  %v1270_v57 = vmul.f32 %v875_v39, %v4700_v37  ;;  %v1682_v37 = vshrl.u32 %v4984_v2, 16 }
  0xa4   : > { %v5010_v59 = vpack.c.bf16 %v1527_v7, %v1527_v7  ;;  %v1045_v25 = vmul.f32 %v4947_v15, %v1044_v46  ;;  %v5065_v34 = vpack.c.bf16 %v1515_v8, %v1515_v8  ;;  %v6741_v7 = vand.u32 2147483648, %v4808_v56  ;;  %v5102_v46 = vpop.permute.xlu1 %4151 }
  0xa5   : > { %v4154_v17 = vunpack.i.h.bf16 %v5102_v46  ;;  %v4177_v8 = vunpack.i.h.bf16 %v4175_v36  ;;  %v4176_v51 = vunpack.i.l.bf16 %v4175_v36  ;;  %v1701_v42 = vshll.u32 %v5107_v21, 16 }
  0xa6   : > { %6730 = vst [vmem:[#allocation5_spill] sm:$0xff] %v5010_v59  ;;  %v1933_v19 = vunpack.c.l.b16 %v5010_v59  ;;  %v1114_v31 = vor.u32 1.1754944e-38, %v6741_v7  ;;  %v1046_v0 = vadd.f32 %v4947_v15, %v1045_v25  ;;  %v1925_v56 = vunpack.c.l.b16 %v5065_v34 }
  0xa7   : > { %v1274_v25 = vmul.f32 %v935_v44, %v4666_v27  ;;  %v577_v27 = vld [vmem:[%s4491_s19 + $0x14] sm:$0x1]  ;;  %v1517_v12 = vmul.f32 %v4154_v17, %v1270_v57  ;;  %v5180_v4 = vrot.slane %v1701_v42, 5  ;;  %vm1092_vm13 = vweird.f32 %v5146_v38 }
  0xa8   : > { %v5038_v9 = vpack.c.b16 %v1933_v19, %v1932_v29  ;;  %v6745_v29 = vunpack.i.h.bf16 %v4916_v11  ;;  %v1940_v32 = vpack.c.b16 %v1925_v56, %v1924_v14  ;;  %v1050_v20 = vsel %vm5098_vm3, %v4947_v15, %v1046_v0  ;;  %v4075_v11 = vld [vmem:[%s4491_s19 + $0x18] sm:$0xff]  }
  0xa9   : > { %v1115_v33 = vsel %vm5086_vm2, %v1114_v31, %v1110_v54  ;;  %v1589_v15 = vshll.u32 %v5040_v3, 16  ;;  %v1055_v49 = vsel %vm5117_vm4, %v1054_v22, %v1050_v20  ;;  %v4062_v13 = vunpack.c.h.bf16 %v4075_v11 }
  0xaa   : > { %6733 = vst [vmem:[#allocation6_spill] sm:$0xff] %v5038_v9  ;;  %3748 = vmatmul.msk.bf16.vlgmr.msra.gmra.mxu3 %vm1834_vm12, %v5038_v9  ;;  %v1516_v19 = vmul.f32 %v6745_v29, %v1269_v24  ;;  %3744 = vmatmul.msk.bf16.vlgmr.msra.gmra.mxu1 %vm1834_vm12, %v1940_v32  ;;  %v1685_v24 = vshll.u32 %v4984_v2, 16  ;;  %v1286_v6 = vmul.f32 %v1115_v33, %v4682_v28  ;;  %v4153_v31 = vunpack.i.l.bf16 %v5102_v46  ;;  %v4017_v46 = vld [vmem:[%s6660_s5 + $0x20] sm:$0xff]  ;;  %v5173_v32 = vpop.eup %4256  ;;  %v4036_v2 = vld [vmem:[%s6660_s5 + $0xb8] sm:$0xff] }
  0xab   : > { %v1521_v7 = vmul.f32 %v4177_v8, %v1274_v25  ;;  %v4069_v0 = vunpack.c.l.bf16 %v4892_v5  ;;  %v1282_v39 = vmul.f32 %v1055_v49, %v4724_v60  ;;  %v4061_v48 = vunpack.c.l.bf16 %v4075_v11  ;;  %1866 = vmatpush.bf16.msra.mxu0 %v4017_v46  ;;  %4081 = vmatpush.bf16.msra.mxu2 %v4017_v46  ;;  %v5186_v25 = vpop.eup %4258 }
  0xac   : > { %v5139_v18 = vpack.c.bf16 %v1516_v19, %v1516_v19  ;;  %v607_v14 = vunpack.c.l.bf16 %v577_v27  ;;  %v5154_v28 = vrot.slane %v1586_v40, 4  ;;  %v5156_v56 = vrot.slane %v1589_v15, 5  ;;  %2543 = vmatpush.bf16.msrb.mxu1 %v4036_v2 }
  0xad   : > { %v643_v54 = vmul.f32 %v4507_v30, %v4062_v13  ;;  %v1533_v5 = vmul.f32 %v4176_v51, %v1286_v6  ;;  %v5163_v41 = vpack.c.bf16 %v1517_v12, %v1517_v12  ;;  %v619_v60 = vunpack.c.l.bf16 %v589_v61  ;;  %v5202_v12 = vpop.eup %4260 }
  0xae   : > { %v1605_v44 = vshll.u32 %v5139_v18, 16  ;;  %v5166_v29 = vrot.slane %v1682_v37, 4  ;;  %v5168_v19 = vrot.slane %v1685_v24, 5  ;;  %v5170_v10 = vpack.c.bf16 %v1521_v7, %v1521_v7  ;;  %v5192_v24 = vpop.permute.xlu1 %4168 }
  0xaf   : > { %v654_v22 = vmul.f32 %v4507_v30, %v4069_v0  ;;  %v1529_v36 = vmul.f32 %v4153_v31, %v1282_v39  ;;  %v1599_v20 = vshrl.u32 %v5065_v34, 16  ;;  %v642_v57 = vmul.f32 %v4507_v30, %v4061_v48 }
  0xb0   : > { %v641_v17 = vmul.f32 %v4507_v30, %v607_v14  ;;  %v5178_v11 = vrot.slane %v1605_v44, 5  ;;  %v5184_v33 = vadd.f32 %v4516_v35, %v643_v54  ;;  %v5188_v8 = vpack.c.bf16 %v1533_v5, %v1533_v5 }
  0xb1   : > { %v653_v51 = vmul.f32 %v4507_v30, %v619_v60  ;;  %v1148_v49 = vmul.f32 %v5173_v32, %v5126_v55  ;;  %v5199_v27 = vadd.f32 %v4516_v35, %v654_v22  ;;  %v1595_v6 = vshll.u32 %v5065_v34, 16  ;;  %v4024_v22 = vld [vmem:[%s6660_s5 + $0x58] sm:$0xff] }
  0xb2   : > { %v5204_v42 = vpack.c.bf16 %v1529_v36, %v1529_v36  ;;  %v1601_v7 = vrot.slane %v1599_v20, 4  ;;  %v5207_v31 = vadd.f32 %v4516_v35, %v642_v57  ;;  %v5210_v30 = vadd.f32 %v4516_v35, %v641_v17  ;;  %v4028_v36 = vld [vmem:[%s6660_s5 + $0x78] sm:$0xff]  ;;  %2197 = vmatpush.bf16.msrb.mxu2 %v4024_v22 }
  0xb3   : > { %v1695_v0 = vshrl.u32 %v5010_v59, 16  ;;  %v908_v61 = vmul.f32 %v5186_v25, %v5137_v58  ;;  %v3671_v39 = vmul.f32 -1.442695, %v5184_v33  ;;  %v1597_v48 = vrot.slane %v1595_v6, 5  ;;  %2303 = vmatpush.bf16.msrb.mxu3 %v4028_v36  ;;  %v580_v36 = vld [vmem:[%s4491_s19 + $0x20] sm:$0x1] }
  0xb4   : > { %6748 = vst [vmem:[#allocation8_spill] sm:$0xff] %v5204_v42  ;;  %v1156_v14 = vand.u32 2147483647, %v5126_v55  ;;  %v1158_v44 = vand.u32 2147483648, %v5126_v55  ;;  %v5220_v54 = vadd.f32 %v4516_v35, %v653_v51  ;;  %v1691_v46 = vshll.u32 %v5010_v59, 16 }
  0xb5   : > { %v1149_v5 = vsub.f32 1.0, %v1148_v49  ;;  %v1088_v60 = vmul.f32 %v5202_v12, %v5146_v38  ;;  %v3669_v35 = vmul.f32 -1.442695, %v5210_v30  ;;  %v1592_v20 = vor.u32 %v5156_v56, %v5154_v28 }
  0xb6   : > { %v1602_v57 = vor.u32 %v1601_v7, %v1597_v48  ;;  %v1697_v17 = vrot.slane %v1695_v0, 4  ;;  %v909_v51 = vsub.f32 1.0, %v908_v61  ;;  %v3670_v49 = vmul.f32 -1.442695, %v5207_v31 }
  0xb7   : > { %v1693_v6 = vrot.slane %v1691_v46, 5  ;;  %v5236_v40 = vor.u32 1.1754944e-38, %v1158_v44  ;;  %v916_v13 = vand.u32 2147483647, %v5137_v58  ;;  %v3681_v52 = vmul.f32 -1.442695, %v5220_v54 }
  0xb8   : > { %v1603_v16 = vrot.slane %v1602_v57, 4  ;;  %v918_v37 = vand.u32 2147483648, %v5137_v58  ;;  %v1089_v15 = vsub.f32 1.0, %v1088_v60  ;;  %4262 = vpow2.f32 %v3671_v39 }
  0xb9   : > { %v3682_v28 = vmul.f32 -1.442695, %v5199_v27  ;;  %v1150_v7 = vmul.f32 %v5173_v32, %v1149_v5  ;;  %4264 = vpow2.f32 %v3669_v35  ;;  %v1593_v0 = vrot.slane %v1592_v20, 4 }
  0xba   : > { %v1688_v61 = vor.u32 %v5168_v19, %v5166_v29  ;;  %v910_v44 = vmul.f32 %v5186_v25, %v909_v51  ;;  %v1096_v46 = vand.u32 2147483647, %v5146_v38  ;;  %4266 = vpow2.f32 %v3670_v49 }
  0xbb   : > { %v1698_v39 = vor.u32 %v1697_v17, %v1693_v6  ;;  %vm1153_vm10 = vweird.f32 %v5173_v32  ;;  %vm5254_vm11 = vcmp.eq.f32.partialorder %v1156_v14, 8.507059e+37  ;;  %4268 = vpow2.f32 %v3681_v52 }
  0xbc   : > { %v1598_v5 = vsel %vm5244_vm9, %v1593_v0, %v1597_v48  ;;  %v1608_v29 = vsel %vm5244_vm9, %v1603_v16, %v5178_v11  ;;  %vm913_vm14 = vweird.f32 %v5186_v25  ;;  %v1090_v19 = vmul.f32 %v5202_v12, %v1089_v15  ;;  %vm5274_vm0 = vmor %vm1152_vm5, %vm1153_vm10  ;;  %v592_v16 = vld [vmem:[%s4491_s19 + $0x50] sm:$0x1] }
  0xbd   : > { %v1098_v22 = vand.u32 2147483648, %v5146_v38  ;;  %v1151_v14 = vadd.f32 %v5173_v32, %v1150_v7  ;;  %vm1093_vm15 = vweird.f32 %v5202_v12  ;;  %4270 = vpow2.f32 %v3682_v28  ;;  %vm5283_vm1 = vmor %vm912_vm6, %vm913_vm14 }
  0xbe   : > { %v1689_v52 = vrot.slane %v1688_v61, 4  ;;  %v4263_v48 = vpop.eup %4262  ;;  %v911_v11 = vadd.f32 %v5186_v25, %v910_v44  ;;  %v1786_v15 = vunpack.c.l.b16 %v1598_v5  ;;  %v1787_v35 = vunpack.c.l.b16 %v1608_v29  ;;  %vm5308_vm4 = vmor %vm1092_vm13, %vm1093_vm15 }
  0xbf   : > { %v1699_v20 = vrot.slane %v1698_v39, 4  ;;  %v4265_v57 = vpop.eup %4264  ;;  %vm5287_vm2 = vcmp.eq.f32.partialorder %v916_v13, 8.507059e+37  ;;  %v919_v51 = vor.u32 1.1754944e-38, %v918_v37  ;;  %vm5291_vm3 = vcmp.eq.f32.partialorder %v1096_v46, 8.507059e+37 }
  0xc0   : > { %v1694_v28 = vsel %vm5244_vm9, %v1689_v52, %v1693_v6  ;;  %v4267_v7 = vpop.eup %4266  ;;  %v1091_v0 = vadd.f32 %v5202_v12, %v1090_v19  ;;  %v1802_v58 = vpack.c.b16 %v1787_v35, %v1786_v15  ;;  %v610_v61 = vunpack.c.l.bf16 %v580_v36  ;;  %v5324_v52 = vld [vmem:[%s4457_s20] ss:$0 sm:$0xff] }
  0xc1   : > { %v1704_v13 = vsel %vm5244_vm9, %v1699_v20, %v5180_v4  ;;  %v4269_v44 = vpop.eup %4268  ;;  %v1155_v37 = vsel %vm5274_vm0, %v5173_v32, %v1151_v14  ;;  %v1099_v46 = vor.u32 1.1754944e-38, %v1098_v22  ;;  %v5312_v39 = vadd.f32 1.0, %v4263_v48  ;;  %6763 = vst [vmem:[#allocation9_spill] sm:$0xff] %v5324_v52 }
  0xc2   : > { %v1926_v4 = vunpack.c.l.b16 %v5163_v41  ;;  %v915_v5 = vsel %vm5283_vm1, %v5186_v25, %v911_v11  ;;  %v5318_v29 = vadd.f32 1.0, %v4265_v57  ;;  %3720 = vmatmul.msk.bf16.vlgmr.msra.gmra.mxu0 %vm1834_vm12, %v1802_v58  ;;  %v1794_v38 = vunpack.c.l.b16 %v1694_v28  ;;  %v5342_v57 = vld [vmem:[%s4463_s23] ss:$0 sm:$0xff] }
  0xc3   : > { %v1795_v32 = vunpack.c.l.b16 %v1704_v13  ;;  %v4271_v19 = vpop.eup %4270  ;;  %v5321_v14 = vadd.f32 1.0, %v4267_v7  ;;  %v644_v22 = vmul.f32 %v5324_v52, %v610_v61  ;;  %v1927_v36 = vunpack.c.l.b16 %v4770_v47  ;;  %6765 = vst [vmem:[#allocation11_spill] sm:$0xff] %v5342_v57 }
  0xc4   : > { %v1934_v48 = vunpack.c.l.b16 %v5204_v42  ;;  %v1095_v25 = vsel %vm5308_vm4, %v5202_v12, %v1091_v0  ;;  %v5333_v11 = vadd.f32 1.0, %v4269_v44  ;;  %v1935_v35 = vunpack.c.l.b16 %v4786_v53 }
  0xc5   : > { %v5335_v15 = vpack.c.b16 %v1795_v32, %v1794_v38  ;;  %v920_v20 = vsel %vm5287_vm2, %v919_v51, %v915_v5  ;;  %4272 = vrcp.f32 %v5312_v39  ;;  %v5345_v17 = vadd.f32 %v5342_v57, %v644_v22 }
  0xc6   : > { %v5347_v28 = vpack.c.b16 %v1927_v36, %v1926_v4  ;;  %v1160_v12 = vsel %vm5254_vm11, %v5236_v40, %v1155_v37  ;;  %4274 = vrcp.f32 %v5318_v29  ;;  %v5355_v55 = vpack.c.b16 %v1935_v35, %v1934_v48 }
  0xc7   : > { %6764 = vst [vmem:[#allocation10_spill] sm:$0xff] %v5335_v15  ;;  %3724 = vmatmul.msk.bf16.vlgmr.msra.gmra.mxu2 %vm1834_vm12, %v5335_v15  ;;  %v622_v51 = vunpack.c.l.bf16 %v592_v16  ;;  %v1100_v7 = vsel %vm5291_vm3, %v1099_v46, %v1095_v25  ;;  %v5359_v0 = vadd.f32 1.0, %v4271_v19  ;;  %4276 = vrcp.f32 %v5321_v14 }
  0xc8   : > { %6766 = vst [vmem:[#allocation12_spill] sm:$0xff] %v5347_v28  ;;  %v3672_v58 = vmul.f32 -1.442695, %v5345_v17  ;;  %3745 = vmatmul.msk.bf16.gmra.mxu1 %vm1834_vm12, %v5347_v28  ;;  %v1273_v40 = vmul.f32 %v920_v20, %v4993_v62  ;;  %4278 = vrcp.f32 %v5333_v11  ;;  %3749 = vmatmul.msk.bf16.gmra.mxu3 %vm1834_vm12, %v5355_v55  ;;  %v1619_v49 = vshll.u32 %v4770_v47, 16 }
  0xc9   : > { %6767 = vst [vmem:[#allocation13_spill] sm:$0xff] %v5355_v55  ;;  %v656_v60 = vmul.f32 %v5324_v52, %v622_v51  ;;  %v1743_v13 = vshrl.u32 %v5188_v8, 16  ;;  %v6768_v61 = vshrl.u32 %v5163_v41, 16  ;;  %v6769_v37 = vshll.u32 %v5163_v41, 16 }
  0xca   : > { %4280 = vpow2.f32 %v3672_v58  ;;  %v1289_v62 = vmul.f32 %v1160_v12, %v4974_v26  ;;  %v1285_v46 = vmul.f32 %v1100_v7, %v5014_v50  ;;  %v4170_v4 = vunpack.i.l.bf16 %v5192_v24  ;;  %v4032_v26 = vld [vmem:[%s6660_s5 + $0x98] sm:$0xff] }
  0xcb   : > { %v1612_v44 = vrot.slane %v6768_v61, 4  ;;  %v1615_v6 = vrot.slane %v6769_v37, 5  ;;  %v5380_v5 = vadd.f32 %v5342_v57, %v656_v60  ;;  %v5382_v38 = vpop.eup %4272  ;;  %v6770_v32 = vshll.u32 %v4914_v23, 16  ;;  %v1469_v61 = vpop.permute.xlu2 %1468  ;;  %2431 = vmatpush.bf16.msrb.mxu0 %v4032_v26 }
  0xcc   : > { %v1706_v22 = vshrl.u32 %v5204_v42, 16  ;;  %v1709_v36 = vshll.u32 %v5204_v42, 16  ;;  %4282 = vrcp.f32 %v5359_v0  ;;  %v5394_v50 = vpop.eup %4274  ;;  %v6771_v48 = vshll.u32 %v5082_v63, 16 }
  0xcd   : > { %v5386_v19 = vrot.slane %v6770_v32, 5  ;;  %v6772_v25 = vunpack.i.h.bf16 %v5192_v24  ;;  %v3684_v20 = vmul.f32 -1.442695, %v5380_v5  ;;  %v5403_v12 = vrot.slane %v1619_v49, 5  ;;  %v5405_v51 = vpop.eup %4276  ;;  %v5414_v32 = vpop.permute.xlu1 %4185 }
  0xce   : > { %v5398_v16 = vrot.slane %v6771_v48, 5  ;;  %v6773_v7 = vshrl.u32 %v5170_v10, 16  ;;  %v5411_v60 = vrot.slane %v1743_v13, 4  ;;  %v978_v37 = vand.u32 2147483648, %v5312_v39 }
  0xcf   : > { %v1520_v35 = vmul.f32 %v6772_v25, %v1273_v40  ;;  %v1616_v24 = vor.u32 %v1615_v6, %v1612_v44  ;;  %v5416_v40 = vpop.eup %4278  ;;  %v1536_v48 = vmul.f32 %v1469_v61, %v1289_v62  ;;  %v1532_v49 = vmul.f32 %v4170_v4, %v1285_v46 }
  0xd0   : > { %v5409_v58 = vrot.slane %v6773_v7, 4  ;;  %4284 = vpow2.f32 %v3684_v20  ;;  %v1626_v25 = vor.u32 %v4864_v43, %v5403_v12  ;;  %v4281_v1 = vpop.eup %4280  ;;  %v5420_v7 = vrot.slane %v1706_v22, 4 }
  0xd1   : > { %v5422_v13 = vrot.slane %v1709_v36, 5  ;;  %v968_v55 = vmul.f32 %v5382_v38, %v5312_v39  ;;  %v938_v26 = vmul.f32 %v5394_v50, %v5318_v29  ;;  %v5428_v44 = vpack.c.bf16 %v1520_v35, %v1520_v35 }
  0xd2   : > { %v953_v6 = vmul.f32 %v5405_v51, %v5321_v14  ;;  %v5433_v46 = vadd.f32 1.0, %v4281_v1  ;;  %v5435_v43 = vpop.eup %4282  ;;  %v976_v4 = vand.u32 2147483647, %v5312_v39  ;;  %v5438_v22 = vor.u32 1.1754944e-38, %v978_v37 }
  0xd3   : > { %v1617_v36 = vrot.slane %v1616_v24, 4  ;;  %v1627_v20 = vrot.slane %v1626_v25, 4  ;;  %v5440_v61 = vpack.c.bf16 %v1536_v48, %v1536_v48  ;;  %v5442_v15 = vpack.c.bf16 %v1532_v49, %v1532_v49 }
  0xd4   : > { %vm972_vm5 = vweird.f32 %v5312_v39  ;;  %v1118_v35 = vmul.f32 %v5416_v40, %v5333_v11  ;;  %4286 = vrcp.f32 %v5433_v46  ;;  %v969_v1 = vsub.f32 1.0, %v968_v55  ;;  %v4023_v55 = vld [vmem:[%s6660_s5 + $0x50] sm:$0xff] }
  0xd5   : > { %vm973_vm6 = vweird.f32 %v5382_v38  ;;  %v939_v37 = vsub.f32 1.0, %v938_v26  ;;  %v954_v49 = vsub.f32 1.0, %v953_v6  ;;  %v1133_v25 = vmul.f32 %v5435_v43, %v5359_v0  ;;  %v4027_v26 = vld [vmem:[%s6660_s5 + $0x70] sm:$0xff]  ;;  %2198 = vmatpush.bf16.msrb.mxu2 %v4023_v55 }
  0xd6   : > { %v4285_v9 = vpop.eup %4284  ;;  %v961_v24 = vand.u32 2147483647, %v5321_v14  ;;  %v1622_v6 = vsel %vm5244_vm9, %v1617_v36, %v5403_v12  ;;  %v1632_v48 = vsel %vm5244_vm9, %v1627_v20, %v5386_v19  ;;  %vm957_vm7 = vweird.f32 %v5321_v14  ;;  %2304 = vmatpush.bf16.msrb.mxu3 %v4027_v26  ;;  %vm5517_vm0 = vmor %vm972_vm5, %vm973_vm6 }
  0xd7   : > { %v5464_v62 = vadd.f32 1.0, %v4285_v9  ;;  %v1119_v59 = vsub.f32 1.0, %v1118_v35  ;;  %v970_v52 = vmul.f32 %v5382_v38, %v969_v1  ;;  %v940_v42 = vmul.f32 %v5394_v50, %v939_v37 }
  0xd8   : > { %v955_v19 = vmul.f32 %v5405_v51, %v954_v49  ;;  %v1134_v36 = vsub.f32 1.0, %v1133_v25  ;;  %v1788_v20 = vunpack.c.l.b16 %v1622_v6  ;;  %v1789_v57 = vunpack.c.l.b16 %v1632_v48 }
  0xd9   : > { %4288 = vrcp.f32 %v5464_v62  ;;  %vm5482_vm8 = vcmp.eq.f32.partialorder %v976_v4, 8.507059e+37  ;;  %vm5486_vm10 = vcmp.eq.f32.partialorder %v961_v24, 8.507059e+37  ;;  %vm942_vm11 = vweird.f32 %v5318_v29 }
  0xda   : > { %v5479_v12 = vpop.eup %4286  ;;  %vm943_vm14 = vweird.f32 %v5394_v50  ;;  %v946_v1 = vand.u32 2147483647, %v5318_v29  ;;  %v963_v37 = vand.u32 2147483648, %v5321_v14  ;;  %v1141_v49 = vand.u32 2147483647, %v5359_v0 }
  0xdb   : > { %v948_v48 = vand.u32 2147483648, %v5318_v29  ;;  %v1120_v4 = vmul.f32 %v5416_v40, %v1119_v59  ;;  %v971_v25 = vadd.f32 %v5382_v38, %v970_v52  ;;  %vm958_vm13 = vweird.f32 %v5405_v51  ;;  %vm5504_vm15 = vmor %vm942_vm11, %vm943_vm14 }
  0xdc   : > { %v941_v24 = vadd.f32 %v5394_v50, %v940_v42  ;;  %v983_v55 = vmul.f32 %v5479_v12, %v5433_v46  ;;  %v956_v26 = vadd.f32 %v5405_v51, %v955_v19  ;;  %v1135_v6 = vmul.f32 %v5435_v43, %v1134_v36  ;;  %vm5531_vm4 = vmor %vm957_vm7, %vm958_vm13 }
  0xdd   : > { %v5508_v29 = vpack.c.b16 %v1789_v57, %v1788_v20  ;;  %v1715_v59 = vshll.u32 %v4786_v53, 16  ;;  %vm5521_vm1 = vcmp.eq.f32.partialorder %v946_v1, 8.507059e+37  ;;  %vm1122_vm2 = vweird.f32 %v5333_v11 }
  0xde   : > { %vm1123_vm3 = vweird.f32 %v5416_v40  ;;  %v1712_v57 = vor.u32 %v5422_v13, %v5420_v7  ;;  %v949_v39 = vor.u32 1.1754944e-38, %v948_v48  ;;  %v1121_v20 = vadd.f32 %v5416_v40, %v1120_v4 }
  0xdf   : > { %v5511_v52 = vpop.eup %4288  ;;  %v1126_v1 = vand.u32 2147483647, %v5333_v11  ;;  %v1128_v21 = vand.u32 2147483648, %v5333_v11  ;;  %3721 = vmatmul.msk.bf16.gmra.mxu0 %vm1834_vm12, %v5508_v29  ;;  %v945_v7 = vsel %vm5504_vm15, %v5394_v50, %v941_v24  ;;  %v984_v13 = vsub.f32 1.0, %v983_v55  ;;  %vm5552_vm7 = vmor %vm1122_vm2, %vm1123_vm3 }
  0xe0   : > { %v1163_v14 = vmul.f32 %v5511_v52, %v5464_v62  ;;  %v1717_v53 = vrot.slane %v1715_v59, 5  ;;  %v964_v28 = vor.u32 1.1754944e-38, %v963_v37  ;;  %vm1137_vm5 = vweird.f32 %v5359_v0 }
  0xe1   : > { %vm1138_vm6 = vweird.f32 %v5435_v43  ;;  %v1143_v48 = vand.u32 2147483648, %v5359_v0  ;;  %v975_v50 = vsel %vm5517_vm0, %v5382_v38, %v971_v25  ;;  %v960_v9 = vsel %vm5531_vm4, %v5405_v51, %v956_v26  ;;  %v4181_v0 = vpop.permute.xlu0 %4180 }
  0xe2   : > { %vm5562_vm11 = vcmp.eq.f32.partialorder %v1141_v49, 8.507059e+37  ;;  %v1713_v24 = vrot.slane %v1712_v57, 4  ;;  %v1136_v11 = vadd.f32 %v5435_v43, %v1135_v6  ;;  %v950_v55 = vsel %vm5521_vm1, %v949_v39, %v945_v7  ;;  %vm5573_vm13 = vmor %vm1137_vm5, %vm1138_vm6 }
  0xe3   : > { %vm5569_vm14 = vcmp.eq.f32.partialorder %v1126_v1, 8.507059e+37  ;;  %v1129_v38 = vor.u32 1.1754944e-38, %v1128_v21  ;;  %v1125_v51 = vsel %vm5552_vm7, %v5416_v40, %v1121_v20  ;;  %v985_v49 = vmul.f32 %v5479_v12, %v984_v13 }
  0xe4   : > { %v1164_v26 = vsub.f32 1.0, %v1163_v14  ;;  %v1722_v6 = vor.u32 %v4866_v45, %v1717_v53  ;;  %v980_v42 = vsel %vm5482_vm8, %v5438_v22, %v975_v50  ;;  %v965_v21 = vsel %vm5486_vm10, %v964_v28, %v960_v9  ;;  %v1393_v50 = vpop.permute.xlu2 %1392 }
  0xe5   : > { %v1144_v19 = vor.u32 1.1754944e-38, %v1143_v48  ;;  %v4183_v57 = vunpack.i.h.bf16 %v4181_v0  ;;  %vm987_vm15 = vweird.f32 %v5433_v46  ;;  %vm988_vm0 = vweird.f32 %v5479_v12 }
  0xe6   : > { %v1718_v40 = vsel %vm5244_vm9, %v1713_v24, %v1717_v53  ;;  %v1723_v36 = vrot.slane %v1722_v6, 4  ;;  %v1140_v45 = vsel %vm5573_vm13, %v5435_v43, %v1136_v11  ;;  %v1130_v22 = vsel %vm5569_vm14, %v1129_v38, %v1125_v51  ;;  %vm5603_vm8 = vmor %vm987_vm15, %vm988_vm0 }
  0xe7   : > { %v1275_v35 = vmul.f32 %v950_v55, %v5210_v30  ;;  %v993_v28 = vand.u32 2147483648, %v5433_v46  ;;  %v4182_v2 = vunpack.i.l.bf16 %v4181_v0  ;;  %v986_v39 = vadd.f32 %v5479_v12, %v985_v49 }
  0xe8   : > { %v991_v20 = vand.u32 2147483647, %v5433_v46  ;;  %v1165_v1 = vmul.f32 %v5511_v52, %v1164_v26  ;;  %v1277_v53 = vmul.f32 %v980_v42, %v5184_v33  ;;  %v1276_v7 = vmul.f32 %v965_v21, %v5207_v31 }
  0xe9   : > { %v1728_v30 = vsel %vm5244_vm9, %v1723_v36, %v5398_v16  ;;  %v1796_v13 = vunpack.c.l.b16 %v1718_v40  ;;  %v1145_v14 = vsel %vm5562_vm11, %v1144_v19, %v1140_v45  ;;  %v1287_v46 = vmul.f32 %v1130_v22, %v5220_v54  ;;  %v1399_v43 = vpop.permute.xlu0 %1398 }
  0xea   : > { %vm1167_vm10 = vweird.f32 %v5464_v62  ;;  %vm1168_vm1 = vweird.f32 %v5511_v52  ;;  %v1522_v33 = vmul.f32 %v4183_v57, %v1275_v35  ;;  %v994_v31 = vor.u32 1.1754944e-38, %v993_v28 }
  0xeb   : > { %v1173_v48 = vand.u32 2147483648, %v5464_v62  ;;  %v1797_v4 = vunpack.c.l.b16 %v1728_v30  ;;  %v990_v16 = vsel %vm5603_vm8, %v5479_v12, %v986_v39  ;;  %vm992_vm2 = vcmp.eq.f32.partialorder %v991_v20, 8.507059e+37  ;;  %vm5622_vm3 = vmor %vm1167_vm10, %vm1168_vm1 }
  0xec   : > { %v1166_v9 = vadd.f32 %v5511_v52, %v1165_v1  ;;  %v1171_v37 = vand.u32 2147483647, %v5464_v62  ;;  %v1524_v54 = vmul.f32 %v1393_v50, %v1277_v53  ;;  %v1288_v0 = vmul.f32 %v1145_v14, %v5199_v27 }
  0xed   : > { %v5626_v11 = vpack.c.b16 %v1797_v4, %v1796_v13  ;;  %v1928_v55 = vunpack.c.l.b16 %v5428_v44  ;;  %v6798_v59 = vshrl.u32 %v5428_v44, 16  ;;  %v6799_v12 = vshll.u32 %v5428_v44, 16 }
  0xee   : > { %v6800_v51 = vshrl.u32 %v5442_v15, 16  ;;  %v6801_v49 = vunpack.i.h.bf16 %v5414_v32  ;;  %v1534_v26 = vmul.f32 %v4182_v2, %v1287_v46  ;;  %v995_v6 = vsel %vm992_vm2, %v994_v31, %v990_v16 }
  0xef   : > { %v1636_v38 = vrot.slane %v6798_v59, 4  ;;  %v1639_v25 = vrot.slane %v6799_v12, 5  ;;  %v1174_v42 = vor.u32 1.1754944e-38, %v1173_v48  ;;  %3725 = vmatmul.msk.bf16.gmra.mxu2 %vm1834_vm12, %v5626_v11  ;;  %v1929_v21 = vunpack.c.l.b16 %v5170_v10 }
  0xf0   : > { %v1732_v62 = vrot.slane %v6800_v51, 4  ;;  %v1523_v27 = vmul.f32 %v6801_v49, %v1276_v7  ;;  %v5640_v19 = vpack.c.bf16 %v1522_v33, %v1522_v33  ;;  %v1170_v57 = vsel %vm5622_vm3, %v5511_v52, %v1166_v9 }
  0xf1   : > { %vm1172_vm4 = vcmp.eq.f32.partialorder %v1171_v37, 8.507059e+37  ;;  %v1936_v40 = vunpack.c.l.b16 %v5442_v15  ;;  %v6802_v36 = vshll.u32 %v5442_v15, 16  ;;  %v5648_v22 = vpack.c.bf16 %v1524_v54, %v1524_v54 }
  0xf2   : > { %v6803_v35 = vunpack.i.l.bf16 %v5414_v32  ;;  %v5652_v2 = vpack.c.b16 %v1929_v21, %v1928_v55  ;;  %v1653_v39 = vshll.u32 %v5640_v19, 16  ;;  %v1278_v20 = vmul.f32 %v995_v6, %v5345_v17  ;;  %v4031_v17 = vld [vmem:[%s6660_s5 + $0x90] sm:$0xff] }
  0xf3   : > { %v1735_v45 = vrot.slane %v6802_v36, 5  ;;  %v1937_v1 = vunpack.c.l.b16 %v5188_v8  ;;  %v1640_v52 = vor.u32 %v1639_v25, %v1636_v38  ;;  %v1667_v53 = vshll.u32 %v5648_v22, 16  ;;  %2432 = vmatpush.bf16.msrb.mxu0 %v4031_v17 }
  0xf4   : > { %v1535_v28 = vmul.f32 %v6803_v35, %v1288_v0  ;;  %v5658_v7 = vpack.c.bf16 %v1534_v26, %v1534_v26  ;;  %v1175_v30 = vsel %vm1172_vm4, %v1174_v42, %v1170_v57  ;;  %3746 = vmatmul.msk.bf16.gmra.mxu1 %vm1834_vm12, %v5652_v2  ;;  %v1643_v32 = vshll.u32 %v5170_v10, 16  ;;  %v1475_v0 = vpop.permute.xlu1 %1474 }
  0xf5   : > { %v1671_v13 = vshrl.u32 %v5648_v22, 16  ;;  %v5664_v14 = vpack.c.bf16 %v1523_v27, %v1523_v27  ;;  %v5666_v46 = vpack.c.b16 %v1937_v1, %v1936_v40  ;;  %v1641_v33 = vrot.slane %v1640_v52, 4  ;;  %v4035_v52 = vld [vmem:[%s6660_s5 + $0xb0] sm:$0xff] }
  0xf6   : > { %v1749_v31 = vshll.u32 %v5658_v7, 16  ;;  %v1645_v48 = vrot.slane %v1643_v32, 5  ;;  %v1736_v4 = vor.u32 %v1735_v45, %v1732_v62  ;;  %v1739_v50 = vshll.u32 %v5188_v8, 16  ;;  %2544 = vmatpush.bf16.msrb.mxu1 %v4035_v52  ;;  %v4033_v52 = vld [vmem:[%s6660_s5 + $0xa0] sm:$0xff] }
  0xf7   : > { %v5673_v16 = vpack.c.bf16 %v1535_v28, %v1535_v28  ;;  %v1655_v9 = vrot.slane %v1653_v39, 5  ;;  %v1525_v37 = vmul.f32 %v1399_v43, %v1278_v20  ;;  %v1290_v54 = vmul.f32 %v1175_v30, %v5380_v5  ;;  %3750 = vmatmul.msk.bf16.gmra.mxu3 %vm1834_vm12, %v5666_v46  ;;  %v4026_v43 = vld [vmem:[%s6660_s5 + $0x68] sm:$0xff] }
  0xf8   : > { %v1646_v24 = vsel %vm5244_vm9, %v1641_v33, %v1645_v48  ;;  %v1650_v55 = vor.u32 %v5409_v58, %v1645_v48  ;;  %v1737_v59 = vrot.slane %v1736_v4, 4  ;;  %v1741_v38 = vrot.slane %v1739_v50, 5  ;;  %2305 = vmatpush.bf16.msrb.mxu3 %v4026_v43 }
  0xf9   : > { %v6804_v12 = vshll.u32 %v5440_v61, 16  ;;  %v1767_v51 = vshrl.u32 %v5440_v61, 16  ;;  %v1658_v5 = vshrl.u32 %v5664_v14, 16  ;;  %v5687_v62 = vrot.slane %v1667_v53, 5 }
  0xfa   : > { %v1661_v49 = vshll.u32 %v5664_v14, 16  ;;  %v1751_v27 = vrot.slane %v1749_v31, 5  ;;  %v1651_v26 = vrot.slane %v1650_v55, 4  ;;  %v1537_v6 = vmul.f32 %v1475_v0, %v1290_v54 }
  0xfb   : > { %v5683_v25 = vrot.slane %v6804_v12, 5  ;;  %v1790_v42 = vunpack.c.l.b16 %v1646_v24  ;;  %v1742_v58 = vsel %vm5244_vm9, %v1737_v59, %v1741_v38  ;;  %v1746_v21 = vor.u32 %v5411_v60, %v1741_v38  ;;  %v4022_v60 = vld [vmem:[%s6660_s5 + $0x48] sm:$0xff] }
  0xfc   : > { %v1673_v57 = vrot.slane %v1671_v13, 4  ;;  %v1754_v40 = vshrl.u32 %v5673_v16, 16  ;;  %v5694_v36 = vpack.c.bf16 %v1525_v37, %v1525_v37  ;;  %v1656_v45 = vsel %vm5244_vm9, %v1651_v26, %v1655_v9  ;;  %2199 = vmatpush.bf16.msrb.mxu2 %v4022_v60  ;;  %v4029_v60 = vld [vmem:[%s6660_s5 + $0x80] sm:$0xff] }
  0xfd   : > { %v1660_v35 = vrot.slane %v1658_v5, 4  ;;  %v1757_v28 = vshll.u32 %v5673_v16, 16  ;;  %v1791_v39 = vunpack.c.l.b16 %v1656_v45  ;;  %v1747_v20 = vrot.slane %v1746_v21, 4 }
  0xfe   : > { %v1663_v1 = vrot.slane %v1661_v49, 5  ;;  %v1798_v53 = vunpack.c.l.b16 %v1742_v58  ;;  %v1930_v30 = vunpack.c.l.b16 %v5664_v14  ;;  %v1931_v32 = vunpack.c.l.b16 %v5648_v22 }
  0xff   : > { %v1769_v13 = vrot.slane %v1767_v51, 4  ;;  %v5710_v17 = vpack.c.bf16 %v1537_v6, %v1537_v6  ;;  %v5712_v33 = vpack.c.b16 %v1791_v39, %v1790_v42  ;;  %v1752_v31 = vsel %vm5244_vm9, %v1747_v20, %v1751_v27 }
 0x100   : > { %v1756_v48 = vrot.slane %v1754_v40, 4  ;;  %v1677_v4 = vshll.u32 %v5694_v36, 16  ;;  %v1799_v50 = vunpack.c.l.b16 %v1752_v31  ;;  %v1674_v9 = vor.u32 %v1673_v57, %v5687_v62 }
 0x101   : > { %v1759_v37 = vrot.slane %v1757_v28, 5  ;;  %vm2053_vm5 = vcmask 1042432   ;;  %3722 = vmatmul.msk.bf16.gmra.mxu0 %vm1834_vm12, %v5712_v33  ;;  %v1938_v54 = vunpack.c.l.b16 %v5673_v16  ;;  %v1939_v0 = vunpack.c.l.b16 %v5440_v61  ;;  %v4030_v28 = vld [vmem:[%s6660_s5 + $0x88] sm:$0xff] }
 0x102   : > { %vm2054_vm6 = vcmask 1046532   ;;  %v5722_v24 = vpack.c.b16 %v1799_v50, %v1798_v53  ;;  %v5724_v55 = vpack.c.b16 %v1931_v32, %v1930_v30  ;;  %v1664_v59 = vor.u32 %v1663_v1, %v1660_v35  ;;  %v4025_v1 = vld [vmem:[%s6660_s5 + $0x60] sm:$0xff]  ;;  %2433 = vmatpush.bf16.msrb.mxu0 %v4030_v28  ;;  %v4040_v30 = vld [vmem:[%s6660_s5 + $0xd8] sm:$0xff]  ;;  %v4050_v50 = vld [vmem:[%s6663_s8 + $0x8] sm:$0xff] }
 0x103   : > { %v2065_v38 = vrot.slane %v4770_v47, 5  ;;  %v1773_v12 = vshll.u32 %v5710_v17, 16  ;;  %v1770_v51 = vor.u32 %v1769_v13, %v5683_v25  ;;  %v2058_v5 = vrot.slane %v5065_v34, 5  ;;  %vm5735_vm7 = vmor %vm2053_vm5, %vm2054_vm6  ;;  %v4044_v32 = vld [vmem:[%s6660_s5 + $0xf8] sm:$0xff]  ;;  %2306 = vmatpush.bf16.msrb.mxu3 %v4025_v1 }
 0x104   : > { %v1679_v49 = vrot.slane %v1677_v4, 5  ;;  %3726 = vmatmul.msk.bf16.gmra.mxu2 %vm1834_vm12, %v5722_v24  ;;  %3747 = vmatmul.msk.bf16.gmra.mxu1 %vm1834_vm12, %v5724_v55  ;;  %v1675_v27 = vrot.slane %v1674_v9, 4  ;;  %v6805_v26 = vmov 0  ;;  %v5739_v47 = vpack.c.b16 %v1939_v0, %v1938_v54  ;;  %v4048_v4 = vld [vmem:[%s6660_s5 + $0x118] sm:$0xff] }
 0x105   : > { %v6806_v26 = vsel %vm5735_vm7, 4294967295, %v6805_v26  ;;  %v1760_v6 = vor.u32 %v1759_v37, %v1756_v48  ;;  %v3752_v42 = vrot.slane %v5040_v3, 9  ;;  %v2068_v34 = vrot.slane %v4914_v23, 5  ;;  %v4034_v3 = vld [vmem:[%s6660_s5 + $0xa8] sm:$0xff] }
 0x106   : > { %6807 = vst [vmem:[#allocation14_spill] sm:$0xff] %v6806_v26  ;;  %v1665_v58 = vrot.slane %v1664_v59, 4  ;;  %v3753_v21 = vrot.slane %v5163_v41, 9  ;;  %v1775_v57 = vrot.slane %v1773_v12, 5  ;;  %v1771_v40 = vrot.slane %v1770_v51, 4  ;;  %v4021_v41 = vld [vmem:[%s6660_s5 + $0x40] sm:$0xff]  ;;  %2545 = vmatpush.bf16.msrb.mxu1 %v4034_v3  ;;  %2434 = vmatpush.bf16.msrb.mxu0 %v4029_v60 }
 0x107   : > { %3751 = vmatmul.msk.bf16.gmra.mxu3 %vm1834_vm12, %v5739_v47  ;;  %v2067_v45 = vrot.slane %v2065_v38, 4  ;;  %v2061_v35 = vrot.slane %v5139_v18, 5  ;;  %v1680_v23 = vsel %vm5244_vm9, %v1675_v27, %v1679_v49  ;;  %v2059_v39 = vsel %vm5735_vm7, %v3752_v42, %v2058_v5  ;;  %2200 = vmatpush.bf16.msrb.mxu2 %v4021_v41 }
 0x108   : > { %v2060_v20 = vrot.slane %v2058_v5, 4  ;;  %v1761_v18 = vrot.slane %v1760_v6, 4  ;;  %v1670_v53 = vsel %vm5244_vm9, %v1665_v58, %v5687_v62  ;;  %v1793_v13 = vunpack.c.l.b16 %v1680_v23  ;;  %2777 = vmatpush.bf16.msra.mxu3 %v4044_v32  ;;  %v6808_v58 = vld [vmem:[#allocation12_spill] sm:$0xff] }
 0x109   : > { %v1776_v31 = vsel %vm5244_vm9, %v1771_v40, %v1775_v57  ;;  %v2066_v62 = vsel %vm5735_vm7, %v3753_v21, %v2065_v38  ;;  %v2069_v48 = vsel %vm5735_vm7, %v2067_v45, %v2068_v34  ;;  %v1792_v9 = vunpack.c.l.b16 %v1670_v53  ;;  %v6809_v40 = vld [vmem:[#allocation8_spill] sm:$0xff] }
 0x10a   : > { %v2062_v43 = vsel %vm5735_vm7, %v2060_v20, %v2061_v35  ;;  %v1766_v37 = vsel %vm5244_vm9, %v1761_v18, %v5683_v25  ;;  %v2121_v54 = vunpack.c.l.b16 %v2059_v39  ;;  %v1801_v59 = vunpack.c.l.b16 %v1776_v31  ;;  %2546 = vmatpush.bf16.msrb.mxu1 %v4033_v52  ;;  %2889 = vmatpush.bf16.msra.mxu0 %v4048_v4  ;;  %v6810_v35 = vld [vmem:[#allocation3_spill] sm:$0xff] }
 0x10b   : > { %2649 = vmatpush.bf16.msra.mxu2 %v4040_v30  ;;  %v2122_v0 = vunpack.c.l.b16 %v2062_v43  ;;  %v2123_v38 = vunpack.c.l.b16 %v2066_v62  ;;  %v2124_v12 = vunpack.c.l.b16 %v2069_v48  ;;  %v5795_v51 = vpack.c.b16 %v1793_v13, %v1792_v9  ;;  %v4039_v9 = vld [vmem:[%s6660_s5 + $0xd0] sm:$0xff] }
 0x10c   : > { %v1800_v49 = vunpack.c.l.b16 %v1766_v37  ;;  %v2072_v25 = vrot.slane %v5170_v10, 5  ;;  %v2096_v42 = vrot.slane %v5082_v63, 5  ;;  %v2075_v34 = vrot.slane %v5640_v19, 5 }
 0x10d   : > { %v2137_v5 = vpack.c.b16 %v2122_v0, %v2121_v54  ;;  %v5801_v6 = vpack.c.b16 %v2124_v12, %v2123_v38  ;;  %v3754_v21 = vrot.slane %v5428_v44, 9  ;;  %v3757_v45 = vrot.slane %v6809_v40, 9  ;;  %v594_v12 = vld [vmem:[%s4491_s19 + $0x54] sm:$0xff]  }
 0x10e   : > { %3257 = vmatpush.bf16.msra.mxu1 %v4050_v50  ;;  %v5799_v27 = vpack.c.b16 %v1801_v59, %v1800_v49  ;;  %v2074_v57 = vrot.slane %v2072_v25, 4  ;;  %v2093_v10 = vrot.slane %v6810_v35, 5  ;;  %v3758_v28 = vrot.slane %v5442_v15, 9  ;;  %v4047_v59 = vld [vmem:[%s6660_s5 + $0x110] sm:$0xff] }
 0x10f   : > { %v2100_v63 = vrot.slane %v5188_v8, 5  ;;  %v2107_v19 = vrot.slane %v5440_v61, 5  ;;  %v2103_v41 = vrot.slane %v5658_v7, 5  ;;  %v3759_v39 = vrot.slane %v5673_v16, 9  ;;  %2650 = vmatpush.bf16.msra.mxu2 %v4039_v9  ;;  %2890 = vmatpush.bf16.msra.mxu0 %v4047_v59  ;;  %v6816_v9 = vld [vmem:[#allocation6_spill] sm:$0xff] }
 0x110   : > { %v2094_v3 = vsel %vm5735_vm7, %v3757_v45, %v2093_v10  ;;  %v2095_v23 = vrot.slane %v2093_v10, 4  ;;  %v2073_v44 = vsel %vm5735_vm7, %v3754_v21, %v2072_v25  ;;  %v2076_v20 = vsel %vm5735_vm7, %v2074_v57, %v2075_v34  ;;  %v6812_v45 = vld [vmem:[#allocation5_spill] sm:$0xff]  ;;  %v6813_v10 = vld [vmem:[#allocation11_spill] sm:$0xff] }
 0x111   : > { %3723 = vmatmul.msk.bf16.gmra.mxu0 %vm1834_vm12, %v5795_v51  ;;  %v2131_v18 = vunpack.c.l.b16 %v2094_v3  ;;  %v2110_v1 = vrot.slane %v5710_v17, 5  ;;  %v2101_v8 = vsel %vm5735_vm7, %v3758_v28, %v2100_v63  ;;  %v2102_v52 = vrot.slane %v2100_v63, 4 }
 0x112   : > { %v2097_v15 = vsel %vm5735_vm7, %v2095_v23, %v2096_v42  ;;  %v2125_v7 = vunpack.c.l.b16 %v2073_v44  ;;  %v2126_v53 = vunpack.c.l.b16 %v2076_v20  ;;  %v2108_v16 = vsel %vm5735_vm7, %v3759_v39, %v2107_v19  ;;  %v6815_v20 = vld [vmem:[#allocation4_spill] sm:$0xff] }
 0x113   : > { %v2132_v61 = vunpack.c.l.b16 %v2097_v15  ;;  %v2109_v60 = vrot.slane %v2107_v19, 4  ;;  %v2104_v30 = vsel %vm5735_vm7, %v2102_v52, %v2103_v41  ;;  %v2133_v32 = vunpack.c.l.b16 %v2101_v8  ;;  %v6814_v19 = vld [vmem:[#allocation7_spill] sm:$0xff] }
 0x114   : > { %3727 = vmatmul.msk.bf16.gmra.mxu2 %vm1834_vm12, %v5799_v27  ;;  %3881 = vmatmul.msk.bf16.vlgmr.msrb.gmra.mxu1 %vm1834_vm12, %v5801_v6  ;;  %v2134_v13 = vunpack.c.l.b16 %v2104_v30  ;;  %v2135_v31 = vunpack.c.l.b16 %v2108_v16  ;;  %v5841_v48 = vpack.c.b16 %v2126_v53, %v2125_v7  ;;  %v2079_v37 = vrot.slane %v5648_v22, 5 }
 0x115   : > { %v5833_v43 = vpack.c.b16 %v2132_v61, %v2131_v18  ;;  %v2111_v17 = vsel %vm5735_vm7, %v2109_v60, %v2110_v1  ;;  %v2082_v54 = vrot.slane %v5694_v36, 5  ;;  %v3755_v38 = vrot.slane %v5664_v14, 9  ;;  %v595_v36 = vld [vmem:[%s4491_s19 + $0x5c] sm:$0x1]  ;;  %s3656_s19 = sshll.u32 %s533_s22, 2 }
 0x116   : > { %v2136_v62 = vunpack.c.l.b16 %v2111_v17  ;;  %v5843_v4 = vpack.c.b16 %v2134_v13, %v2133_v32  ;;  %v2081_v0 = vrot.slane %v2079_v37, 4  ;;  %v624_v22 = vunpack.c.h.bf16 %v594_v12  ;;  %v4038_v32 = vld [vmem:[%s6660_s5 + $0xc8] sm:$0xff]  ;;  %s6087_s26 = scalar_lea.vmem %s6657_s2, %s3656_s19 }
 0x117   : > { %3816 = vmatmul.msk.bf16.vlgmr.msrb.gmra.mxu3 %vm1834_vm12, %v6808_v58  ;;  %v2080_v49 = vsel %vm5735_vm7, %v3755_v38, %v2079_v37  ;;  %v623_v42 = vunpack.c.l.bf16 %v594_v12  ;;  %v6811_v58 = vld [vmem:[#allocation9_spill] sm:$0xff]  ;;  %v625_v57 = vunpack.c.l.bf16 %v595_v36  ;;  %v2086_v35 = vrot.slane %v6812_v45, 5  ;;  %v4042_v13 = vld [vmem:[%s6660_s5 + $0xe8] sm:$0xff]  ;;  %2651 = vmatpush.bf16.msra.mxu2 %v4038_v32  ;;  %v4049_v37 = vld [vmem:[%s6663_s8] sm:$0xff] }
 0x118   : > { %v5845_v50 = vpack.c.b16 %v2136_v62, %v2135_v31  ;;  %v2127_v34 = vunpack.c.l.b16 %v2080_v49  ;;  %v658_v21 = vmul.f32 %v6811_v58, %v624_v22  ;;  %v2089_v41 = vrot.slane %v6814_v19, 5  ;;  %3258 = vmatpush.bf16.msra.mxu1 %v4049_v37  ;;  %v6817_v22 = vld [vmem:[#allocation10_spill] sm:$0xff] }
 0x119   : > { %v657_v40 = vmul.f32 %v6811_v58, %v623_v42  ;;  %v659_v3 = vmul.f32 %v6811_v58, %v625_v57  ;;  %v2088_v63 = vrot.slane %v2086_v35, 4  ;;  %v3756_v15 = vrot.slane %v6815_v20, 9  ;;  %v4041_v37 = vld [vmem:[%s6660_s5 + $0xe0] sm:$0xff] }
 0x11a   : > { %v5882_v28 = vadd.f32 %v6813_v10, %v658_v21  ;;  %vm3226_vm6 = vcmask 261120  }
 0x11b   : > { %v5886_v23 = vadd.f32 %v6813_v10, %v657_v40  ;;  %v2090_v18 = vsel %vm5735_vm7, %v2088_v63, %v2089_v41  ;;  %v2087_v8 = vsel %vm5735_vm7, %v3756_v15, %v2086_v35  ;;  %v6818_v40 = vld [vmem:[#allocation13_spill] sm:$0xff] }
 0x11c   : > { %v3686_v39 = vmul.f32 -1.442695, %v5882_v28  ;;  %v2130_v61 = vunpack.c.l.b16 %v2090_v18  ;;  %v2129_v52 = vunpack.c.l.b16 %v2087_v8 }
 0x11d   : > { %v3685_v44 = vmul.f32 -1.442695, %v5886_v23 }
 0x11e   : > { %4290 = vpow2.f32 %v3686_v39  ;;  %v5904_v16 = vpack.c.b16 %v2130_v61, %v2129_v52 }
 0x11f   : > { %4292 = vpow2.f32 %v3685_v44 }
 0x121   : > { %3848 = vmatmul.msk.bf16.vlgmr.msrb.gmra.mxu0 %vm1834_vm12, %v5508_v29  ;;  %v4043_v29 = vld [vmem:[%s6660_s5 + $0xf0] sm:$0xff] }
 0x122   : > { %2778 = vmatpush.bf16.msra.mxu3 %v4043_v29  ;;  %v4046_v29 = vld [vmem:[%s6660_s5 + $0x108] sm:$0xff] }
 0x123   : > { %2891 = vmatpush.bf16.msra.mxu0 %v4046_v29  ;;  %v4037_v29 = vld [vmem:[%s6660_s5 + $0xc0] sm:$0xff] }
 0x124   : > { %3784 = vmatmul.msk.bf16.vlgmr.msrb.gmra.mxu2 %vm1834_vm12, %v2137_v5  ;;  %3882 = vmatmul.msk.bf16.gmra.mxu1 %vm1834_vm12, %v5841_v48  ;;  %v2083_v5 = vsel %vm5735_vm7, %v2081_v0, %v2082_v54  ;;  %v4291_v30 = vpop.eup %4290 }
 0x125   : > { %v2128_v25 = vunpack.c.l.b16 %v2083_v5  ;;  %v4293_v17 = vpop.eup %4292  ;;  %v812_v31 = vadd.f32 1.0, %v4291_v30  ;;  %2652 = vmatpush.bf16.msra.mxu2 %v4037_v29 }
 0x126   : > { %2779 = vmatpush.bf16.msra.mxu3 %v4042_v13  ;;  %v811_v54 = vadd.f32 1.0, %v4293_v17 }
 0x127   : > { %3817 = vmatmul.msk.bf16.gmra.mxu3 %vm1834_vm12, %v5652_v2  ;;  %v5873_v14 = vpack.c.b16 %v2128_v25, %v2127_v34  ;;  %v2005_v7 = vpop.f32.mrf.mxu1  ;;  %vm1197_vm11 = vweird.f32 %v812_v31  ;;  %v1201_v39 = vand.u32 2147483647, %v812_v31  ;;  %v1203_v44 = vand.u32 2147483648, %v812_v31 }
 0x128   : > { %vm1182_vm13 = vweird.f32 %v811_v54  ;;  %v1188_v8 = vand.u32 2147483648, %v811_v54  ;;  %v1186_v52 = vand.u32 2147483647, %v811_v54 }
 0x129   : > { %vm1202_vm2 = vcmp.eq.f32.partialorder %v1201_v39, 8.507059e+37  ;;  %v1494_v39 = vpop.permute.xlu0 %1493 }
 0x12a   : > { %vm1187_vm4 = vcmp.eq.f32.partialorder %v1186_v52, 8.507059e+37  ;;  %2780 = vmatpush.bf16.msra.mxu3 %v4041_v37 }
 0x12d   : > { %v2025_v59 = vpop.f32.mrf.mxu3 }
 0x12f   : > { %v5933_v25 = vpop.f32.mrf.mxu1 }
 0x131   : > { %3849 = vmatmul.msk.bf16.gmra.mxu0 %vm1834_vm12, %v5712_v33 }
 0x134   : > { %3785 = vmatmul.msk.bf16.gmra.mxu2 %vm1834_vm12, %v5801_v6  ;;  %3883 = vmatmul.msk.bf16.gmra.mxu1 %vm1834_vm12, %v5873_v14  ;;  %v5893_v6 = vadd.f32 %v6813_v10, %v659_v3 }
 0x135   : > { %v5944_v3 = vpop.f32.mrf.mxu3 }
 0x136   : > { %v3687_v1 = vmul.f32 -1.442695, %v5893_v6 }
 0x137   : > { %3818 = vmatmul.msk.bf16.gmra.mxu3 %vm1834_vm12, %v5724_v55 }
 0x138   : > { %4294 = vpow2.f32 %v3687_v1 }
 0x139   : > { %4296 = vrcp.f32 %v812_v31 }
 0x13a   : > { %4298 = vrcp.f32 %v811_v54 }
 0x13e   : > { %v4295_v62 = vpop.eup %4294 }
 0x13f   : > { %v1868_v53 = vpop.f32.mrf.mxu0  ;;  %v5926_v0 = vadd.f32 1.0, %v4295_v62  ;;  %v4297_v5 = vpop.eup %4296  ;;  %v1189_v62 = vor.u32 1.1754944e-38, %v1188_v8 }
 0x140   : > { %v5906_v60 = vadd.f32 %v2005_v7, %v1868_v53  ;;  %v4299_v49 = vpop.eup %4298  ;;  %v1193_v36 = vmul.f32 %v4297_v5, %v812_v31  ;;  %vm1198_vm14 = vweird.f32 %v4297_v5  ;;  %v1204_v7 = vor.u32 1.1754944e-38, %v1203_v44 }
 0x141   : > { %3850 = vmatmul.msk.bf16.gmra.mxu0 %vm1834_vm12, %v5795_v51  ;;  %4300 = vrcp.f32 %v5926_v0  ;;  %v1178_v58 = vmul.f32 %v4299_v49, %v811_v54  ;;  %vm1183_vm15 = vweird.f32 %v4299_v49  ;;  %vm5948_vm0 = vmor %vm1197_vm11, %vm1198_vm14  ;;  %vm1212_vm8 = vweird.f32 %v5926_v0 }
 0x142   : > { %v1194_v21 = vsub.f32 1.0, %v1193_v36  ;;  %v1218_v53 = vand.u32 2147483648, %v5926_v0  ;;  %vm5956_vm1 = vmor %vm1182_vm13, %vm1183_vm15  ;;  %v1216_v17 = vand.u32 2147483647, %v5926_v0 }
 0x143   : > { %v1179_v45 = vsub.f32 1.0, %v1178_v58 }
 0x144   : > { %3786 = vmatmul.msk.bf16.gmra.mxu2 %vm1834_vm12, %v5841_v48  ;;  %3884 = vmatmul.msk.bf16.gmra.mxu1 %vm1834_vm12, %v5904_v16  ;;  %v1195_v35 = vmul.f32 %v4297_v5, %v1194_v21  ;;  %vm1217_vm5 = vcmp.eq.f32.partialorder %v1216_v17, 8.507059e+37 }
 0x145   : > { %v1180_v63 = vmul.f32 %v4299_v49, %v1179_v45  ;;  %v2010_v19 = vpop.f32.mrf.mxu1  ;;  %v4045_v45 = vld [vmem:[%s6660_s5 + $0x100] sm:$0xff] }
 0x146   : > { %v1196_v15 = vadd.f32 %v4297_v5, %v1195_v35  ;;  %2892 = vmatpush.bf16.msra.mxu0 %v4045_v45 }
 0x147   : > { %3819 = vmatmul.msk.bf16.gmra.mxu3 %vm1834_vm12, %v6816_v9  ;;  %v5935_v42 = vpop.f32.mrf.mxu0  ;;  %v4301_v34 = vpop.eup %4300  ;;  %v1181_v61 = vadd.f32 %v4299_v49, %v1180_v63 }
 0x148   : > { %v1208_v57 = vmul.f32 %v4301_v34, %v5926_v0  ;;  %vm1213_vm10 = vweird.f32 %v4301_v34  ;;  %v1200_v32 = vsel %vm5948_vm0, %v4297_v5, %v1196_v15 }
 0x149   : > { %vm5963_vm3 = vmor %vm1212_vm8, %vm1213_vm10  ;;  %v1185_v54 = vsel %vm5956_vm1, %v4299_v49, %v1181_v61  ;;  %v1205_v0 = vsel %vm1202_vm2, %v1204_v7, %v1200_v32 }
 0x14a   : > { %v1888_v38 = vpop.f32.mrf.mxu2  ;;  %v1209_v10 = vsub.f32 1.0, %v1208_v57  ;;  %v1190_v58 = vsel %vm1187_vm4, %v1189_v62, %v1185_v54  ;;  %v1292_v21 = vmul.f32 %v1205_v0, %v5882_v28 }
 0x14b   : > { %v5928_v12 = vadd.f32 %v2025_v59, %v1888_v38  ;;  %v1219_v59 = vor.u32 1.1754944e-38, %v1218_v53  ;;  %v2030_v38 = vpop.f32.mrf.mxu3  ;;  %v1291_v35 = vmul.f32 %v1190_v58, %v5886_v23 }
 0x14c   : > { %v1210_v18 = vmul.f32 %v4301_v34, %v1209_v10  ;;  %v1488_v10 = vpop.permute.xlu2 %1487 }
 0x14d   : > { %v5983_v36 = vpop.f32.mrf.mxu1  ;;  %v1539_v63 = vmul.f32 %v1488_v10, %v1292_v21 }
 0x14e   : > { %v1211_v13 = vadd.f32 %v4301_v34, %v1210_v18 }
 0x14f   : > { %v1569_v15 = vpack.c.bf16 %v1539_v63, %v1539_v63 }
 0x150   : > { %v1215_v5 = vsel %vm5963_vm3, %v4301_v34, %v1211_v13  ;;  %v1482_v34 = vpop.permute.xlu1 %1481 }
 0x151   : > { %3851 = vmatmul.msk.bf16.gmra.mxu0 %vm1834_vm12, %v6817_v22  ;;  %v1220_v49 = vsel %vm1217_vm5, %v1219_v59, %v1215_v5  ;;  %v2374_v32 = vshll.u32 %v1569_v15, 16  ;;  %v2378_v13 = vshrl.u32 %v1569_v15, 16 }
 0x152   : > { %v5986_v57 = vpop.f32.mrf.mxu2 }
 0x153   : > { %v2032_v44 = vpop.f32.mrf.mxu3  ;;  %v2376_v5 = vrot.slane %v2374_v32, 5  ;;  %v2380_v58 = vrot.slane %v2378_v13, 4 }
 0x154   : > { %3787 = vmatmul.msk.bf16.gmra.mxu2 %vm1834_vm12, %v5873_v14  ;;  %3885 = vmatmul.msk.bf16.gmra.mxu1 %vm1834_vm12, %v5833_v43 }
 0x157   : > { %3820 = vmatmul.msk.bf16.gmra.mxu3 %vm1834_vm12, %v6818_v40 }
 0x15c   : > { %v1873_v41 = vpop.f32.mrf.mxu0 }
 0x15d   : > { %v5946_v20 = vadd.f32 %v2010_v19, %v1873_v41  ;;  %v1293_v19 = vmul.f32 %v1220_v49, %v5893_v6  ;;  %v1538_v41 = vmul.f32 %v1482_v34, %v1291_v35  ;;  %v2495_v6 = vrot.slane %v1569_v15, 5 }
 0x15f   : > { %v1540_v28 = vmul.f32 %v1494_v39, %v1293_v19  ;;  %v1568_v1 = vpack.c.bf16 %v1538_v41, %v1538_v41  ;;  %v2497_v62 = vrot.slane %v2495_v6, 4  ;;  %v2381_v39 = vor.u32 %v2380_v58, %v2376_v5 }
 0x161   : > { %3852 = vmatmul.msk.bf16.gmra.mxu0 %vm1834_vm12, %v5626_v11  ;;  %v1570_v52 = vpack.c.bf16 %v1540_v28, %v1540_v28  ;;  %v2365_v7 = vshrl.u32 %v1568_v1, 16  ;;  %v2368_v53 = vshll.u32 %v1568_v1, 16  ;;  %v3856_v30 = vrot.slane %v1568_v1, 9 }
 0x162   : > { %v2269_v41 = vunpack.c.l.b16 %v1568_v1 }
 0x163   : > { %v2498_v17 = vrot.slane %v1570_v52, 5  ;;  %v2367_v37 = vrot.slane %v2365_v7, 4  ;;  %v2370_v54 = vrot.slane %v2368_v53, 5  ;;  %v2496_v59 = vsel %vm5735_vm7, %v3856_v30, %v2495_v6 }
 0x164   : > { %3788 = vmatmul.msk.bf16.gmra.mxu2 %vm1834_vm12, %v5904_v16  ;;  %3886 = vmatmul.msk.bf16.gmra.mxu1 %vm1834_vm12, %v5843_v4  ;;  %v5999_v61 = vpop.f32.mrf.mxu0  ;;  %v2509_v45 = vunpack.c.l.b16 %v2496_v59  ;;  %v2384_v63 = vshll.u32 %v1570_v52, 16  ;;  %v2382_v52 = vrot.slane %v2381_v39, 4 }
 0x165   : > { %v2499_v21 = vsel %vm5735_vm7, %v2497_v62, %v2498_v17  ;;  %v2371_v10 = vor.u32 %v2370_v54, %v2367_v37  ;;  %v2970_v37 = vld [vmem:[%s6033_s21] sm:$0xf]  ;;  %v2971_v54 = vld [vmem:[%s6033_s21 + $0x4] sm:$0xf] }
 0x166   : > { %v2510_v34 = vunpack.c.l.b16 %v2499_v21  ;;  %v2995_v59 = vshrl.u32 %v2970_v37, 16  ;;  %v2998_v58 = vshll.u32 %v2970_v37, 16  ;;  %v3004_v21 = vshll.u32 %v2971_v54, 16 }
 0x167   : > { %3821 = vmatmul.msk.bf16.gmra.mxu3 %vm1834_vm12, %v5666_v46  ;;  %v2372_v6 = vrot.slane %v2371_v10, 4 }
 0x168   : > { %v6016_v28 = vpack.c.b16 %v2510_v34, %v2509_v45  ;;  %v2997_v45 = vrot.slane %v2995_v59, 4  ;;  %v3000_v10 = vrot.slane %v2998_v58, 5  ;;  %v3006_v34 = vrot.slane %v3004_v21, 5 }
 0x169   : > { %v2377_v30 = vsel %vm5244_vm9, %v2372_v6, %v2376_v5  ;;  %v3008_v5 = vshrl.u32 %v2971_v54, 16 }
 0x16a   : > { %6826 = vst [vmem:[#allocation8_spill] sm:$0xff] %v6016_v28 }
 0x171   : > { %3853 = vmatmul.msk.bf16.gmra.mxu0 %vm1834_vm12, %v5722_v24  ;;  %v2015_v18 = vpop.f32.mrf.mxu1 }
 0x172   : > { %v1893_v8 = vpop.f32.mrf.mxu2 }
 0x173   : > { %v5997_v23 = vadd.f32 %v2030_v38, %v1893_v8  ;;  %v2270_v8 = vunpack.c.l.b16 %v1569_v15 }
 0x174   : > { %3789 = vmatmul.msk.bf16.gmra.mxu2 %vm1834_vm12, %v5833_v43  ;;  %3887 = vmatmul.msk.bf16.gmra.mxu1 %vm1834_vm12, %v5845_v50 }
 0x175   : > { %v6026_v1 = vpack.c.b16 %v2270_v8, %v2269_v41 }
 0x177   : > { %3822 = vmatmul.msk.bf16.gmra.mxu3 %vm1834_vm12, %v5739_v47  ;;  %6828 = vst [vmem:[#allocation3_spill] sm:$0xff] %v6026_v1 }
 0x179   : > { %v2017_v31 = vpop.f32.mrf.mxu1 }
 0x17a   : > { %v2035_v29 = vpop.f32.mrf.mxu3  ;;  %v1895_v0 = vpop.f32.mrf.mxu2 }
 0x17b   : > { %v6007_v38 = vadd.f32 %v2032_v44, %v1895_v0  ;;  %v2972_v0 = vld [vmem:[%s6033_s21 + $0x8] sm:$0x1] }
 0x17d   : > { %6825 = vst [vmem:[#allocation12_spill] sm:$0xff] %v6007_v38 }
 0x17e   : > { %v1878_v49 = vpop.f32.mrf.mxu0 }
 0x17f   : > { %v6011_v35 = vadd.f32 %v2015_v18, %v1878_v49  ;;  %v2386_v18 = vrot.slane %v2384_v63, 5  ;;  %v3014_v49 = vshll.u32 %v2972_v0, 16  ;;  %v3010_v63 = vrot.slane %v3008_v5, 4 }
 0x181   : > { %3854 = vmatmul.msk.bf16.gmra.mxu0 %vm1834_vm12, %v5799_v27  ;;  %v2020_v19 = vpop.f32.mrf.mxu1  ;;  %v2387_v17 = vsel %vm5244_vm9, %v2382_v52, %v2386_v18  ;;  %v3001_v18 = vor.u32 %v3000_v10, %v2997_v45  ;;  %v3011_v52 = vor.u32 %v3010_v63, %v3006_v34  ;;  %v2973_v10 = vld [vmem:[%s6033_s21 + $0xc] sm:$0xf]  ;;  %v2975_v63 = vld [vmem:[%s6033_s21 + $0x14] sm:$0x1] }
 0x182   : > { %v2037_v44 = vpop.f32.mrf.mxu3 }
 0x183   : > { %v3012_v37 = vrot.slane %v3011_v52, 4 }
 0x184   : > { %3790 = vmatmul.msk.bf16.gmra.mxu2 %vm1834_vm12, %v5843_v4  ;;  %3888 = vmatmul.msk.bf16.gmra.mxu1 %vm1834_vm12, %v6016_v28 }
 0x186   : > { %v1880_v7 = vpop.f32.mrf.mxu0 }
 0x187   : > { %v1898_v15 = vpop.f32.mrf.mxu2  ;;  %v6035_v53 = vadd.f32 %v2017_v31, %v1880_v7  ;;  %3823 = vmatmul.msk.bf16.gmra.mxu3 %vm1834_vm12, %v6026_v1  ;;  %v2397_v31 = vunpack.c.l.b16 %v2377_v30  ;;  %v3016_v7 = vrot.slane %v3014_v49, 5 }
 0x188   : > { %v6041_v32 = vadd.f32 %v2035_v29, %v1898_v15  ;;  %v2398_v29 = vunpack.c.l.b16 %v2387_v17  ;;  %v3002_v17 = vrot.slane %v3001_v18, 4 }
 0x189   : > { %v2022_v13 = vpop.f32.mrf.mxu1 }
 0x18a   : > { %6829 = vst [vmem:[#allocation9_spill] sm:$0xff] %v6041_v32  ;;  %v2040_v62 = vpop.f32.mrf.mxu3  ;;  %v6055_v39 = vpack.c.b16 %v2398_v29, %v2397_v31  ;;  %v3007_v31 = vsel %vm5244_vm9, %v3002_v17, %v3006_v34  ;;  %v2974_v34 = vld [vmem:[%s6033_s21 + $0x10] sm:$0xf] }
 0x18b   : > { %v3028_v18 = vshll.u32 %v2974_v34, 16  ;;  %v3032_v52 = vshrl.u32 %v2974_v34, 16 }
 0x18d   : > { %v3034_v17 = vrot.slane %v3032_v52, 4  ;;  %v4316_v52 = vld [vmem:[%s4457_s20] ss:$0 sm:$0xff] }
 0x18e   : > { %v1883_v41 = vpop.f32.mrf.mxu0 }
 0x18f   : > { %v1900_v8 = vpop.f32.mrf.mxu2  ;;  %v6057_v6 = vadd.f32 %v2020_v19, %v1883_v41  ;;  %v3017_v19 = vsel %vm5244_vm9, %v3012_v37, %v3016_v7  ;;  %v3019_v41 = vshrl.u32 %v2973_v10, 16  ;;  %v3030_v7 = vrot.slane %v3028_v18, 5 }
 0x190   : > { %v6059_v15 = vadd.f32 %v2037_v44, %v1900_v8  ;;  %v3190_v44 = vunpack.c.l.b16 %v3007_v31  ;;  %v3191_v0 = vunpack.c.l.b16 %v3017_v19  ;;  %v3022_v8 = vshll.u32 %v2973_v10, 16  ;;  %v4072_v31 = vld [vmem:[%s6087_s26] sm:$0xff]  }
 0x191   : > { %3855 = vmatmul.msk.bf16.gmra.mxu0 %vm1834_vm12, %v6055_v39  ;;  %v6063_v30 = vpop.f32.mrf.mxu1 }
 0x192   : > { %6830 = vst [vmem:[#allocation5_spill] sm:$0xff] %v6059_v15  ;;  %v2042_v54 = vpop.f32.mrf.mxu3  ;;  %v3206_v58 = vpack.c.b16 %v3191_v0, %v3190_v44  ;;  %v3035_v0 = vor.u32 %v3034_v17, %v3030_v7 }
 0x194   : > { %3791 = vmatmul.msk.bf16.gmra.mxu2 %vm1834_vm12, %v5845_v50  ;;  %3994 = vmatmul.msk.bf16.vlgmr.msra.gmra.mxu1 %vm3226_vm6, %v3206_v58  ;;  %v4073_v58 = vunpack.c.l.bf16 %v4072_v31 }
 0x196   : > { %v1885_v59 = vpop.f32.mrf.mxu0 }
 0x197   : > { %v1903_v21 = vpop.f32.mrf.mxu2  ;;  %v6072_v5 = vadd.f32 %v2022_v13, %v1885_v59  ;;  %3945 = vmatmul.msk.bf16.vlgmr.msra.gmra.mxu3 %vm1834_vm12, %v5712_v33  ;;  %v3038_v33 = vshll.u32 %v2975_v63, 16  ;;  %v3021_v13 = vrot.slane %v3019_v41, 4  ;;  %v3036_v63 = vrot.slane %v3035_v0, 4 }
 0x198   : > { %v6076_v29 = vadd.f32 %v2040_v62, %v1903_v21  ;;  %v3024_v62 = vrot.slane %v3022_v8, 5 }
 0x199   : > { %v6079_v49 = vpop.f32.mrf.mxu1  ;;  %v3040_v59 = vrot.slane %v3038_v33, 5  ;;  %v660_v33 = vmul.f32 %v4316_v52, %v4073_v58 }
 0x19a   : > { %6831 = vst [vmem:[#allocation11_spill] sm:$0xff] %v6076_v29  ;;  %v2308_v45 = vpop.f32.mrf.mxu3  ;;  %v3025_v44 = vor.u32 %v3024_v62, %v3021_v13 }
 0x19b   : > { %v3041_v18 = vsel %vm5244_vm9, %v3036_v63, %v3040_v59  ;;  %v2976_v63 = vld [vmem:[%s6033_s21 + $0x18] sm:$0xf] }
 0x19c   : > { %v3026_v34 = vrot.slane %v3025_v44, 4 }
 0x19e   : > { %v6089_v37 = vpop.f32.mrf.mxu0  ;;  %v3031_v8 = vsel %vm5244_vm9, %v3026_v34, %v3030_v7  ;;  %v4074_v7 = vunpack.c.h.bf16 %v4072_v31 }
 0x19f   : > { %v1905_v19 = vpop.f32.mrf.mxu2 }
 0x1a0   : > { %v6092_v21 = vadd.f32 %v2042_v54, %v1905_v19  ;;  %v3193_v54 = vunpack.c.l.b16 %v3041_v18  ;;  %v4317_v19 = vld [vmem:[%s4463_s23] ss:$0 sm:$0xff]  ;;  %s3660_s23 = sshll.u32 %s4481_s27, 3 }
 0x1a1   : > { %3978 = vmatmul.msk.bf16.vlgmr.msra.gmra.mxu0 %vm1834_vm12, %v5841_v48  ;;  %v6096_v10 = vpop.f32.mrf.mxu1  ;;  %v3192_v48 = vunpack.c.l.b16 %v3031_v8  ;;  %v6110_v44 = vadd.f32 %v4317_v19, %v660_v33  ;;  %v2977_v8 = vld [vmem:[%s6033_s21 + $0x1c] sm:$0xf]  ;;  %v2978_v18 = vld [vmem:[%s6033_s21 + $0x20] sm:$0x1]  ;;  %s6510_s10 = scalar_lea.vmem %s6664_s9, %s3660_s23 }
 0x1a2   : > { %6832 = vst [vmem:[#allocation7_spill] sm:$0xff] %v6092_v21  ;;  %v2310_v41 = vpop.f32.mrf.mxu3  ;;  %v3056_v31 = vshrl.u32 %v2977_v8, 16  ;;  %v661_v21 = vmul.f32 %v4316_v52, %v4074_v7 }
 0x1a3   : > { %v3207_v62 = vpack.c.b16 %v3193_v54, %v3192_v48  ;;  %v3043_v48 = vshrl.u32 %v2976_v63, 16  ;;  %v3046_v54 = vshll.u32 %v2976_v63, 16  ;;  %v3688_v29 = vmul.f32 -1.442695, %v6110_v44 }
 0x1a4   : > { %3913 = vmatmul.msk.bf16.vlgmr.msra.gmra.mxu2 %vm1834_vm12, %v5652_v2  ;;  %v598_v2 = vld [vmem:[%s6087_s26 + $0x8] sm:$0x1]  ;;  %v3058_v26 = vrot.slane %v3056_v31, 4  ;;  %v6127_v38 = vadd.f32 %v4317_v19, %v661_v21 }
 0x1a5   : > { %3995 = vmatmul.msk.bf16.gmra.mxu1 %vm3226_vm6, %v3207_v62  ;;  %v628_v33 = vunpack.c.l.bf16 %v598_v2  ;;  %v3048_v62 = vrot.slane %v3046_v54, 5  ;;  %4302 = vpow2.f32 %v3688_v29 }
 0x1a6   : > { %v6105_v13 = vpop.f32.mrf.mxu0  ;;  %v3689_v21 = vmul.f32 -1.442695, %v6127_v38 }
 0x1a7   : > { %v2202_v17 = vpop.f32.mrf.mxu2  ;;  %3946 = vmatmul.msk.bf16.gmra.mxu3 %vm1834_vm12, %v5795_v51  ;;  %v3052_v51 = vshll.u32 %v2977_v8, 16  ;;  %v662_v7 = vmul.f32 %v4316_v52, %v628_v33 }
 0x1a8   : > { %v2242_v0 = vadd.f32 %v2202_v17, %v5906_v60  ;;  %v3062_v60 = vshll.u32 %v2978_v18, 16  ;;  %v3045_v17 = vrot.slane %v3043_v48, 4  ;;  %4304 = vpow2.f32 %v3689_v21 }
 0x1a9   : > { %v6115_v59 = vpop.f32.mrf.mxu1  ;;  %v3054_v15 = vrot.slane %v3052_v51, 5  ;;  %v6140_v29 = vadd.f32 %v4317_v19, %v662_v7  ;;  %v2013_v21 = vadd.f32 %v5983_v36, %v5999_v61 }
 0x1aa   : > { %v6117_v58 = vadd.f32 %v2308_v45, %v2242_v0  ;;  %v2313_v34 = vpop.f32.mrf.mxu3  ;;  %v2008_v45 = vadd.f32 %v5933_v25, %v5935_v42  ;;  %v3049_v1 = vor.u32 %v3048_v62, %v3045_v17  ;;  %v3064_v63 = vrot.slane %v3062_v60, 5  ;;  %v2979_v60 = vld [vmem:[%s6033_s21 + $0x24] sm:$0xf]  ;;  %v2980_v17 = vld [vmem:[%s6033_s21 + $0x28] sm:$0xf] }
 0x1ab   : > { %v3059_v28 = vor.u32 %v3058_v26, %v3054_v15  ;;  %v3690_v52 = vmul.f32 -1.442695, %v6140_v29  ;;  %v2981_v62 = vld [vmem:[%s6033_s21 + $0x2c] sm:$0x1]  ;;  %v3080_v7 = vshrl.u32 %v2980_v17, 16 }
 0x1ac   : > { %v3050_v18 = vrot.slane %v3049_v1, 4  ;;  %v4303_v1 = vpop.eup %4302 }
 0x1ad   : > { %v3060_v48 = vrot.slane %v3059_v28, 4  ;;  %4306 = vpow2.f32 %v3690_v52 }
 0x1ae   : > { %v6125_v0 = vpop.f32.mrf.mxu0  ;;  %v3055_v42 = vsel %vm5244_vm9, %v3050_v18, %v3054_v15 }
 0x1af   : > { %v2204_v32 = vpop.f32.mrf.mxu2  ;;  %v3065_v26 = vsel %vm5244_vm9, %v3060_v48, %v3064_v63  ;;  %v3070_v63 = vshll.u32 %v2979_v60, 16 }
 0x1b0   : > { %v2243_v2 = vadd.f32 %v2204_v32, %v2008_v45  ;;  %v3195_v28 = vunpack.c.l.b16 %v3065_v26  ;;  %v3067_v45 = vshrl.u32 %v2979_v60, 16  ;;  %v4305_v26 = vpop.eup %4304 }
 0x1b1   : > { %3979 = vmatmul.msk.bf16.gmra.mxu0 %vm1834_vm12, %v5873_v14  ;;  %v6131_v8 = vpop.f32.mrf.mxu1  ;;  %v3194_v14 = vunpack.c.l.b16 %v3055_v42  ;;  %v3082_v42 = vrot.slane %v3080_v7, 4 }
 0x1b2   : > { %v6133_v54 = vadd.f32 %v2310_v41, %v2243_v2  ;;  %v2315_v25 = vpop.f32.mrf.mxu3  ;;  %v3086_v2 = vshll.u32 %v2981_v62, 16  ;;  %v3069_v18 = vrot.slane %v3067_v45, 4 }
 0x1b3   : > { %v3208_v41 = vpack.c.b16 %v3195_v28, %v3194_v14  ;;  %v4307_v62 = vpop.eup %4306 }
 0x1b4   : > { %3914 = vmatmul.msk.bf16.gmra.mxu2 %vm1834_vm12, %v5724_v55  ;;  %v6151_v55 = vadd.f32 1.0, %v4303_v1 }
 0x1b5   : > { %3996 = vmatmul.msk.bf16.gmra.mxu1 %vm3226_vm6, %v3208_v41  ;;  %v3088_v41 = vrot.slane %v3086_v2, 5 }
 0x1b6   : > { %v6144_v32 = vpop.f32.mrf.mxu0  ;;  %4308 = vrcp.f32 %v6151_v55  ;;  %vm1227_vm11 = vweird.f32 %v6151_v55 }
 0x1b7   : > { %v2207_v15 = vpop.f32.mrf.mxu2  ;;  %3947 = vmatmul.msk.bf16.gmra.mxu3 %vm1834_vm12, %v6817_v22  ;;  %v3076_v22 = vshll.u32 %v2980_v17, 16 }
 0x1b8   : > { %v2244_v19 = vadd.f32 %v2207_v15, %v5946_v20  ;;  %v3072_v20 = vrot.slane %v3070_v63, 5 }
 0x1b9   : > { %v6153_v51 = vpop.f32.mrf.mxu1  ;;  %v3078_v48 = vrot.slane %v3076_v22, 5 }
 0x1ba   : > { %6833 = vst [vmem:[#allocation4_spill] sm:$0xff] %v6153_v51  ;;  %v6155_v31 = vadd.f32 %v2313_v34, %v2244_v19  ;;  %v2318_v33 = vpop.f32.mrf.mxu3  ;;  %v3073_v28 = vor.u32 %v3072_v20, %v3069_v18  ;;  %v6165_v19 = vadd.f32 1.0, %v4305_v26 }
 0x1bb   : > { %v3083_v1 = vor.u32 %v3082_v42, %v3078_v48 }
 0x1bc   : > { %v3074_v60 = vrot.slane %v3073_v28, 4  ;;  %v6179_v7 = vpop.eup %4308  ;;  %4310 = vrcp.f32 %v6165_v19  ;;  %v2983_v28 = vld [vmem:[%s6033_s21 + $0x34] sm:$0xf]  ;;  %vm1242_vm15 = vweird.f32 %v6165_v19 }
 0x1bd   : > { %v3084_v17 = vrot.slane %v3083_v1, 4  ;;  %v2984_v1 = vld [vmem:[%s6033_s21 + $0x38] sm:$0x1]  ;;  %vm1228_vm14 = vweird.f32 %v6179_v7 }
 0x1be   : > { %v6162_v34 = vpop.f32.mrf.mxu0  ;;  %v3079_v45 = vsel %vm5244_vm9, %v3074_v60, %v3078_v48  ;;  %v3100_v60 = vshll.u32 %v2983_v28, 16  ;;  %vm6240_vm13 = vmor %vm1227_vm11, %vm1228_vm14 }
 0x1bf   : > { %v2209_v14 = vpop.f32.mrf.mxu2  ;;  %v3089_v63 = vsel %vm5244_vm9, %v3084_v17, %v3088_v41  ;;  %v3196_v22 = vunpack.c.l.b16 %v3079_v45  ;;  %v3104_v17 = vshrl.u32 %v2983_v28, 16 }
 0x1c0   : > { %v2245_v15 = vadd.f32 %v2209_v14, %v2013_v21  ;;  %v2982_v14 = vld [vmem:[%s6033_s21 + $0x30] sm:$0xf] }
 0x1c1   : > { %3980 = vmatmul.msk.bf16.gmra.mxu0 %vm1834_vm12, %v5904_v16  ;;  %v6169_v52 = vpop.f32.mrf.mxu1  ;;  %v3197_v16 = vunpack.c.l.b16 %v3089_v63 }
 0x1c2   : > { %6834 = vst [vmem:[#allocation6_spill] sm:$0xff] %v6169_v52  ;;  %v6171_v36 = vadd.f32 %v2315_v25, %v2245_v15  ;;  %v2320_v61 = vpop.f32.mrf.mxu3  ;;  %v6182_v25 = vadd.f32 1.0, %v4307_v62  ;;  %v6202_v41 = vpop.eup %4310  ;;  %v3094_v15 = vshll.u32 %v2982_v14, 16  ;;  %v3110_v62 = vshll.u32 %v2984_v1, 16 }
 0x1c3   : > { %v3209_v18 = vpack.c.b16 %v3197_v16, %v3196_v22  ;;  %v3102_v22 = vrot.slane %v3100_v60, 5  ;;  %v3106_v16 = vrot.slane %v3104_v17, 4  ;;  %vm1243_vm0 = vweird.f32 %v6202_v41 }
 0x1c4   : > { %3915 = vmatmul.msk.bf16.gmra.mxu2 %vm1834_vm12, %v6816_v9  ;;  %v1223_v9 = vmul.f32 %v6179_v7, %v6151_v55  ;;  %4312 = vrcp.f32 %v6182_v25  ;;  %v3096_v63 = vrot.slane %v3094_v15, 5  ;;  %v3112_v51 = vrot.slane %v3110_v62, 5  ;;  %vm6281_vm2 = vmor %vm1242_vm15, %vm1243_vm0 }
 0x1c5   : > { %3997 = vmatmul.msk.bf16.gmra.mxu1 %vm3226_vm6, %v3209_v18  ;;  %v3107_v52 = vor.u32 %v3106_v16, %v3102_v22  ;;  %v1246_v62 = vand.u32 2147483647, %v6165_v19  ;;  %vm1257_vm1 = vweird.f32 %v6182_v25 }
 0x1c6   : > { %v6184_v2 = vpop.f32.mrf.mxu0 }
 0x1c7   : > { %v2212_v20 = vpop.f32.mrf.mxu2  ;;  %3948 = vmatmul.msk.bf16.gmra.mxu3 %vm1834_vm12, %v5626_v11  ;;  %v3091_v11 = vshrl.u32 %v2982_v14, 16  ;;  %vm6255_vm8 = vcmp.eq.f32.partialorder %v1246_v62, 8.507059e+37 }
 0x1c8   : > { %v2246_v48 = vadd.f32 %v2212_v20, %v6011_v35  ;;  %v1224_v35 = vsub.f32 1.0, %v1223_v9 }
 0x1c9   : > { %v6193_v42 = vpop.f32.mrf.mxu1  ;;  %v3093_v45 = vrot.slane %v3091_v11, 4  ;;  %v3108_v11 = vrot.slane %v3107_v52, 4  ;;  %v1233_v52 = vand.u32 2147483648, %v6151_v55 }
 0x1ca   : > { %6835 = vst [vmem:[#allocation10_spill] sm:$0xff] %v6193_v42  ;;  %v6195_v26 = vadd.f32 %v2318_v33, %v2246_v48  ;;  %v6197_v21 = vpop.f32.mrf.mxu3  ;;  %v1238_v33 = vmul.f32 %v6202_v41, %v6165_v19  ;;  %v6208_v20 = vpop.eup %4312  ;;  %v1225_v9 = vmul.f32 %v6179_v7, %v1224_v35  ;;  %v2476_v35 = vadd.f32 %v6089_v37, %v6117_v58 }
 0x1cb   : > { %v3097_v42 = vor.u32 %v3096_v63, %v3093_v45  ;;  %v1253_v60 = vmul.f32 %v6208_v20, %v6182_v25  ;;  %v1248_v63 = vand.u32 2147483648, %v6165_v19  ;;  %vm1258_vm3 = vweird.f32 %v6208_v20 }
 0x1cc   : > { %v1239_v15 = vsub.f32 1.0, %v1238_v33  ;;  %v1226_v16 = vadd.f32 %v6179_v7, %v1225_v9  ;;  %v6247_v58 = vadd.f32 %v6063_v30, %v2476_v35  ;;  %vm6305_vm4 = vmor %vm1257_vm1, %vm1258_vm3 }
 0x1cd   : > { %v3098_v1 = vrot.slane %v3097_v42, 4  ;;  %v1254_v33 = vsub.f32 1.0, %v1253_v60  ;;  %v1249_v30 = vor.u32 1.1754944e-38, %v1248_v63 }
 0x1ce   : > { %v6206_v18 = vpop.f32.mrf.mxu0 }
 0x1cf   : > { %v2214_v48 = vpop.f32.mrf.mxu2 }
 0x1d0   : > { %v2247_v14 = vadd.f32 %v2214_v48, %v6035_v53  ;;  %v3103_v53 = vsel %vm5244_vm9, %v3098_v1, %v3102_v22  ;;  %v1231_v22 = vand.u32 2147483647, %v6151_v55  ;;  %v1234_v55 = vor.u32 1.1754944e-38, %v1233_v52  ;;  %v2985_v52 = vld [vmem:[%s6033_s21 + $0x3c] sm:$0xf] }
 0x1d1   : > { %3981 = vmatmul.msk.bf16.gmra.mxu0 %vm1834_vm12, %v5833_v43  ;;  %v6214_v28 = vpop.f32.mrf.mxu1  ;;  %v3113_v43 = vsel %vm5244_vm9, %v3108_v11, %v3112_v51  ;;  %v3198_v42 = vunpack.c.l.b16 %v3103_v53  ;;  %v1240_v51 = vmul.f32 %v6202_v41, %v1239_v15  ;;  %v3115_v35 = vshrl.u32 %v2985_v52, 16 }
 0x1d2   : > { %v6218_v17 = vadd.f32 %v2320_v61, %v2247_v14  ;;  %v6220_v45 = vpop.f32.mrf.mxu3  ;;  %v3199_v61 = vunpack.c.l.b16 %v3113_v43  ;;  %vm6262_vm10 = vcmp.eq.f32.partialorder %v1231_v22, 8.507059e+37  ;;  %v3118_v62 = vshll.u32 %v2985_v52, 16 }
 0x1d3   : > { %v1241_v60 = vadd.f32 %v6202_v41, %v1240_v51  ;;  %v2477_v51 = vadd.f32 %v6105_v13, %v6133_v54  ;;  %v1263_v52 = vand.u32 2147483648, %v6182_v25 }
 0x1d4   : > { %3916 = vmatmul.msk.bf16.gmra.mxu2 %vm1834_vm12, %v6818_v40  ;;  %v3210_v37 = vpack.c.b16 %v3199_v61, %v3198_v42  ;;  %v2986_v42 = vld [vmem:[%s6033_s21 + $0x40] sm:$0xf]  ;;  %v2987_v61 = vld [vmem:[%s6033_s21 + $0x44] sm:$0x1]  ;;  %v3120_v40 = vrot.slane %v3118_v62, 5 }
 0x1d5   : > { %v3124_v63 = vshll.u32 %v2986_v42, 16  ;;  %v3134_v22 = vshll.u32 %v2987_v61, 16 }
 0x1d6   : > { %v6244_v48 = vpop.f32.mrf.mxu0  ;;  %3998 = vmatmul.msk.bf16.gmra.mxu1 %vm3226_vm6, %v3210_v37 }
 0x1d7   : > { %v2217_v14 = vpop.f32.mrf.mxu2  ;;  %3949 = vmatmul.msk.bf16.gmra.mxu3 %vm1834_vm12, %v5722_v24  ;;  %v1230_v24 = vsel %vm6240_vm13, %v6179_v7, %v1226_v16  ;;  %v3128_v16 = vshrl.u32 %v2986_v42, 16  ;;  %v3126_v19 = vrot.slane %v3124_v63, 5  ;;  %v3136_v61 = vrot.slane %v3134_v22, 5 }
 0x1d8   : > { %v2248_v9 = vadd.f32 %v2217_v14, %v6057_v6  ;;  %v1255_v6 = vmul.f32 %v6208_v20, %v1254_v33  ;;  %v3117_v33 = vrot.slane %v3115_v35, 4  ;;  %v1245_v14 = vsel %vm6281_vm2, %v6202_v41, %v1241_v60 }
 0x1d9   : > { %v6266_v15 = vpop.f32.mrf.mxu1  ;;  %v3130_v37 = vrot.slane %v3128_v16, 4  ;;  %v1250_v63 = vsel %vm6255_vm8, %v1249_v30, %v1245_v14 }
 0x1da   : > { %v6272_v53 = vadd.f32 %v6197_v21, %v2248_v9  ;;  %v2328_v43 = vpop.f32.mrf.mxu3  ;;  %v1235_v21 = vsel %vm6262_vm10, %v1234_v55, %v1230_v24  ;;  %v1261_v9 = vand.u32 2147483647, %v6182_v25  ;;  %v6298_v55 = vadd.f32 %v6079_v49, %v2477_v51  ;;  %v1501_v49 = vpop.permute.xlu1 %1500 }
 0x1db   : > { %v1256_v24 = vadd.f32 %v6208_v20, %v1255_v6  ;;  %v3121_v54 = vor.u32 %v3120_v40, %v3117_v33  ;;  %v3131_v11 = vor.u32 %v3130_v37, %v3126_v19  ;;  %v1294_v60 = vmul.f32 %v1235_v21, %v6110_v44  ;;  %v1507_v37 = vpop.permute.xlu2 %1506 }
 0x1dc   : > { %vm6317_vm5 = vcmp.eq.f32.partialorder %v1261_v9, 8.507059e+37  ;;  %v1295_v33 = vmul.f32 %v1250_v63, %v6127_v38 }
 0x1dd   : > { %v3122_v35 = vrot.slane %v3121_v54, 4  ;;  %v3132_v62 = vrot.slane %v3131_v11, 4  ;;  %v1541_v30 = vmul.f32 %v1501_v49, %v1294_v60  ;;  %v2989_v54 = vld [vmem:[%s6033_s21 + $0x4c] sm:$0xf]  ;;  %v2990_v11 = vld [vmem:[%s6033_s21 + $0x50] sm:$0x1] }
 0x1de   : > { %v6295_v42 = vpop.f32.mrf.mxu0  ;;  %v1542_v9 = vmul.f32 %v1507_v37, %v1295_v33  ;;  %v3152_v60 = vshrl.u32 %v2989_v54, 16  ;;  %v3158_v49 = vshll.u32 %v2990_v11, 16  ;;  %v2480_v11 = vadd.f32 %v6162_v34, %v6195_v26 }
 0x1df   : > { %v2219_v13 = vpop.f32.mrf.mxu2  ;;  %v3127_v21 = vsel %vm5244_vm9, %v3122_v35, %v3126_v19  ;;  %v3137_v1 = vsel %vm5244_vm9, %v3132_v62, %v3136_v61  ;;  %v2479_v35 = vadd.f32 %v6144_v32, %v6171_v36  ;;  %v1513_v62 = vpop.permute.xlu0 %1512 }
 0x1e0   : > { %v2249_v7 = vadd.f32 %v2219_v13, %v6072_v5  ;;  %v1260_v5 = vsel %vm6305_vm4, %v6208_v20, %v1256_v24  ;;  %v3200_v22 = vunpack.c.l.b16 %v3127_v21  ;;  %v3201_v51 = vunpack.c.l.b16 %v3137_v1  ;;  %v2988_v13 = vld [vmem:[%s6033_s21 + $0x48] sm:$0xf] }
 0x1e1   : > { %3982 = vmatmul.msk.bf16.gmra.mxu0 %vm1834_vm12, %v5843_v4  ;;  %v6313_v6 = vpop.f32.mrf.mxu1  ;;  %v1264_v4 = vor.u32 1.1754944e-38, %v1263_v52  ;;  %v3139_v61 = vshrl.u32 %v2988_v13, 16  ;;  %v3142_v41 = vshll.u32 %v2988_v13, 16  ;;  %v3154_v25 = vrot.slane %v3152_v60, 4 }
 0x1e2   : > { %v6322_v16 = vadd.f32 %v6220_v45, %v2249_v7  ;;  %v2330_v44 = vpop.f32.mrf.mxu3  ;;  %v2478_v45 = vadd.f32 %v6125_v0, %v6155_v31  ;;  %v3211_v40 = vpack.c.b16 %v3201_v51, %v3200_v22  ;;  %v6345_v0 = vpack.c.bf16 %v1541_v30, %v1541_v30 }
 0x1e3   : > { %v6368_v1 = vadd.f32 %v6115_v59, %v2479_v35 }
 0x1e4   : > { %3917 = vmatmul.msk.bf16.gmra.mxu2 %vm1834_vm12, %v5666_v46  ;;  %v6339_v19 = vadd.f32 %v6096_v10, %v2478_v45  ;;  %v1265_v46 = vsel %vm6317_vm5, %v1264_v4, %v1260_v5  ;;  %v2711_v7 = vshrl.u32 %v6345_v0, 16  ;;  %v6361_v5 = vpack.c.bf16 %v1542_v9, %v1542_v9 }
 0x1e5   : > { %v1296_v10 = vmul.f32 %v1265_v46, %v6140_v29  ;;  %v3141_v29 = vrot.slane %v3139_v61, 4  ;;  %v2028_v4 = vadd.f32 %v5944_v3, %v5986_v57  ;;  %v3160_v45 = vrot.slane %v3158_v49, 5 }
 0x1e6   : > { %v6336_v20 = vpop.f32.mrf.mxu0  ;;  %3999 = vmatmul.msk.bf16.gmra.mxu1 %vm3226_vm6, %v3211_v40  ;;  %v2713_v33 = vrot.slane %v2711_v7, 4  ;;  %v2720_v57 = vshll.u32 %v6361_v5, 16  ;;  %v2724_v59 = vshrl.u32 %v6361_v5, 16  ;;  %v6391_v7 = vadd.f32 %v6131_v8, %v2480_v11  ;;  %v2992_v8 = vld [vmem:[%s6033_s21 + $0x58] sm:$0xf]  ;;  %v6850_v11 = vld [vmem:[#allocation8_spill] sm:$0xff] }
 0x1e7   : > { %v2222_v14 = vpop.f32.mrf.mxu2  ;;  %3950 = vmatmul.msk.bf16.gmra.mxu3 %vm1834_vm12, %v5799_v27  ;;  %v3148_v27 = vshll.u32 %v2989_v54, 16  ;;  %v1543_v32 = vmul.f32 %v1513_v62, %v1296_v10 }
 0x1e8   : > { %v2250_v38 = vadd.f32 %v2222_v14, %v5928_v12  ;;  %v2714_v12 = vshll.u32 %v6345_v0, 16 }
 0x1e9   : > { %v6349_v31 = vpop.f32.mrf.mxu1  ;;  %v3150_v63 = vrot.slane %v3148_v27, 5  ;;  %v6382_v13 = vpack.c.bf16 %v1543_v32, %v1543_v32 }
 0x1ea   : > { %v6352_v52 = vadd.f32 %v2328_v43, %v2250_v38  ;;  %v2333_v24 = vpop.f32.mrf.mxu3  ;;  %v3144_v43 = vrot.slane %v3142_v41, 5  ;;  %v2716_v40 = vrot.slane %v2714_v12, 5  ;;  %v2726_v41 = vrot.slane %v2724_v59, 4 }
 0x1eb   : > { %v3155_v51 = vor.u32 %v3154_v25, %v3150_v63 }
 0x1ec   : > { %v3145_v22 = vor.u32 %v3144_v43, %v3141_v29  ;;  %v2717_v61 = vor.u32 %v2716_v40, %v2713_v33  ;;  %v2991_v43 = vld [vmem:[%s6033_s21 + $0x54] sm:$0xf] }
 0x1ed   : > { %v3156_v3 = vrot.slane %v3155_v51, 4  ;;  %v3163_v25 = vshrl.u32 %v2991_v43, 16 }
 0x1ee   : > { %v6365_v21 = vpop.f32.mrf.mxu0  ;;  %v3146_v46 = vrot.slane %v3145_v22, 4  ;;  %v2718_v26 = vrot.slane %v2717_v61, 4 }
 0x1ef   : > { %v2224_v30 = vpop.f32.mrf.mxu2  ;;  %v3161_v10 = vsel %vm5244_vm9, %v3156_v3, %v3160_v45  ;;  %v3165_v45 = vrot.slane %v3163_v25, 4  ;;  %v6848_v3 = vld [vmem:[#allocation4_spill] sm:$0xff] }
 0x1f0   : > { %v2251_v36 = vadd.f32 %v2224_v30, %v2028_v4  ;;  %v3151_v9 = vsel %vm5244_vm9, %v3146_v46, %v3150_v63  ;;  %v3203_v54 = vunpack.c.l.b16 %v3161_v10  ;;  %v2993_v63 = vld [vmem:[%s6033_s21 + $0x5c] sm:$0x1]  ;;  %v3166_v4 = vshll.u32 %v2991_v43, 16 }
 0x1f1   : > { %3983 = vmatmul.msk.bf16.gmra.mxu0 %vm1834_vm12, %v5845_v50  ;;  %v6372_v37 = vpop.f32.mrf.mxu1  ;;  %v3202_v50 = vunpack.c.l.b16 %v3151_v9  ;;  %v3172_v30 = vshll.u32 %v2992_v8, 16  ;;  %v3182_v51 = vshll.u32 %v2993_v63, 16  ;;  %v6851_v63 = vld [vmem:[#allocation3_spill] sm:$0xff] }
 0x1f2   : > { %v6376_v14 = vadd.f32 %v2330_v44, %v2251_v36  ;;  %v2335_v38 = vpop.f32.mrf.mxu3  ;;  %v2722_v44 = vrot.slane %v2720_v57, 5  ;;  %v3168_v32 = vrot.slane %v3166_v4, 5  ;;  %v2482_v4 = vadd.f32 %v6206_v18, %v6272_v53 }
 0x1f3   : > { %v3212_v60 = vpack.c.b16 %v3203_v54, %v3202_v50  ;;  %v3174_v36 = vrot.slane %v3172_v30, 5  ;;  %v3184_v50 = vrot.slane %v3182_v51, 5 }
 0x1f4   : > { %3918 = vmatmul.msk.bf16.gmra.mxu2 %vm1834_vm12, %v5739_v47  ;;  %v2730_v47 = vshll.u32 %v6382_v13, 16  ;;  %v2727_v35 = vor.u32 %v2726_v41, %v2722_v44  ;;  %v2723_v46 = vsel %vm5244_vm9, %v2718_v26, %v2722_v44  ;;  %v3169_v9 = vor.u32 %v3168_v32, %v3165_v45 }
 0x1f5   : > { %v2743_v61 = vunpack.c.l.b16 %v2723_v46 }
 0x1f6   : > { %v6388_v27 = vpop.f32.mrf.mxu0  ;;  %4000 = vmatmul.msk.bf16.gmra.mxu1 %vm3226_vm6, %v3212_v60  ;;  %v2732_v22 = vrot.slane %v2730_v47, 5  ;;  %v2728_v40 = vrot.slane %v2727_v35, 4  ;;  %v3170_v41 = vrot.slane %v3169_v9, 4  ;;  %v2841_v47 = vrot.slane %v6361_v5, 5 }
 0x1f7   : > { %v2227_v12 = vpop.f32.mrf.mxu2  ;;  %3951 = vmatmul.msk.bf16.gmra.mxu3 %vm1834_vm12, %v6055_v39  ;;  %v3176_v39 = vshrl.u32 %v2992_v8, 16  ;;  %v3953_v8 = vrot.slane %v6345_v0, 9 }
 0x1f8   : > { %v2252_v34 = vadd.f32 %v2227_v12, %v5997_v23  ;;  %v2481_v23 = vadd.f32 %v6184_v2, %v6218_v17  ;;  %v2733_v2 = vsel %vm5244_vm9, %v2728_v40, %v2732_v22  ;;  %v6849_v17 = vld [vmem:[#allocation12_spill] sm:$0xff]  ;;  %v3175_v35 = vsel %vm5244_vm9, %v3170_v41, %v3174_v36  ;;  %v6856_v41 = vld [vmem:[#allocation5_spill] sm:$0xff] }
 0x1f9   : > { %v6398_v49 = vpop.f32.mrf.mxu1  ;;  %v3178_v33 = vrot.slane %v3176_v39, 4  ;;  %v3204_v25 = vunpack.c.l.b16 %v3175_v35  ;;  %v2844_v39 = vrot.slane %v6382_v13, 5  ;;  %v2843_v32 = vrot.slane %v2841_v47, 4 }
 0x1fa   : > { %v6400_v62 = vadd.f32 %v2333_v24, %v2252_v34  ;;  %v2338_v29 = vpop.f32.mrf.mxu3  ;;  %v6412_v57 = vadd.f32 %v6848_v3, %v2481_v23  ;;  %v2744_v34 = vunpack.c.l.b16 %v2733_v2  ;;  %v6852_v23 = vld [vmem:[#allocation6_spill] sm:$0xff]  ;;  %v2842_v46 = vsel %vm5735_vm7, %v3953_v8, %v2841_v47  ;;  %v6857_v8 = vld [vmem:[#allocation11_spill] sm:$0xff] }
 0x1fb   : > { %v3179_v10 = vor.u32 %v3178_v33, %v3174_v36  ;;  %v6437_v45 = vadd.f32 %v6852_v23, %v2482_v4  ;;  %v6853_v36 = vld [vmem:[#allocation9_spill] sm:$0xff]  ;;  %v2845_v18 = vsel %vm5735_vm7, %v2843_v32, %v2844_v39  ;;  %v2855_v3 = vunpack.c.l.b16 %v2842_v46  ;;  %v6859_v32 = vld [vmem:[#allocation2_spill] sm:$0xff] }
 0x1fc   : > { %v2745_v30 = vpack.c.b16 %v2744_v34, %v2743_v61  ;;  %v2856_v9 = vunpack.c.l.b16 %v2845_v18  ;;  %v3316_v23 = vstv %s4439_s16  ;;  %vm3361_vm7 = vcmask 1040384  }
 0x1fd   : > { %v3180_v60 = vrot.slane %v3179_v10, 4 }
 0x1fe   : > { %v6407_v24 = vpop.f32.mrf.mxu0  ;;  %v2857_v61 = vpack.c.b16 %v2856_v9, %v2855_v3 }
 0x1ff   : > { %v2229_v59 = vpop.f32.mrf.mxu2  ;;  %v3185_v43 = vsel %vm5244_vm9, %v3180_v60, %v3184_v50  ;;  %v2615_v50 = vunpack.c.l.b16 %v6345_v0  ;;  %v2484_v0 = vadd.f32 %v6295_v42, %v6352_v52  ;;  %v6858_v52 = vld [vmem:[#allocation7_spill] sm:$0xff] }
 0x200   : > { %v2253_v54 = vadd.f32 %v2229_v59, %v6849_v17  ;;  %v2483_v59 = vadd.f32 %v6244_v48, %v6322_v16  ;;  %v6855_v17 = vld [vmem:[#allocation10_spill] sm:$0xff] }
 0x201   : > { %3984 = vmatmul.msk.bf16.gmra.mxu0 %vm1834_vm12, %v6850_v11  ;;  %v6422_v26 = vpop.f32.mrf.mxu1 }
 0x202   : > { %v6419_v12 = vadd.f32 %v2335_v38, %v2253_v54  ;;  %v2340_v44 = vpop.f32.mrf.mxu3  ;;  %v3205_v38 = vunpack.c.l.b16 %v3185_v43  ;;  %v6456_v54 = vadd.f32 %v6855_v17, %v2483_v59  ;;  %v6469_v43 = vadd.f32 %v6214_v28, %v2484_v0 }
 0x203   : > { %v6860_v59 = vmov 0.0  }
 0x204   : > { %3919 = vmatmul.msk.bf16.gmra.mxu2 %vm1834_vm12, %v6851_v63  ;;  %v3213_v51 = vpack.c.b16 %v3205_v38, %v3204_v25  ;;  %v2485_v38 = vadd.f32 %v6336_v20, %v6376_v14 }
 0x206   : > { %v6434_v22 = vpop.f32.mrf.mxu0  ;;  %4001 = vmatmul.msk.bf16.gmra.mxu1 %vm3226_vm6, %v3213_v51  ;;  %v6477_v39 = vadd.f32 %v6266_v15, %v2485_v38  ;;  %vm3428_vm6 = vcmask 517120  }
 0x207   : > { %v2232_v56 = vpop.f32.mrf.mxu2  ;;  %3952 = vmatmul.msk.bf16.gmra.mxu3 %vm1834_vm12, %v2745_v30 }
 0x208   : > { %v2254_v33 = vadd.f32 %v2232_v56, %v6853_v36  ;;  %v3317_v36 = vadd.s32 %v3316_v23, %v6859_v32 }
 0x209   : > { %v6450_v10 = vpop.f32.mrf.mxu1 }
 0x20a   : > { %v6446_v53 = vadd.f32 %v2338_v29, %v2254_v33  ;;  %v2343_v13 = vpop.f32.mrf.mxu3  ;;  %v2616_v29 = vunpack.c.l.b16 %v6361_v5  ;;  %v2486_v33 = vadd.f32 %v6365_v21, %v6400_v62  ;;  %vm3318_vm9 = vcmp.lt.s32.totalorder %v3317_v36, 16 }
 0x20b   : > { %v6496_v9 = vsel %vm3318_vm9, 1.0, %v6860_v59 }
 0x20c   : > { %v2617_v48 = vpack.c.b16 %v2616_v29, %v2615_v50  ;;  %v6487_v20 = vadd.f32 %v6313_v6, %v2486_v33  ;;  %v2487_v6 = vadd.f32 %v6388_v27, %v6419_v12 }
 0x20e   : > { %v6453_v2 = vpop.f32.mrf.mxu0  ;;  %v6503_v17 = vadd.f32 %v6349_v31, %v2487_v6  ;;  %v2488_v31 = vadd.f32 %v6407_v24, %v6446_v53 }
 0x20f   : > { %v2234_v11 = vpop.f32.mrf.mxu2 }
 0x210   : > { %v2255_v60 = vadd.f32 %v2234_v11, %v6856_v41 }
 0x211   : > { %3985 = vmatmul.msk.bf16.gmra.mxu0 %vm1834_vm12, %v2857_v61  ;;  %v3260_v34 = vpop.f32.mrf.mxu1 }
 0x212   : > { %v6461_v47 = vadd.f32 %v2340_v44, %v2255_v60  ;;  %v2345_v16 = vpop.f32.mrf.mxu3 }
 0x214   : > { %3920 = vmatmul.msk.bf16.gmra.mxu2 %vm1834_vm12, %v2617_v48 }
 0x216   : > { %v6466_v35 = vpop.f32.mrf.mxu0 }
 0x217   : > { %v2237_v5 = vpop.f32.mrf.mxu2 }
 0x218   : > { %v2256_v63 = vadd.f32 %v2237_v5, %v6857_v8  ;;  %v6517_v5 = vadd.f32 %v6372_v37, %v2488_v31  ;;  %v3322_v37 = vperm.slane %v6496_v9, 1 }
 0x219   : > { %v3262_v4 = vpop.f32.mrf.mxu1 }
 0x21a   : > { %v6472_v25 = vadd.f32 %v2343_v13, %v2256_v63  ;;  %v2782_v44 = vpop.f32.mrf.mxu3  ;;  %v6493_v13 = vld [vmem:[%s6661_s6] ss:$0 sm:$0xff] }
 0x21c   : > { %v2490_v59 = vadd.f32 %v6453_v2, %v6472_v25 }
 0x21e   : > { %v2894_v30 = vpop.f32.mrf.mxu0 }
 0x21f   : > { %v2239_v42 = vpop.f32.mrf.mxu2 }
 0x220   : > { %v2257_v51 = vadd.f32 %v2239_v42, %v6858_v52 }
 0x222   : > { %v6481_v28 = vadd.f32 %v2345_v16, %v2257_v51  ;;  %v2784_v56 = vpop.f32.mrf.mxu3  ;;  %v3265_v40 = vpop.f32.mrf.mxu1  ;;  %v2489_v51 = vadd.f32 %v6434_v22, %v6461_v47 }
 0x224   : > { %v6529_v32 = vadd.f32 %v6398_v49, %v2489_v51 }
 0x226   : > { %v2896_v46 = vpop.f32.mrf.mxu0 }
 0x227   : > { %v2654_v14 = vpop.f32.mrf.mxu2 }
 0x228   : > { %v2694_v15 = vadd.f32 %v2654_v14, %v6247_v58  ;;  %v3321_v58 = vperm.slane %v6496_v9, 0 }
 0x22a   : > { %v2822_v18 = vadd.f32 %v2782_v44, %v2694_v15  ;;  %v2787_v3 = vpop.f32.mrf.mxu3  ;;  %v3267_v61 = vpop.f32.mrf.mxu1 }
 0x22c   : > { %v2934_v21 = vadd.f32 %v2894_v30, %v2822_v18 }
 0x22e   : > { %v2954_v62 = vadd.f32 %v6493_v13, %v2934_v21  ;;  %v2899_v50 = vpop.f32.mrf.mxu0 }
 0x22f   : > { %v2656_v11 = vpop.f32.mrf.mxu2 }
 0x230   : > { %v3300_v29 = vadd.f32 %v3260_v34, %v2954_v62  ;;  %v2695_v41 = vadd.f32 %v2656_v11, %v6298_v55  ;;  %v6541_v62 = vadd.f32 %v6422_v26, %v2490_v59 }
 0x232   : > { %v3329_v60 = vmul.f32 %v3321_v58, %v3300_v29  ;;  %v2823_v48 = vadd.f32 %v2784_v56, %v2695_v41  ;;  %v2789_v16 = vpop.f32.mrf.mxu3  ;;  %v3270_v38 = vpop.f32.mrf.mxu1  ;;  %v2491_v41 = vadd.f32 %v6466_v35, %v6481_v28 }
 0x234   : > { %v3362_v27 = vrot.slane %v3329_v60, 7  ;;  %v2935_v12 = vadd.f32 %v2896_v46, %v2823_v48  ;;  %v3323_v60 = vperm.slane %v6496_v9, 2 }
 0x236   : > { %v3410_v0 = vsel %vm3361_vm7, 0.0, %v3362_v27  ;;  %v2955_v55 = vadd.f32 %v6493_v13, %v2935_v12  ;;  %v2901_v34 = vpop.f32.mrf.mxu0 }
 0x237   : > { %3426 = vst.msk [vmem:[%s6510_s10] sm:$0xff] %vm1834_vm12, %v3410_v0  ;;  %v2659_v8 = vpop.f32.mrf.mxu2 }
 0x238   : > { %v3301_v63 = vadd.f32 %v3262_v4, %v2955_v55  ;;  %v2696_v44 = vadd.f32 %v2659_v8, %v6339_v19 }
 0x23a   : > { %v3330_v30 = vmul.f32 %v3321_v58, %v3301_v63  ;;  %v2824_v42 = vadd.f32 %v2787_v3, %v2696_v44  ;;  %v2792_v24 = vpop.f32.mrf.mxu3  ;;  %v3272_v15 = vpop.f32.mrf.mxu1 }
 0x23c   : > { %v3363_v53 = vrot.slane %v3330_v30, 7  ;;  %v2936_v52 = vadd.f32 %v2899_v50, %v2824_v42 }
 0x23e   : > { %v3364_v23 = vsel %vm3361_vm7, %v3362_v27, %v3363_v53  ;;  %v3418_v4 = vsel %vm3361_vm7, %v3363_v53, 0.0  ;;  %v2956_v56 = vadd.f32 %v6493_v13, %v2936_v52  ;;  %v2904_v19 = vpop.f32.mrf.mxu0  ;;  %v6553_v27 = vadd.f32 %v6450_v10, %v2491_v41 }
 0x23f   : > { %3427 = vst.msk [vmem:[%s6510_s10 + $0x8] sm:$0xff] %vm1834_vm12, %v3364_v23  ;;  %v2661_v36 = vpop.f32.mrf.mxu2 }
 0x240   : > { %3429 = vst.msk [vmem:[%s6510_s10 + $0x10] sm:$0x3] %vm3428_vm6, %v3418_v4  ;;  %v3302_v22 = vadd.f32 %v3265_v40, %v2956_v56  ;;  %v2697_v47 = vadd.f32 %v2661_v36, %v6368_v1 }
 0x242   : > { %v3331_v33 = vmul.f32 %v3322_v37, %v3302_v22  ;;  %v2825_v46 = vadd.f32 %v2789_v16, %v2697_v47  ;;  %v2794_v14 = vpop.f32.mrf.mxu3  ;;  %v3275_v26 = vpop.f32.mrf.mxu1 }
 0x244   : > { %v3365_v18 = vrot.slane %v3331_v33, 7  ;;  %v2937_v3 = vadd.f32 %v2901_v34, %v2825_v46 }
 0x246   : > { %v3411_v49 = vsel %vm3361_vm7, 0.0, %v3365_v18  ;;  %v2957_v21 = vadd.f32 %v6493_v13, %v2937_v3  ;;  %v2906_v6 = vpop.f32.mrf.mxu0 }
 0x247   : > { %3430 = vst.msk [vmem:[%s6510_s10 + $0x18] sm:$0xff] %vm1834_vm12, %v3411_v49  ;;  %v2664_v1 = vpop.f32.mrf.mxu2 }
 0x248   : > { %v3303_v40 = vadd.f32 %v3267_v61, %v2957_v21  ;;  %v2698_v58 = vadd.f32 %v2664_v1, %v6391_v7 }
 0x24a   : > { %v3332_v50 = vmul.f32 %v3322_v37, %v3303_v40  ;;  %v2826_v11 = vadd.f32 %v2792_v24, %v2698_v58  ;;  %v2797_v29 = vpop.f32.mrf.mxu3  ;;  %v3277_v42 = vpop.f32.mrf.mxu1 }
 0x24c   : > { %v3366_v2 = vrot.slane %v3332_v50, 7  ;;  %v2938_v25 = vadd.f32 %v2904_v19, %v2826_v11  ;;  %v3324_v19 = vperm.slane %v6496_v9, 3 }
 0x24e   : > { %v3367_v48 = vsel %vm3361_vm7, %v3365_v18, %v3366_v2  ;;  %v3419_v16 = vsel %vm3361_vm7, %v3366_v2, 0.0  ;;  %v2958_v61 = vadd.f32 %v6493_v13, %v2938_v25  ;;  %v2909_v7 = vpop.f32.mrf.mxu0 }
 0x24f   : > { %3431 = vst.msk [vmem:[%s6510_s10 + $0x20] sm:$0xff] %vm1834_vm12, %v3367_v48  ;;  %v2666_v12 = vpop.f32.mrf.mxu2 }
 0x250   : > { %3432 = vst.msk [vmem:[%s6510_s10 + $0x28] sm:$0x3] %vm3428_vm6, %v3419_v16  ;;  %v3304_v35 = vadd.f32 %v3270_v38, %v2958_v61  ;;  %v2699_v28 = vadd.f32 %v2666_v12, %v6412_v57 }
 0x252   : > { %v3333_v31 = vmul.f32 %v3323_v60, %v3304_v35  ;;  %v2827_v0 = vadd.f32 %v2794_v14, %v2699_v28  ;;  %v2799_v55 = vpop.f32.mrf.mxu3 }
 0x253   : > { %v3280_v33 = vpop.f32.mrf.mxu1 }
 0x254   : > { %v3368_v34 = vrot.slane %v3333_v31, 7  ;;  %v2939_v8 = vadd.f32 %v2906_v6, %v2827_v0 }
 0x256   : > { %v3412_v63 = vsel %vm3361_vm7, 0.0, %v3368_v34  ;;  %v2959_v44 = vadd.f32 %v6493_v13, %v2939_v8  ;;  %v2911_v30 = vpop.f32.mrf.mxu0 }
 0x257   : > { %3433 = vst.msk [vmem:[%s6510_s10 + $0x30] sm:$0xff] %vm1834_vm12, %v3412_v63  ;;  %v2669_v10 = vpop.f32.mrf.mxu2 }
 0x258   : > { %v3305_v24 = vadd.f32 %v3272_v15, %v2959_v44  ;;  %v2700_v38 = vadd.f32 %v2669_v10, %v6437_v45 }
 0x25a   : > { %v3334_v57 = vmul.f32 %v3323_v60, %v3305_v24  ;;  %v2828_v53 = vadd.f32 %v2797_v29, %v2700_v38  ;;  %v2802_v52 = vpop.f32.mrf.mxu3  ;;  %v3325_v60 = vperm.slane %v6496_v9, 4 }
 0x25b   : > { %v3282_v50 = vpop.f32.mrf.mxu1 }
 0x25c   : > { %v3369_v51 = vrot.slane %v3334_v57, 7  ;;  %v2940_v37 = vadd.f32 %v2909_v7, %v2828_v53 }
 0x25e   : > { %v3370_v23 = vsel %vm3361_vm7, %v3368_v34, %v3369_v51  ;;  %v3420_v4 = vsel %vm3361_vm7, %v3369_v51, 0.0  ;;  %v2960_v56 = vadd.f32 %v6493_v13, %v2940_v37  ;;  %v2914_v36 = vpop.f32.mrf.mxu0 }
 0x25f   : > { %3434 = vst.msk [vmem:[%s6510_s10 + $0x38] sm:$0xff] %vm1834_vm12, %v3370_v23  ;;  %v2671_v22 = vpop.f32.mrf.mxu2 }
 0x260   : > { %3435 = vst.msk [vmem:[%s6510_s10 + $0x40] sm:$0x3] %vm3428_vm6, %v3420_v4  ;;  %v3306_v45 = vadd.f32 %v3275_v26, %v2960_v56  ;;  %v2701_v47 = vadd.f32 %v2671_v22, %v6456_v54 }
 0x262   : > { %v3335_v46 = vmul.f32 %v3324_v19, %v3306_v45  ;;  %v2829_v14 = vadd.f32 %v2799_v55, %v2701_v47  ;;  %v2804_v3 = vpop.f32.mrf.mxu3 }
 0x263   : > { %v3285_v31 = vpop.f32.mrf.mxu1 }
 0x264   : > { %v3371_v15 = vrot.slane %v3335_v46, 7  ;;  %v2941_v18 = vadd.f32 %v2911_v30, %v2829_v14 }
 0x266   : > { %v3413_v59 = vsel %vm3361_vm7, 0.0, %v3371_v15  ;;  %v2961_v49 = vadd.f32 %v6493_v13, %v2941_v18  ;;  %v2916_v6 = vpop.f32.mrf.mxu0 }
 0x267   : > { %3436 = vst.msk [vmem:[%s6510_s10 + $0x48] sm:$0xff] %vm1834_vm12, %v3413_v59  ;;  %v2674_v21 = vpop.f32.mrf.mxu2 }
 0x268   : > { %v3307_v1 = vadd.f32 %v3277_v42, %v2961_v49  ;;  %v2702_v40 = vadd.f32 %v2674_v21, %v6469_v43 }
 0x26a   : > { %v3336_v54 = vmul.f32 %v3324_v19, %v3307_v1  ;;  %v2830_v58 = vadd.f32 %v2802_v52, %v2702_v40  ;;  %v2807_v26 = vpop.f32.mrf.mxu3  ;;  %v3326_v52 = vperm.slane %v6496_v9, 5 }
 0x26b   : > { %v3287_v37 = vpop.f32.mrf.mxu1 }
 0x26c   : > { %v3372_v11 = vrot.slane %v3336_v54, 7  ;;  %v2942_v29 = vadd.f32 %v2914_v36, %v2830_v58  ;;  %v3327_v54 = vperm.slane %v6496_v9, 6 }
 0x26e   : > { %v3373_v2 = vsel %vm3361_vm7, %v3371_v15, %v3372_v11  ;;  %v3421_v25 = vsel %vm3361_vm7, %v3372_v11, 0.0  ;;  %v2962_v41 = vadd.f32 %v6493_v13, %v2942_v29  ;;  %v2919_v61 = vpop.f32.mrf.mxu0 }
 0x26f   : > { %3437 = vst.msk [vmem:[%s6510_s10 + $0x50] sm:$0xff] %vm1834_vm12, %v3373_v2  ;;  %v2676_v48 = vpop.f32.mrf.mxu2 }
 0x270   : > { %3438 = vst.msk [vmem:[%s6510_s10 + $0x58] sm:$0x3] %vm3428_vm6, %v3421_v25  ;;  %v3308_v43 = vadd.f32 %v3280_v33, %v2962_v41  ;;  %v2703_v16 = vadd.f32 %v2676_v48, %v6477_v39 }
 0x272   : > { %v3337_v7 = vmul.f32 %v3325_v60, %v3308_v43  ;;  %v2831_v12 = vadd.f32 %v2804_v3, %v2703_v16  ;;  %v2809_v44 = vpop.f32.mrf.mxu3 }
 0x273   : > { %v3290_v18 = vpop.f32.mrf.mxu1 }
 0x274   : > { %v3374_v35 = vrot.slane %v3337_v7, 7  ;;  %v2943_v28 = vadd.f32 %v2916_v6, %v2831_v12 }
 0x276   : > { %v3414_v0 = vsel %vm3361_vm7, 0.0, %v3374_v35  ;;  %v2963_v55 = vadd.f32 %v6493_v13, %v2943_v28  ;;  %v2921_v10 = vpop.f32.mrf.mxu0 }
 0x277   : > { %3439 = vst.msk [vmem:[%s6510_s10 + $0x60] sm:$0xff] %vm1834_vm12, %v3414_v0  ;;  %v2679_v34 = vpop.f32.mrf.mxu2 }
 0x278   : > { %v3309_v8 = vadd.f32 %v3282_v50, %v2963_v55  ;;  %v2704_v63 = vadd.f32 %v2679_v34, %v6487_v20 }
 0x27a   : > { %v3338_v39 = vmul.f32 %v3325_v60, %v3309_v8  ;;  %v2832_v30 = vadd.f32 %v2807_v26, %v2704_v63  ;;  %v2812_v19 = vpop.f32.mrf.mxu3  ;;  %v3328_v63 = vperm.slane %v6496_v9, 7 }
 0x27b   : > { %v3292_v25 = vpop.f32.mrf.mxu1 }
 0x27c   : > { %v3375_v42 = vrot.slane %v3338_v39, 7  ;;  %v2944_v24 = vadd.f32 %v2919_v61, %v2832_v30 }
 0x27e   : > { %v3376_v38 = vsel %vm3361_vm7, %v3374_v35, %v3375_v42  ;;  %v3422_v57 = vsel %vm3361_vm7, %v3375_v42, 0.0  ;;  %v2964_v53 = vadd.f32 %v6493_v13, %v2944_v24  ;;  %v2924_v45 = vpop.f32.mrf.mxu0 }
 0x27f   : > { %3440 = vst.msk [vmem:[%s6510_s10 + $0x68] sm:$0xff] %vm1834_vm12, %v3376_v38  ;;  %v2681_v51 = vpop.f32.mrf.mxu2 }
 0x280   : > { %3441 = vst.msk [vmem:[%s6510_s10 + $0x70] sm:$0x3] %vm3428_vm6, %v3422_v57  ;;  %v3310_v20 = vadd.f32 %v3285_v31, %v2964_v53  ;;  %v2705_v23 = vadd.f32 %v2681_v51, %v6503_v17 }
 0x282   : > { %v3339_v4 = vmul.f32 %v3326_v52, %v3310_v20  ;;  %v2833_v56 = vadd.f32 %v2809_v44, %v2705_v23  ;;  %v2814_v21 = vpop.f32.mrf.mxu3 }
 0x283   : > { %v3295_v0 = vpop.f32.mrf.mxu1 }
 0x284   : > { %v3377_v36 = vrot.slane %v3339_v4, 7  ;;  %v2945_v22 = vadd.f32 %v2921_v10, %v2833_v56 }
 0x286   : > { %v3415_v47 = vsel %vm3361_vm7, 0.0, %v3377_v36  ;;  %v2965_v33 = vadd.f32 %v6493_v13, %v2945_v22  ;;  %v2926_v58 = vpop.f32.mrf.mxu0 }
 0x287   : > { %3442 = vst.msk [vmem:[%s6510_s10 + $0x78] sm:$0xff] %vm1834_vm12, %v3415_v47  ;;  %v2684_v46 = vpop.f32.mrf.mxu2 }
 0x288   : > { %v3311_v14 = vadd.f32 %v3287_v37, %v2965_v33  ;;  %v2706_v15 = vadd.f32 %v2684_v46, %v6517_v5 }
 0x28a   : > { %v3340_v17 = vmul.f32 %v3326_v52, %v3311_v14  ;;  %v2834_v3 = vadd.f32 %v2812_v19, %v2706_v15  ;;  %v2817_v43 = vpop.f32.mrf.mxu3 }
 0x28b   : > { %v3297_v52 = vpop.f32.mrf.mxu1 }
 0x28c   : > { %v3378_v59 = vrot.slane %v3340_v17, 7  ;;  %v2946_v49 = vadd.f32 %v2924_v45, %v2834_v3 }
 0x28e   : > { %v3379_v6 = vsel %vm3361_vm7, %v3377_v36, %v3378_v59  ;;  %v3423_v1 = vsel %vm3361_vm7, %v3378_v59, 0.0  ;;  %v2966_v40 = vadd.f32 %v6493_v13, %v2946_v49  ;;  %v2929_v12 = vpop.f32.mrf.mxu0 }
 0x28f   : > { %3443 = vst.msk [vmem:[%s6510_s10 + $0x80] sm:$0xff] %vm1834_vm12, %v3379_v6  ;;  %v2686_v50 = vpop.f32.mrf.mxu2 }
 0x290   : > { %3444 = vst.msk [vmem:[%s6510_s10 + $0x88] sm:$0x3] %vm3428_vm6, %v3423_v1  ;;  %v3312_v5 = vadd.f32 %v3290_v18, %v2966_v40  ;;  %v2707_v11 = vadd.f32 %v2686_v50, %v6529_v32 }
 0x292   : > { %v3341_v29 = vmul.f32 %v3327_v54, %v3312_v5  ;;  %v2835_v2 = vadd.f32 %v2814_v21, %v2707_v11  ;;  %v2819_v30 = vpop.f32.mrf.mxu3 }
 0x294   : > { %v3380_v41 = vrot.slane %v3341_v29, 7  ;;  %v2947_v60 = vadd.f32 %v2926_v58, %v2835_v2 }
 0x296   : > { %v3416_v26 = vsel %vm3361_vm7, 0.0, %v3380_v41  ;;  %v2967_v48 = vadd.f32 %v6493_v13, %v2947_v60  ;;  %v2931_v24 = vpop.f32.mrf.mxu0 }
 0x297   : > { %3445 = vst.msk [vmem:[%s6510_s10 + $0x90] sm:$0xff] %vm1834_vm12, %v3416_v26  ;;  %v2689_v16 = vpop.f32.mrf.mxu2 }
 0x298   : > { %v3313_v61 = vadd.f32 %v3292_v25, %v2967_v48  ;;  %v2708_v7 = vadd.f32 %v2689_v16, %v6541_v62 }
 0x29a   : > { %v3342_v32 = vmul.f32 %v3327_v54, %v3313_v61  ;;  %v2836_v35 = vadd.f32 %v2817_v43, %v2708_v7 }
 0x29c   : > { %v3381_v28 = vrot.slane %v3342_v32, 7  ;;  %v2948_v31 = vadd.f32 %v2929_v12, %v2836_v35 }
 0x29e   : > { %v3382_v55 = vsel %vm3361_vm7, %v3380_v41, %v3381_v28  ;;  %v3424_v34 = vsel %vm3361_vm7, %v3381_v28, 0.0  ;;  %v2968_v8 = vadd.f32 %v6493_v13, %v2948_v31 }
 0x29f   : > { %3446 = vst.msk [vmem:[%s6510_s10 + $0x98] sm:$0xff] %vm1834_vm12, %v3382_v55  ;;  %v2691_v44 = vpop.f32.mrf.mxu2 }
 0x2a0   : > { %3447 = vst.msk [vmem:[%s6510_s10 + $0xa0] sm:$0x3] %vm3428_vm6, %v3424_v34  ;;  %v3314_v62 = vadd.f32 %v3295_v0, %v2968_v8  ;;  %v2709_v39 = vadd.f32 %v2691_v44, %v6553_v27 }
 0x2a2   : > { %v3343_v10 = vmul.f32 %v3328_v63, %v3314_v62  ;;  %v2837_v42 = vadd.f32 %v2819_v30, %v2709_v39 }
 0x2a4   : > { %v3383_v38 = vrot.slane %v3343_v10, 7  ;;  %v2949_v57 = vadd.f32 %v2931_v24, %v2837_v42 }
 0x2a6   : > { %v3417_v53 = vsel %vm3361_vm7, 0.0, %v3383_v38  ;;  %v2969_v9 = vadd.f32 %v6493_v13, %v2949_v57 }
 0x2a7   : > { %3448 = vst.msk [vmem:[%s6510_s10 + $0xa8] sm:$0xff] %vm1834_vm12, %v3417_v53 }
 0x2a8   : > { %v3315_v51 = vadd.f32 %v3297_v52, %v2969_v9 }
 0x2aa   : > { %v3344_v37 = vmul.f32 %v3328_v63, %v3315_v51 }
 0x2ac   : > { %v3384_v20 = vrot.slane %v3344_v37, 7 }
 0x2ae   : > { %v3385_v27 = vsel %vm3361_vm7, %v3383_v38, %v3384_v20  ;;  %v3425_v23 = vsel %vm3361_vm7, %v3384_v20, 0.0 }
 0x2af   : > { %3449 = vst.msk [vmem:[%s6510_s10 + $0xb0] sm:$0xff] %vm1834_vm12, %v3385_v27 }
 0x2b0   : > { %3450 = vst.msk [vmem:[%s6510_s10 + $0xb8] sm:$0x3] %vm3428_vm6, %v3425_v23 }
 0x2b1 PF: > { %s19_s13 = sadd.s32 1, %s4356_s13   ;;  %s6861_s30 = smov %s4348_s11 }
 0x2b2   : > { %p16_p10 = scmp.ge.s32.totalorder %s19_s13, 6   ;;  %s6862_s10 = smov %s4352_s12 }
 0x2b3   : > { %s6863_s11 = smov %s6866_s14  ;;  %s6864_s12 = smov %s6870_s15 }
 0x2b4   :  { %18 = sbr.rel (!%p16_p10) target bundleno = 3 (0x3), region = 109 }

</bundles_post_ra>
